<compile_context>
chip_gen: v5e
topology: v5e:2x2
jax: 0.10.0
libtpu: 0.0.40
codegen_flags: <defaults>
</compile_context>

<pallas_src>
import functools
import numpy as np

import jax
import jax.numpy as jnp
from jax.experimental import pallas as pl
from jax.experimental.pallas import tpu as pltpu


# ----------------------------- small helpers ---------------------------------

def _vmem_limit_bytes():
    # Generation-aware scoped-VMEM ceiling (review #5).  Actual footprint of
    # this kernel is ~1-2 MiB, so these are just safe upper bounds.
    try:
        kind = jax.devices()[0].device_kind.lower()
    except Exception:
        kind = ""
    if "v7" in kind or "7x" in kind:
        return 48 * 1024 * 1024          # 64 MiB/TC physical on v7x
    if "v5" in kind or "v6" in kind:
        return 100 * 1024 * 1024         # 128 MiB physical on v5e/v6e
    return 32 * 1024 * 1024              # conservative default


def _layernorm_f32(x, g, b, eps):
    mu = jnp.mean(x, axis=-1, keepdims=True)
    xc = x - mu
    var = jnp.mean(xc * xc, axis=-1, keepdims=True)
    return xc * jax.lax.rsqrt(var + eps) * g + b


def _gelu_tanh(x):
    # tanh-approx GELU: transcendental lands on the EUP slot.
    # TODO(synk): torch nn.GELU() default is exact erf; tanh approx differs ~1e-3.
    # TODO(synk): on v6e/v7x this chain could run in bf16 for ~2x VPU/EUP rate.
    c = 0.7978845608028654  # sqrt(2/pi)
    return 0.5 * x * (1.0 + jnp.tanh(c * (x + 0.044715 * x * x * x)))


# ----------------------------- the fused kernel -------------------------------

def _nat_forward_kernel(xp_ref, pw_ref, pb_ref, plg_ref, plb_ref,
                        ln1g_ref, ln1b_ref, qkvw_ref, qkvb_ref, bias_ref,
                        projw_ref, projb_ref, ln2g_ref, ln2b_ref,
                        fc1w_ref, fc1b_ref, fc2w_ref, fc2b_ref,
                        ng_ref, nb_ref, hw_ref, hb_ref, o_ref,
                        *, depth, num_heads, head_dim, eps):
    C = num_heads * head_dim
    bf16 = jnp.bfloat16

    # ---- patch embed: Conv2d(k=stride=patch) as matmul + patch LayerNorm ----
    y = jnp.dot(xp_ref[...], pw_ref[...],
                preferred_element_type=jnp.float32) + pb_ref[...]
    x = _layernorm_f32(y, plg_ref[...], plb_ref[...], eps)          # (N, C) f32
    # pos_drop / attn_drop / drop_path: identity in eval mode.

    # ---- transformer layers (depth statically unrolled) ----
    for d in range(depth):
        # LN1 -> lane-dense QKV projection (q-scale pre-folded into weights)
        h1 = _layernorm_f32(x, ln1g_ref[d], ln1b_ref[d], eps).astype(bf16)
        qkv = jnp.dot(h1, qkvw_ref[d],
                      preferred_element_type=jnp.float32) + qkvb_ref[d]   # (N, 3C)

        pw = projw_ref[d]                                   # (C, C) f32 proj weight
        attn = jnp.zeros_like(x)                            # f32 accumulator
        for h in range(num_heads):
            lo = h * head_dim
            q = qkv[:, lo:lo + head_dim].astype(bf16)                    # (N, Dh)
            k = qkv[:, C + lo:C + lo + head_dim].astype(bf16)
            v = qkv[:, 2 * C + lo:2 * C + lo + head_dim].astype(bf16)
            # neighborhood attention == full attention + additive bias/mask
            s = jax.lax.dot_general(q, k, (((1,), (1,)), ((), ())),
                                    preferred_element_type=jnp.float32)  # (N, N)
            s = s + bias_ref[d * num_heads + h]
            p = jnp.exp(s - jnp.max(s, axis=-1, keepdims=True))
            inv = pl.reciprocal(jnp.sum(p, axis=-1, keepdims=True), approx=True)
            # normalise AFTER the PV matmul (N*Dh instead of N*N multiplies)
            ctx = jnp.dot(p.astype(bf16), v,
                          preferred_element_type=jnp.float32) * inv       # (N, Dh)
            # block-row decomposition of the dense output projection
            attn = attn + jnp.dot(ctx.astype(bf16),
                                  pw[lo:lo + head_dim, :].astype(bf16),
                                  preferred_element_type=jnp.float32)
        x = x + attn + projb_ref[d]

        # LN2 -> FC1 -> GELU(tanh) -> FC2 -> residual
        h2 = _layernorm_f32(x, ln2g_ref[d], ln2b_ref[d], eps).astype(bf16)
        h2 = jnp.dot(h2, fc1w_ref[d],
                     preferred_element_type=jnp.float32) + fc1b_ref[d]
        h2 = _gelu_tanh(h2)
        h2 = jnp.dot(h2.astype(bf16), fc2w_ref[d],
                     preferred_element_type=jnp.float32) + fc2b_ref[d]
        x = x + h2

    # ---- final LN -> AdaptiveAvgPool1d(1) over tokens -> classifier head ----
    hN = _layernorm_f32(x, ng_ref[...], nb_ref[...], eps)
    pooled = jnp.mean(hN, axis=0, keepdims=True).astype(bf16)        # (1, C)
    logits = jnp.dot(pooled, hw_ref[...],
                     preferred_element_type=jnp.float32) + hb_ref[...]
    o_ref[...] = logits.astype(o_ref.dtype)


# ----------------------------- pallas_call wrapper ----------------------------

def nat_isotropic_forward(params, x_img, cfg):
    B, Cin, _, _ = x_img.shape
    p = cfg["patch_size"]
    fm = cfg["img_size"] // p
    H = cfg["num_heads"]
    N = fm * fm
    Kp, C = params["patch_w"].shape
    depth = params["qkv_w"].shape[0]
    hidden = params["fc1_w"].shape[2]
    ncls = params["head_w"].shape[1]
    assert C % H == 0

    # PatchEmbed input: NCHW -> (B, N, Cin*p*p); pre-cast to bf16 (review #8).
    xp = x_img.reshape(B, Cin, fm, p, fm, p).transpose(0, 2, 4, 1, 3, 5)
    xp = xp.reshape(B, N, Cin * p * p).astype(jnp.bfloat16)

    def _const(shape):
        nd = len(shape)
        return pl.BlockSpec(shape, lambda b: (0,) * nd)   # resident, DMA'd once

    kernel = functools.partial(_nat_forward_kernel, depth=depth, num_heads=H,
                               head_dim=C // H, eps=1e-5)
    out = pl.pallas_call(
        kernel,
        out_shape=jax.ShapeDtypeStruct((B, 1, ncls), jnp.float32),
        grid=(B,),
        in_specs=[
            pl.BlockSpec((None, N, Kp), lambda b: (b, 0, 0)),       # patches
            _const((Kp, C)), _const((1, C)), _const((1, C)), _const((1, C)),
            _const((depth, 1, C)), _const((depth, 1, C)),           # ln1 g/b
            _const((depth, C, 3 * C)), _const((depth, 1, 3 * C)),   # qkv w/b
            _const((depth * H, N, N)),                              # NA bias (f32)
            _const((depth, C, C)), _const((depth, 1, C)),           # proj w/b
            _const((depth, 1, C)), _const((depth, 1, C)),           # ln2 g/b
            _const((depth, C, hidden)), _const((depth, 1, hidden)), # fc1 w/b
            _const((depth, hidden, C)), _const((depth, 1, C)),      # fc2 w/b
            _const((1, C)), _const((1, C)),                         # final norm
            _const((C, ncls)), _const((1, ncls)),                   # head
        ],
        out_specs=pl.BlockSpec((None, 1, ncls), lambda b: (b, 0, 0)),
        compiler_params=pltpu.CompilerParams(
            dimension_semantics=("parallel",),
            vmem_limit_bytes=_vmem_limit_bytes()),
    )(xp, params["patch_w"], params["patch_b"],
      params["patch_ln_g"], params["patch_ln_b"],
      params["ln1_g"], params["ln1_b"],
      params["qkv_w"], params["qkv_b"], params["bias"],
      params["proj_w"], params["proj_b"],
      params["ln2_g"], params["ln2_b"],
      params["fc1_w"], params["fc1_b"],
      params["fc2_w"], params["fc2_b"],
      params["norm_g"], params["norm_b"],
      params["head_w"], params["head_b"])
    return out.reshape(B, ncls)


# ----------------- NATTEN neighborhood / rpb index maps (setup glue) ----------

def _window_start(i, length, K, d):
    nb = K // 2
    if d <= 1:
        return max(i - nb, 0) + ((length - i - nb - 1) if i + nb >= length else 0)
    ni = i - nb * d
    if ni < 0:
        return i % d
    if i + nb * d >= length:
        imodd = i % d
        a = (length // d) * d
        b = length - a
        if imodd < b:
            return length - b + imodd - 2 * nb * d
        return a + imodd - K * d
    return ni


def _pb_start(i, length, K, d):
    nb = K // 2
    if d <= 1:
        return nb + ((nb - i) if i < nb else 0) + \
               ((length - i - 1 - nb) if i + nb >= length else 0)
    if i - nb * d < 0:
        return K - 1 - (i // d)
    if i + nb * d >= length:
        return (length - i - 1) // d
    return nb


def build_na_bias(rpb, fm, K, d, mask_value=-1e30):
    """rpb: (heads, 2K-1, 2K-1) -> additive bias (heads, N, N) f32, N = fm*fm."""
    heads = rpb.shape[0]
    N = fm * fm
    qs, ks, ris = [], [], []
    for i in range(fm):
        wsi, pbi = _window_start(i, fm, K, d), _pb_start(i, fm, K, d)
        for j in range(fm):
            wsj, pbj = _window_start(j, fm, K, d), _pb_start(j, fm, K, d)
            qidx = i * fm + j
            for ki in range(K):
                for kj in range(K):
                    key = (wsi + ki * d) * fm + (wsj + kj * d)
                    rp = (pbi + ki) * (2 * K - 1) + (pbj + kj)
                    qs.append(qidx); ks.append(key); ris.append(rp)
    assert len(set(zip(qs, ks))) == len(qs), "duplicate (q,k) neighborhood pair"
    qs, ks, ris = np.asarray(qs), np.asarray(ks), np.asarray(ris)
    rpb_flat = rpb.reshape(heads, -1)
    bias = jnp.full((heads, N, N), mask_value, dtype=jnp.float32)
    bias = bias.at[:, qs, ks].set(rpb_flat[:, ris])
    return bias


# ----------------------------- parameters ------------------------------------

def init_params(key, cfg):
    # TODO(synk): trunc_normal_(std=0.02) replaced by plain normal*0.02 (synthetic init)
    C, Cin, p = cfg["embed_dim"], cfg["in_chans"], cfg["patch_size"]
    H, K, depth = cfg["num_heads"], cfg["kernel_size"], cfg["depth"]
    hidden = int(C * cfg["mlp_ratio"])
    ncls = cfg["num_classes"]
    fm = cfg["img_size"] // p
    Dh = C // H
    scale = Dh ** -0.5 if cfg["qk_scale"] is None else cfg["qk_scale"]
    f32, bf16 = jnp.float32, jnp.bfloat16
    keys = jax.random.split(key, 2 + depth)

    def tn(k, shape):
        return 0.02 * jax.random.normal(k, shape, dtype=f32)

    # fold 1/sqrt(Dh) into the q columns of the fused QKV weight/bias
    qscale = jnp.concatenate([jnp.full((1, C), scale, f32),
                              jnp.ones((1, 2 * C), f32)], axis=1)

    names = ("ln1_g", "ln1_b", "qkv_w", "qkv_b", "bias", "proj_w", "proj_b",
             "ln2_g", "ln2_b", "fc1_w", "fc1_b", "fc2_w", "fc2_b")
    L = {n: [] for n in names}
    for i in range(depth):
        lk = jax.random.split(keys[2 + i], 5)
        dil = 1 if i % 2 == 0 else cfg["dilation"]
        L["ln1_g"].append(jnp.ones((1, C), f32))
        L["ln1_b"].append(jnp.zeros((1, C), f32))
        L["qkv_w"].append(tn(lk[0], (C, 3 * C)) * qscale)
        L["qkv_b"].append(jnp.zeros((1, 3 * C), f32) * qscale)   # qkv_bias=True, init 0
        L["bias"].append(build_na_bias(tn(lk[4], (H, 2 * K - 1, 2 * K - 1)),
                                       fm, K, dil))
        L["proj_w"].append(tn(lk[1], (C, C)))
        L["proj_b"].append(jnp.zeros((1, C), f32))
        L["ln2_g"].append(jnp.ones((1, C), f32))
        L["ln2_b"].append(jnp.zeros((1, C), f32))
        L["fc1_w"].append(tn(lk[2], (C, hidden)))
        L["fc1_b"].append(jnp.zeros((1, hidden), f32))
        L["fc2_w"].append(tn(lk[3], (hidden, C)))
        L["fc2_b"].append(jnp.zeros((1, C), f32))

    return {
        # torch Conv2d(weight (C, Cin, p, p)) == matmul with weight.reshape(C, -1).T
        "patch_w": tn(keys[0], (Cin * p * p, C)).astype(bf16),
        "patch_b": jnp.zeros((1, C), f32),
        "patch_ln_g": jnp.ones((1, C), f32),
        "patch_ln_b": jnp.zeros((1, C), f32),
        "ln1_g": jnp.stack(L["ln1_g"]), "ln1_b": jnp.stack(L["ln1_b"]),
        "qkv_w": jnp.stack(L["qkv_w"]).astype(bf16),
        "qkv_b": jnp.stack(L["qkv_b"]),
        "bias": jnp.concatenate(L["bias"], axis=0),      # (depth*H, N, N) f32
        # proj_w stays f32 so the in-kernel 8-row block slices are tile aligned
        "proj_w": jnp.stack(L["proj_w"]),
        "proj_b": jnp.stack(L["proj_b"]),
        "ln2_g": jnp.stack(L["ln2_g"]), "ln2_b": jnp.stack(L["ln2_b"]),
        "fc1_w": jnp.stack(L["fc1_w"]).astype(bf16), "fc1_b": jnp.stack(L["fc1_b"]),
        "fc2_w": jnp.stack(L["fc2_w"]).astype(bf16), "fc2_b": jnp.stack(L["fc2_b"]),
        "norm_g": jnp.ones((1, C), f32), "norm_b": jnp.zeros((1, C), f32),
        "head_w": tn(keys[1], (C, ncls)).astype(bf16),
        "head_b": jnp.zeros((1, ncls), f32),
    }


# ----------------------------- main -------------------------------------------

if __name__ == "__main__":
    cfg = dict(
        img_size=32, patch_size=4, in_chans=3, num_classes=10,
        embed_dim=32, depth=2, num_heads=4, mlp_ratio=4.0,
        qkv_bias=True, qk_scale=None, kernel_size=3, dilation=2,
    )
    key = jax.random.PRNGKey(0)
    kp, kx = jax.random.split(key)
    params = init_params(kp, cfg)
    x = jax.random.normal(kx, (2, cfg["in_chans"], cfg["img_size"], cfg["img_size"]),
                          dtype=jnp.float32)
    fwd = jax.jit(functools.partial(nat_isotropic_forward, cfg=cfg))
    logits = fwd(params, x)
    jax.block_until_ready(logits)
    assert logits.shape == (2, cfg["num_classes"]), logits.shape
    assert bool(jnp.all(jnp.isfinite(logits)))
    print("KERNEL_OK")
</pallas_src>

<mosaic_0001>
module attributes {stable_mosaic.version = 11 : i64} {
  func.func @_nat_forward_kernel(%arg0: i32, %arg1: memref<1x64x48xbf16, #tpu.memory_space<vmem>>, %arg2: memref<48x32xbf16, #tpu.memory_space<vmem>>, %arg3: memref<1x32xf32, #tpu.memory_space<vmem>>, %arg4: memref<1x32xf32, #tpu.memory_space<vmem>>, %arg5: memref<1x32xf32, #tpu.memory_space<vmem>>, %arg6: memref<2x1x32xf32, #tpu.memory_space<vmem>>, %arg7: memref<2x1x32xf32, #tpu.memory_space<vmem>>, %arg8: memref<2x32x96xbf16, #tpu.memory_space<vmem>>, %arg9: memref<2x1x96xf32, #tpu.memory_space<vmem>>, %arg10: memref<8x64x64xf32, #tpu.memory_space<vmem>>, %arg11: memref<2x32x32xf32, #tpu.memory_space<vmem>>, %arg12: memref<2x1x32xf32, #tpu.memory_space<vmem>>, %arg13: memref<2x1x32xf32, #tpu.memory_space<vmem>>, %arg14: memref<2x1x32xf32, #tpu.memory_space<vmem>>, %arg15: memref<2x32x128xbf16, #tpu.memory_space<vmem>>, %arg16: memref<2x1x128xf32, #tpu.memory_space<vmem>>, %arg17: memref<2x128x32xbf16, #tpu.memory_space<vmem>>, %arg18: memref<2x1x32xf32, #tpu.memory_space<vmem>>, %arg19: memref<1x32xf32, #tpu.memory_space<vmem>>, %arg20: memref<1x32xf32, #tpu.memory_space<vmem>>, %arg21: memref<32x10xbf16, #tpu.memory_space<vmem>>, %arg22: memref<1x10xf32, #tpu.memory_space<vmem>>, %arg23: memref<1x1x10xf32, #tpu.memory_space<vmem>>) attributes {dimension_semantics = [#tpu.dimension_semantics<parallel>], iteration_bounds = array<i64: 2>, scalar_prefetch = 0 : i64, scratch_operands = 0 : i64, tpu.core_type = #tpu.core_type<tc>, window_params = [{transform_indices = @transform_0, window_bounds = array<i64: 1, 64, 48>}, {pipeline_mode = #tpu.pipeline_mode<synchronous>, transform_indices = @transform_1, window_bounds = array<i64: 48, 32>}, {pipeline_mode = #tpu.pipeline_mode<synchronous>, transform_indices = @transform_2, window_bounds = array<i64: 1, 32>}, {pipeline_mode = #tpu.pipeline_mode<synchronous>, transform_indices = @transform_3, window_bounds = array<i64: 1, 32>}, {pipeline_mode = #tpu.pipeline_mode<synchronous>, transform_indices = @transform_4, window_bounds = array<i64: 1, 32>}, {pipeline_mode = #tpu.pipeline_mode<synchronous>, transform_indices = @transform_5, window_bounds = array<i64: 2, 1, 32>}, {pipeline_mode = #tpu.pipeline_mode<synchronous>, transform_indices = @transform_6, window_bounds = array<i64: 2, 1, 32>}, {pipeline_mode = #tpu.pipeline_mode<synchronous>, transform_indices = @transform_7, window_bounds = array<i64: 2, 32, 96>}, {pipeline_mode = #tpu.pipeline_mode<synchronous>, transform_indices = @transform_8, window_bounds = array<i64: 2, 1, 96>}, {pipeline_mode = #tpu.pipeline_mode<synchronous>, transform_indices = @transform_9, window_bounds = array<i64: 8, 64, 64>}, {pipeline_mode = #tpu.pipeline_mode<synchronous>, transform_indices = @transform_10, window_bounds = array<i64: 2, 32, 32>}, {pipeline_mode = #tpu.pipeline_mode<synchronous>, transform_indices = @transform_11, window_bounds = array<i64: 2, 1, 32>}, {pipeline_mode = #tpu.pipeline_mode<synchronous>, transform_indices = @transform_12, window_bounds = array<i64: 2, 1, 32>}, {pipeline_mode = #tpu.pipeline_mode<synchronous>, transform_indices = @transform_13, window_bounds = array<i64: 2, 1, 32>}, {pipeline_mode = #tpu.pipeline_mode<synchronous>, transform_indices = @transform_14, window_bounds = array<i64: 2, 32, 128>}, {pipeline_mode = #tpu.pipeline_mode<synchronous>, transform_indices = @transform_15, window_bounds = array<i64: 2, 1, 128>}, {pipeline_mode = #tpu.pipeline_mode<synchronous>, transform_indices = @transform_16, window_bounds = array<i64: 2, 128, 32>}, {pipeline_mode = #tpu.pipeline_mode<synchronous>, transform_indices = @transform_17, window_bounds = array<i64: 2, 1, 32>}, {pipeline_mode = #tpu.pipeline_mode<synchronous>, transform_indices = @transform_18, window_bounds = array<i64: 1, 32>}, {pipeline_mode = #tpu.pipeline_mode<synchronous>, transform_indices = @transform_19, window_bounds = array<i64: 1, 32>}, {pipeline_mode = #tpu.pipeline_mode<synchronous>, transform_indices = @transform_20, window_bounds = array<i64: 32, 10>}, {pipeline_mode = #tpu.pipeline_mode<synchronous>, transform_indices = @transform_21, window_bounds = array<i64: 1, 10>}, {transform_indices = @transform_22, window_bounds = array<i64: 1, 1, 10>}]} {
    %c0 = arith.constant 0 : index
    %c0_0 = arith.constant 0 : index
    %c0_1 = arith.constant 0 : index
    %0 = vector.load %arg1[%c0, %c0_0, %c0_1] : memref<1x64x48xbf16, #tpu.memory_space<vmem>>, vector<1x64x48xbf16>
    %1 = vector.shape_cast %0 : vector<1x64x48xbf16> to vector<64x48xbf16>
    %c0_2 = arith.constant 0 : index
    %c0_3 = arith.constant 0 : index
    %2 = vector.load %arg2[%c0_2, %c0_3] : memref<48x32xbf16, #tpu.memory_space<vmem>>, vector<48x32xbf16>
    %cst = arith.constant dense<0.000000e+00> : vector<64x32xf32>
    %3 = tpu.matmul %1, %2, %cst {dimension_numbers = #tpu.dot_dimension_numbers<[1], [0], [0], [1], [0, 0, 1, 1], [], []>} : vector<64x48xbf16>, vector<48x32xbf16>, vector<64x32xf32> -> vector<64x32xf32>
    %c0_4 = arith.constant 0 : index
    %c0_5 = arith.constant 0 : index
    %4 = vector.load %arg3[%c0_4, %c0_5] : memref<1x32xf32, #tpu.memory_space<vmem>>, vector<1x32xf32>
    %5 = vector.broadcast %4 : vector<1x32xf32> to vector<64x32xf32>
    %6 = arith.addf %3, %5 : vector<64x32xf32>
    %c0_6 = arith.constant 0 : index
    %c0_7 = arith.constant 0 : index
    %7 = vector.load %arg4[%c0_6, %c0_7] : memref<1x32xf32, #tpu.memory_space<vmem>>, vector<1x32xf32>
    %c0_8 = arith.constant 0 : index
    %c0_9 = arith.constant 0 : index
    %8 = vector.load %arg5[%c0_8, %c0_9] : memref<1x32xf32, #tpu.memory_space<vmem>>, vector<1x32xf32>
    %cst_10 = arith.constant dense<0.000000e+00> : vector<64xf32>
    %9 = vector.multi_reduction <add>, %6, %cst_10 [1] : vector<64x32xf32> to vector<64xf32>
    %10 = vector.shape_cast %9 : vector<64xf32> to vector<64x1xf32>
    %cst_11 = arith.constant 3.200000e+01 : f32
    %11 = vector.broadcast %cst_11 : f32 to vector<64x1xf32>
    %12 = arith.divf %10, %11 : vector<64x1xf32>
    %13 = vector.broadcast %12 : vector<64x1xf32> to vector<64x32xf32>
    %14 = arith.subf %6, %13 : vector<64x32xf32>
    %15 = arith.mulf %14, %14 : vector<64x32xf32>
    %cst_12 = arith.constant dense<0.000000e+00> : vector<64xf32>
    %16 = vector.multi_reduction <add>, %15, %cst_12 [1] : vector<64x32xf32> to vector<64xf32>
    %17 = vector.shape_cast %16 : vector<64xf32> to vector<64x1xf32>
    %cst_13 = arith.constant 3.200000e+01 : f32
    %18 = vector.broadcast %cst_13 : f32 to vector<64x1xf32>
    %19 = arith.divf %17, %18 : vector<64x1xf32>
    %cst_14 = arith.constant 9.99999974E-6 : f32
    %20 = vector.broadcast %cst_14 : f32 to vector<64x1xf32>
    %21 = arith.addf %19, %20 : vector<64x1xf32>
    %22 = math.rsqrt %21 : vector<64x1xf32>
    %23 = vector.broadcast %22 : vector<64x1xf32> to vector<64x32xf32>
    %24 = arith.mulf %14, %23 : vector<64x32xf32>
    %25 = vector.broadcast %7 : vector<1x32xf32> to vector<64x32xf32>
    %26 = arith.mulf %24, %25 : vector<64x32xf32>
    %27 = vector.broadcast %8 : vector<1x32xf32> to vector<64x32xf32>
    %28 = arith.addf %26, %27 : vector<64x32xf32>
    %c0_15 = arith.constant 0 : index
    %c0_16 = arith.constant 0 : index
    %c0_17 = arith.constant 0 : index
    %29 = vector.load %arg6[%c0_15, %c0_16, %c0_17] : memref<2x1x32xf32, #tpu.memory_space<vmem>>, vector<1x1x32xf32>
    %30 = vector.shape_cast %29 : vector<1x1x32xf32> to vector<1x32xf32>
    %c0_18 = arith.constant 0 : index
    %c0_19 = arith.constant 0 : index
    %c0_20 = arith.constant 0 : index
    %31 = vector.load %arg7[%c0_18, %c0_19, %c0_20] : memref<2x1x32xf32, #tpu.memory_space<vmem>>, vector<1x1x32xf32>
    %32 = vector.shape_cast %31 : vector<1x1x32xf32> to vector<1x32xf32>
    %cst_21 = arith.constant dense<0.000000e+00> : vector<64xf32>
    %33 = vector.multi_reduction <add>, %28, %cst_21 [1] : vector<64x32xf32> to vector<64xf32>
    %34 = vector.shape_cast %33 : vector<64xf32> to vector<64x1xf32>
    %cst_22 = arith.constant 3.200000e+01 : f32
    %35 = vector.broadcast %cst_22 : f32 to vector<64x1xf32>
    %36 = arith.divf %34, %35 : vector<64x1xf32>
    %37 = vector.broadcast %36 : vector<64x1xf32> to vector<64x32xf32>
    %38 = arith.subf %28, %37 : vector<64x32xf32>
    %39 = arith.mulf %38, %38 : vector<64x32xf32>
    %cst_23 = arith.constant dense<0.000000e+00> : vector<64xf32>
    %40 = vector.multi_reduction <add>, %39, %cst_23 [1] : vector<64x32xf32> to vector<64xf32>
    %41 = vector.shape_cast %40 : vector<64xf32> to vector<64x1xf32>
    %cst_24 = arith.constant 3.200000e+01 : f32
    %42 = vector.broadcast %cst_24 : f32 to vector<64x1xf32>
    %43 = arith.divf %41, %42 : vector<64x1xf32>
    %cst_25 = arith.constant 9.99999974E-6 : f32
    %44 = vector.broadcast %cst_25 : f32 to vector<64x1xf32>
    %45 = arith.addf %43, %44 : vector<64x1xf32>
    %46 = math.rsqrt %45 : vector<64x1xf32>
    %47 = vector.broadcast %46 : vector<64x1xf32> to vector<64x32xf32>
    %48 = arith.mulf %38, %47 : vector<64x32xf32>
    %49 = vector.broadcast %30 : vector<1x32xf32> to vector<64x32xf32>
    %50 = arith.mulf %48, %49 : vector<64x32xf32>
    %51 = vector.broadcast %32 : vector<1x32xf32> to vector<64x32xf32>
    %52 = arith.addf %50, %51 : vector<64x32xf32>
    %53 = arith.truncf %52 : vector<64x32xf32> to vector<64x32xbf16>
    %c0_26 = arith.constant 0 : index
    %c0_27 = arith.constant 0 : index
    %c0_28 = arith.constant 0 : index
    %54 = vector.load %arg8[%c0_26, %c0_27, %c0_28] : memref<2x32x96xbf16, #tpu.memory_space<vmem>>, vector<1x32x96xbf16>
    %55 = vector.shape_cast %54 : vector<1x32x96xbf16> to vector<32x96xbf16>
    %cst_29 = arith.constant dense<0.000000e+00> : vector<64x96xf32>
    %56 = tpu.matmul %53, %55, %cst_29 {dimension_numbers = #tpu.dot_dimension_numbers<[1], [0], [0], [1], [0, 0, 1, 1], [], []>} : vector<64x32xbf16>, vector<32x96xbf16>, vector<64x96xf32> -> vector<64x96xf32>
    %c0_30 = arith.constant 0 : index
    %c0_31 = arith.constant 0 : index
    %c0_32 = arith.constant 0 : index
    %57 = vector.load %arg9[%c0_30, %c0_31, %c0_32] : memref<2x1x96xf32, #tpu.memory_space<vmem>>, vector<1x1x96xf32>
    %58 = vector.shape_cast %57 : vector<1x1x96xf32> to vector<1x96xf32>
    %59 = vector.broadcast %58 : vector<1x96xf32> to vector<64x96xf32>
    %60 = arith.addf %56, %59 : vector<64x96xf32>
    %c0_33 = arith.constant 0 : index
    %c0_34 = arith.constant 0 : index
    %c0_35 = arith.constant 0 : index
    %61 = vector.load %arg11[%c0_33, %c0_34, %c0_35] : memref<2x32x32xf32, #tpu.memory_space<vmem>>, vector<1x32x32xf32>
    %62 = vector.shape_cast %61 : vector<1x32x32xf32> to vector<32x32xf32>
    %cst_36 = arith.constant 0.000000e+00 : f32
    %63 = vector.broadcast %cst_36 : f32 to vector<64x32xf32>
    %64 = vector.extract_strided_slice %60 {offsets = [0, 0], sizes = [64, 8], strides = [1, 1]} : vector<64x96xf32> to vector<64x8xf32>
    %65 = arith.truncf %64 : vector<64x8xf32> to vector<64x8xbf16>
    %66 = vector.extract_strided_slice %60 {offsets = [0, 32], sizes = [64, 8], strides = [1, 1]} : vector<64x96xf32> to vector<64x8xf32>
    %67 = arith.truncf %66 : vector<64x8xf32> to vector<64x8xbf16>
    %68 = vector.extract_strided_slice %60 {offsets = [0, 64], sizes = [64, 8], strides = [1, 1]} : vector<64x96xf32> to vector<64x8xf32>
    %69 = arith.truncf %68 : vector<64x8xf32> to vector<64x8xbf16>
    %cst_37 = arith.constant dense<0.000000e+00> : vector<64x64xf32>
    %70 = tpu.matmul %65, %67, %cst_37 {dimension_numbers = #tpu.dot_dimension_numbers<[1], [1], [0], [0], [0, 0, 1, 0], [], []>} : vector<64x8xbf16>, vector<64x8xbf16>, vector<64x64xf32> -> vector<64x64xf32>
    %c0_38 = arith.constant 0 : index
    %c0_39 = arith.constant 0 : index
    %c0_40 = arith.constant 0 : index
    %71 = vector.load %arg10[%c0_38, %c0_39, %c0_40] : memref<8x64x64xf32, #tpu.memory_space<vmem>>, vector<1x64x64xf32>
    %72 = vector.shape_cast %71 : vector<1x64x64xf32> to vector<64x64xf32>
    %73 = arith.addf %70, %72 : vector<64x64xf32>
    %cst_41 = arith.constant dense<0xFF800000> : vector<64xf32>
    %74 = vector.multi_reduction <maximumf>, %73, %cst_41 [1] : vector<64x64xf32> to vector<64xf32>
    %75 = vector.shape_cast %74 : vector<64xf32> to vector<64x1xf32>
    %76 = vector.broadcast %75 : vector<64x1xf32> to vector<64x64xf32>
    %77 = arith.subf %73, %76 : vector<64x64xf32>
    %78 = math.exp %77 : vector<64x64xf32>
    %cst_42 = arith.constant dense<0.000000e+00> : vector<64xf32>
    %79 = vector.multi_reduction <add>, %78, %cst_42 [1] : vector<64x64xf32> to vector<64xf32>
    %80 = vector.shape_cast %79 : vector<64xf32> to vector<64x1xf32>
    %81 = tpu.reciprocal %80 {approx = true} : vector<64x1xf32> -> vector<64x1xf32>
    %82 = arith.truncf %78 : vector<64x64xf32> to vector<64x64xbf16>
    %cst_43 = arith.constant dense<0.000000e+00> : vector<64x8xf32>
    %83 = tpu.matmul %82, %69, %cst_43 {dimension_numbers = #tpu.dot_dimension_numbers<[1], [0], [0], [1], [0, 0, 1, 1], [], []>} : vector<64x64xbf16>, vector<64x8xbf16>, vector<64x8xf32> -> vector<64x8xf32>
    %84 = vector.broadcast %81 : vector<64x1xf32> to vector<64x8xf32>
    %85 = arith.mulf %83, %84 : vector<64x8xf32>
    %86 = arith.truncf %85 : vector<64x8xf32> to vector<64x8xbf16>
    %87 = vector.extract_strided_slice %62 {offsets = [0, 0], sizes = [8, 32], strides = [1, 1]} : vector<32x32xf32> to vector<8x32xf32>
    %88 = arith.truncf %87 : vector<8x32xf32> to vector<8x32xbf16>
    %cst_44 = arith.constant dense<0.000000e+00> : vector<64x32xf32>
    %89 = tpu.matmul %86, %88, %cst_44 {dimension_numbers = #tpu.dot_dimension_numbers<[1], [0], [0], [1], [0, 0, 1, 1], [], []>} : vector<64x8xbf16>, vector<8x32xbf16>, vector<64x32xf32> -> vector<64x32xf32>
    %90 = arith.addf %63, %89 : vector<64x32xf32>
    %91 = vector.extract_strided_slice %60 {offsets = [0, 8], sizes = [64, 8], strides = [1, 1]} : vector<64x96xf32> to vector<64x8xf32>
    %92 = arith.truncf %91 : vector<64x8xf32> to vector<64x8xbf16>
    %93 = vector.extract_strided_slice %60 {offsets = [0, 40], sizes = [64, 8], strides = [1, 1]} : vector<64x96xf32> to vector<64x8xf32>
    %94 = arith.truncf %93 : vector<64x8xf32> to vector<64x8xbf16>
    %95 = vector.extract_strided_slice %60 {offsets = [0, 72], sizes = [64, 8], strides = [1, 1]} : vector<64x96xf32> to vector<64x8xf32>
    %96 = arith.truncf %95 : vector<64x8xf32> to vector<64x8xbf16>
    %cst_45 = arith.constant dense<0.000000e+00> : vector<64x64xf32>
    %97 = tpu.matmul %92, %94, %cst_45 {dimension_numbers = #tpu.dot_dimension_numbers<[1], [1], [0], [0], [0, 0, 1, 0], [], []>} : vector<64x8xbf16>, vector<64x8xbf16>, vector<64x64xf32> -> vector<64x64xf32>
    %c1 = arith.constant 1 : index
    %c0_46 = arith.constant 0 : index
    %c0_47 = arith.constant 0 : index
    %98 = vector.load %arg10[%c1, %c0_46, %c0_47] : memref<8x64x64xf32, #tpu.memory_space<vmem>>, vector<1x64x64xf32>
    %99 = vector.shape_cast %98 : vector<1x64x64xf32> to vector<64x64xf32>
    %100 = arith.addf %97, %99 : vector<64x64xf32>
    %cst_48 = arith.constant dense<0xFF800000> : vector<64xf32>
    %101 = vector.multi_reduction <maximumf>, %100, %cst_48 [1] : vector<64x64xf32> to vector<64xf32>
    %102 = vector.shape_cast %101 : vector<64xf32> to vector<64x1xf32>
    %103 = vector.broadcast %102 : vector<64x1xf32> to vector<64x64xf32>
    %104 = arith.subf %100, %103 : vector<64x64xf32>
    %105 = math.exp %104 : vector<64x64xf32>
    %cst_49 = arith.constant dense<0.000000e+00> : vector<64xf32>
    %106 = vector.multi_reduction <add>, %105, %cst_49 [1] : vector<64x64xf32> to vector<64xf32>
    %107 = vector.shape_cast %106 : vector<64xf32> to vector<64x1xf32>
    %108 = tpu.reciprocal %107 {approx = true} : vector<64x1xf32> -> vector<64x1xf32>
    %109 = arith.truncf %105 : vector<64x64xf32> to vector<64x64xbf16>
    %cst_50 = arith.constant dense<0.000000e+00> : vector<64x8xf32>
    %110 = tpu.matmul %109, %96, %cst_50 {dimension_numbers = #tpu.dot_dimension_numbers<[1], [0], [0], [1], [0, 0, 1, 1], [], []>} : vector<64x64xbf16>, vector<64x8xbf16>, vector<64x8xf32> -> vector<64x8xf32>
    %111 = vector.broadcast %108 : vector<64x1xf32> to vector<64x8xf32>
    %112 = arith.mulf %110, %111 : vector<64x8xf32>
    %113 = arith.truncf %112 : vector<64x8xf32> to vector<64x8xbf16>
    %114 = vector.extract_strided_slice %62 {offsets = [8, 0], sizes = [8, 32], strides = [1, 1]} : vector<32x32xf32> to vector<8x32xf32>
    %115 = arith.truncf %114 : vector<8x32xf32> to vector<8x32xbf16>
    %cst_51 = arith.constant dense<0.000000e+00> : vector<64x32xf32>
    %116 = tpu.matmul %113, %115, %cst_51 {dimension_numbers = #tpu.dot_dimension_numbers<[1], [0], [0], [1], [0, 0, 1, 1], [], []>} : vector<64x8xbf16>, vector<8x32xbf16>, vector<64x32xf32> -> vector<64x32xf32>
    %117 = arith.addf %90, %116 : vector<64x32xf32>
    %118 = vector.extract_strided_slice %60 {offsets = [0, 16], sizes = [64, 8], strides = [1, 1]} : vector<64x96xf32> to vector<64x8xf32>
    %119 = arith.truncf %118 : vector<64x8xf32> to vector<64x8xbf16>
    %120 = vector.extract_strided_slice %60 {offsets = [0, 48], sizes = [64, 8], strides = [1, 1]} : vector<64x96xf32> to vector<64x8xf32>
    %121 = arith.truncf %120 : vector<64x8xf32> to vector<64x8xbf16>
    %122 = vector.extract_strided_slice %60 {offsets = [0, 80], sizes = [64, 8], strides = [1, 1]} : vector<64x96xf32> to vector<64x8xf32>
    %123 = arith.truncf %122 : vector<64x8xf32> to vector<64x8xbf16>
    %cst_52 = arith.constant dense<0.000000e+00> : vector<64x64xf32>
    %124 = tpu.matmul %119, %121, %cst_52 {dimension_numbers = #tpu.dot_dimension_numbers<[1], [1], [0], [0], [0, 0, 1, 0], [], []>} : vector<64x8xbf16>, vector<64x8xbf16>, vector<64x64xf32> -> vector<64x64xf32>
    %c2 = arith.constant 2 : index
    %c0_53 = arith.constant 0 : index
    %c0_54 = arith.constant 0 : index
    %125 = vector.load %arg10[%c2, %c0_53, %c0_54] : memref<8x64x64xf32, #tpu.memory_space<vmem>>, vector<1x64x64xf32>
    %126 = vector.shape_cast %125 : vector<1x64x64xf32> to vector<64x64xf32>
    %127 = arith.addf %124, %126 : vector<64x64xf32>
    %cst_55 = arith.constant dense<0xFF800000> : vector<64xf32>
    %128 = vector.multi_reduction <maximumf>, %127, %cst_55 [1] : vector<64x64xf32> to vector<64xf32>
    %129 = vector.shape_cast %128 : vector<64xf32> to vector<64x1xf32>
    %130 = vector.broadcast %129 : vector<64x1xf32> to vector<64x64xf32>
    %131 = arith.subf %127, %130 : vector<64x64xf32>
    %132 = math.exp %131 : vector<64x64xf32>
    %cst_56 = arith.constant dense<0.000000e+00> : vector<64xf32>
    %133 = vector.multi_reduction <add>, %132, %cst_56 [1] : vector<64x64xf32> to vector<64xf32>
    %134 = vector.shape_cast %133 : vector<64xf32> to vector<64x1xf32>
    %135 = tpu.reciprocal %134 {approx = true} : vector<64x1xf32> -> vector<64x1xf32>
    %136 = arith.truncf %132 : vector<64x64xf32> to vector<64x64xbf16>
    %cst_57 = arith.constant dense<0.000000e+00> : vector<64x8xf32>
    %137 = tpu.matmul %136, %123, %cst_57 {dimension_numbers = #tpu.dot_dimension_numbers<[1], [0], [0], [1], [0, 0, 1, 1], [], []>} : vector<64x64xbf16>, vector<64x8xbf16>, vector<64x8xf32> -> vector<64x8xf32>
    %138 = vector.broadcast %135 : vector<64x1xf32> to vector<64x8xf32>
    %139 = arith.mulf %137, %138 : vector<64x8xf32>
    %140 = arith.truncf %139 : vector<64x8xf32> to vector<64x8xbf16>
    %141 = vector.extract_strided_slice %62 {offsets = [16, 0], sizes = [8, 32], strides = [1, 1]} : vector<32x32xf32> to vector<8x32xf32>
    %142 = arith.truncf %141 : vector<8x32xf32> to vector<8x32xbf16>
    %cst_58 = arith.constant dense<0.000000e+00> : vector<64x32xf32>
    %143 = tpu.matmul %140, %142, %cst_58 {dimension_numbers = #tpu.dot_dimension_numbers<[1], [0], [0], [1], [0, 0, 1, 1], [], []>} : vector<64x8xbf16>, vector<8x32xbf16>, vector<64x32xf32> -> vector<64x32xf32>
    %144 = arith.addf %117, %143 : vector<64x32xf32>
    %145 = vector.extract_strided_slice %60 {offsets = [0, 24], sizes = [64, 8], strides = [1, 1]} : vector<64x96xf32> to vector<64x8xf32>
    %146 = arith.truncf %145 : vector<64x8xf32> to vector<64x8xbf16>
    %147 = vector.extract_strided_slice %60 {offsets = [0, 56], sizes = [64, 8], strides = [1, 1]} : vector<64x96xf32> to vector<64x8xf32>
    %148 = arith.truncf %147 : vector<64x8xf32> to vector<64x8xbf16>
    %149 = vector.extract_strided_slice %60 {offsets = [0, 88], sizes = [64, 8], strides = [1, 1]} : vector<64x96xf32> to vector<64x8xf32>
    %150 = arith.truncf %149 : vector<64x8xf32> to vector<64x8xbf16>
    %cst_59 = arith.constant dense<0.000000e+00> : vector<64x64xf32>
    %151 = tpu.matmul %146, %148, %cst_59 {dimension_numbers = #tpu.dot_dimension_numbers<[1], [1], [0], [0], [0, 0, 1, 0], [], []>} : vector<64x8xbf16>, vector<64x8xbf16>, vector<64x64xf32> -> vector<64x64xf32>
    %c3 = arith.constant 3 : index
    %c0_60 = arith.constant 0 : index
    %c0_61 = arith.constant 0 : index
    %152 = vector.load %arg10[%c3, %c0_60, %c0_61] : memref<8x64x64xf32, #tpu.memory_space<vmem>>, vector<1x64x64xf32>
    %153 = vector.shape_cast %152 : vector<1x64x64xf32> to vector<64x64xf32>
    %154 = arith.addf %151, %153 : vector<64x64xf32>
    %cst_62 = arith.constant dense<0xFF800000> : vector<64xf32>
    %155 = vector.multi_reduction <maximumf>, %154, %cst_62 [1] : vector<64x64xf32> to vector<64xf32>
    %156 = vector.shape_cast %155 : vector<64xf32> to vector<64x1xf32>
    %157 = vector.broadcast %156 : vector<64x1xf32> to vector<64x64xf32>
    %158 = arith.subf %154, %157 : vector<64x64xf32>
    %159 = math.exp %158 : vector<64x64xf32>
    %cst_63 = arith.constant dense<0.000000e+00> : vector<64xf32>
    %160 = vector.multi_reduction <add>, %159, %cst_63 [1] : vector<64x64xf32> to vector<64xf32>
    %161 = vector.shape_cast %160 : vector<64xf32> to vector<64x1xf32>
    %162 = tpu.reciprocal %161 {approx = true} : vector<64x1xf32> -> vector<64x1xf32>
    %163 = arith.truncf %159 : vector<64x64xf32> to vector<64x64xbf16>
    %cst_64 = arith.constant dense<0.000000e+00> : vector<64x8xf32>
    %164 = tpu.matmul %163, %150, %cst_64 {dimension_numbers = #tpu.dot_dimension_numbers<[1], [0], [0], [1], [0, 0, 1, 1], [], []>} : vector<64x64xbf16>, vector<64x8xbf16>, vector<64x8xf32> -> vector<64x8xf32>
    %165 = vector.broadcast %162 : vector<64x1xf32> to vector<64x8xf32>
    %166 = arith.mulf %164, %165 : vector<64x8xf32>
    %167 = arith.truncf %166 : vector<64x8xf32> to vector<64x8xbf16>
    %168 = vector.extract_strided_slice %62 {offsets = [24, 0], sizes = [8, 32], strides = [1, 1]} : vector<32x32xf32> to vector<8x32xf32>
    %169 = arith.truncf %168 : vector<8x32xf32> to vector<8x32xbf16>
    %cst_65 = arith.constant dense<0.000000e+00> : vector<64x32xf32>
    %170 = tpu.matmul %167, %169, %cst_65 {dimension_numbers = #tpu.dot_dimension_numbers<[1], [0], [0], [1], [0, 0, 1, 1], [], []>} : vector<64x8xbf16>, vector<8x32xbf16>, vector<64x32xf32> -> vector<64x32xf32>
    %171 = arith.addf %144, %170 : vector<64x32xf32>
    %172 = arith.addf %28, %171 : vector<64x32xf32>
    %c0_66 = arith.constant 0 : index
    %c0_67 = arith.constant 0 : index
    %c0_68 = arith.constant 0 : index
    %173 = vector.load %arg12[%c0_66, %c0_67, %c0_68] : memref<2x1x32xf32, #tpu.memory_space<vmem>>, vector<1x1x32xf32>
    %174 = vector.shape_cast %173 : vector<1x1x32xf32> to vector<1x32xf32>
    %175 = vector.broadcast %174 : vector<1x32xf32> to vector<64x32xf32>
    %176 = arith.addf %172, %175 : vector<64x32xf32>
    %c0_69 = arith.constant 0 : index
    %c0_70 = arith.constant 0 : index
    %c0_71 = arith.constant 0 : index
    %177 = vector.load %arg13[%c0_69, %c0_70, %c0_71] : memref<2x1x32xf32, #tpu.memory_space<vmem>>, vector<1x1x32xf32>
    %178 = vector.shape_cast %177 : vector<1x1x32xf32> to vector<1x32xf32>
    %c0_72 = arith.constant 0 : index
    %c0_73 = arith.constant 0 : index
    %c0_74 = arith.constant 0 : index
    %179 = vector.load %arg14[%c0_72, %c0_73, %c0_74] : memref<2x1x32xf32, #tpu.memory_space<vmem>>, vector<1x1x32xf32>
    %180 = vector.shape_cast %179 : vector<1x1x32xf32> to vector<1x32xf32>
    %cst_75 = arith.constant dense<0.000000e+00> : vector<64xf32>
    %181 = vector.multi_reduction <add>, %176, %cst_75 [1] : vector<64x32xf32> to vector<64xf32>
    %182 = vector.shape_cast %181 : vector<64xf32> to vector<64x1xf32>
    %cst_76 = arith.constant 3.200000e+01 : f32
    %183 = vector.broadcast %cst_76 : f32 to vector<64x1xf32>
    %184 = arith.divf %182, %183 : vector<64x1xf32>
    %185 = vector.broadcast %184 : vector<64x1xf32> to vector<64x32xf32>
    %186 = arith.subf %176, %185 : vector<64x32xf32>
    %187 = arith.mulf %186, %186 : vector<64x32xf32>
    %cst_77 = arith.constant dense<0.000000e+00> : vector<64xf32>
    %188 = vector.multi_reduction <add>, %187, %cst_77 [1] : vector<64x32xf32> to vector<64xf32>
    %189 = vector.shape_cast %188 : vector<64xf32> to vector<64x1xf32>
    %cst_78 = arith.constant 3.200000e+01 : f32
    %190 = vector.broadcast %cst_78 : f32 to vector<64x1xf32>
    %191 = arith.divf %189, %190 : vector<64x1xf32>
    %cst_79 = arith.constant 9.99999974E-6 : f32
    %192 = vector.broadcast %cst_79 : f32 to vector<64x1xf32>
    %193 = arith.addf %191, %192 : vector<64x1xf32>
    %194 = math.rsqrt %193 : vector<64x1xf32>
    %195 = vector.broadcast %194 : vector<64x1xf32> to vector<64x32xf32>
    %196 = arith.mulf %186, %195 : vector<64x32xf32>
    %197 = vector.broadcast %178 : vector<1x32xf32> to vector<64x32xf32>
    %198 = arith.mulf %196, %197 : vector<64x32xf32>
    %199 = vector.broadcast %180 : vector<1x32xf32> to vector<64x32xf32>
    %200 = arith.addf %198, %199 : vector<64x32xf32>
    %201 = arith.truncf %200 : vector<64x32xf32> to vector<64x32xbf16>
    %c0_80 = arith.constant 0 : index
    %c0_81 = arith.constant 0 : index
    %c0_82 = arith.constant 0 : index
    %202 = vector.load %arg15[%c0_80, %c0_81, %c0_82] : memref<2x32x128xbf16, #tpu.memory_space<vmem>>, vector<1x32x128xbf16>
    %203 = vector.shape_cast %202 : vector<1x32x128xbf16> to vector<32x128xbf16>
    %cst_83 = arith.constant dense<0.000000e+00> : vector<64x128xf32>
    %204 = tpu.matmul %201, %203, %cst_83 {dimension_numbers = #tpu.dot_dimension_numbers<[1], [0], [0], [1], [0, 0, 1, 1], [], []>} : vector<64x32xbf16>, vector<32x128xbf16>, vector<64x128xf32> -> vector<64x128xf32>
    %c0_84 = arith.constant 0 : index
    %c0_85 = arith.constant 0 : index
    %c0_86 = arith.constant 0 : index
    %205 = vector.load %arg16[%c0_84, %c0_85, %c0_86] : memref<2x1x128xf32, #tpu.memory_space<vmem>>, vector<1x1x128xf32>
    %206 = vector.shape_cast %205 : vector<1x1x128xf32> to vector<1x128xf32>
    %207 = vector.broadcast %206 : vector<1x128xf32> to vector<64x128xf32>
    %208 = arith.addf %204, %207 : vector<64x128xf32>
    %cst_87 = arith.constant 5.000000e-01 : f32
    %209 = vector.broadcast %cst_87 : f32 to vector<64x128xf32>
    %210 = arith.mulf %209, %208 : vector<64x128xf32>
    %cst_88 = arith.constant 4.471500e-02 : f32
    %211 = vector.broadcast %cst_88 : f32 to vector<64x128xf32>
    %212 = arith.mulf %211, %208 : vector<64x128xf32>
    %213 = arith.mulf %212, %208 : vector<64x128xf32>
    %214 = arith.mulf %213, %208 : vector<64x128xf32>
    %215 = arith.addf %208, %214 : vector<64x128xf32>
    %cst_89 = arith.constant 0.797884583 : f32
    %216 = vector.broadcast %cst_89 : f32 to vector<64x128xf32>
    %217 = arith.mulf %216, %215 : vector<64x128xf32>
    %218 = math.tanh %217 : vector<64x128xf32>
    %cst_90 = arith.constant 1.000000e+00 : f32
    %219 = vector.broadcast %cst_90 : f32 to vector<64x128xf32>
    %220 = arith.addf %219, %218 : vector<64x128xf32>
    %221 = arith.mulf %210, %220 : vector<64x128xf32>
    %222 = arith.truncf %221 : vector<64x128xf32> to vector<64x128xbf16>
    %c0_91 = arith.constant 0 : index
    %c0_92 = arith.constant 0 : index
    %c0_93 = arith.constant 0 : index
    %223 = vector.load %arg17[%c0_91, %c0_92, %c0_93] : memref<2x128x32xbf16, #tpu.memory_space<vmem>>, vector<1x128x32xbf16>
    %224 = vector.shape_cast %223 : vector<1x128x32xbf16> to vector<128x32xbf16>
    %cst_94 = arith.constant dense<0.000000e+00> : vector<64x32xf32>
    %225 = tpu.matmul %222, %224, %cst_94 {dimension_numbers = #tpu.dot_dimension_numbers<[1], [0], [0], [1], [0, 0, 1, 1], [], []>} : vector<64x128xbf16>, vector<128x32xbf16>, vector<64x32xf32> -> vector<64x32xf32>
    %c0_95 = arith.constant 0 : index
    %c0_96 = arith.constant 0 : index
    %c0_97 = arith.constant 0 : index
    %226 = vector.load %arg18[%c0_95, %c0_96, %c0_97] : memref<2x1x32xf32, #tpu.memory_space<vmem>>, vector<1x1x32xf32>
    %227 = vector.shape_cast %226 : vector<1x1x32xf32> to vector<1x32xf32>
    %228 = vector.broadcast %227 : vector<1x32xf32> to vector<64x32xf32>
    %229 = arith.addf %225, %228 : vector<64x32xf32>
    %230 = arith.addf %176, %229 : vector<64x32xf32>
    %c1_98 = arith.constant 1 : index
    %c0_99 = arith.constant 0 : index
    %c0_100 = arith.constant 0 : index
    %231 = vector.load %arg6[%c1_98, %c0_99, %c0_100] : memref<2x1x32xf32, #tpu.memory_space<vmem>>, vector<1x1x32xf32>
    %232 = vector.shape_cast %231 : vector<1x1x32xf32> to vector<1x32xf32>
    %c1_101 = arith.constant 1 : index
    %c0_102 = arith.constant 0 : index
    %c0_103 = arith.constant 0 : index
    %233 = vector.load %arg7[%c1_101, %c0_102, %c0_103] : memref<2x1x32xf32, #tpu.memory_space<vmem>>, vector<1x1x32xf32>
    %234 = vector.shape_cast %233 : vector<1x1x32xf32> to vector<1x32xf32>
    %cst_104 = arith.constant dense<0.000000e+00> : vector<64xf32>
    %235 = vector.multi_reduction <add>, %230, %cst_104 [1] : vector<64x32xf32> to vector<64xf32>
    %236 = vector.shape_cast %235 : vector<64xf32> to vector<64x1xf32>
    %cst_105 = arith.constant 3.200000e+01 : f32
    %237 = vector.broadcast %cst_105 : f32 to vector<64x1xf32>
    %238 = arith.divf %236, %237 : vector<64x1xf32>
    %239 = vector.broadcast %238 : vector<64x1xf32> to vector<64x32xf32>
    %240 = arith.subf %230, %239 : vector<64x32xf32>
    %241 = arith.mulf %240, %240 : vector<64x32xf32>
    %cst_106 = arith.constant dense<0.000000e+00> : vector<64xf32>
    %242 = vector.multi_reduction <add>, %241, %cst_106 [1] : vector<64x32xf32> to vector<64xf32>
    %243 = vector.shape_cast %242 : vector<64xf32> to vector<64x1xf32>
    %cst_107 = arith.constant 3.200000e+01 : f32
    %244 = vector.broadcast %cst_107 : f32 to vector<64x1xf32>
    %245 = arith.divf %243, %244 : vector<64x1xf32>
    %cst_108 = arith.constant 9.99999974E-6 : f32
    %246 = vector.broadcast %cst_108 : f32 to vector<64x1xf32>
    %247 = arith.addf %245, %246 : vector<64x1xf32>
    %248 = math.rsqrt %247 : vector<64x1xf32>
    %249 = vector.broadcast %248 : vector<64x1xf32> to vector<64x32xf32>
    %250 = arith.mulf %240, %249 : vector<64x32xf32>
    %251 = vector.broadcast %232 : vector<1x32xf32> to vector<64x32xf32>
    %252 = arith.mulf %250, %251 : vector<64x32xf32>
    %253 = vector.broadcast %234 : vector<1x32xf32> to vector<64x32xf32>
    %254 = arith.addf %252, %253 : vector<64x32xf32>
    %255 = arith.truncf %254 : vector<64x32xf32> to vector<64x32xbf16>
    %c1_109 = arith.constant 1 : index
    %c0_110 = arith.constant 0 : index
    %c0_111 = arith.constant 0 : index
    %256 = vector.load %arg8[%c1_109, %c0_110, %c0_111] : memref<2x32x96xbf16, #tpu.memory_space<vmem>>, vector<1x32x96xbf16>
    %257 = vector.shape_cast %256 : vector<1x32x96xbf16> to vector<32x96xbf16>
    %cst_112 = arith.constant dense<0.000000e+00> : vector<64x96xf32>
    %258 = tpu.matmul %255, %257, %cst_112 {dimension_numbers = #tpu.dot_dimension_numbers<[1], [0], [0], [1], [0, 0, 1, 1], [], []>} : vector<64x32xbf16>, vector<32x96xbf16>, vector<64x96xf32> -> vector<64x96xf32>
    %c1_113 = arith.constant 1 : index
    %c0_114 = arith.constant 0 : index
    %c0_115 = arith.constant 0 : index
    %259 = vector.load %arg9[%c1_113, %c0_114, %c0_115] : memref<2x1x96xf32, #tpu.memory_space<vmem>>, vector<1x1x96xf32>
    %260 = vector.shape_cast %259 : vector<1x1x96xf32> to vector<1x96xf32>
    %261 = vector.broadcast %260 : vector<1x96xf32> to vector<64x96xf32>
    %262 = arith.addf %258, %261 : vector<64x96xf32>
    %c1_116 = arith.constant 1 : index
    %c0_117 = arith.constant 0 : index
    %c0_118 = arith.constant 0 : index
    %263 = vector.load %arg11[%c1_116, %c0_117, %c0_118] : memref<2x32x32xf32, #tpu.memory_space<vmem>>, vector<1x32x32xf32>
    %264 = vector.shape_cast %263 : vector<1x32x32xf32> to vector<32x32xf32>
    %cst_119 = arith.constant 0.000000e+00 : f32
    %265 = vector.broadcast %cst_119 : f32 to vector<64x32xf32>
    %266 = vector.extract_strided_slice %262 {offsets = [0, 0], sizes = [64, 8], strides = [1, 1]} : vector<64x96xf32> to vector<64x8xf32>
    %267 = arith.truncf %266 : vector<64x8xf32> to vector<64x8xbf16>
    %268 = vector.extract_strided_slice %262 {offsets = [0, 32], sizes = [64, 8], strides = [1, 1]} : vector<64x96xf32> to vector<64x8xf32>
    %269 = arith.truncf %268 : vector<64x8xf32> to vector<64x8xbf16>
    %270 = vector.extract_strided_slice %262 {offsets = [0, 64], sizes = [64, 8], strides = [1, 1]} : vector<64x96xf32> to vector<64x8xf32>
    %271 = arith.truncf %270 : vector<64x8xf32> to vector<64x8xbf16>
    %cst_120 = arith.constant dense<0.000000e+00> : vector<64x64xf32>
    %272 = tpu.matmul %267, %269, %cst_120 {dimension_numbers = #tpu.dot_dimension_numbers<[1], [1], [0], [0], [0, 0, 1, 0], [], []>} : vector<64x8xbf16>, vector<64x8xbf16>, vector<64x64xf32> -> vector<64x64xf32>
    %c4 = arith.constant 4 : index
    %c0_121 = arith.constant 0 : index
    %c0_122 = arith.constant 0 : index
    %273 = vector.load %arg10[%c4, %c0_121, %c0_122] : memref<8x64x64xf32, #tpu.memory_space<vmem>>, vector<1x64x64xf32>
    %274 = vector.shape_cast %273 : vector<1x64x64xf32> to vector<64x64xf32>
    %275 = arith.addf %272, %274 : vector<64x64xf32>
    %cst_123 = arith.constant dense<0xFF800000> : vector<64xf32>
    %276 = vector.multi_reduction <maximumf>, %275, %cst_123 [1] : vector<64x64xf32> to vector<64xf32>
    %277 = vector.shape_cast %276 : vector<64xf32> to vector<64x1xf32>
    %278 = vector.broadcast %277 : vector<64x1xf32> to vector<64x64xf32>
    %279 = arith.subf %275, %278 : vector<64x64xf32>
    %280 = math.exp %279 : vector<64x64xf32>
    %cst_124 = arith.constant dense<0.000000e+00> : vector<64xf32>
    %281 = vector.multi_reduction <add>, %280, %cst_124 [1] : vector<64x64xf32> to vector<64xf32>
    %282 = vector.shape_cast %281 : vector<64xf32> to vector<64x1xf32>
    %283 = tpu.reciprocal %282 {approx = true} : vector<64x1xf32> -> vector<64x1xf32>
    %284 = arith.truncf %280 : vector<64x64xf32> to vector<64x64xbf16>
    %cst_125 = arith.constant dense<0.000000e+00> : vector<64x8xf32>
    %285 = tpu.matmul %284, %271, %cst_125 {dimension_numbers = #tpu.dot_dimension_numbers<[1], [0], [0], [1], [0, 0, 1, 1], [], []>} : vector<64x64xbf16>, vector<64x8xbf16>, vector<64x8xf32> -> vector<64x8xf32>
    %286 = vector.broadcast %283 : vector<64x1xf32> to vector<64x8xf32>
    %287 = arith.mulf %285, %286 : vector<64x8xf32>
    %288 = arith.truncf %287 : vector<64x8xf32> to vector<64x8xbf16>
    %289 = vector.extract_strided_slice %264 {offsets = [0, 0], sizes = [8, 32], strides = [1, 1]} : vector<32x32xf32> to vector<8x32xf32>
    %290 = arith.truncf %289 : vector<8x32xf32> to vector<8x32xbf16>
    %cst_126 = arith.constant dense<0.000000e+00> : vector<64x32xf32>
    %291 = tpu.matmul %288, %290, %cst_126 {dimension_numbers = #tpu.dot_dimension_numbers<[1], [0], [0], [1], [0, 0, 1, 1], [], []>} : vector<64x8xbf16>, vector<8x32xbf16>, vector<64x32xf32> -> vector<64x32xf32>
    %292 = arith.addf %265, %291 : vector<64x32xf32>
    %293 = vector.extract_strided_slice %262 {offsets = [0, 8], sizes = [64, 8], strides = [1, 1]} : vector<64x96xf32> to vector<64x8xf32>
    %294 = arith.truncf %293 : vector<64x8xf32> to vector<64x8xbf16>
    %295 = vector.extract_strided_slice %262 {offsets = [0, 40], sizes = [64, 8], strides = [1, 1]} : vector<64x96xf32> to vector<64x8xf32>
    %296 = arith.truncf %295 : vector<64x8xf32> to vector<64x8xbf16>
    %297 = vector.extract_strided_slice %262 {offsets = [0, 72], sizes = [64, 8], strides = [1, 1]} : vector<64x96xf32> to vector<64x8xf32>
    %298 = arith.truncf %297 : vector<64x8xf32> to vector<64x8xbf16>
    %cst_127 = arith.constant dense<0.000000e+00> : vector<64x64xf32>
    %299 = tpu.matmul %294, %296, %cst_127 {dimension_numbers = #tpu.dot_dimension_numbers<[1], [1], [0], [0], [0, 0, 1, 0], [], []>} : vector<64x8xbf16>, vector<64x8xbf16>, vector<64x64xf32> -> vector<64x64xf32>
    %c5 = arith.constant 5 : index
    %c0_128 = arith.constant 0 : index
    %c0_129 = arith.constant 0 : index
    %300 = vector.load %arg10[%c5, %c0_128, %c0_129] : memref<8x64x64xf32, #tpu.memory_space<vmem>>, vector<1x64x64xf32>
    %301 = vector.shape_cast %300 : vector<1x64x64xf32> to vector<64x64xf32>
    %302 = arith.addf %299, %301 : vector<64x64xf32>
    %cst_130 = arith.constant dense<0xFF800000> : vector<64xf32>
    %303 = vector.multi_reduction <maximumf>, %302, %cst_130 [1] : vector<64x64xf32> to vector<64xf32>
    %304 = vector.shape_cast %303 : vector<64xf32> to vector<64x1xf32>
    %305 = vector.broadcast %304 : vector<64x1xf32> to vector<64x64xf32>
    %306 = arith.subf %302, %305 : vector<64x64xf32>
    %307 = math.exp %306 : vector<64x64xf32>
    %cst_131 = arith.constant dense<0.000000e+00> : vector<64xf32>
    %308 = vector.multi_reduction <add>, %307, %cst_131 [1] : vector<64x64xf32> to vector<64xf32>
    %309 = vector.shape_cast %308 : vector<64xf32> to vector<64x1xf32>
    %310 = tpu.reciprocal %309 {approx = true} : vector<64x1xf32> -> vector<64x1xf32>
    %311 = arith.truncf %307 : vector<64x64xf32> to vector<64x64xbf16>
    %cst_132 = arith.constant dense<0.000000e+00> : vector<64x8xf32>
    %312 = tpu.matmul %311, %298, %cst_132 {dimension_numbers = #tpu.dot_dimension_numbers<[1], [0], [0], [1], [0, 0, 1, 1], [], []>} : vector<64x64xbf16>, vector<64x8xbf16>, vector<64x8xf32> -> vector<64x8xf32>
    %313 = vector.broadcast %310 : vector<64x1xf32> to vector<64x8xf32>
    %314 = arith.mulf %312, %313 : vector<64x8xf32>
    %315 = arith.truncf %314 : vector<64x8xf32> to vector<64x8xbf16>
    %316 = vector.extract_strided_slice %264 {offsets = [8, 0], sizes = [8, 32], strides = [1, 1]} : vector<32x32xf32> to vector<8x32xf32>
    %317 = arith.truncf %316 : vector<8x32xf32> to vector<8x32xbf16>
    %cst_133 = arith.constant dense<0.000000e+00> : vector<64x32xf32>
    %318 = tpu.matmul %315, %317, %cst_133 {dimension_numbers = #tpu.dot_dimension_numbers<[1], [0], [0], [1], [0, 0, 1, 1], [], []>} : vector<64x8xbf16>, vector<8x32xbf16>, vector<64x32xf32> -> vector<64x32xf32>
    %319 = arith.addf %292, %318 : vector<64x32xf32>
    %320 = vector.extract_strided_slice %262 {offsets = [0, 16], sizes = [64, 8], strides = [1, 1]} : vector<64x96xf32> to vector<64x8xf32>
    %321 = arith.truncf %320 : vector<64x8xf32> to vector<64x8xbf16>
    %322 = vector.extract_strided_slice %262 {offsets = [0, 48], sizes = [64, 8], strides = [1, 1]} : vector<64x96xf32> to vector<64x8xf32>
    %323 = arith.truncf %322 : vector<64x8xf32> to vector<64x8xbf16>
    %324 = vector.extract_strided_slice %262 {offsets = [0, 80], sizes = [64, 8], strides = [1, 1]} : vector<64x96xf32> to vector<64x8xf32>
    %325 = arith.truncf %324 : vector<64x8xf32> to vector<64x8xbf16>
    %cst_134 = arith.constant dense<0.000000e+00> : vector<64x64xf32>
    %326 = tpu.matmul %321, %323, %cst_134 {dimension_numbers = #tpu.dot_dimension_numbers<[1], [1], [0], [0], [0, 0, 1, 0], [], []>} : vector<64x8xbf16>, vector<64x8xbf16>, vector<64x64xf32> -> vector<64x64xf32>
    %c6 = arith.constant 6 : index
    %c0_135 = arith.constant 0 : index
    %c0_136 = arith.constant 0 : index
    %327 = vector.load %arg10[%c6, %c0_135, %c0_136] : memref<8x64x64xf32, #tpu.memory_space<vmem>>, vector<1x64x64xf32>
    %328 = vector.shape_cast %327 : vector<1x64x64xf32> to vector<64x64xf32>
    %329 = arith.addf %326, %328 : vector<64x64xf32>
    %cst_137 = arith.constant dense<0xFF800000> : vector<64xf32>
    %330 = vector.multi_reduction <maximumf>, %329, %cst_137 [1] : vector<64x64xf32> to vector<64xf32>
    %331 = vector.shape_cast %330 : vector<64xf32> to vector<64x1xf32>
    %332 = vector.broadcast %331 : vector<64x1xf32> to vector<64x64xf32>
    %333 = arith.subf %329, %332 : vector<64x64xf32>
    %334 = math.exp %333 : vector<64x64xf32>
    %cst_138 = arith.constant dense<0.000000e+00> : vector<64xf32>
    %335 = vector.multi_reduction <add>, %334, %cst_138 [1] : vector<64x64xf32> to vector<64xf32>
    %336 = vector.shape_cast %335 : vector<64xf32> to vector<64x1xf32>
    %337 = tpu.reciprocal %336 {approx = true} : vector<64x1xf32> -> vector<64x1xf32>
    %338 = arith.truncf %334 : vector<64x64xf32> to vector<64x64xbf16>
    %cst_139 = arith.constant dense<0.000000e+00> : vector<64x8xf32>
    %339 = tpu.matmul %338, %325, %cst_139 {dimension_numbers = #tpu.dot_dimension_numbers<[1], [0], [0], [1], [0, 0, 1, 1], [], []>} : vector<64x64xbf16>, vector<64x8xbf16>, vector<64x8xf32> -> vector<64x8xf32>
    %340 = vector.broadcast %337 : vector<64x1xf32> to vector<64x8xf32>
    %341 = arith.mulf %339, %340 : vector<64x8xf32>
    %342 = arith.truncf %341 : vector<64x8xf32> to vector<64x8xbf16>
    %343 = vector.extract_strided_slice %264 {offsets = [16, 0], sizes = [8, 32], strides = [1, 1]} : vector<32x32xf32> to vector<8x32xf32>
    %344 = arith.truncf %343 : vector<8x32xf32> to vector<8x32xbf16>
    %cst_140 = arith.constant dense<0.000000e+00> : vector<64x32xf32>
    %345 = tpu.matmul %342, %344, %cst_140 {dimension_numbers = #tpu.dot_dimension_numbers<[1], [0], [0], [1], [0, 0, 1, 1], [], []>} : vector<64x8xbf16>, vector<8x32xbf16>, vector<64x32xf32> -> vector<64x32xf32>
    %346 = arith.addf %319, %345 : vector<64x32xf32>
    %347 = vector.extract_strided_slice %262 {offsets = [0, 24], sizes = [64, 8], strides = [1, 1]} : vector<64x96xf32> to vector<64x8xf32>
    %348 = arith.truncf %347 : vector<64x8xf32> to vector<64x8xbf16>
    %349 = vector.extract_strided_slice %262 {offsets = [0, 56], sizes = [64, 8], strides = [1, 1]} : vector<64x96xf32> to vector<64x8xf32>
    %350 = arith.truncf %349 : vector<64x8xf32> to vector<64x8xbf16>
    %351 = vector.extract_strided_slice %262 {offsets = [0, 88], sizes = [64, 8], strides = [1, 1]} : vector<64x96xf32> to vector<64x8xf32>
    %352 = arith.truncf %351 : vector<64x8xf32> to vector<64x8xbf16>
    %cst_141 = arith.constant dense<0.000000e+00> : vector<64x64xf32>
    %353 = tpu.matmul %348, %350, %cst_141 {dimension_numbers = #tpu.dot_dimension_numbers<[1], [1], [0], [0], [0, 0, 1, 0], [], []>} : vector<64x8xbf16>, vector<64x8xbf16>, vector<64x64xf32> -> vector<64x64xf32>
    %c7 = arith.constant 7 : index
    %c0_142 = arith.constant 0 : index
    %c0_143 = arith.constant 0 : index
    %354 = vector.load %arg10[%c7, %c0_142, %c0_143] : memref<8x64x64xf32, #tpu.memory_space<vmem>>, vector<1x64x64xf32>
    %355 = vector.shape_cast %354 : vector<1x64x64xf32> to vector<64x64xf32>
    %356 = arith.addf %353, %355 : vector<64x64xf32>
    %cst_144 = arith.constant dense<0xFF800000> : vector<64xf32>
    %357 = vector.multi_reduction <maximumf>, %356, %cst_144 [1] : vector<64x64xf32> to vector<64xf32>
    %358 = vector.shape_cast %357 : vector<64xf32> to vector<64x1xf32>
    %359 = vector.broadcast %358 : vector<64x1xf32> to vector<64x64xf32>
    %360 = arith.subf %356, %359 : vector<64x64xf32>
    %361 = math.exp %360 : vector<64x64xf32>
    %cst_145 = arith.constant dense<0.000000e+00> : vector<64xf32>
    %362 = vector.multi_reduction <add>, %361, %cst_145 [1] : vector<64x64xf32> to vector<64xf32>
    %363 = vector.shape_cast %362 : vector<64xf32> to vector<64x1xf32>
    %364 = tpu.reciprocal %363 {approx = true} : vector<64x1xf32> -> vector<64x1xf32>
    %365 = arith.truncf %361 : vector<64x64xf32> to vector<64x64xbf16>
    %cst_146 = arith.constant dense<0.000000e+00> : vector<64x8xf32>
    %366 = tpu.matmul %365, %352, %cst_146 {dimension_numbers = #tpu.dot_dimension_numbers<[1], [0], [0], [1], [0, 0, 1, 1], [], []>} : vector<64x64xbf16>, vector<64x8xbf16>, vector<64x8xf32> -> vector<64x8xf32>
    %367 = vector.broadcast %364 : vector<64x1xf32> to vector<64x8xf32>
    %368 = arith.mulf %366, %367 : vector<64x8xf32>
    %369 = arith.truncf %368 : vector<64x8xf32> to vector<64x8xbf16>
    %370 = vector.extract_strided_slice %264 {offsets = [24, 0], sizes = [8, 32], strides = [1, 1]} : vector<32x32xf32> to vector<8x32xf32>
    %371 = arith.truncf %370 : vector<8x32xf32> to vector<8x32xbf16>
    %cst_147 = arith.constant dense<0.000000e+00> : vector<64x32xf32>
    %372 = tpu.matmul %369, %371, %cst_147 {dimension_numbers = #tpu.dot_dimension_numbers<[1], [0], [0], [1], [0, 0, 1, 1], [], []>} : vector<64x8xbf16>, vector<8x32xbf16>, vector<64x32xf32> -> vector<64x32xf32>
    %373 = arith.addf %346, %372 : vector<64x32xf32>
    %374 = arith.addf %230, %373 : vector<64x32xf32>
    %c1_148 = arith.constant 1 : index
    %c0_149 = arith.constant 0 : index
    %c0_150 = arith.constant 0 : index
    %375 = vector.load %arg12[%c1_148, %c0_149, %c0_150] : memref<2x1x32xf32, #tpu.memory_space<vmem>>, vector<1x1x32xf32>
    %376 = vector.shape_cast %375 : vector<1x1x32xf32> to vector<1x32xf32>
    %377 = vector.broadcast %376 : vector<1x32xf32> to vector<64x32xf32>
    %378 = arith.addf %374, %377 : vector<64x32xf32>
    %c1_151 = arith.constant 1 : index
    %c0_152 = arith.constant 0 : index
    %c0_153 = arith.constant 0 : index
    %379 = vector.load %arg13[%c1_151, %c0_152, %c0_153] : memref<2x1x32xf32, #tpu.memory_space<vmem>>, vector<1x1x32xf32>
    %380 = vector.shape_cast %379 : vector<1x1x32xf32> to vector<1x32xf32>
    %c1_154 = arith.constant 1 : index
    %c0_155 = arith.constant 0 : index
    %c0_156 = arith.constant 0 : index
    %381 = vector.load %arg14[%c1_154, %c0_155, %c0_156] : memref<2x1x32xf32, #tpu.memory_space<vmem>>, vector<1x1x32xf32>
    %382 = vector.shape_cast %381 : vector<1x1x32xf32> to vector<1x32xf32>
    %cst_157 = arith.constant dense<0.000000e+00> : vector<64xf32>
    %383 = vector.multi_reduction <add>, %378, %cst_157 [1] : vector<64x32xf32> to vector<64xf32>
    %384 = vector.shape_cast %383 : vector<64xf32> to vector<64x1xf32>
    %cst_158 = arith.constant 3.200000e+01 : f32
    %385 = vector.broadcast %cst_158 : f32 to vector<64x1xf32>
    %386 = arith.divf %384, %385 : vector<64x1xf32>
    %387 = vector.broadcast %386 : vector<64x1xf32> to vector<64x32xf32>
    %388 = arith.subf %378, %387 : vector<64x32xf32>
    %389 = arith.mulf %388, %388 : vector<64x32xf32>
    %cst_159 = arith.constant dense<0.000000e+00> : vector<64xf32>
    %390 = vector.multi_reduction <add>, %389, %cst_159 [1] : vector<64x32xf32> to vector<64xf32>
    %391 = vector.shape_cast %390 : vector<64xf32> to vector<64x1xf32>
    %cst_160 = arith.constant 3.200000e+01 : f32
    %392 = vector.broadcast %cst_160 : f32 to vector<64x1xf32>
    %393 = arith.divf %391, %392 : vector<64x1xf32>
    %cst_161 = arith.constant 9.99999974E-6 : f32
    %394 = vector.broadcast %cst_161 : f32 to vector<64x1xf32>
    %395 = arith.addf %393, %394 : vector<64x1xf32>
    %396 = math.rsqrt %395 : vector<64x1xf32>
    %397 = vector.broadcast %396 : vector<64x1xf32> to vector<64x32xf32>
    %398 = arith.mulf %388, %397 : vector<64x32xf32>
    %399 = vector.broadcast %380 : vector<1x32xf32> to vector<64x32xf32>
    %400 = arith.mulf %398, %399 : vector<64x32xf32>
    %401 = vector.broadcast %382 : vector<1x32xf32> to vector<64x32xf32>
    %402 = arith.addf %400, %401 : vector<64x32xf32>
    %403 = arith.truncf %402 : vector<64x32xf32> to vector<64x32xbf16>
    %c1_162 = arith.constant 1 : index
    %c0_163 = arith.constant 0 : index
    %c0_164 = arith.constant 0 : index
    %404 = vector.load %arg15[%c1_162, %c0_163, %c0_164] : memref<2x32x128xbf16, #tpu.memory_space<vmem>>, vector<1x32x128xbf16>
    %405 = vector.shape_cast %404 : vector<1x32x128xbf16> to vector<32x128xbf16>
    %cst_165 = arith.constant dense<0.000000e+00> : vector<64x128xf32>
    %406 = tpu.matmul %403, %405, %cst_165 {dimension_numbers = #tpu.dot_dimension_numbers<[1], [0], [0], [1], [0, 0, 1, 1], [], []>} : vector<64x32xbf16>, vector<32x128xbf16>, vector<64x128xf32> -> vector<64x128xf32>
    %c1_166 = arith.constant 1 : index
    %c0_167 = arith.constant 0 : index
    %c0_168 = arith.constant 0 : index
    %407 = vector.load %arg16[%c1_166, %c0_167, %c0_168] : memref<2x1x128xf32, #tpu.memory_space<vmem>>, vector<1x1x128xf32>
    %408 = vector.shape_cast %407 : vector<1x1x128xf32> to vector<1x128xf32>
    %409 = vector.broadcast %408 : vector<1x128xf32> to vector<64x128xf32>
    %410 = arith.addf %406, %409 : vector<64x128xf32>
    %cst_169 = arith.constant 5.000000e-01 : f32
    %411 = vector.broadcast %cst_169 : f32 to vector<64x128xf32>
    %412 = arith.mulf %411, %410 : vector<64x128xf32>
    %cst_170 = arith.constant 4.471500e-02 : f32
    %413 = vector.broadcast %cst_170 : f32 to vector<64x128xf32>
    %414 = arith.mulf %413, %410 : vector<64x128xf32>
    %415 = arith.mulf %414, %410 : vector<64x128xf32>
    %416 = arith.mulf %415, %410 : vector<64x128xf32>
    %417 = arith.addf %410, %416 : vector<64x128xf32>
    %cst_171 = arith.constant 0.797884583 : f32
    %418 = vector.broadcast %cst_171 : f32 to vector<64x128xf32>
    %419 = arith.mulf %418, %417 : vector<64x128xf32>
    %420 = math.tanh %419 : vector<64x128xf32>
    %cst_172 = arith.constant 1.000000e+00 : f32
    %421 = vector.broadcast %cst_172 : f32 to vector<64x128xf32>
    %422 = arith.addf %421, %420 : vector<64x128xf32>
    %423 = arith.mulf %412, %422 : vector<64x128xf32>
    %424 = arith.truncf %423 : vector<64x128xf32> to vector<64x128xbf16>
    %c1_173 = arith.constant 1 : index
    %c0_174 = arith.constant 0 : index
    %c0_175 = arith.constant 0 : index
    %425 = vector.load %arg17[%c1_173, %c0_174, %c0_175] : memref<2x128x32xbf16, #tpu.memory_space<vmem>>, vector<1x128x32xbf16>
    %426 = vector.shape_cast %425 : vector<1x128x32xbf16> to vector<128x32xbf16>
    %cst_176 = arith.constant dense<0.000000e+00> : vector<64x32xf32>
    %427 = tpu.matmul %424, %426, %cst_176 {dimension_numbers = #tpu.dot_dimension_numbers<[1], [0], [0], [1], [0, 0, 1, 1], [], []>} : vector<64x128xbf16>, vector<128x32xbf16>, vector<64x32xf32> -> vector<64x32xf32>
    %c1_177 = arith.constant 1 : index
    %c0_178 = arith.constant 0 : index
    %c0_179 = arith.constant 0 : index
    %428 = vector.load %arg18[%c1_177, %c0_178, %c0_179] : memref<2x1x32xf32, #tpu.memory_space<vmem>>, vector<1x1x32xf32>
    %429 = vector.shape_cast %428 : vector<1x1x32xf32> to vector<1x32xf32>
    %430 = vector.broadcast %429 : vector<1x32xf32> to vector<64x32xf32>
    %431 = arith.addf %427, %430 : vector<64x32xf32>
    %432 = arith.addf %378, %431 : vector<64x32xf32>
    %c0_180 = arith.constant 0 : index
    %c0_181 = arith.constant 0 : index
    %433 = vector.load %arg19[%c0_180, %c0_181] : memref<1x32xf32, #tpu.memory_space<vmem>>, vector<1x32xf32>
    %c0_182 = arith.constant 0 : index
    %c0_183 = arith.constant 0 : index
    %434 = vector.load %arg20[%c0_182, %c0_183] : memref<1x32xf32, #tpu.memory_space<vmem>>, vector<1x32xf32>
    %cst_184 = arith.constant dense<0.000000e+00> : vector<64xf32>
    %435 = vector.multi_reduction <add>, %432, %cst_184 [1] : vector<64x32xf32> to vector<64xf32>
    %436 = vector.shape_cast %435 : vector<64xf32> to vector<64x1xf32>
    %cst_185 = arith.constant 3.200000e+01 : f32
    %437 = vector.broadcast %cst_185 : f32 to vector<64x1xf32>
    %438 = arith.divf %436, %437 : vector<64x1xf32>
    %439 = vector.broadcast %438 : vector<64x1xf32> to vector<64x32xf32>
    %440 = arith.subf %432, %439 : vector<64x32xf32>
    %441 = arith.mulf %440, %440 : vector<64x32xf32>
    %cst_186 = arith.constant dense<0.000000e+00> : vector<64xf32>
    %442 = vector.multi_reduction <add>, %441, %cst_186 [1] : vector<64x32xf32> to vector<64xf32>
    %443 = vector.shape_cast %442 : vector<64xf32> to vector<64x1xf32>
    %cst_187 = arith.constant 3.200000e+01 : f32
    %444 = vector.broadcast %cst_187 : f32 to vector<64x1xf32>
    %445 = arith.divf %443, %444 : vector<64x1xf32>
    %cst_188 = arith.constant 9.99999974E-6 : f32
    %446 = vector.broadcast %cst_188 : f32 to vector<64x1xf32>
    %447 = arith.addf %445, %446 : vector<64x1xf32>
    %448 = math.rsqrt %447 : vector<64x1xf32>
    %449 = vector.broadcast %448 : vector<64x1xf32> to vector<64x32xf32>
    %450 = arith.mulf %440, %449 : vector<64x32xf32>
    %451 = vector.broadcast %433 : vector<1x32xf32> to vector<64x32xf32>
    %452 = arith.mulf %450, %451 : vector<64x32xf32>
    %453 = vector.broadcast %434 : vector<1x32xf32> to vector<64x32xf32>
    %454 = arith.addf %452, %453 : vector<64x32xf32>
    %cst_189 = arith.constant dense<0.000000e+00> : vector<32xf32>
    %455 = vector.multi_reduction <add>, %454, %cst_189 [0] : vector<64x32xf32> to vector<32xf32>
    %456 = vector.shape_cast %455 : vector<32xf32> to vector<1x32xf32>
    %cst_190 = arith.constant 6.400000e+01 : f32
    %457 = vector.broadcast %cst_190 : f32 to vector<1x32xf32>
    %458 = arith.divf %456, %457 : vector<1x32xf32>
    %459 = arith.truncf %458 : vector<1x32xf32> to vector<1x32xbf16>
    %c0_191 = arith.constant 0 : index
    %c0_192 = arith.constant 0 : index
    %460 = vector.load %arg21[%c0_191, %c0_192] : memref<32x10xbf16, #tpu.memory_space<vmem>>, vector<32x10xbf16>
    %cst_193 = arith.constant dense<0.000000e+00> : vector<1x10xf32>
    %461 = tpu.matmul %459, %460, %cst_193 {dimension_numbers = #tpu.dot_dimension_numbers<[1], [0], [0], [1], [0, 0, 1, 1], [], []>} : vector<1x32xbf16>, vector<32x10xbf16>, vector<1x10xf32> -> vector<1x10xf32>
    %c0_194 = arith.constant 0 : index
    %c0_195 = arith.constant 0 : index
    %462 = vector.load %arg22[%c0_194, %c0_195] : memref<1x10xf32, #tpu.memory_space<vmem>>, vector<1x10xf32>
    %463 = arith.addf %461, %462 : vector<1x10xf32>
    %c0_196 = arith.constant 0 : index
    %c0_197 = arith.constant 0 : index
    %c0_198 = arith.constant 0 : index
    %464 = vector.load %arg23[%c0_196, %c0_197, %c0_198] : memref<1x1x10xf32, #tpu.memory_space<vmem>>, vector<1x1x10xf32>
    %465 = vector.shape_cast %464 : vector<1x1x10xf32> to vector<1x10xf32>
    %466 = vector.shape_cast %463 : vector<1x10xf32> to vector<1x1x10xf32>
    tpu.vector_store %arg23[%c0_196, %c0_197, %c0_198], %466 {strides = array<i32>} : memref<1x1x10xf32, #tpu.memory_space<vmem>>, vector<1x1x10xf32>,
    return
  }
  func.func @transform_0(%arg0: i32) -> (i32, i32, i32) {
    %c0_i32 = arith.constant 0 : i32
    %c0_i32_0 = arith.constant 0 : i32
    %c0_i32_1 = arith.constant 0 : i32
    return %arg0, %c0_i32, %c0_i32_0 : i32, i32, i32
  }
  func.func @transform_1(%arg0: i32) -> (i32, i32) {
    %c0_i32 = arith.constant 0 : i32
    %c0_i32_0 = arith.constant 0 : i32
    %c0_i32_1 = arith.constant 0 : i32
    return %c0_i32, %c0_i32_0 : i32, i32
  }
  func.func @transform_2(%arg0: i32) -> (i32, i32) {
    %c0_i32 = arith.constant 0 : i32
    %c0_i32_0 = arith.constant 0 : i32
    %c0_i32_1 = arith.constant 0 : i32
    return %c0_i32, %c0_i32_0 : i32, i32
  }
  func.func @transform_3(%arg0: i32) -> (i32, i32) {
    %c0_i32 = arith.constant 0 : i32
    %c0_i32_0 = arith.constant 0 : i32
    %c0_i32_1 = arith.constant 0 : i32
    return %c0_i32, %c0_i32_0 : i32, i32
  }
  func.func @transform_4(%arg0: i32) -> (i32, i32) {
    %c0_i32 = arith.constant 0 : i32
    %c0_i32_0 = arith.constant 0 : i32
    %c0_i32_1 = arith.constant 0 : i32
    return %c0_i32, %c0_i32_0 : i32, i32
  }
  func.func @transform_5(%arg0: i32) -> (i32, i32, i32) {
    %c0_i32 = arith.constant 0 : i32
    %c0_i32_0 = arith.constant 0 : i32
    %c0_i32_1 = arith.constant 0 : i32
    %c0_i32_2 = arith.constant 0 : i32
    return %c0_i32, %c0_i32_0, %c0_i32_1 : i32, i32, i32
  }
  func.func @transform_6(%arg0: i32) -> (i32, i32, i32) {
    %c0_i32 = arith.constant 0 : i32
    %c0_i32_0 = arith.constant 0 : i32
    %c0_i32_1 = arith.constant 0 : i32
    %c0_i32_2 = arith.constant 0 : i32
    return %c0_i32, %c0_i32_0, %c0_i32_1 : i32, i32, i32
  }
  func.func @transform_7(%arg0: i32) -> (i32, i32, i32) {
    %c0_i32 = arith.constant 0 : i32
    %c0_i32_0 = arith.constant 0 : i32
    %c0_i32_1 = arith.constant 0 : i32
    %c0_i32_2 = arith.constant 0 : i32
    return %c0_i32, %c0_i32_0, %c0_i32_1 : i32, i32, i32
  }
  func.func @transform_8(%arg0: i32) -> (i32, i32, i32) {
    %c0_i32 = arith.constant 0 : i32
    %c0_i32_0 = arith.constant 0 : i32
    %c0_i32_1 = arith.constant 0 : i32
    %c0_i32_2 = arith.constant 0 : i32
    return %c0_i32, %c0_i32_0, %c0_i32_1 : i32, i32, i32
  }
  func.func @transform_9(%arg0: i32) -> (i32, i32, i32) {
    %c0_i32 = arith.constant 0 : i32
    %c0_i32_0 = arith.constant 0 : i32
    %c0_i32_1 = arith.constant 0 : i32
    %c0_i32_2 = arith.constant 0 : i32
    return %c0_i32, %c0_i32_0, %c0_i32_1 : i32, i32, i32
  }
  func.func @transform_10(%arg0: i32) -> (i32, i32, i32) {
    %c0_i32 = arith.constant 0 : i32
    %c0_i32_0 = arith.constant 0 : i32
    %c0_i32_1 = arith.constant 0 : i32
    %c0_i32_2 = arith.constant 0 : i32
    return %c0_i32, %c0_i32_0, %c0_i32_1 : i32, i32, i32
  }
  func.func @transform_11(%arg0: i32) -> (i32, i32, i32) {
    %c0_i32 = arith.constant 0 : i32
    %c0_i32_0 = arith.constant 0 : i32
    %c0_i32_1 = arith.constant 0 : i32
    %c0_i32_2 = arith.constant 0 : i32
    return %c0_i32, %c0_i32_0, %c0_i32_1 : i32, i32, i32
  }
  func.func @transform_12(%arg0: i32) -> (i32, i32, i32) {
    %c0_i32 = arith.constant 0 : i32
    %c0_i32_0 = arith.constant 0 : i32
    %c0_i32_1 = arith.constant 0 : i32
    %c0_i32_2 = arith.constant 0 : i32
    return %c0_i32, %c0_i32_0, %c0_i32_1 : i32, i32, i32
  }
  func.func @transform_13(%arg0: i32) -> (i32, i32, i32) {
    %c0_i32 = arith.constant 0 : i32
    %c0_i32_0 = arith.constant 0 : i32
    %c0_i32_1 = arith.constant 0 : i32
    %c0_i32_2 = arith.constant 0 : i32
    return %c0_i32, %c0_i32_0, %c0_i32_1 : i32, i32, i32
  }
  func.func @transform_14(%arg0: i32) -> (i32, i32, i32) {
    %c0_i32 = arith.constant 0 : i32
    %c0_i32_0 = arith.constant 0 : i32
    %c0_i32_1 = arith.constant 0 : i32
    %c0_i32_2 = arith.constant 0 : i32
    return %c0_i32, %c0_i32_0, %c0_i32_1 : i32, i32, i32
  }
  func.func @transform_15(%arg0: i32) -> (i32, i32, i32) {
    %c0_i32 = arith.constant 0 : i32
    %c0_i32_0 = arith.constant 0 : i32
    %c0_i32_1 = arith.constant 0 : i32
    %c0_i32_2 = arith.constant 0 : i32
    return %c0_i32, %c0_i32_0, %c0_i32_1 : i32, i32, i32
  }
  func.func @transform_16(%arg0: i32) -> (i32, i32, i32) {
    %c0_i32 = arith.constant 0 : i32
    %c0_i32_0 = arith.constant 0 : i32
    %c0_i32_1 = arith.constant 0 : i32
    %c0_i32_2 = arith.constant 0 : i32
    return %c0_i32, %c0_i32_0, %c0_i32_1 : i32, i32, i32
  }
  func.func @transform_17(%arg0: i32) -> (i32, i32, i32) {
    %c0_i32 = arith.constant 0 : i32
    %c0_i32_0 = arith.constant 0 : i32
    %c0_i32_1 = arith.constant 0 : i32
    %c0_i32_2 = arith.constant 0 : i32
    return %c0_i32, %c0_i32_0, %c0_i32_1 : i32, i32, i32
  }
  func.func @transform_18(%arg0: i32) -> (i32, i32) {
    %c0_i32 = arith.constant 0 : i32
    %c0_i32_0 = arith.constant 0 : i32
    %c0_i32_1 = arith.constant 0 : i32
    return %c0_i32, %c0_i32_0 : i32, i32
  }
  func.func @transform_19(%arg0: i32) -> (i32, i32) {
    %c0_i32 = arith.constant 0 : i32
    %c0_i32_0 = arith.constant 0 : i32
    %c0_i32_1 = arith.constant 0 : i32
    return %c0_i32, %c0_i32_0 : i32, i32
  }
  func.func @transform_20(%arg0: i32) -> (i32, i32) {
    %c0_i32 = arith.constant 0 : i32
    %c0_i32_0 = arith.constant 0 : i32
    %c0_i32_1 = arith.constant 0 : i32
    return %c0_i32, %c0_i32_0 : i32, i32
  }
  func.func @transform_21(%arg0: i32) -> (i32, i32) {
    %c0_i32 = arith.constant 0 : i32
    %c0_i32_0 = arith.constant 0 : i32
    %c0_i32_1 = arith.constant 0 : i32
    return %c0_i32, %c0_i32_0 : i32, i32
  }
  func.func @transform_22(%arg0: i32) -> (i32, i32, i32) {
    %c0_i32 = arith.constant 0 : i32
    %c0_i32_0 = arith.constant 0 : i32
    %c0_i32_1 = arith.constant 0 : i32
    return %arg0, %c0_i32, %c0_i32_0 : i32, i32, i32
  }
}

</mosaic_0001>

<bundles_post_ra>
// kernel: nat_isotropic_forward.1
= control target key start
LH: loop header
LB: loop body
LE: loop exit
PB: predicated region body
PF: predicated region fallthrough
CT: control target
= control target key end

     0   :  { %s8178_s0 = inlined_call_operand.vmem [shape: bf16[2,64,48], index: 0, kind: input, shape index: {}]   ;;  %s8179_s1 = inlined_call_operand.vmem [shape: bf16[48,32], index: 1, kind: input, shape index: {}]   ;;  %s8180_s2 = inlined_call_operand.vmem [shape: f32[1,32], index: 2, kind: input, shape index: {}]   ;;  %s8181_s3 = inlined_call_operand.vmem [shape: f32[1,32], index: 3, kind: input, shape index: {}]   ;;  %s8182_s4 = inlined_call_operand.vmem [shape: f32[1,32], index: 4, kind: input, shape index: {}]   ;;  %s8183_s5 = inlined_call_operand.vmem [shape: f32[2,1,32], index: 5, kind: input, shape index: {}]   ;;  %s8184_s6 = inlined_call_operand.vmem [shape: f32[2,1,32], index: 6, kind: input, shape index: {}]   ;;  %s8185_s7 = inlined_call_operand.vmem [shape: bf16[2,32,96], index: 7, kind: input, shape index: {}]   ;;  %s8186_s8 = inlined_call_operand.vmem [shape: f32[2,1,96], index: 8, kind: input, shape index: {}]   ;;  %s8187_s9 = inlined_call_operand.vmem [shape: f32[8,64,64], index: 9, kind: input, shape index: {}]   ;;  %s8188_s10 = inlined_call_operand.vmem [shape: f32[2,32,32], index: 10, kind: input, shape index: {}]   ;;  %s8189_s11 = inlined_call_operand.vmem [shape: f32[2,1,32], index: 11, kind: input, shape index: {}]   ;;  %s8190_s12 = inlined_call_operand.vmem [shape: f32[2,1,32], index: 12, kind: input, shape index: {}]   ;;  %s8191_s13 = inlined_call_operand.vmem [shape: f32[2,1,32], index: 13, kind: input, shape index: {}]   ;;  %s8192_s14 = inlined_call_operand.vmem [shape: bf16[2,32,128], index: 14, kind: input, shape index: {}]   ;;  %s8193_s15 = inlined_call_operand.vmem [shape: f32[2,1,128], index: 15, kind: input, shape index: {}]   ;;  %s8194_s16 = inlined_call_operand.vmem [shape: bf16[2,128,32], index: 16, kind: input, shape index: {}]   ;;  %s8195_s17 = inlined_call_operand.vmem [shape: f32[2,1,32], index: 17, kind: input, shape index: {}]   ;;  %s8196_s18 = inlined_call_operand.vmem [shape: f32[1,32], index: 18, kind: input, shape index: {}]   ;;  %s8197_s19 = inlined_call_operand.vmem [shape: f32[1,32], index: 19, kind: input, shape index: {}]   ;;  %s8198_s20 = inlined_call_operand.vmem [shape: bf16[32,10], index: 20, kind: input, shape index: {}]   ;;  %s8199_s21 = inlined_call_operand.vmem [shape: f32[1,10], index: 21, kind: input, shape index: {}]   ;;  %s8200_s22 = inlined_call_operand.hbm [shape: f32[2,1,10], index: 22, kind: output, shape index: {}]  }
   0x1   :  { %8230 = sst [smem:[#allocation11_spill]] %s8178_s0 }
   0x2   :  { %8231 = sst [smem:[#allocation12_spill]] %s8179_s1 }
   0x3   :  { %8232 = sst [smem:[#allocation13_spill]] %s8180_s2 }
   0x4   :  { %8233 = sst [smem:[#allocation14_spill]] %s8181_s3 }
   0x5   :  { %8234 = sst [smem:[#allocation15_spill]] %s8182_s4 }
   0x6   :  { %8235 = sst [smem:[#allocation16_spill]] %s8183_s5 }
   0x7   :  { %8236 = sst [smem:[#allocation17_spill]] %s8184_s6 }
   0x8   :  { %8237 = sst [smem:[#allocation18_spill]] %s8185_s7 }
   0x9   :  { %8238 = sst [smem:[#allocation19_spill]] %s8186_s8 }
   0xa   :  { %8239 = sst [smem:[#allocation20_spill]] %s8187_s9 }
   0xb   :  { %8240 = sst [smem:[#allocation21_spill]] %s8188_s10 }
   0xc   :  { %27 = vsyncpa [#allocation3], 0 }
   0xd   :  { %29 = vsyncpa [#allocation3 + $0x1], 0  ;;  %s6049_s3 = smov 0   ;;  %s6051_s28 = smov 0  }
   0xe   :  { %s6053_s29 = smov 0   ;;  %s6055_s30 = smov 0  }
   0xf LB: > { %8241 = sst [smem:[#allocation5_spill]] %s5907_s3  ;;  %s6070_s4 = sadd.s32 4294967295, %s5919_s30   ;;  %s5919_s30 = sphi %s6055_s30, %s8284_s30   ;;  %s5915_s29 = sphi %s6053_s29, %s8286_s29   ;;  %s5911_s28 = sphi %s6051_s28, %s8288_s28   ;;  %s5907_s3 = sphi %s6049_s3, %s8287_s3  }
  0x10   : > { %8242 = sst [smem:[#allocation6_spill]] %s5915_s29  ;;  %s5013_s0 = sadd.s32 4294967294, %s5919_s30  }
  0x11   : > { %8243 = sst [smem:[#allocation7_spill]] %s5919_s30  ;;  %s6074_s23 = sadd.s32 1, %s5919_s30  }
  0x12   : > { %8244 = sst [smem:[#allocation8_spill]] %s6074_s23  ;;  %s509_s1 = sadd.s32 1, %s5915_s29 }
  0x13   : > { %s506_s5 = ssub.s32 %s5919_s30, %s6074_s23  ;;  %p519_p0 = scmp.ne.s32.totalorder %s5915_s29, %s5911_s28 }
  0x14   : > { %p507_p1 = scmp.eq.s32.totalorder %s506_s5, 0  ;;  %p520_p2 = scmp.eq.s32.totalorder %s6070_s4, 1 }
  0x15   : > { %p525_p3 = scmp.ne.s32.totalorder %s5911_s28, %s5907_s3  ;;  %p526_p4 = scmp.eq.s32.totalorder %s5013_s0, 1 }
  0x16   : > { %s6085_s24 = scalar_select %p507_p1, %s5915_s29, %s509_s1  }
  0x17   : > { %p6087_p5 = por %p520_p2, %p519_p0  ;;  %p6091_p6 = por %p526_p4, %p525_p3 }
  0x18   : > { %8245 = sst [smem:[#allocation9_spill]] %s6085_s24  ;;  %p5016_p7 = scmp.ge.s32.totalorder %s5919_s30, 1 }
  0x19   : > { %s8247_s25 = scalar_select %p6091_p6, 1, 0 }
  0x1a   : > { %p615_p8 = scmp.lt.s32.totalorder %s5919_s30, 3 }
  0x1b   : > { %8248 = sst [smem:[#allocation10_spill]] %s8247_s25 }
  0x1c   : > { %p616_p9 = pnand %p5016_p7, %p615_p8 }
  0x1d   : > { %s8249_s27 = sld [smem:[#allocation12_spill]] (!%p616_p9)  ;;  %p676_p10 = scmp.lt.s32.totalorder (!%p616_p9), %s6070_s4, 1 }
  0x1e   : > { %619 = sbr.rel (%p616_p9) target bundleno = 5703 (0x1647), region = 108  ;;  %s8250_s30 = sld [smem:[#allocation11_spill]] (!%p616_p9) }
  0x1f   : > { %s8251_s1 = sld [smem:[#allocation13_spill]] (!%p616_p9)  ;;  %s5922_s2 = smov (!%p616_p9), 96  }
  0x20   : > { %s8253_s25 = sld [smem:[#allocation15_spill]] (!%p616_p9)  ;;  %s8210_s0 = smov (!%p616_p9), 64  }
  0x21   : > { %s8254_s7 = sld [smem:[#allocation18_spill]] (!%p616_p9)  ;;  %s8218_s3 = smov (!%p616_p9), 104  }
  0x22   : > { %s8255_s29 = sld [smem:[#allocation16_spill]] (!%p616_p9) }
  0x23   : > { %v5369_v0 = vld [vmem:[%s8249_s27 + $0x10] sm:$0xff]  ;;  %v5368_v1 = vld [vmem:[%s8249_s27 + $0x8] sm:$0xff]  ;;  %s677_s5 = scalar_select %p676_p10, %s6070_s4, 1  ;;  %v5367_v2 = vld [vmem:[%s8249_s27] sm:$0xff]  ;;  %vm738_vm0 = vcmask 392192   ;;  %vm782_vm1 = vcmask 261120  }
  0x24   : > { %756 = vmatpush.bf16.msra.mxu0 %v5369_v0  ;;  %v5921_v29 = vmov 32.0   ;;  %s8258_s8 = sld [smem:[#allocation19_spill]] }
  0x25   : > { %s5362_s24 = sshll.u32 %s677_s5, 5  ;;  %v5448_v7 = vld [vmem:[%s8251_s1] ss:$0 sm:$0xff]  ;;  %5469 = vrcp.f32 %v5921_v29  ;;  %s8259_s9 = sld [smem:[#allocation20_spill]] }
  0x26   : > { %s680_s26 = scalar_lea.vmem %s8250_s30, %s5362_s24  ;;  %s8252_s30 = sld [smem:[#allocation14_spill]] }
  0x27   : > { %v5363_v3 = vld [vmem:[%s680_s26] sm:$0xff]  ;;  %v5364_v4 = vld [vmem:[%s680_s26 + $0x8] sm:$0xff]  ;;  %v5365_v5 = vld [vmem:[%s680_s26 + $0x10] sm:$0xff]  ;;  %s8226_s24 = smov 120   ;;  %s8220_s5 = smov 72  }
  0x28   : > { %757 = vmatpush.bf16.msra.mxu0 %v5368_v1  ;;  %v5366_v6 = vld [vmem:[%s680_s26 + $0x18] sm:$0xff]  ;;  %s8256_s23 = smov %s8255_s29  ;;  %s8260_s10 = sld [smem:[#allocation21_spill]] }
  0x29   : > { %s8214_s26 = smov 56   ;;  %s8224_s1 = smov 40  }
  0x2b   : > { %v5470_v30 = vpop.eup %5469 }
  0x2c   : > { %758 = vmatpush.bf16.msra.mxu0 %v5367_v2  ;;  %v808_v31 = vmul.f32 32.0, %v5470_v30  ;;  %vm812_vm2 = vweird.f32 %v5470_v30 }
  0x2e   : > { %v809_v32 = vsub.f32 1.0, %v808_v31 }
  0x2f   : > { %5047 = vmatmul.msk.bf16.vlgmr.msra.gmra.mxu0 %vm738_vm0, %v5363_v3 }
  0x30   : > { %v810_v33 = vmul.f32 %v5470_v30, %v809_v32  ;;  %v6178_v32 = vld [vmem:[%s8252_s30] ss:$0 sm:$0xff]  ;;  %s8228_s30 = smov 88  }
  0x32   : > { %v811_v34 = vadd.f32 %v5470_v30, %v810_v33 }
  0x34   : > { %v6121_v35 = vsel %vm812_vm2, %v5470_v30, %v811_v34 }
  0x3f   : > { %5048 = vmatmul.msk.bf16.gmra.mxu0 %vm738_vm0, %v5364_v4 }
  0x4f   : > { %5049 = vmatmul.msk.bf16.gmra.mxu0 %vm738_vm0, %v5365_v5 }
  0x5f   : > { %5050 = vmatmul.msk.bf16.gmra.mxu0 %vm738_vm0, %v5366_v6 }
  0xac   : > { %v760_v8 = vpop.f32.mrf.mxu0 }
  0xad   : > { %v761_v9 = vadd.f32 %v5448_v7, %v760_v8 }
  0xaf   : > { %v783_v10 = vsel %vm782_vm1, %v761_v9, 0.0 }
  0xb0   : > { %784 = vadd.xlane.f32.xlu0 %v783_v10 }
  0xb4   : > { %v762_v11 = vpop.f32.mrf.mxu0 }
  0xb5   : > { %v763_v12 = vadd.f32 %v5448_v7, %v762_v11 }
  0xb7   : > { %v786_v13 = vsel %vm782_vm1, %v763_v12, 0.0 }
  0xb8   : > { %787 = vadd.xlane.f32.xlu0 %v786_v13 }
  0xbc   : > { %v765_v14 = vpop.f32.mrf.mxu0 }
  0xbd   : > { %v766_v15 = vadd.f32 %v5448_v7, %v765_v14 }
  0xbf   : > { %v789_v16 = vsel %vm782_vm1, %v766_v15, 0.0 }
  0xc0   : > { %790 = vadd.xlane.f32.xlu1 %v789_v16 }
  0xc4   : > { %v767_v17 = vpop.f32.mrf.mxu0 }
  0xc5   : > { %v768_v18 = vadd.f32 %v5448_v7, %v767_v17 }
  0xc7   : > { %v792_v19 = vsel %vm782_vm1, %v768_v18, 0.0 }
  0xc8   : > { %793 = vadd.xlane.f32.xlu1 %v792_v19 }
  0xcc   : > { %v770_v20 = vpop.f32.mrf.mxu0 }
  0xcd   : > { %v771_v21 = vadd.f32 %v5448_v7, %v770_v20 }
  0xcf   : > { %v795_v22 = vsel %vm782_vm1, %v771_v21, 0.0 }
  0xd0   : > { %796 = vadd.xlane.f32.xlu2 %v795_v22 }
  0xd4   : > { %v772_v23 = vpop.f32.mrf.mxu0 }
  0xd5   : > { %v773_v24 = vadd.f32 %v5448_v7, %v772_v23 }
  0xd7   : > { %v798_v25 = vsel %vm782_vm1, %v773_v24, 0.0 }
  0xd8   : > { %799 = vadd.xlane.f32.xlu2 %v798_v25 }
  0xdc   : > { %v775_v26 = vpop.f32.mrf.mxu0 }
  0xdd   : > { %v776_v27 = vadd.f32 %v5448_v7, %v775_v26 }
  0xdf   : > { %v801_v28 = vsel %vm782_vm1, %v776_v27, 0.0 }
  0xe0   : > { %802 = vadd.xlane.f32.xlu2 %v801_v28 }
  0xe4   : > { %v777_v41 = vpop.f32.mrf.mxu0 }
  0xe5   : > { %v778_v44 = vadd.f32 %v5448_v7, %v777_v41 }
  0xe7   : > { %v804_v47 = vsel %vm782_vm1, %v778_v44, 0.0 }
 0x123   : > { %v785_v36 = vpop.xlane.xlu0 %784 }
 0x124   : > { %v814_v37 = vmul.f32 %v6121_v35, %v785_v36 }
 0x126   : > { %v6124_v38 = vsub.f32 %v761_v9, %v814_v37  ;;  %v6184_v37 = vld [vmem:[%s8253_s25] ss:$0 sm:$0xff]  ;;  %s8257_s25 = sld [smem:[#allocation17_spill]] }
 0x128   : > { %v830_v39 = vmul.f32 %v6124_v38, %v6124_v38 }
 0x12a   : > { %v838_v40 = vsel %vm782_vm1, %v830_v39, 0.0 }
 0x12b   : > { %839 = vadd.xlane.f32.xlu0 %v838_v40  ;;  %v788_v42 = vpop.xlane.xlu0 %787 }
 0x12c   : > { %v815_v43 = vmul.f32 %v6121_v35, %v788_v42 }
 0x12e   : > { %v6130_v45 = vsub.f32 %v763_v12, %v815_v43 }
 0x130   : > { %v831_v46 = vmul.f32 %v6130_v45, %v6130_v45 }
 0x132   : > { %v841_v48 = vsel %vm782_vm1, %v831_v46, 0.0 }
 0x133   : > { %v791_v49 = vpop.xlane.xlu1 %790  ;;  %805 = vadd.xlane.f32.xlu0 %v804_v47  ;;  %842 = vadd.xlane.f32.xlu1 %v841_v48 }
 0x134   : > { %v816_v50 = vmul.f32 %v6121_v35, %v791_v49 }
 0x136   : > { %v6137_v51 = vsub.f32 %v766_v15, %v816_v50 }
 0x138   : > { %v832_v52 = vmul.f32 %v6137_v51, %v6137_v51 }
 0x13a   : > { %v844_v53 = vsel %vm782_vm1, %v832_v52, 0.0 }
 0x13b   : > { %v794_v54 = vpop.xlane.xlu1 %793  ;;  %845 = vadd.xlane.f32.xlu1 %v844_v53 }
 0x13c   : > { %v817_v55 = vmul.f32 %v6121_v35, %v794_v54 }
 0x13e   : > { %v6143_v56 = vsub.f32 %v768_v18, %v817_v55 }
 0x140   : > { %v833_v57 = vmul.f32 %v6143_v56, %v6143_v56 }
 0x142   : > { %v847_v58 = vsel %vm782_vm1, %v833_v57, 0.0 }
 0x143   : > { %v797_v59 = vpop.xlane.xlu2 %796  ;;  %848 = vadd.xlane.f32.xlu2 %v847_v58 }
 0x144   : > { %v818_v60 = vmul.f32 %v6121_v35, %v797_v59 }
 0x146   : > { %v6149_v61 = vsub.f32 %v771_v21, %v818_v60 }
 0x148   : > { %v834_v62 = vmul.f32 %v6149_v61, %v6149_v61 }
 0x14a   : > { %v850_v63 = vsel %vm782_vm1, %v834_v62, 0.0 }
 0x14b   : > { %v800_v0 = vpop.xlane.xlu2 %799  ;;  %851 = vadd.xlane.f32.xlu0 %v850_v63 }
 0x14c   : > { %v819_v1 = vmul.f32 %v6121_v35, %v800_v0 }
 0x14e   : > { %v6155_v2 = vsub.f32 %v773_v24, %v819_v1 }
 0x150   : > { %v835_v3 = vmul.f32 %v6155_v2, %v6155_v2 }
 0x152   : > { %v853_v4 = vsel %vm782_vm1, %v835_v3, 0.0 }
 0x153   : > { %v803_v5 = vpop.xlane.xlu2 %802  ;;  %854 = vadd.xlane.f32.xlu1 %v853_v4 }
 0x154   : > { %v820_v6 = vmul.f32 %v6121_v35, %v803_v5 }
 0x156   : > { %v6161_v7 = vsub.f32 %v776_v27, %v820_v6 }
 0x158   : > { %v836_v8 = vmul.f32 %v6161_v7, %v6161_v7 }
 0x15a   : > { %v856_v9 = vsel %vm782_vm1, %v836_v8, 0.0 }
 0x15b   : > { %857 = vadd.xlane.f32.xlu2 %v856_v9 }
 0x19e   : > { %v840_v10 = vpop.xlane.xlu0 %839 }
 0x19f   : > { %v862_v11 = vmul.f32 %v840_v10, %v6121_v35 }
 0x1a1   : > { %v870_v12 = vadd.f32 1e-05, %v862_v11 }
 0x1a3   : > { %5471 = vrsqrt.f32 %v870_v12  ;;  %vm884_vm4 = vweird.f32 %v870_v12 }
 0x1a6   : > { %v843_v13 = vpop.xlane.xlu1 %842  ;;  %v806_v14 = vpop.xlane.xlu0 %805 }
 0x1a7   : > { %v863_v15 = vmul.f32 %v843_v13, %v6121_v35  ;;  %v821_v16 = vmul.f32 %v6121_v35, %v806_v14 }
 0x1a9   : > { %v5472_v17 = vpop.eup %5471  ;;  %v871_v18 = vadd.f32 1e-05, %v863_v15  ;;  %v6169_v19 = vsub.f32 %v778_v44, %v821_v16 }
 0x1aa   : > { %v879_v20 = vmul.f32 %v5472_v17, %v870_v12  ;;  %vm885_vm3 = vweird.f32 %v5472_v17 }
 0x1ab   : > { %5473 = vrsqrt.f32 %v871_v18  ;;  %v837_v21 = vmul.f32 %v6169_v19, %v6169_v19  ;;  %vm886_vm5 = vmor %vm884_vm4, %vm885_vm3  ;;  %vm894_vm7 = vweird.f32 %v871_v18 }
 0x1ac   : > { %v880_v22 = vmul.f32 %v5472_v17, %v879_v20 }
 0x1ad   : > { %v859_v23 = vsel %vm782_vm1, %v837_v21, 0.0 }
 0x1ae   : > { %v881_v24 = vmul.f32 0.5, %v880_v22  ;;  %v846_v25 = vpop.xlane.xlu1 %845  ;;  %860 = vadd.xlane.f32.xlu0 %v859_v23 }
 0x1af   : > { %v864_v26 = vmul.f32 %v846_v25, %v6121_v35 }
 0x1b0   : > { %v882_v27 = vsub.f32 1.5, %v881_v24 }
 0x1b1   : > { %v5474_v28 = vpop.eup %5473  ;;  %v872_v29 = vadd.f32 1e-05, %v864_v26 }
 0x1b2   : > { %v883_v30 = vmul.f32 %v5472_v17, %v882_v27  ;;  %v889_v31 = vmul.f32 %v5474_v28, %v871_v18  ;;  %vm895_vm6 = vweird.f32 %v5474_v28 }
 0x1b3   : > { %5475 = vrsqrt.f32 %v872_v29  ;;  %vm896_vm8 = vmor %vm894_vm7, %vm895_vm6  ;;  %vm904_vm10 = vweird.f32 %v872_v29 }
 0x1b4   : > { %v890_v33 = vmul.f32 %v5474_v28, %v889_v31  ;;  %v887_v34 = vsel %vm886_vm5, %v5472_v17, %v883_v30 }
 0x1b5   : > { %v958_v36 = vmul.f32 %v887_v34, %v6124_v38 }
 0x1b6   : > { %v891_v39 = vmul.f32 0.5, %v890_v33  ;;  %v849_v40 = vpop.xlane.xlu2 %848 }
 0x1b7   : > { %v865_v41 = vmul.f32 %v849_v40, %v6121_v35  ;;  %v969_v42 = vmul.f32 %v6178_v32, %v958_v36 }
 0x1b8   : > { %v892_v43 = vsub.f32 1.5, %v891_v39 }
 0x1b9   : > { %v5476_v44 = vpop.eup %5475  ;;  %v873_v46 = vadd.f32 1e-05, %v865_v41  ;;  %v6189_v47 = vadd.f32 %v6184_v37, %v969_v42 }
 0x1ba   : > { %v893_v48 = vmul.f32 %v5474_v28, %v892_v43  ;;  %v899_v38 = vmul.f32 %v5476_v44, %v872_v29  ;;  %vm905_vm9 = vweird.f32 %v5476_v44 }
 0x1bb   : > { %5477 = vrsqrt.f32 %v873_v46  ;;  %v990_v49 = vsel %vm782_vm1, %v6189_v47, 0.0  ;;  %vm906_vm11 = vmor %vm904_vm10, %vm905_vm9  ;;  %vm914_vm13 = vweird.f32 %v873_v46 }
 0x1bc   : > { %v900_v50 = vmul.f32 %v5476_v44, %v899_v38  ;;  %991 = vadd.xlane.f32.xlu1 %v990_v49  ;;  %v897_v52 = vsel %vm896_vm8, %v5474_v28, %v893_v48 }
 0x1bd   : > { %v959_v53 = vmul.f32 %v897_v52, %v6130_v45 }
 0x1be   : > { %v901_v54 = vmul.f32 0.5, %v900_v50  ;;  %v852_v55 = vpop.xlane.xlu0 %851 }
 0x1bf   : > { %v866_v57 = vmul.f32 %v852_v55, %v6121_v35  ;;  %v970_v58 = vmul.f32 %v6178_v32, %v959_v53 }
 0x1c0   : > { %v902_v59 = vsub.f32 1.5, %v901_v54 }
 0x1c1   : > { %v5478_v60 = vpop.eup %5477  ;;  %v874_v62 = vadd.f32 1e-05, %v866_v57  ;;  %v6197_v63 = vadd.f32 %v6184_v37, %v970_v58 }
 0x1c2   : > { %v903_v0 = vmul.f32 %v5476_v44, %v902_v59  ;;  %v909_v1 = vmul.f32 %v5478_v60, %v873_v46  ;;  %vm915_vm12 = vweird.f32 %v5478_v60 }
 0x1c3   : > { %5479 = vrsqrt.f32 %v874_v62  ;;  %v993_v45 = vsel %vm782_vm1, %v6197_v63, 0.0  ;;  %vm916_vm14 = vmor %vm914_vm13, %vm915_vm12  ;;  %vm924_vm0 = vweird.f32 %v874_v62 }
 0x1c4   : > { %v910_v3 = vmul.f32 %v5478_v60, %v909_v1  ;;  %994 = vadd.xlane.f32.xlu2 %v993_v45  ;;  %v907_v4 = vsel %vm906_vm11, %v5476_v44, %v903_v0 }
 0x1c5   : > { %v960_v5 = vmul.f32 %v907_v4, %v6137_v51 }
 0x1c6   : > { %v911_v6 = vmul.f32 0.5, %v910_v3  ;;  %v855_v8 = vpop.xlane.xlu1 %854 }
 0x1c7   : > { %v867_v9 = vmul.f32 %v855_v8, %v6121_v35  ;;  %v971_v10 = vmul.f32 %v6178_v32, %v960_v5 }
 0x1c8   : > { %v912_v11 = vsub.f32 1.5, %v911_v6 }
 0x1c9   : > { %v5480_v12 = vpop.eup %5479  ;;  %v875_v13 = vadd.f32 1e-05, %v867_v9  ;;  %v6205_v14 = vadd.f32 %v6184_v37, %v971_v10 }
 0x1ca   : > { %v913_v15 = vmul.f32 %v5478_v60, %v912_v11  ;;  %v919_v16 = vmul.f32 %v5480_v12, %v874_v62  ;;  %vm925_vm15 = vweird.f32 %v5480_v12 }
 0x1cb   : > { %5481 = vrsqrt.f32 %v875_v13  ;;  %v996_v51 = vsel %vm782_vm1, %v6205_v14, 0.0  ;;  %vm926_vm2 = vmor %vm924_vm0, %vm925_vm15  ;;  %vm934_vm4 = vweird.f32 %v875_v13 }
 0x1cc   : > { %v920_v17 = vmul.f32 %v5480_v12, %v919_v16  ;;  %997 = vadd.xlane.f32.xlu0 %v996_v51  ;;  %v917_v18 = vsel %vm916_vm14, %v5478_v60, %v913_v15 }
 0x1cd   : > { %v961_v20 = vmul.f32 %v917_v18, %v6143_v56 }
 0x1ce   : > { %v921_v21 = vmul.f32 0.5, %v920_v17  ;;  %v858_v22 = vpop.xlane.xlu2 %857 }
 0x1cf   : > { %v868_v23 = vmul.f32 %v858_v22, %v6121_v35  ;;  %v972_v24 = vmul.f32 %v6178_v32, %v961_v20 }
 0x1d0   : > { %v922_v25 = vsub.f32 1.5, %v921_v21 }
 0x1d1   : > { %v5482_v26 = vpop.eup %5481  ;;  %v876_v27 = vadd.f32 1e-05, %v868_v23  ;;  %v6213_v28 = vadd.f32 %v6184_v37, %v972_v24 }
 0x1d2   : > { %v923_v29 = vmul.f32 %v5480_v12, %v922_v25  ;;  %v929_v30 = vmul.f32 %v5482_v26, %v875_v13  ;;  %vm935_vm3 = vweird.f32 %v5482_v26 }
 0x1d3   : > { %5483 = vrsqrt.f32 %v876_v27  ;;  %v999_v56 = vsel %vm782_vm1, %v6213_v28, 0.0  ;;  %vm936_vm5 = vmor %vm934_vm4, %vm935_vm3  ;;  %vm944_vm7 = vweird.f32 %v876_v27 }
 0x1d4   : > { %v930_v31 = vmul.f32 %v5482_v26, %v929_v30  ;;  %1000 = vadd.xlane.f32.xlu1 %v999_v56  ;;  %v927_v33 = vsel %vm926_vm2, %v5480_v12, %v923_v29 }
 0x1d5   : > { %v962_v34 = vmul.f32 %v927_v33, %v6149_v61 }
 0x1d6   : > { %v931_v36 = vmul.f32 0.5, %v930_v31 }
 0x1d7   : > { %v973_v39 = vmul.f32 %v6178_v32, %v962_v34 }
 0x1d8   : > { %v932_v40 = vsub.f32 1.5, %v931_v36 }
 0x1d9   : > { %v5484_v41 = vpop.eup %5483  ;;  %v6220_v42 = vadd.f32 %v6184_v37, %v973_v39 }
 0x1da   : > { %v933_v43 = vmul.f32 %v5482_v26, %v932_v40  ;;  %v939_v44 = vmul.f32 %v5484_v41, %v876_v27  ;;  %vm945_vm6 = vweird.f32 %v5484_v41 }
 0x1db   : > { %v1002_v46 = vsel %vm782_vm1, %v6220_v42, 0.0  ;;  %vm946_vm8 = vmor %vm944_vm7, %vm945_vm6 }
 0x1dc   : > { %v940_v48 = vmul.f32 %v5484_v41, %v939_v44  ;;  %1003 = vadd.xlane.f32.xlu2 %v1002_v46  ;;  %v937_v38 = vsel %vm936_vm5, %v5482_v26, %v933_v43 }
 0x1dd   : > { %v963_v61 = vmul.f32 %v937_v38, %v6155_v2 }
 0x1de   : > { %v941_v49 = vmul.f32 0.5, %v940_v48 }
 0x1df   : > { %v974_v50 = vmul.f32 %v6178_v32, %v963_v61 }
 0x1e0   : > { %v942_v52 = vsub.f32 1.5, %v941_v49 }
 0x1e1   : > { %v6227_v53 = vadd.f32 %v6184_v37, %v974_v50 }
 0x1e2   : > { %v943_v54 = vmul.f32 %v5484_v41, %v942_v52  ;;  %v5371_v52 = vld [vmem:[%s8254_s7 + $0x8] sm:$0xff] }
 0x1e3   : > { %v1005_v55 = vsel %vm782_vm1, %v6227_v53, 0.0  ;;  %1230 = vmatpush.bf16.msra.mxu1 %v5371_v52 }
 0x1e4   : > { %1006 = vadd.xlane.f32.xlu0 %v1005_v55  ;;  %v947_v57 = vsel %vm946_vm8, %v5484_v41, %v943_v54 }
 0x1e5   : > { %v964_v58 = vmul.f32 %v947_v57, %v6161_v7  ;;  %v5370_v57 = vld [vmem:[%s8254_s7] sm:$0xff] }
 0x1e7   : > { %v975_v2 = vmul.f32 %v6178_v32, %v964_v58  ;;  %1231 = vmatpush.bf16.msra.mxu1 %v5370_v57 }
 0x1e9   : > { %v6234_v59 = vadd.f32 %v6184_v37, %v975_v2 }
 0x1eb   : > { %v1008_v60 = vsel %vm782_vm1, %v6234_v59, 0.0 }
 0x1ec   : > { %1009 = vadd.xlane.f32.xlu0 %v1008_v60 }
 0x221   : > { %v861_v62 = vpop.xlane.xlu0 %860 }
 0x222   : > { %v869_v0 = vmul.f32 %v861_v62, %v6121_v35 }
 0x224   : > { %v877_v1 = vadd.f32 1e-05, %v869_v0 }
 0x226   : > { %5485 = vrsqrt.f32 %v877_v1  ;;  %vm954_vm10 = vweird.f32 %v877_v1 }
 0x22c   : > { %v5486_v45 = vpop.eup %5485 }
 0x22d   : > { %v949_v3 = vmul.f32 %v5486_v45, %v877_v1  ;;  %vm955_vm9 = vweird.f32 %v5486_v45 }
 0x22e   : > { %vm956_vm11 = vmor %vm954_vm10, %vm955_vm9 }
 0x22f   : > { %v950_v4 = vmul.f32 %v5486_v45, %v949_v3  ;;  %v992_v5 = vpop.xlane.xlu1 %991 }
 0x230   : > { %v1014_v7 = vmul.f32 %v992_v5, %v6121_v35 }
 0x231   : > { %v951_v6 = vmul.f32 0.5, %v950_v4 }
 0x232   : > { %v6241_v8 = vsub.f32 %v6189_v47, %v1014_v7 }
 0x233   : > { %v952_v9 = vsub.f32 1.5, %v951_v6 }
 0x234   : > { %v1030_v10 = vmul.f32 %v6241_v8, %v6241_v8 }
 0x235   : > { %v953_v11 = vmul.f32 %v5486_v45, %v952_v9 }
 0x236   : > { %v1038_v12 = vsel %vm782_vm1, %v1030_v10, 0.0 }
 0x237   : > { %v995_v13 = vpop.xlane.xlu2 %994  ;;  %1039 = vadd.xlane.f32.xlu1 %v1038_v12  ;;  %v957_v15 = vsel %vm956_vm11, %v5486_v45, %v953_v11 }
 0x238   : > { %v1015_v16 = vmul.f32 %v995_v13, %v6121_v35  ;;  %v965_v51 = vmul.f32 %v957_v15, %v6169_v19 }
 0x23a   : > { %v6249_v17 = vsub.f32 %v6197_v63, %v1015_v16  ;;  %v976_v18 = vmul.f32 %v6178_v32, %v965_v51 }
 0x23c   : > { %v1031_v20 = vmul.f32 %v6249_v17, %v6249_v17  ;;  %v6255_v21 = vadd.f32 %v6184_v37, %v976_v18 }
 0x23e   : > { %v1041_v22 = vsel %vm782_vm1, %v1031_v20, 0.0  ;;  %v1011_v23 = vsel %vm782_vm1, %v6255_v21, 0.0 }
 0x23f   : > { %1042 = vadd.xlane.f32.xlu2 %v1041_v22  ;;  %1012 = vadd.xlane.f32.xlu1 %v1011_v23  ;;  %v998_v24 = vpop.xlane.xlu0 %997 }
 0x240   : > { %v1016_v19 = vmul.f32 %v998_v24, %v6121_v35 }
 0x242   : > { %v6262_v25 = vsub.f32 %v6205_v14, %v1016_v19 }
 0x244   : > { %v1032_v32 = vmul.f32 %v6262_v25, %v6262_v25 }
 0x246   : > { %v1044_v26 = vsel %vm782_vm1, %v1032_v32, 0.0 }
 0x247   : > { %v1001_v37 = vpop.xlane.xlu1 %1000  ;;  %1045 = vadd.xlane.f32.xlu2 %v1044_v26 }
 0x248   : > { %v1017_v27 = vmul.f32 %v1001_v37, %v6121_v35 }
 0x24a   : > { %v6269_v29 = vsub.f32 %v6213_v28, %v1017_v27  ;;  %v6316_v27 = vld [vmem:[%s8255_s29] ss:$0 sm:$0xff]  ;;  %s8216_s29 = smov 112  }
 0x24c   : > { %v1033_v30 = vmul.f32 %v6269_v29, %v6269_v29 }
 0x24e   : > { %v1047_v56 = vsel %vm782_vm1, %v1033_v30, 0.0 }
 0x24f   : > { %1048 = vadd.xlane.f32.xlu0 %v1047_v56  ;;  %v1004_v31 = vpop.xlane.xlu2 %1003 }
 0x250   : > { %v1018_v33 = vmul.f32 %v1004_v31, %v6121_v35 }
 0x252   : > { %v6276_v34 = vsub.f32 %v6220_v42, %v1018_v33 }
 0x254   : > { %v1034_v36 = vmul.f32 %v6276_v34, %v6276_v34 }
 0x256   : > { %v1050_v39 = vsel %vm782_vm1, %v1034_v36, 0.0 }
 0x257   : > { %1051 = vadd.xlane.f32.xlu1 %v1050_v39  ;;  %v1007_v40 = vpop.xlane.xlu0 %1006 }
 0x258   : > { %v1019_v41 = vmul.f32 %v1007_v40, %v6121_v35 }
 0x25a   : > { %v6283_v43 = vsub.f32 %v6227_v53, %v1019_v41 }
 0x25c   : > { %v1035_v44 = vmul.f32 %v6283_v43, %v6283_v43 }
 0x25e   : > { %v1053_v46 = vsel %vm782_vm1, %v1035_v44, 0.0 }
 0x25f   : > { %1054 = vadd.xlane.f32.xlu2 %v1053_v46  ;;  %v1010_v48 = vpop.xlane.xlu0 %1009 }
 0x260   : > { %v1020_v38 = vmul.f32 %v1010_v48, %v6121_v35 }
 0x262   : > { %v6290_v61 = vsub.f32 %v6234_v59, %v1020_v38 }
 0x264   : > { %v1036_v49 = vmul.f32 %v6290_v61, %v6290_v61 }
 0x266   : > { %v1056_v50 = vsel %vm782_vm1, %v1036_v49, 0.0 }
 0x267   : > { %1057 = vadd.xlane.f32.xlu0 %v1056_v50 }
 0x2aa   : > { %v1040_v54 = vpop.xlane.xlu1 %1039 }
 0x2ab   : > { %v1062_v55 = vmul.f32 %v1040_v54, %v6121_v35 }
 0x2ad   : > { %v1070_v58 = vadd.f32 1e-05, %v1062_v55 }
 0x2af   : > { %5487 = vrsqrt.f32 %v1070_v58  ;;  %vm1084_vm13 = vweird.f32 %v1070_v58 }
 0x2b2   : > { %v1043_v2 = vpop.xlane.xlu2 %1042  ;;  %v1013_v60 = vpop.xlane.xlu1 %1012 }
 0x2b3   : > { %v1063_v62 = vmul.f32 %v1043_v2, %v6121_v35  ;;  %v1021_v0 = vmul.f32 %v1013_v60, %v6121_v35 }
 0x2b5   : > { %v5488_v1 = vpop.eup %5487  ;;  %v1071_v45 = vadd.f32 1e-05, %v1063_v62  ;;  %v6305_v3 = vsub.f32 %v6255_v21, %v1021_v0 }
 0x2b6   : > { %v1079_v4 = vmul.f32 %v5488_v1, %v1070_v58  ;;  %vm1085_vm12 = vweird.f32 %v5488_v1 }
 0x2b7   : > { %5489 = vrsqrt.f32 %v1071_v45  ;;  %v1037_v5 = vmul.f32 %v6305_v3, %v6305_v3  ;;  %vm1086_vm14 = vmor %vm1084_vm13, %vm1085_vm12  ;;  %vm1094_vm0 = vweird.f32 %v1071_v45 }
 0x2b8   : > { %v1080_v7 = vmul.f32 %v5488_v1, %v1079_v4 }
 0x2b9   : > { %v1059_v6 = vsel %vm782_vm1, %v1037_v5, 0.0 }
 0x2ba   : > { %v1081_v9 = vmul.f32 0.5, %v1080_v7  ;;  %1060 = vadd.xlane.f32.xlu1 %v1059_v6  ;;  %v1046_v10 = vpop.xlane.xlu2 %1045 }
 0x2bb   : > { %v1064_v11 = vmul.f32 %v1046_v10, %v6121_v35 }
 0x2bc   : > { %v1082_v12 = vsub.f32 1.5, %v1081_v9 }
 0x2bd   : > { %v5490_v13 = vpop.eup %5489  ;;  %v1072_v15 = vadd.f32 1e-05, %v1064_v11 }
 0x2be   : > { %v1083_v16 = vmul.f32 %v5488_v1, %v1082_v12  ;;  %v1089_v51 = vmul.f32 %v5490_v13, %v1071_v45  ;;  %vm1095_vm15 = vweird.f32 %v5490_v13 }
 0x2bf   : > { %5491 = vrsqrt.f32 %v1072_v15  ;;  %vm1096_vm2 = vmor %vm1094_vm0, %vm1095_vm15  ;;  %vm1104_vm4 = vweird.f32 %v1072_v15 }
 0x2c0   : > { %v1090_v18 = vmul.f32 %v5490_v13, %v1089_v51  ;;  %v1087_v20 = vsel %vm1086_vm14, %v5488_v1, %v1083_v16 }
 0x2c1   : > { %v1158_v37 = vmul.f32 %v1087_v20, %v6241_v8  ;;  %v6323_v8 = vld [vmem:[%s8257_s25] ss:$0 sm:$0xff] }
 0x2c2   : > { %v1091_v22 = vmul.f32 0.5, %v1090_v18  ;;  %v1049_v23 = vpop.xlane.xlu0 %1048 }
 0x2c3   : > { %v1065_v24 = vmul.f32 %v1049_v23, %v6121_v35  ;;  %v1169_v39 = vmul.f32 %v6316_v27, %v1158_v37 }
 0x2c4   : > { %v1092_v19 = vsub.f32 1.5, %v1091_v22 }
 0x2c5   : > { %v5492_v32 = vpop.eup %5491  ;;  %v1073_v26 = vadd.f32 1e-05, %v1065_v24  ;;  %v1180_v50 = vadd.f32 %v6323_v8, %v1169_v39 }
 0x2c6   : > { %v1093_v30 = vmul.f32 %v5490_v13, %v1092_v19  ;;  %v1099_v56 = vmul.f32 %v5492_v32, %v1072_v15  ;;  %vm1105_vm3 = vweird.f32 %v5492_v32 }
 0x2c7   : > { %5493 = vrsqrt.f32 %v1073_v26  ;;  %vm1106_vm5 = vmor %vm1104_vm4, %vm1105_vm3  ;;  %vm1114_vm7 = vweird.f32 %v1073_v26 }
 0x2c8   : > { %v1097_v31 = vsel %vm1096_vm2, %v5490_v13, %v1093_v30  ;;  %v1100_v33 = vmul.f32 %v5492_v32, %v1099_v56 }
 0x2c9   : > { %v1159_v36 = vmul.f32 %v1097_v31, %v6249_v17 }
 0x2ca   : > { %v1101_v40 = vmul.f32 0.5, %v1100_v33  ;;  %v1052_v41 = vpop.xlane.xlu1 %1051 }
 0x2cb   : > { %v1066_v44 = vmul.f32 %v1052_v41, %v6121_v35  ;;  %v1170_v46 = vmul.f32 %v6316_v27, %v1159_v36 }
 0x2cc   : > { %v1102_v48 = vsub.f32 1.5, %v1101_v40 }
 0x2cd   : > { %v5494_v38 = vpop.eup %5493  ;;  %v1074_v49 = vadd.f32 1e-05, %v1066_v44  ;;  %v1181_v17 = vadd.f32 %v6323_v8, %v1170_v46 }
 0x2ce   : > { %v1103_v52 = vmul.f32 %v5492_v32, %v1102_v48  ;;  %v1109_v54 = vmul.f32 %v5494_v38, %v1073_v26  ;;  %vm1115_vm6 = vweird.f32 %v5494_v38 }
 0x2cf   : > { %5495 = vrsqrt.f32 %v1074_v49  ;;  %v1188_v55 = vpack.c.bf16 %v1181_v17, %v1180_v50  ;;  %vm1116_vm8 = vmor %vm1114_vm7, %vm1115_vm6  ;;  %vm1124_vm10 = vweird.f32 %v1074_v49  ;;  %vm1281_vm6 = vcmask 64512  }
 0x2d0   : > { %v1110_v57 = vmul.f32 %v5494_v38, %v1109_v54  ;;  %v1107_v58 = vsel %vm1106_vm5, %v5492_v32, %v1103_v52  ;;  %vm1335_vm7 = vcmask 523264  }
 0x2d1   : > { %5059 = vmatmul.msk.bf16.vlgmr.msra.gmra.mxu1 %vm782_vm1, %v1188_v55  ;;  %v1160_v4 = vmul.f32 %v1107_v58, %v6262_v25 }
 0x2d2   : > { %v1111_v2 = vmul.f32 0.5, %v1110_v57  ;;  %v1055_v60 = vpop.xlane.xlu2 %1054 }
 0x2d3   : > { %v1067_v62 = vmul.f32 %v1055_v60, %v6121_v35  ;;  %v1171_v11 = vmul.f32 %v6316_v27, %v1160_v4 }
 0x2d4   : > { %v1112_v0 = vsub.f32 1.5, %v1111_v2 }
 0x2d5   : > { %v5496_v1 = vpop.eup %5495  ;;  %v1075_v45 = vadd.f32 1e-05, %v1067_v62  ;;  %v1182_v51 = vadd.f32 %v6323_v8, %v1171_v11 }
 0x2d6   : > { %v1113_v5 = vmul.f32 %v5494_v38, %v1112_v0  ;;  %v1119_v7 = vmul.f32 %v5496_v1, %v1074_v49  ;;  %vm1125_vm9 = vweird.f32 %v5496_v1 }
 0x2d7   : > { %5497 = vrsqrt.f32 %v1075_v45  ;;  %vm1126_vm11 = vmor %vm1124_vm10, %vm1125_vm9  ;;  %vm1134_vm13 = vweird.f32 %v1075_v45 }
 0x2d8   : > { %v1117_v6 = vsel %vm1116_vm8, %v5494_v38, %v1113_v5  ;;  %v1120_v9 = vmul.f32 %v5496_v1, %v1119_v7  ;;  %vm1726_vm8 = vcmask 1043456  }
 0x2d9   : > { %v1161_v10 = vmul.f32 %v1117_v6, %v6269_v29 }
 0x2da   : > { %v1121_v12 = vmul.f32 0.5, %v1120_v9  ;;  %v1058_v40 = vpop.xlane.xlu0 %1057 }
 0x2db   : > { %v1172_v13 = vmul.f32 %v6316_v27, %v1161_v10 }
 0x2dc   : > { %v1122_v15 = vsub.f32 1.5, %v1121_v12  ;;  %v5453_v12 = vld [vmem:[%s8258_s8] ss:$0 sm:$0xff] }
 0x2dd   : > { %v5498_v16 = vpop.eup %5497  ;;  %v1183_v25 = vadd.f32 %v6323_v8, %v1172_v13 }
 0x2de   : > { %v1123_v18 = vmul.f32 %v5496_v1, %v1122_v15  ;;  %v1129_v20 = vmul.f32 %v5498_v16, %v1075_v45  ;;  %vm1135_vm12 = vweird.f32 %v5498_v16 }
 0x2df   : > { %v1189_v22 = vpack.c.bf16 %v1183_v25, %v1182_v51  ;;  %vm1136_vm14 = vmor %vm1134_vm13, %vm1135_vm12 }
 0x2e0   : > { %v1130_v23 = vmul.f32 %v5498_v16, %v1129_v20  ;;  %v1127_v29 = vsel %vm1126_vm11, %v5496_v1, %v1123_v18 }
 0x2e1   : > { %5060 = vmatmul.msk.bf16.gmra.mxu1 %vm782_vm1, %v1189_v22  ;;  %v1162_v32 = vmul.f32 %v1127_v29, %v6276_v34  ;;  %v1068_v34 = vmul.f32 %v1058_v40, %v6121_v35 }
 0x2e2   : > { %v1131_v24 = vmul.f32 0.5, %v1130_v23 }
 0x2e3   : > { %v1173_v56 = vmul.f32 %v6316_v27, %v1162_v32  ;;  %v1076_v41 = vadd.f32 1e-05, %v1068_v34 }
 0x2e4   : > { %v1132_v19 = vsub.f32 1.5, %v1131_v24 }
 0x2e5   : > { %v1184_v33 = vadd.f32 %v6323_v8, %v1173_v56  ;;  %5499 = vrsqrt.f32 %v1076_v41  ;;  %vm1144_vm0 = vweird.f32 %v1076_v41 }
 0x2e6   : > { %v1133_v26 = vmul.f32 %v5498_v16, %v1132_v19 }
 0x2e8   : > { %v1137_v37 = vsel %vm1136_vm14, %v5498_v16, %v1133_v26 }
 0x2e9   : > { %v1163_v30 = vmul.f32 %v1137_v37, %v6283_v43 }
 0x2eb   : > { %v1174_v31 = vmul.f32 %v6316_v27, %v1163_v30  ;;  %v5500_v44 = vpop.eup %5499 }
 0x2ec   : > { %v1139_v46 = vmul.f32 %v5500_v44, %v1076_v41  ;;  %vm1145_vm15 = vweird.f32 %v5500_v44 }
 0x2ed   : > { %v1185_v36 = vadd.f32 %v6323_v8, %v1174_v31  ;;  %vm1146_vm2 = vmor %vm1144_vm0, %vm1145_vm15 }
 0x2ee   : > { %v1140_v48 = vmul.f32 %v5500_v44, %v1139_v46 }
 0x2ef   : > { %v1190_v39 = vpack.c.bf16 %v1185_v36, %v1184_v33 }
 0x2f0   : > { %v1141_v50 = vmul.f32 0.5, %v1140_v48  ;;  %v1261_v48 = vld [vmem:[%s8259_s9] sm:$0xff] }
 0x2f1   : > { %5061 = vmatmul.msk.bf16.gmra.mxu1 %vm782_vm1, %v1190_v39 }
 0x2f2   : > { %v1142_v17 = vsub.f32 1.5, %v1141_v50  ;;  %v1262_v50 = vld [vmem:[%s8259_s9 + $0x8] sm:$0xff] }
 0x2f4   : > { %v1143_v54 = vmul.f32 %v5500_v44, %v1142_v17 }
 0x2f6   : > { %v1147_v58 = vsel %vm1146_vm2, %v5500_v44, %v1143_v54 }
 0x2f7   : > { %v1164_v62 = vmul.f32 %v1147_v58, %v6290_v61 }
 0x2f9   : > { %v1175_v4 = vmul.f32 %v6316_v27, %v1164_v62 }
 0x2fb   : > { %v1186_v7 = vadd.f32 %v6323_v8, %v1175_v4 }
 0x32d   : > { %v1061_v43 = vpop.xlane.xlu1 %1060 }
 0x32e   : > { %v1069_v38 = vmul.f32 %v1061_v43, %v6121_v35 }
 0x330   : > { %v1077_v49 = vadd.f32 1e-05, %v1069_v38 }
 0x332   : > { %5501 = vrsqrt.f32 %v1077_v49  ;;  %vm1154_vm4 = vweird.f32 %v1077_v49 }
 0x338   : > { %v5502_v52 = vpop.eup %5501 }
 0x339   : > { %v1149_v55 = vmul.f32 %v5502_v52, %v1077_v49  ;;  %vm1155_vm3 = vweird.f32 %v5502_v52 }
 0x33a   : > { %vm1156_vm5 = vmor %vm1154_vm4, %vm1155_vm3 }
 0x33b   : > { %v1150_v57 = vmul.f32 %v5502_v52, %v1149_v55  ;;  %v1263_v55 = vld [vmem:[%s8259_s9 + $0x10] sm:$0xff] }
 0x33d   : > { %v1151_v2 = vmul.f32 0.5, %v1150_v57 }
 0x33f   : > { %v1152_v60 = vsub.f32 1.5, %v1151_v2 }
 0x341   : > { %v1153_v0 = vmul.f32 %v5502_v52, %v1152_v60  ;;  %v1264_v60 = vld [vmem:[%s8259_s9 + $0x18] sm:$0xff] }
 0x343   : > { %v1157_v1 = vsel %vm1156_vm5, %v5502_v52, %v1153_v0 }
 0x344   : > { %v1165_v45 = vmul.f32 %v1157_v1, %v6305_v3 }
 0x346   : > { %v1176_v5 = vmul.f32 %v6316_v27, %v1165_v45  ;;  %v1265_v45 = vld [vmem:[%s8259_s9 + $0x20] sm:$0xff] }
 0x348   : > { %v1187_v6 = vadd.f32 %v6323_v8, %v1176_v5 }
 0x34a   : > { %v1191_v9 = vpack.c.bf16 %v1187_v6, %v1186_v7 }
 0x34c   : > { %5062 = vmatmul.msk.bf16.gmra.mxu1 %vm782_vm1, %v1191_v9 }
 0x34e   : > { %v1233_v10 = vpop.f32.mrf.mxu1 }
 0x34f   : > { %v1234_v22 = vadd.f32 %v5453_v12, %v1233_v10  ;;  %v1266_v10 = vld [vmem:[%s8259_s9 + $0x28] sm:$0xff] }
 0x356   : > { %v1235_v11 = vpop.f32.mrf.mxu1 }
 0x357   : > { %v1236_v20 = vadd.f32 %v5453_v12, %v1235_v11 }
 0x359   : > { %v6369_v23 = vpack.c.bf16 %v1236_v20, %v1234_v22 }
 0x35e   : > { %v1238_v61 = vpop.f32.mrf.mxu1 }
 0x35f   : > { %v1239_v3 = vadd.f32 %v5453_v12, %v1238_v61 }
 0x366   : > { %v1240_v13 = vpop.f32.mrf.mxu1 }
 0x367   : > { %v1241_v15 = vadd.f32 %v5453_v12, %v1240_v13 }
 0x369   : > { %v6357_v16 = vpack.c.bf16 %v1241_v15, %v1239_v3  ;;  %v1267_v3 = vld [vmem:[%s8259_s9 + $0x30] sm:$0xff] }
 0x36b   : > { %1275 = vrot.lane.b32.xlu1 %v6357_v16, %s5922_s2 }
 0x36e   : > { %v1243_v27 = vpop.f32.mrf.mxu1 }
 0x36f   : > { %v1244_v51 = vadd.f32 %v5453_v12, %v1243_v27 }
 0x376   : > { %v1245_v8 = vpop.f32.mrf.mxu1 }
 0x377   : > { %v1246_v25 = vadd.f32 %v5453_v12, %v1245_v8 }
 0x379   : > { %v6361_v18 = vpack.c.bf16 %v1246_v25, %v1244_v51 }
 0x37b   : > { %1277 = vrot.lane.b32.xlu0 %v6361_v18, %s5922_s2 }
 0x383   : > { %1424 = vrot.lane.b32.xlu0 %v6361_v18, %s8210_s0 }
 0x38b   : > { %1422 = vrot.lane.b32.xlu0 %v6357_v16, %s8210_s0 }
 0x393   : > { %1420 = vrot.lane.b32.xlu0 %v6369_v23, %s8210_s0 }
 0x3c9   : > { %v1248_v29 = vpop.f32.mrf.mxu1 }
 0x3ca   : > { %v1249_v19 = vadd.f32 %v5453_v12, %v1248_v29 }
 0x3d1   : > { %v1250_v24 = vpop.f32.mrf.mxu1 }
 0x3d2   : > { %v1251_v32 = vadd.f32 %v5453_v12, %v1250_v24  ;;  %v1268_v12 = vld [vmem:[%s8259_s9 + $0x38] sm:$0xff] }
 0x3d4   : > { %v6373_v26 = vpack.c.bf16 %v1251_v32, %v1249_v19 }
 0x3d6   : > { %1426 = vrot.lane.b32.xlu0 %v6373_v26, %s8210_s0  ;;  %1279 = vrot.lane.b32.xlu2 %v6373_v26, %s5922_s2  ;;  %s8212_s0 = smov 80  }
 0x3dd   : > { %v1276_v39 = vpop.permute.xlu1 %1275 }
 0x3de   : > { %1273 = vrot.lane.b32.xlu2 %v6369_v23, %s5922_s2  ;;  %v1298_v34 = vsel %vm1281_vm6, %v1276_v39, 0 }
 0x3ed   : > { %v1278_v37 = vpop.permute.xlu0 %1277 }
 0x3ee   : > { %v1301_v36 = vsel %vm1281_vm6, %v1278_v37, 0 }
 0x3f5   : > { %v1425_v30 = vpop.permute.xlu0 %1424 }
 0x3fd   : > { %v1423_v33 = vpop.permute.xlu0 %1422 }
 0x405   : > { %v1421_v40 = vpop.permute.xlu0 %1420 }
 0x430   : > { %v1280_v56 = vpop.permute.xlu2 %1279 }
 0x431   : > { %v1304_v31 = vsel %vm1281_vm6, %v1280_v56, 0 }
 0x432   : > { %1310 = vmatpush.bf16.xpose.msra.mxu2 %v1304_v31 }
 0x438   : > { %v1274_v41 = vpop.permute.xlu2 %1273 }
 0x439   : > { %v1295_v46 = vsel %vm1281_vm6, %v1274_v41, 0 }
 0x43a   : > { %1311 = vmatpush.bf16.xpose.msra.mxu2 %v1301_v36 }
 0x442   : > { %1312 = vmatpush.bf16.xpose.msra.mxu2 %v1298_v34 }
 0x448   : > { %v1427_v44 = vpop.permute.xlu0 %1426 }
 0x449   : > { %1448 = vmatpush.bf16.msra.mxu3 %v1427_v44 }
 0x44a   : > { %1313 = vmatpush.bf16.xpose.msra.mxu2 %v1295_v46 }
 0x44d   : > { %1449 = vmatpush.bf16.msra.mxu3 %v1425_v30 }
 0x451   : > { %5063 = vmatmul.msk.bf16.vlgmr.msra.gmra.mxu2 %vm1281_vm6, %v6369_v23  ;;  %1450 = vmatpush.bf16.msra.mxu3 %v1423_v33 }
 0x455   : > { %1451 = vmatpush.bf16.msra.mxu3 %v1421_v40 }
 0x461   : > { %5064 = vmatmul.msk.bf16.gmra.mxu2 %vm1281_vm6, %v6357_v16 }
 0x471   : > { %5065 = vmatmul.msk.bf16.gmra.mxu2 %vm1281_vm6, %v6361_v18 }
 0x481   : > { %5066 = vmatmul.msk.bf16.gmra.mxu2 %vm1281_vm6, %v6373_v26 }
 0x4d4   : > { %v1315_v43 = vpop.f32.mrf.mxu2 }
 0x4d5   : > { %v1316_v38 = vadd.f32 %v1315_v43, %v1261_v48 }
 0x4d7   : > { %v1336_v49 = vsel %vm1335_vm7, %v1316_v38, -inf }
 0x4d8   : > { %1337 = vmax.xlane.f32.xlu2 %v1336_v49 }
 0x4dc   : > { %v1317_v17 = vpop.f32.mrf.mxu2 }
 0x4dd   : > { %v1318_v52 = vadd.f32 %v1317_v17, %v1262_v50 }
 0x4df   : > { %v1339_v54 = vsel %vm1335_vm7, %v1318_v52, -inf }
 0x4e0   : > { %1340 = vmax.xlane.f32.xlu1 %v1339_v54 }
 0x4e4   : > { %v1320_v57 = vpop.f32.mrf.mxu2 }
 0x4e5   : > { %v1321_v58 = vadd.f32 %v1320_v57, %v1263_v55 }
 0x4e7   : > { %v1342_v2 = vsel %vm1335_vm7, %v1321_v58, -inf }
 0x4e8   : > { %1343 = vmax.xlane.f32.xlu0 %v1342_v2 }
 0x4ec   : > { %v1322_v62 = vpop.f32.mrf.mxu2 }
 0x4ed   : > { %v1323_v0 = vadd.f32 %v1322_v62, %v1264_v60 }
 0x4ef   : > { %v1345_v1 = vsel %vm1335_vm7, %v1323_v0, -inf }
 0x4f0   : > { %1346 = vmax.xlane.f32.xlu2 %v1345_v1 }
 0x4f4   : > { %v1325_v4 = vpop.f32.mrf.mxu2 }
 0x4f5   : > { %v6412_v5 = vadd.f32 %v1325_v4, %v1265_v45 }
 0x4f7   : > { %v1348_v7 = vsel %vm1335_vm7, %v6412_v5, -inf }
 0x4f8   : > { %1349 = vmax.xlane.f32.xlu1 %v1348_v7 }
 0x4fc   : > { %1505 = vrot.lane.b32.xlu0 %v6357_v16, %s8228_s30  ;;  %v1327_v6 = vpop.f32.mrf.mxu2 }
 0x4fd   : > { %v6429_v11 = vadd.f32 %v1327_v6, %v1266_v10 }
 0x4ff   : > { %v1351_v61 = vsel %vm1335_vm7, %v6429_v11, -inf }
 0x504   : > { %1503 = vrot.lane.b32.xlu0 %v6369_v23, %s8228_s30  ;;  %v1330_v9 = vpop.f32.mrf.mxu2 }
 0x505   : > { %v6441_v27 = vadd.f32 %v1330_v9, %v1267_v3 }
 0x507   : > { %v1354_v51 = vsel %vm1335_vm7, %v6441_v27, -inf }
 0x508   : > { %1507 = vrot.lane.b32.xlu2 %v6361_v18, %s8228_s30 }
 0x50c   : > { %1495 = vrot.lane.b32.xlu0 %v6369_v23, %s8226_s24  ;;  %v1332_v13 = vpop.f32.mrf.mxu2 }
 0x50d   : > { %v6439_v15 = vadd.f32 %v1332_v13, %v1268_v12 }
 0x50f   : > { %v1357_v8 = vsel %vm1335_vm7, %v6439_v15, -inf }
 0x511   : > { %1509 = vrot.lane.b32.xlu1 %v6373_v26, %s8228_s30 }
 0x531   : > { %1352 = vmax.xlane.f32.xlu2 %v1351_v61 }
 0x539   : > { %1358 = vmax.xlane.f32.xlu2 %v1357_v8 }
 0x53b   : > { %1355 = vmax.xlane.f32.xlu1 %v1354_v51 }
 0x54b   : > { %v1338_v25 = vpop.xlane.xlu2 %1337 }
 0x54c   : > { %v1360_v20 = vsub.f32 %v1316_v38, %v1338_v25 }
 0x54e   : > { %v1368_v22 = vmul.f32 1.442695, %v1360_v20 }
 0x550   : > { %5503 = vpow2.f32 %v1368_v22 }
 0x551   : > { %1497 = vrot.lane.b32.xlu2 %v6357_v16, %s8226_s24 }
 0x553   : > { %v1341_v29 = vpop.xlane.xlu1 %1340 }
 0x554   : > { %v1361_v24 = vsub.f32 %v1318_v52, %v1341_v29  ;;  %v1253_v29 = vld [vmem:[%s8260_s10] sm:$0xff] }
 0x556   : > { %v5504_v19 = vpop.eup %5503  ;;  %v1370_v32 = vmul.f32 1.442695, %v1361_v24  ;;  %v1485_v24 = vpack.c.bf16 %v1253_v29, %v1253_v29 }
 0x557   : > { %v1384_v37 = vsel %vm1335_vm7, %v5504_v19, 0.0 }
 0x558   : > { %5505 = vpow2.f32 %v1370_v32  ;;  %1385 = vadd.xlane.f32.xlu1 %v1384_v37 }
 0x55b   : > { %v1344_v30 = vpop.xlane.xlu0 %1343 }
 0x55c   : > { %v1362_v56 = vsub.f32 %v1321_v58, %v1344_v30 }
 0x55e   : > { %v5506_v31 = vpop.eup %5505  ;;  %v1372_v33 = vmul.f32 1.442695, %v1362_v56 }
 0x55f   : > { %v1416_v36 = vpack.c.bf16 %v5506_v31, %v5504_v19  ;;  %v1387_v43 = vsel %vm1335_vm7, %v5506_v31, 0.0  ;;  %v1772_v19 = vsel %vm1726_vm8, %v1485_v24, 0 }
 0x560   : > { %5507 = vpow2.f32 %v1372_v33  ;;  %1781 = vmatpush.bf16.msrb.mxu2 %v1772_v19 }
 0x561   : > { %5067 = vmatmul.msk.bf16.vlgmr.msra.gmra.mxu3 %vm1335_vm7, %v1416_v36 }
 0x563   : > { %v1347_v39 = vpop.xlane.xlu2 %1346 }
 0x564   : > { %v1363_v40 = vsub.f32 %v1323_v0, %v1347_v39 }
 0x566   : > { %v5508_v34 = vpop.eup %5507  ;;  %v1374_v41 = vmul.f32 1.442695, %v1363_v40 }
 0x567   : > { %v1390_v44 = vsel %vm1335_vm7, %v5508_v34, 0.0 }
 0x568   : > { %5509 = vpow2.f32 %v1374_v41  ;;  %1391 = vadd.xlane.f32.xlu0 %v1390_v44 }
 0x56b   : > { %v1350_v38 = vpop.xlane.xlu1 %1349  ;;  %v1508_v17 = vpop.permute.xlu2 %1507 }
 0x56c   : > { %v1530_v52 = vsel %vm1281_vm6, %v1508_v17, 0  ;;  %v1364_v2 = vsub.f32 %v6412_v5, %v1350_v38 }
 0x56e   : > { %v5510_v46 = vpop.eup %5509  ;;  %v1506_v54 = vpop.permute.xlu0 %1505  ;;  %v1376_v62 = vmul.f32 1.442695, %v1364_v2 }
 0x56f   : > { %v1417_v48 = vpack.c.bf16 %v5510_v46, %v5508_v34  ;;  %v1527_v55 = vsel %vm1281_vm6, %v1506_v54, 0  ;;  %v1393_v25 = vsel %vm1335_vm7, %v5510_v46, 0.0 }
 0x570   : > { %5511 = vpow2.f32 %v1376_v62 }
 0x571   : > { %1826 = vrot.lane.b32.xlu1 %v6373_v26, %s8212_s0  ;;  %5068 = vmatmul.msk.bf16.gmra.mxu3 %vm1335_vm7, %v1417_v48 }
 0x576   : > { %v1504_v57 = vpop.permute.xlu0 %1503  ;;  %v5512_v6 = vpop.eup %5511 }
 0x577   : > { %v1524_v58 = vsel %vm1281_vm6, %v1504_v57, 0  ;;  %v1396_v20 = vsel %vm1335_vm7, %v5512_v6, 0.0  ;;  %v5071_v57 = vld [vmem:[%s8259_s9 + $0x40] sm:$0xff] }
 0x579   : > { %1824 = vrot.lane.b32.xlu1 %v6361_v18, %s8212_s0 }
 0x57a   : > { %1388 = vadd.xlane.f32.xlu2 %v1387_v43 }
 0x57c   : > { %1499 = vrot.lane.b32.xlu0 %v6361_v18, %s8226_s24 }
 0x57e   : > { %v1496_v60 = vpop.permute.xlu0 %1495 }
 0x581   : > { %2104 = vrot.lane.b32.xlu1 %v6361_v18, %s8220_s5 }
 0x583   : > { %v1510_v49 = vpop.permute.xlu1 %1509 }
 0x584   : > { %v1533_v50 = vsel %vm1281_vm6, %v1510_v49, 0 }
 0x585   : > { %1539 = vmatpush.bf16.xpose.msrb.mxu1 %v1533_v50 }
 0x589   : > { %1501 = vrot.lane.b32.xlu1 %v6373_v26, %s8226_s24 }
 0x58d   : > { %1540 = vmatpush.bf16.xpose.msrb.mxu1 %v1530_v52 }
 0x591   : > { %1822 = vrot.lane.b32.xlu1 %v6357_v16, %s8212_s0 }
 0x592   : > { %2106 = vrot.lane.b32.xlu2 %v6373_v26, %s8220_s5 }
 0x595   : > { %1541 = vmatpush.bf16.xpose.msrb.mxu1 %v1527_v55 }
 0x59d   : > { %1542 = vmatpush.bf16.xpose.msrb.mxu1 %v1524_v58 }
 0x5a4   : > { %v1353_v0 = vpop.xlane.xlu2 %1352  ;;  %5079 = vmatmul.msk.bf16.vlgmr.msrb.gmra.mxu1 %vm1281_vm6, %v1496_v60 }
 0x5a5   : > { %v1365_v1 = vsub.f32 %v6429_v11, %v1353_v0  ;;  %v5072_v0 = vld [vmem:[%s8259_s9 + $0x48] sm:$0xff] }
 0x5a7   : > { %v1378_v45 = vmul.f32 1.442695, %v1365_v1 }
 0x5a9   : > { %5513 = vpow2.f32 %v1378_v45 }
 0x5ac   : > { %v1359_v4 = vpop.xlane.xlu2 %1358 }
 0x5ad   : > { %v1367_v7 = vsub.f32 %v6439_v15, %v1359_v4 }
 0x5ae   : > { %v1356_v9 = vpop.xlane.xlu1 %1355 }
 0x5af   : > { %v5514_v10 = vpop.eup %5513  ;;  %v1382_v61 = vmul.f32 1.442695, %v1367_v7  ;;  %v1366_v12 = vsub.f32 %v6441_v27, %v1356_v9 }
 0x5b0   : > { %v1418_v5 = vpack.c.bf16 %v5514_v10, %v5512_v6  ;;  %v1399_v22 = vsel %vm1335_vm7, %v5514_v10, 0.0  ;;  %v5073_v10 = vld [vmem:[%s8259_s9 + $0x50] sm:$0xff] }
 0x5b1   : > { %5515 = vpow2.f32 %v1382_v61  ;;  %v1380_v13 = vmul.f32 1.442695, %v1366_v12 }
 0x5b2   : > { %5069 = vmatmul.msk.bf16.gmra.mxu3 %vm1335_vm7, %v1418_v5 }
 0x5b3   : > { %5517 = vpow2.f32 %v1380_v13 }
 0x5b4   : > { %v1498_v3 = vpop.permute.xlu2 %1497 }
 0x5b5   : > { %5080 = vmatmul.msk.bf16.gmra.mxu1 %vm1281_vm6, %v1498_v3 }
 0x5b7   : > { %v5516_v11 = vpop.eup %5515 }
 0x5b8   : > { %v1405_v8 = vsel %vm1335_vm7, %v5516_v11, 0.0 }
 0x5b9   : > { %v5518_v51 = vpop.eup %5517  ;;  %1406 = vadd.xlane.f32.xlu0 %v1405_v8 }
 0x5ba   : > { %v1402_v15 = vsel %vm1335_vm7, %v5518_v51, 0.0  ;;  %v1419_v27 = vpack.c.bf16 %v5516_v11, %v5518_v51 }
 0x5bb   : > { %1403 = vadd.xlane.f32.xlu2 %v1402_v15  ;;  %1394 = vadd.xlane.f32.xlu1 %v1393_v25 }
 0x5c2   : > { %5070 = vmatmul.msk.bf16.gmra.mxu3 %vm1335_vm7, %v1419_v27 }
 0x5c3   : > { %1397 = vadd.xlane.f32.xlu1 %v1396_v20 }
 0x5cb   : > { %1400 = vadd.xlane.f32.xlu1 %v1399_v22  ;;  %v1386_v32 = vpop.xlane.xlu1 %1385  ;;  %v5074_v22 = vld [vmem:[%s8259_s9 + $0x58] sm:$0xff] }
 0x5cc   : > { %5519 = vrcp.f32 %v1386_v32 }
 0x5cd   : > { %2100 = vrot.lane.b32.xlu0 %v6369_v23, %s8220_s5 }
 0x5d2   : > { %v5520_v34 = vpop.eup %5519 }
 0x5d3   : > { %2102 = vrot.lane.b32.xlu2 %v6357_v16, %s8220_s5  ;;  %s8264_s5 = smov 72  }
 0x5d5   : > { %2094 = vrot.lane.b32.xlu0 %v6357_v16, %s8218_s3 }
 0x5db   : > { %1814 = vrot.lane.b32.xlu2 %v6357_v16, %s8216_s29  ;;  %v1392_v56 = vpop.xlane.xlu0 %1391 }
 0x5dd   : > { %1818 = vrot.lane.b32.xlu0 %v6373_v26, %s8216_s29 }
 0x5e3   : > { %2096 = vrot.lane.b32.xlu2 %v6361_v18, %s8218_s3  ;;  %v1827_v37 = vpop.permute.xlu1 %1826 }
 0x5e4   : > { %v1850_v30 = vsel %vm1281_vm6, %v1827_v37, 0  ;;  %1820 = vrot.lane.b32.xlu1 %v6369_v23, %s8212_s0  ;;  %v1453_v31 = vpop.f32.mrf.mxu3  ;;  %s8222_s0 = smov 48  }
 0x5e5   : > { %1856 = vmatpush.bf16.xpose.msra.mxu1 %v1850_v30  ;;  %v1473_v48 = vmul.f32 %v5520_v34, %v1453_v31 }
 0x5eb   : > { %1654 = vrot.lane.b32.xlu2 %v6373_v26, %s8214_s26  ;;  %v1825_v33 = vpop.permute.xlu1 %1824 }
 0x5ec   : > { %1812 = vrot.lane.b32.xlu1 %v6369_v23, %s8216_s29  ;;  %v1847_v36 = vsel %vm1281_vm6, %v1825_v33, 0  ;;  %v1455_v46 = vpop.f32.mrf.mxu3 }
 0x5ed   : > { %v1389_v39 = vpop.xlane.xlu2 %1388  ;;  %1857 = vmatpush.bf16.xpose.msra.mxu1 %v1847_v36 }
 0x5ee   : > { %5521 = vrcp.f32 %v1389_v39  ;;  %v1500_v40 = vpop.permute.xlu0 %1499 }
 0x5ef   : > { %5081 = vmatmul.msk.bf16.gmra.mxu1 %vm1281_vm6, %v1500_v40  ;;  %5523 = vrcp.f32 %v1392_v56 }
 0x5f3   : > { %1652 = vrot.lane.b32.xlu2 %v6361_v18, %s8214_s26  ;;  %v2105_v41 = vpop.permute.xlu1 %2104 }
 0x5f4   : > { %v5522_v44 = vpop.eup %5521  ;;  %2092 = vrot.lane.b32.xlu1 %v6369_v23, %s8218_s3  ;;  %v2127_v52 = vsel %vm1281_vm6, %v2105_v41, 0  ;;  %v1458_v60 = vpop.f32.mrf.mxu3 }
 0x5f5   : > { %v1474_v43 = vmul.f32 %v5522_v44, %v1455_v46  ;;  %v2107_v38 = vpop.permute.xlu2 %2106  ;;  %v5524_v5 = vpop.eup %5523 }
 0x5f6   : > { %v2130_v49 = vsel %vm1281_vm6, %v2107_v38, 0  ;;  %v1475_v8 = vmul.f32 %v5524_v5, %v1458_v60 }
 0x5f7   : > { %2136 = vmatpush.bf16.xpose.msra.mxu2 %v2130_v49  ;;  %v1481_v50 = vpack.c.bf16 %v1474_v43, %v1473_v48 }
 0x5f9   : > { %5091 = vmatmul.msk.bf16.vlgmr.msrb.gmra.mxu2 %vm1281_vm6, %v1481_v50 }
 0x5fb   : > { %1650 = vrot.lane.b32.xlu2 %v6357_v16, %s8214_s26  ;;  %v1502_v17 = vpop.permute.xlu1 %1501 }
 0x5fc   : > { %1816 = vrot.lane.b32.xlu1 %v6361_v18, %s8216_s29  ;;  %v1460_v7 = vpop.f32.mrf.mxu3  ;;  %s8261_s29 = smov 88  }
 0x5ff   : > { %5082 = vmatmul.msk.bf16.gmra.mxu1 %vm1281_vm6, %v1502_v17  ;;  %2137 = vmatpush.bf16.xpose.msra.mxu2 %v2127_v52 }
 0x603   : > { %1648 = vrot.lane.b32.xlu2 %v6369_v23, %s8214_s26  ;;  %v1823_v54 = vpop.permute.xlu1 %1822  ;;  %s8269_s26 = smov 40  }
 0x604   : > { %2098 = vrot.lane.b32.xlu1 %v6373_v26, %s8218_s3  ;;  %v1844_v55 = vsel %vm1281_vm6, %v1823_v54, 0  ;;  %s8265_s3 = smov 80  }
 0x605   : > { %1858 = vmatpush.bf16.xpose.msra.mxu1 %v1844_v55 }
 0x621   : > { %v1544_v58 = vpop.f32.mrf.mxu1 }
 0x622   : > { %v6530_v2 = vadd.f32 %v5071_v57, %v1544_v58 }
 0x624   : > { %v1564_v62 = vsel %vm1335_vm7, %v6530_v2, -inf }
 0x625   : > { %1565 = vmax.xlane.f32.xlu0 %v1564_v62 }
 0x629   : > { %v1546_v1 = vpop.f32.mrf.mxu1 }
 0x62a   : > { %v6537_v45 = vadd.f32 %v5072_v0, %v1546_v1  ;;  %v5075_v1 = vld [vmem:[%s8259_s9 + $0x60] sm:$0xff] }
 0x62c   : > { %v1567_v4 = vsel %vm1335_vm7, %v6537_v45, -inf  ;;  %v1407_v27 = vpop.xlane.xlu0 %1406 }
 0x62e   : > { %v1395_v6 = vpop.xlane.xlu1 %1394  ;;  %v1404_v9 = vpop.xlane.xlu2 %1403  ;;  %1568 = vmax.xlane.f32.xlu1 %v1567_v4 }
 0x62f   : > { %5525 = vrcp.f32 %v1395_v6 }
 0x632   : > { %v1549_v61 = vpop.f32.mrf.mxu1 }
 0x633   : > { %v6544_v12 = vadd.f32 %v5073_v10, %v1549_v61 }
 0x635   : > { %v5526_v13 = vpop.eup %5525  ;;  %v1463_v3 = vpop.f32.mrf.mxu3  ;;  %v1570_v11 = vsel %vm1335_vm7, %v6544_v12, -inf }
 0x636   : > { %v1398_v51 = vpop.xlane.xlu1 %1397  ;;  %v2103_v15 = vpop.permute.xlu2 %2102  ;;  %1571 = vmax.xlane.f32.xlu2 %v1570_v11  ;;  %v1476_v25 = vmul.f32 %v5526_v13, %v1460_v7 }
 0x637   : > { %v2124_v20 = vsel %vm1281_vm6, %v2103_v15, 0  ;;  %5527 = vrcp.f32 %v1398_v51 }
 0x638   : > { %2138 = vmatpush.bf16.xpose.msra.mxu2 %v2124_v20  ;;  %v1482_v29 = vpack.c.bf16 %v1476_v25, %v1475_v8  ;;  %v5078_v25 = vld [vmem:[%s8259_s9 + $0x78] sm:$0xff] }
 0x63a   : > { %v1551_v24 = vpop.f32.mrf.mxu1  ;;  %5092 = vmatmul.msk.bf16.gmra.mxu2 %vm1281_vm6, %v1482_v29 }
 0x63b   : > { %v6553_v19 = vadd.f32 %v5074_v22, %v1551_v24 }
 0x63d   : > { %v1465_v32 = vpop.f32.mrf.mxu3  ;;  %v1573_v37 = vsel %vm1335_vm7, %v6553_v19, -inf  ;;  %v5528_v36 = vpop.eup %5527 }
 0x63e   : > { %v1401_v30 = vpop.xlane.xlu1 %1400  ;;  %v1815_v56 = vpop.permute.xlu2 %1814  ;;  %1574 = vmax.xlane.f32.xlu0 %v1573_v37  ;;  %v1477_v34 = vmul.f32 %v5528_v36, %v1463_v3  ;;  %v5077_v3 = vld [vmem:[%s8259_s9 + $0x70] sm:$0xff] }
 0x63f   : > { %5529 = vrcp.f32 %v1401_v30  ;;  %v2101_v31 = vpop.permute.xlu0 %2100 }
 0x640   : > { %v2121_v33 = vsel %vm1281_vm6, %v2101_v31, 0  ;;  %5531 = vrcp.f32 %v1407_v27 }
 0x641   : > { %2139 = vmatpush.bf16.xpose.msra.mxu2 %v2121_v33  ;;  %5533 = vrcp.f32 %v1404_v9  ;;  %v5076_v9 = vld [vmem:[%s8259_s9 + $0x68] sm:$0xff] }
 0x645   : > { %v5530_v39 = vpop.eup %5529  ;;  %v1468_v44 = vpop.f32.mrf.mxu3 }
 0x646   : > { %v2097_v40 = vpop.permute.xlu2 %2096  ;;  %v1478_v41 = vmul.f32 %v5530_v39, %v1465_v32  ;;  %v5532_v38 = vpop.eup %5531 }
 0x647   : > { %v5534_v50 = vpop.eup %5533  ;;  %v2095_v13 = vpop.permute.xlu0 %2094 }
 0x648   : > { %v1483_v46 = vpack.c.bf16 %v1478_v41, %v1477_v34  ;;  %v1479_v17 = vmul.f32 %v5534_v50, %v1468_v44 }
 0x64a   : > { %5093 = vmatmul.msk.bf16.gmra.mxu2 %vm1281_vm6, %v1483_v46 }
 0x64d   : > { %v1470_v43 = vpop.f32.mrf.mxu3 }
 0x64e   : > { %v1655_v48 = vpop.permute.xlu2 %1654  ;;  %v1480_v49 = vmul.f32 %v5532_v38, %v1470_v43 }
 0x64f   : > { %1676 = vmatpush.bf16.msrb.mxu0 %v1655_v48  ;;  %v1819_v29 = vpop.permute.xlu0 %1818 }
 0x650   : > { %v1484_v57 = vpack.c.bf16 %v1480_v49, %v1479_v17 }
 0x656   : > { %v1821_v52 = vpop.permute.xlu1 %1820  ;;  %v1653_v54 = vpop.permute.xlu2 %1652 }
 0x657   : > { %1677 = vmatpush.bf16.msrb.mxu0 %v1653_v54  ;;  %v1841_v55 = vsel %vm1281_vm6, %v1821_v52, 0  ;;  %v5095_v52 = vld [vmem:[%s8259_s9 + $0x80] sm:$0xff] }
 0x658   : > { %1859 = vmatpush.bf16.xpose.msra.mxu1 %v1841_v55 }
 0x65a   : > { %5094 = vmatmul.msk.bf16.gmra.mxu2 %vm1281_vm6, %v1484_v57 }
 0x65e   : > { %v1813_v58 = vpop.permute.xlu1 %1812  ;;  %v1651_v60 = vpop.permute.xlu2 %1650 }
 0x65f   : > { %1678 = vmatpush.bf16.msrb.mxu0 %v1651_v60  ;;  %5103 = vmatmul.msk.bf16.vlgmr.msra.gmra.mxu1 %vm1281_vm6, %v1813_v58  ;;  %v5096_v60 = vld [vmem:[%s8259_s9 + $0x88] sm:$0xff] }
 0x666   : > { %v1649_v62 = vpop.permute.xlu2 %1648  ;;  %v2093_v0 = vpop.permute.xlu1 %2092 }
 0x667   : > { %1679 = vmatpush.bf16.msrb.mxu0 %v1649_v62 }
 0x66a   : > { %5123 = vmatmul.msk.bf16.vlgmr.msra.gmra.mxu2 %vm1281_vm6, %v2093_v0 }
 0x66c   : > { %v1554_v4 = vpop.f32.mrf.mxu1 }
 0x66d   : > { %v6566_v7 = vadd.f32 %v5075_v1, %v1554_v4 }
 0x66e   : > { %v1817_v51 = vpop.permute.xlu1 %1816 }
 0x66f   : > { %5104 = vmatmul.msk.bf16.gmra.mxu1 %vm1281_vm6, %v1815_v56  ;;  %v1576_v6 = vsel %vm1335_vm7, %v6566_v7, -inf }
 0x670   : > { %1577 = vmax.xlane.f32.xlu1 %v1576_v6 }
 0x674   : > { %v1556_v10 = vpop.f32.mrf.mxu1 }
 0x675   : > { %v6574_v61 = vadd.f32 %v5076_v9, %v1556_v10 }
 0x676   : > { %v2099_v24 = vpop.permute.xlu1 %2098 }
 0x677   : > { %v1579_v5 = vsel %vm1335_vm7, %v6574_v61, -inf }
 0x678   : > { %1580 = vmax.xlane.f32.xlu0 %v1579_v5 }
 0x67a   : > { %5124 = vmatmul.msk.bf16.gmra.mxu2 %vm1281_vm6, %v2095_v13 }
 0x67c   : > { %v1559_v11 = vpop.f32.mrf.mxu1 }
 0x67d   : > { %v6582_v8 = vadd.f32 %v5077_v3, %v1559_v11 }
 0x67f   : > { %5105 = vmatmul.msk.bf16.gmra.mxu1 %vm1281_vm6, %v1817_v51  ;;  %v1582_v15 = vsel %vm1335_vm7, %v6582_v8, -inf }
 0x680   : > { %1583 = vmax.xlane.f32.xlu1 %v1582_v15  ;;  %v5098_v15 = vld [vmem:[%s8259_s9 + $0x98] sm:$0xff] }
 0x684   : > { %v1561_v27 = vpop.f32.mrf.mxu1 }
 0x685   : > { %v6590_v20 = vadd.f32 %v5078_v25, %v1561_v27 }
 0x687   : > { %v1585_v22 = vsel %vm1335_vm7, %v6590_v20, -inf }
 0x688   : > { %1586 = vmax.xlane.f32.xlu0 %v1585_v22 }
 0x68a   : > { %5125 = vmatmul.msk.bf16.gmra.mxu2 %vm1281_vm6, %v2097_v40  ;;  %v6605_v40 = vpop.f32.mrf.mxu2 }
 0x68f   : > { %5106 = vmatmul.msk.bf16.gmra.mxu1 %vm1281_vm6, %v1819_v29 }
 0x692   : > { %v6614_v48 = vpop.f32.mrf.mxu2 }
 0x698   : > { %v1566_v32 = vpop.xlane.xlu0 %1565 }
 0x699   : > { %1971 = vrot.lane.b32.xlu1 %v6373_v26, %s8222_s0  ;;  %v1588_v37 = vsub.f32 %v6530_v2, %v1566_v32 }
 0x69a   : > { %5126 = vmatmul.msk.bf16.gmra.mxu2 %vm1281_vm6, %v2099_v24 }
 0x69b   : > { %v1596_v30 = vmul.f32 1.442695, %v1588_v37 }
 0x69d   : > { %5535 = vpow2.f32 %v1596_v30  ;;  %v5115_v30 = vld [vmem:[%s8259_s9 + $0xc0] sm:$0xff] }
 0x6a1   : > { %v1569_v56 = vpop.xlane.xlu1 %1568  ;;  %2251 = vrot.lane.b32.xlu1 %v6373_v26, %s8224_s1 }
 0x6a2   : > { %v1589_v31 = vsub.f32 %v6537_v45, %v1569_v56 }
 0x6a3   : > { %v6603_v39 = vpop.eup %5535 }
 0x6a4   : > { %v1598_v33 = vmul.f32 1.442695, %v1589_v31 }
 0x6a6   : > { %5537 = vpow2.f32 %v1598_v33 }
 0x6a9   : > { %v1572_v36 = vpop.xlane.xlu2 %1571 }
 0x6aa   : > { %v1590_v2 = vsub.f32 %v6544_v12, %v1572_v36 }
 0x6ac   : > { %v6607_v34 = vpop.eup %5537  ;;  %v1600_v26 = vmul.f32 1.442695, %v1590_v2 }
 0x6ad   : > { %v1644_v41 = vpack.c.bf16 %v6607_v34, %v6603_v39 }
 0x6ae   : > { %5539 = vpow2.f32 %v1600_v26  ;;  %v5117_v26 = vld [vmem:[%s8259_s9 + $0xd0] sm:$0xff] }
 0x6af   : > { %5083 = vmatmul.msk.bf16.vlgmr.msrb.gmra.mxu0 %vm1335_vm7, %v1644_v41 }
 0x6b1   : > { %v1575_v44 = vpop.xlane.xlu0 %1574 }
 0x6b2   : > { %v1591_v45 = vsub.f32 %v6553_v19, %v1575_v44 }
 0x6b4   : > { %v1602_v46 = vmul.f32 1.442695, %v1591_v45  ;;  %v6616_v43 = vpop.eup %5539 }
 0x6b6   : > { %5541 = vpow2.f32 %v1602_v46 }
 0x6bc   : > { %v6618_v38 = vpop.eup %5541 }
 0x6bd   : > { %v6620_v49 = vpop.f32.mrf.mxu2  ;;  %v1645_v12 = vpack.c.bf16 %v6618_v38, %v6616_v43 }
 0x6bf   : > { %5084 = vmatmul.msk.bf16.gmra.mxu0 %vm1335_vm7, %v1645_v12 }
 0x6c5   : > { %v6625_v50 = vpop.f32.mrf.mxu2 }
 0x6cd   : > { %v6627_v17 = vpop.f32.mrf.mxu2 }
 0x6d5   : > { %v6629_v19 = vpop.f32.mrf.mxu2 }
 0x6dc   : > { %v1861_v54 = vpop.f32.mrf.mxu1 }
 0x6dd   : > { %v6634_v55 = vadd.f32 %v5095_v52, %v1861_v54  ;;  %v6636_v57 = vpop.f32.mrf.mxu2  ;;  %v5118_v54 = vld [vmem:[%s8259_s9 + $0xd8] sm:$0xff] }
 0x6df   : > { %v1881_v58 = vsel %vm1335_vm7, %v6634_v55, -inf }
 0x6e0   : > { %1882 = vmax.xlane.f32.xlu0 %v1881_v58 }
 0x6e3   : > { %v1578_v62 = vpop.xlane.xlu1 %1577 }
 0x6e4   : > { %v1863_v0 = vpop.f32.mrf.mxu1  ;;  %v1592_v6 = vsub.f32 %v6566_v7, %v1578_v62 }
 0x6e5   : > { %v6643_v1 = vadd.f32 %v5096_v60, %v1863_v0  ;;  %v6645_v4 = vpop.f32.mrf.mxu2 }
 0x6e6   : > { %v1604_v10 = vmul.f32 1.442695, %v1592_v6  ;;  %v5100_v6 = vld [vmem:[%s8259_s9 + $0xa8] sm:$0xff] }
 0x6e7   : > { %v1884_v9 = vsel %vm1335_vm7, %v6643_v1, -inf }
 0x6e8   : > { %1885 = vmax.xlane.f32.xlu2 %v1884_v9  ;;  %5543 = vpow2.f32 %v1604_v10 }
 0x6eb   : > { %v1581_v5 = vpop.xlane.xlu0 %1580 }
 0x6ec   : > { %v1593_v13 = vsub.f32 %v6574_v61, %v1581_v5  ;;  %v6651_v3 = vpop.f32.mrf.mxu1 }
 0x6ed   : > { %v2141_v11 = vpop.f32.mrf.mxu2 }
 0x6ee   : > { %v1606_v51 = vmul.f32 1.442695, %v1593_v13  ;;  %v6658_v27 = vpop.eup %5543  ;;  %v6673_v56 = vadd.f32 %v5115_v30, %v2141_v11  ;;  %v5116_v11 = vld [vmem:[%s8259_s9 + $0xc8] sm:$0xff] }
 0x6f0   : > { %5545 = vpow2.f32 %v1606_v51  ;;  %v2161_v41 = vsel %vm1335_vm7, %v6673_v56, -inf }
 0x6f3   : > { %v1584_v25 = vpop.xlane.xlu1 %1583 }
 0x6f4   : > { %v1868_v7 = vpop.f32.mrf.mxu1  ;;  %1969 = vrot.lane.b32.xlu0 %v6361_v18, %s8222_s0  ;;  %v1594_v24 = vsub.f32 %v6582_v8, %v1584_v25 }
 0x6f5   : > { %v6660_v22 = vadd.f32 %v5098_v15, %v1868_v7  ;;  %v2143_v61 = vpop.f32.mrf.mxu2  ;;  %v5119_v15 = vld [vmem:[%s8259_s9 + $0xe0] sm:$0xff] }
 0x6f6   : > { %v6662_v29 = vpop.eup %5545  ;;  %v1608_v31 = vmul.f32 1.442695, %v1594_v24 }
 0x6f7   : > { %v1890_v32 = vsel %vm1335_vm7, %v6660_v22, -inf  ;;  %v1646_v37 = vpack.c.bf16 %v6662_v29, %v6658_v27 }
 0x6f8   : > { %1891 = vmax.xlane.f32.xlu1 %v1890_v32  ;;  %5547 = vpow2.f32 %v1608_v31  ;;  %v5121_v31 = vld [vmem:[%s8259_s9 + $0xf0] sm:$0xff] }
 0x6f9   : > { %5085 = vmatmul.msk.bf16.gmra.mxu0 %vm1335_vm7, %v1646_v37  ;;  %v5101_v37 = vld [vmem:[%s8259_s9 + $0xb0] sm:$0xff] }
 0x6fb   : > { %v1587_v33 = vpop.xlane.xlu0 %1586 }
 0x6fc   : > { %v1595_v36 = vsub.f32 %v6590_v20, %v1587_v33  ;;  %v6687_v20 = vpop.f32.mrf.mxu1 }
 0x6fd   : > { %v2146_v2 = vpop.f32.mrf.mxu2 }
 0x6fe   : > { %v1610_v8 = vmul.f32 1.442695, %v1595_v36  ;;  %v6683_v44 = vadd.f32 %v5117_v26, %v2146_v2  ;;  %v5548_v45 = vpop.eup %5547  ;;  %v1612_v2 = vsel %vm1335_vm7, %v6603_v39, 0.0 }
 0x700   : > { %5549 = vpow2.f32 %v1610_v8  ;;  %1967 = vrot.lane.b32.xlu2 %v6357_v16, %s8222_s0  ;;  %2162 = vmax.xlane.f32.xlu1 %v2161_v41  ;;  %v2167_v12 = vsel %vm1335_vm7, %v6683_v44, -inf  ;;  %v5097_v41 = vld [vmem:[%s8259_s9 + $0x90] sm:$0xff] }
 0x701   : > { %v6749_v26 = vadd.f32 %v5097_v41, %v6651_v3  ;;  %v1627_v41 = vsel %vm1335_vm7, %v6662_v29, 0.0 }
 0x704   : > { %v1873_v9 = vpop.f32.mrf.mxu1 }
 0x705   : > { %v2148_v58 = vpop.f32.mrf.mxu2  ;;  %v6707_v10 = vadd.f32 %v5100_v6, %v1873_v9  ;;  %v5122_v6 = vld [vmem:[%s8259_s9 + $0xf8] sm:$0xff]  ;;  %v5099_v9 = vld [vmem:[%s8259_s9 + $0xa0] sm:$0xff] }
 0x706   : > { %v6685_v46 = vpop.eup %5549  ;;  %v6698_v60 = vadd.f32 %v5118_v54, %v2148_v58  ;;  %v1630_v54 = vsel %vm1335_vm7, %v5548_v45, 0.0 }
 0x707   : > { %v1647_v52 = vpack.c.bf16 %v6685_v46, %v5548_v45  ;;  %v1896_v51 = vsel %vm1335_vm7, %v6707_v10, -inf }
 0x708   : > { %1965 = vrot.lane.b32.xlu2 %v6369_v23, %s8222_s0  ;;  %2168 = vmax.xlane.f32.xlu1 %v2167_v12  ;;  %v2170_v0 = vsel %vm1335_vm7, %v6698_v60, -inf  ;;  %v1621_v12 = vsel %vm1335_vm7, %v6618_v38, 0.0  ;;  %v5102_v38 = vld [vmem:[%s8259_s9 + $0xb8] sm:$0xff]  ;;  %s8262_s0 = smov 64  }
 0x709   : > { %5086 = vmatmul.msk.bf16.gmra.mxu0 %vm1335_vm7, %v1647_v52  ;;  %v1887_v52 = vsel %vm1335_vm7, %v6749_v26, -inf }
 0x70b   : > { %v1972_v62 = vpop.permute.xlu1 %1971 }
 0x70c   : > { %1993 = vmatpush.bf16.msra.mxu0 %v1972_v62  ;;  %v1876_v30 = vpop.f32.mrf.mxu1 }
 0x70d   : > { %v2151_v13 = vpop.f32.mrf.mxu2 }
 0x70e   : > { %v6721_v25 = vadd.f32 %v5119_v15, %v2151_v13  ;;  %v6779_v13 = vadd.f32 %v5099_v9, %v6687_v20 }
 0x710   : > { %2249 = vrot.lane.b32.xlu2 %v6361_v18, %s8224_s1  ;;  %2171 = vmax.xlane.f32.xlu1 %v2170_v0  ;;  %v6719_v18 = vadd.f32 %v5116_v11, %v2143_v61  ;;  %v2173_v32 = vsel %vm1335_vm7, %v6721_v25, -inf  ;;  %v1893_v15 = vsel %vm1335_vm7, %v6779_v13, -inf }
 0x712   : > { %v2164_v7 = vsel %vm1335_vm7, %v6719_v18, -inf }
 0x713   : > { %v2252_v5 = vpop.permute.xlu1 %2251 }
 0x714   : > { %2273 = vmatpush.bf16.msrb.mxu1 %v2252_v5  ;;  %v1878_v58 = vpop.f32.mrf.mxu1 }
 0x715   : > { %v2153_v24 = vpop.f32.mrf.mxu2  ;;  %v6766_v62 = vadd.f32 %v5102_v38, %v1878_v58 }
 0x717   : > { %v1902_v0 = vsel %vm1335_vm7, %v6766_v62, -inf }
 0x718   : > { %2247 = vrot.lane.b32.xlu2 %v6357_v16, %s8224_s1  ;;  %1897 = vmax.xlane.f32.xlu1 %v1896_v51  ;;  %v6730_v16 = vadd.f32 %v5101_v37, %v1876_v30  ;;  %v1615_v37 = vsel %vm1335_vm7, %v6607_v34, 0.0 }
 0x71a   : > { %v1899_v61 = vsel %vm1335_vm7, %v6730_v16, -inf }
 0x71d   : > { %v2156_v33 = vpop.f32.mrf.mxu2 }
 0x71e   : > { %2165 = vmax.xlane.f32.xlu0 %v2164_v7  ;;  %v6737_v36 = vadd.f32 %v5121_v31, %v2156_v33 }
 0x720   : > { %2174 = vmax.xlane.f32.xlu1 %v2173_v32  ;;  %v2179_v8 = vsel %vm1335_vm7, %v6737_v36, -inf }
 0x725   : > { %v2158_v45 = vpop.f32.mrf.mxu2 }
 0x726   : > { %v6776_v5 = vadd.f32 %v5122_v6, %v2158_v45 }
 0x728   : > { %1900 = vmax.xlane.f32.xlu1 %v1899_v61  ;;  %v2182_v11 = vsel %vm1335_vm7, %v6776_v5, -inf  ;;  %v1618_v61 = vsel %vm1335_vm7, %v6616_v43, 0.0 }
 0x730   : > { %2180 = vmax.xlane.f32.xlu1 %v2179_v8 }
 0x732   : > { %2245 = vrot.lane.b32.xlu0 %v6369_v23, %s8224_s1  ;;  %v5120_v23 = vld [vmem:[%s8259_s9 + $0xe8] sm:$0xff]  ;;  %s8263_s1 = smov 120  }
 0x733   : > { %v6758_v39 = vadd.f32 %v5120_v23, %v2153_v24 }
 0x735   : > { %v2176_v3 = vsel %vm1335_vm7, %v6758_v39, -inf }
 0x738   : > { %1613 = vadd.xlane.f32.xlu1 %v1612_v2  ;;  %v1624_v2 = vsel %vm1335_vm7, %v6658_v27, 0.0 }
 0x740   : > { %1622 = vadd.xlane.f32.xlu1 %v1621_v12 }
 0x741   : > { %1888 = vmax.xlane.f32.xlu2 %v1887_v52  ;;  %v1633_v52 = vsel %vm1335_vm7, %v6685_v46, 0.0 }
 0x748   : > { %1631 = vadd.xlane.f32.xlu1 %v1630_v54 }
 0x749   : > { %2177 = vmax.xlane.f32.xlu2 %v2176_v3 }
 0x751   : > { %1903 = vmax.xlane.f32.xlu2 %v1902_v0 }
 0x753   : > { %v1883_v24 = vpop.xlane.xlu0 %1882 }
 0x754   : > { %v1905_v20 = vsub.f32 %v6634_v55, %v1883_v24 }
 0x756   : > { %v1913_v31 = vmul.f32 1.442695, %v1905_v20 }
 0x759   : > { %2183 = vmax.xlane.f32.xlu2 %v2182_v11 }
 0x75b   : > { %v1886_v51 = vpop.xlane.xlu2 %1885 }
 0x75c   : > { %v1906_v7 = vsub.f32 %v6643_v1, %v1886_v51  ;;  %1894 = vmax.xlane.f32.xlu0 %v1893_v15 }
 0x75e   : > { %v1915_v32 = vmul.f32 1.442695, %v1906_v7 }
 0x760   : > { %5551 = vpow2.f32 %v1915_v32 }
 0x761   : > { %1616 = vadd.xlane.f32.xlu2 %v1615_v37  ;;  %5553 = vpow2.f32 %v1913_v31 }
 0x763   : > { %v1968_v30 = vpop.permute.xlu2 %1967 }
 0x764   : > { %1619 = vadd.xlane.f32.xlu0 %v1618_v61 }
 0x766   : > { %v5552_v33 = vpop.eup %5551  ;;  %v1970_v8 = vpop.permute.xlu0 %1969 }
 0x767   : > { %1994 = vmatpush.bf16.msra.mxu0 %v1970_v8  ;;  %v1932_v1 = vsel %vm1335_vm7, %v5552_v33, 0.0  ;;  %v5554_v43 = vpop.eup %5553 }
 0x768   : > { %1933 = vadd.xlane.f32.xlu1 %v1932_v1  ;;  %v1961_v12 = vpack.c.bf16 %v5552_v33, %v5554_v43  ;;  %v1929_v54 = vsel %vm1335_vm7, %v5554_v43, 0.0  ;;  %v1254_v43 = vld [vmem:[%s8260_s10 + $0x8] sm:$0xff] }
 0x769   : > { %1625 = vadd.xlane.f32.xlu2 %v1624_v2 }
 0x76b   : > { %v1966_v34 = vpop.permute.xlu2 %1965  ;;  %v1892_v55 = vpop.xlane.xlu1 %1891  ;;  %1995 = vmatpush.bf16.msra.mxu0 %v1968_v30 }
 0x76c   : > { %1628 = vadd.xlane.f32.xlu0 %v1627_v41  ;;  %v1908_v29 = vsub.f32 %v6660_v22, %v1892_v55 }
 0x76e   : > { %v1919_v58 = vmul.f32 1.442695, %v1908_v29 }
 0x76f   : > { %1996 = vmatpush.bf16.msra.mxu0 %v1966_v34 }
 0x771   : > { %1634 = vadd.xlane.f32.xlu2 %v1633_v52 }
 0x772   : > { %5107 = vmatmul.msk.bf16.vlgmr.msra.gmra.mxu0 %vm1335_vm7, %v1961_v12  ;;  %v1713_v12 = vpack.c.bf16 %v1254_v43, %v1254_v43 }
 0x773   : > { %v2250_v23 = vpop.permute.xlu2 %2249  ;;  %v2163_v27 = vpop.xlane.xlu1 %2162 }
 0x774   : > { %v2185_v3 = vsub.f32 %v6673_v56, %v2163_v27  ;;  %2274 = vmatpush.bf16.msrb.mxu1 %v2250_v23  ;;  %1930 = vadd.xlane.f32.xlu0 %v1929_v54 }
 0x776   : > { %v2193_v38 = vmul.f32 1.442695, %v2185_v3 }
 0x778   : > { %5555 = vpow2.f32 %v2193_v38 }
 0x779   : > { %5557 = vpow2.f32 %v1919_v58 }
 0x77b   : > { %v2248_v0 = vpop.permute.xlu2 %2247  ;;  %v2169_v6 = vpop.xlane.xlu1 %2168 }
 0x77c   : > { %2275 = vmatpush.bf16.msrb.mxu1 %v2248_v0  ;;  %v2187_v7 = vsub.f32 %v6683_v44, %v2169_v6 }
 0x77e   : > { %v5556_v46 = vpop.eup %5555  ;;  %v2197_v37 = vmul.f32 1.442695, %v2187_v7 }
 0x77f   : > { %v2209_v45 = vsel %vm1335_vm7, %v5556_v46, 0.0  ;;  %v5558_v11 = vpop.eup %5557 }
 0x780   : > { %2210 = vadd.xlane.f32.xlu2 %v2209_v45  ;;  %v1938_v51 = vsel %vm1335_vm7, %v5558_v11, 0.0 }
 0x783   : > { %v2172_v9 = vpop.xlane.xlu1 %2171 }
 0x784   : > { %v2188_v44 = vsub.f32 %v6698_v60, %v2172_v9 }
 0x788   : > { %1939 = vadd.xlane.f32.xlu2 %v1938_v51 }
 0x78b   : > { %v1898_v56 = vpop.xlane.xlu1 %1897 }
 0x78c   : > { %v1910_v30 = vsub.f32 %v6707_v10, %v1898_v56  ;;  %v2199_v10 = vmul.f32 1.442695, %v2188_v44  ;;  %v1681_v56 = vpop.f32.mrf.mxu0 }
 0x78e   : > { %v1923_v31 = vmul.f32 1.442695, %v1910_v30 }
 0x791   : > { %v2166_v15 = vpop.xlane.xlu0 %2165 }
 0x792   : > { %v2186_v22 = vsub.f32 %v6719_v18, %v2166_v15 }
 0x793   : > { %v2175_v32 = vpop.xlane.xlu1 %2174 }
 0x794   : > { %v2195_v24 = vmul.f32 1.442695, %v2186_v22  ;;  %v2189_v58 = vsub.f32 %v6721_v25, %v2175_v32 }
 0x796   : > { %5559 = vpow2.f32 %v2195_v24  ;;  %v2201_v0 = vmul.f32 1.442695, %v2189_v58 }
 0x797   : > { %5561 = vpow2.f32 %v2197_v37 }
 0x798   : > { %5563 = vpow2.f32 %v1923_v31 }
 0x79b   : > { %v1901_v33 = vpop.xlane.xlu1 %1900 }
 0x79c   : > { %v5560_v20 = vpop.eup %5559  ;;  %v1911_v1 = vsub.f32 %v6730_v16, %v1901_v33  ;;  %v1728_v16 = vsel %vm1726_vm8, %v1713_v12, 0 }
 0x79d   : > { %v2212_v61 = vsel %vm1335_vm7, %v5560_v20, 0.0  ;;  %v5562_v8 = vpop.eup %5561  ;;  %v2241_v34 = vpack.c.bf16 %v5560_v20, %v5556_v46  ;;  %1737 = vmatpush.bf16.msrb.mxu3 %v1728_v16 }
 0x79e   : > { %2213 = vadd.xlane.f32.xlu0 %v2212_v61  ;;  %v2215_v2 = vsel %vm1335_vm7, %v5562_v8, 0.0  ;;  %v1925_v55 = vmul.f32 1.442695, %v1911_v1  ;;  %v6812_v41 = vpop.eup %5563 }
 0x79f   : > { %v1944_v60 = vsel %vm1335_vm7, %v6812_v41, 0.0 }
 0x7a0   : > { %5565 = vpow2.f32 %v1925_v55 }
 0x7a1   : > { %5567 = vpow2.f32 %v2199_v10 }
 0x7a3   : > { %v2181_v25 = vpop.xlane.xlu1 %2180 }
 0x7a4   : > { %v2246_v18 = vpop.permute.xlu0 %2245  ;;  %v2191_v32 = vsub.f32 %v6737_v36, %v2181_v25 }
 0x7a5   : > { %2276 = vmatpush.bf16.msrb.mxu1 %v2246_v18 }
 0x7a6   : > { %2216 = vadd.xlane.f32.xlu0 %v2215_v2  ;;  %v6820_v52 = vpop.eup %5565  ;;  %v2205_v30 = vmul.f32 1.442695, %v2191_v32 }
 0x7a7   : > { %v5568_v23 = vpop.eup %5567  ;;  %v1947_v3 = vsel %vm1335_vm7, %v6820_v52, 0.0 }
 0x7a8   : > { %5127 = vmatmul.msk.bf16.vlgmr.msrb.gmra.mxu1 %vm1335_vm7, %v2241_v34  ;;  %v2242_v29 = vpack.c.bf16 %v5568_v23, %v5562_v8 }
 0x7ab   : > { %v1614_v1 = vpop.xlane.xlu1 %1613 }
 0x7ae   : > { %1945 = vadd.xlane.f32.xlu0 %v1944_v60 }
 0x7b4   : > { %v1889_v27 = vpop.xlane.xlu2 %1888 }
 0x7b5   : > { %v1907_v54 = vsub.f32 %v6749_v26, %v1889_v27 }
 0x7b6   : > { %1948 = vadd.xlane.f32.xlu0 %v1947_v3 }
 0x7b7   : > { %v1917_v38 = vmul.f32 1.442695, %v1907_v54 }
 0x7b8   : > { %5128 = vmatmul.msk.bf16.gmra.mxu1 %vm1335_vm7, %v2242_v29 }
 0x7b9   : > { %5569 = vpow2.f32 %v1917_v38 }
 0x7ba   : > { %5571 = vpow2.f32 %v2201_v0  ;;  %v1623_v0 = vpop.xlane.xlu1 %1622 }
 0x7bc   : > { %v2178_v6 = vpop.xlane.xlu2 %2177 }
 0x7bd   : > { %v2190_v46 = vsub.f32 %v6758_v39, %v2178_v6  ;;  %v2218_v39 = vsel %vm1335_vm7, %v5568_v23, 0.0  ;;  %v1255_v6 = vld [vmem:[%s8260_s10 + $0x10] sm:$0xff] }
 0x7bf   : > { %v5570_v45 = vpop.eup %5569  ;;  %v2203_v9 = vmul.f32 1.442695, %v2190_v46  ;;  %v2030_v46 = vpack.c.bf16 %v1255_v6, %v1255_v6 }
 0x7c0   : > { %v1935_v26 = vsel %vm1335_vm7, %v5570_v45, 0.0  ;;  %v1962_v51 = vpack.c.bf16 %v5558_v11, %v5570_v45  ;;  %v5572_v22 = vpop.eup %5571  ;;  %v1683_v11 = vpop.f32.mrf.mxu0 }
 0x7c1   : > { %5573 = vpow2.f32 %v2203_v9  ;;  %1936 = vadd.xlane.f32.xlu1 %v1935_v26  ;;  %v2221_v36 = vsel %vm1335_vm7, %v5572_v22, 0.0  ;;  %v2044_v45 = vsel %vm1726_vm8, %v2030_v46, 0 }
 0x7c2   : > { %5108 = vmatmul.msk.bf16.gmra.mxu0 %vm1335_vm7, %v1962_v51  ;;  %2053 = vmatpush.bf16.msra.mxu3 %v2044_v45 }
 0x7c4   : > { %v1904_v15 = vpop.xlane.xlu2 %1903 }
 0x7c5   : > { %v1912_v24 = vsub.f32 %v6766_v62, %v1904_v15 }
 0x7c7   : > { %v5574_v7 = vpop.eup %5573  ;;  %v1927_v20 = vmul.f32 1.442695, %v1912_v24 }
 0x7c8   : > { %v2243_v37 = vpack.c.bf16 %v5574_v7, %v5572_v22  ;;  %v1686_v34 = vpop.f32.mrf.mxu0 }
 0x7c9   : > { %2219 = vadd.xlane.f32.xlu1 %v2218_v39  ;;  %5575 = vpow2.f32 %v1927_v20 }
 0x7ca   : > { %5129 = vmatmul.msk.bf16.gmra.mxu1 %vm1335_vm7, %v2243_v37  ;;  %5577 = vpow2.f32 %v2205_v30  ;;  %v1256_v37 = vld [vmem:[%s8260_s10 + $0x18] sm:$0xff] }
 0x7cc   : > { %v2184_v61 = vpop.xlane.xlu2 %2183 }
 0x7cd   : > { %v2192_v31 = vsub.f32 %v6776_v5, %v2184_v61 }
 0x7cf   : > { %v2207_v33 = vmul.f32 1.442695, %v2192_v31  ;;  %v1895_v8 = vpop.xlane.xlu0 %1894  ;;  %v5576_v2 = vpop.eup %5575 }
 0x7d0   : > { %v1909_v62 = vsub.f32 %v6779_v13, %v1895_v8  ;;  %v5578_v55 = vpop.eup %5577  ;;  %v1950_v10 = vsel %vm1335_vm7, %v5576_v2, 0.0  ;;  %v1688_v58 = vpop.f32.mrf.mxu0  ;;  %v1964_v25 = vpack.c.bf16 %v5576_v2, %v6820_v52 }
 0x7d1   : > { %5579 = vpow2.f32 %v2207_v33  ;;  %2222 = vadd.xlane.f32.xlu1 %v2221_v36  ;;  %v2227_v15 = vsel %vm1335_vm7, %v5578_v55, 0.0 }
 0x7d2   : > { %v1921_v18 = vmul.f32 1.442695, %v1909_v62  ;;  %5581 = vrcp.f32 %v1614_v1  ;;  %v1632_v62 = vpop.xlane.xlu1 %1631 }
 0x7d4   : > { %5583 = vpow2.f32 %v1921_v18  ;;  %v1617_v44 = vpop.xlane.xlu2 %1616 }
 0x7d5   : > { %5585 = vrcp.f32 %v1617_v44 }
 0x7d7   : > { %v5580_v5 = vpop.eup %5579  ;;  %v1620_v29 = vpop.xlane.xlu0 %1619 }
 0x7d8   : > { %v2230_v43 = vsel %vm1335_vm7, %v5580_v5, 0.0  ;;  %v2244_v12 = vpack.c.bf16 %v5580_v5, %v5578_v55  ;;  %v5582_v60 = vpop.eup %5581  ;;  %5587 = vrcp.f32 %v1620_v29  ;;  %v1691_v26 = vpop.f32.mrf.mxu0 }
 0x7d9   : > { %1951 = vadd.xlane.f32.xlu1 %v1950_v10  ;;  %2231 = vadd.xlane.f32.xlu0 %v2230_v43  ;;  %v1701_v54 = vmul.f32 %v5582_v60, %v1681_v56  ;;  %5589 = vrcp.f32 %v1623_v0 }
 0x7da   : > { %v5584_v13 = vpop.eup %5583  ;;  %5130 = vmatmul.msk.bf16.gmra.mxu1 %vm1335_vm7, %v2244_v12 }
 0x7db   : > { %v5586_v16 = vpop.eup %5585  ;;  %v1941_v23 = vsel %vm1335_vm7, %v5584_v13, 0.0  ;;  %v1963_v27 = vpack.c.bf16 %v6812_v41, %v5584_v13  ;;  %v2224_v41 = vsel %vm1335_vm7, %v5574_v7, 0.0  ;;  %v1934_v10 = vpop.xlane.xlu1 %1933 }
 0x7dc   : > { %v1702_v3 = vmul.f32 %v5586_v16, %v1683_v11  ;;  %1942 = vadd.xlane.f32.xlu2 %v1941_v23  ;;  %v1626_v39 = vpop.xlane.xlu2 %1625  ;;  %v2310_v11 = vpack.c.bf16 %v1256_v37, %v1256_v37 }
 0x7dd   : > { %5109 = vmatmul.msk.bf16.gmra.mxu0 %vm1335_vm7, %v1963_v27 }
 0x7de   : > { %v1709_v38 = vpack.c.bf16 %v1702_v3, %v1701_v54  ;;  %v5588_v9 = vpop.eup %5587  ;;  %v2324_v20 = vsel %vm1726_vm8, %v2310_v11, 0 }
 0x7df   : > { %v5590_v51 = vpop.eup %5589  ;;  %v1703_v56 = vmul.f32 %v5588_v9, %v1686_v34  ;;  %v1629_v24 = vpop.xlane.xlu0 %1628  ;;  %2333 = vmatpush.bf16.msrb.mxu0 %v2324_v20 }
 0x7e0   : > { %5087 = vmatmul.msk.bf16.vlgmr.msrb.gmra.mxu3 %vm1281_vm6, %v1709_v38  ;;  %v1704_v22 = vmul.f32 %v5590_v51, %v1688_v58  ;;  %v1693_v7 = vpop.f32.mrf.mxu0  ;;  %5591 = vrcp.f32 %v1629_v24 }
 0x7e1   : > { %5593 = vrcp.f32 %v1626_v39 }
 0x7e2   : > { %v1710_v32 = vpack.c.bf16 %v1704_v22, %v1703_v56 }
 0x7e4   : > { %2225 = vadd.xlane.f32.xlu2 %v2224_v41  ;;  %v1635_v8 = vpop.xlane.xlu2 %1634 }
 0x7e5   : > { %5595 = vrcp.f32 %v1635_v8 }
 0x7e6   : > { %v5592_v52 = vpop.eup %5591  ;;  %5597 = vrcp.f32 %v1632_v62 }
 0x7e7   : > { %v5594_v30 = vpop.eup %5593  ;;  %v1706_v61 = vmul.f32 %v5592_v52, %v1693_v7  ;;  %v1931_v43 = vpop.xlane.xlu0 %1930  ;;  %5599 = vrcp.f32 %v1934_v10 }
 0x7e8   : > { %v1696_v31 = vpop.f32.mrf.mxu0  ;;  %v1705_v33 = vmul.f32 %v5594_v30, %v1691_v26  ;;  %5601 = vrcp.f32 %v1931_v43 }
 0x7ea   : > { %v1711_v1 = vpack.c.bf16 %v1706_v61, %v1705_v33 }
 0x7eb   : > { %v5596_v18 = vpop.eup %5595 }
 0x7ec   : > { %2228 = vadd.xlane.f32.xlu2 %v2227_v15  ;;  %v5598_v44 = vpop.eup %5597 }
 0x7ed   : > { %5110 = vmatmul.msk.bf16.gmra.mxu0 %vm1335_vm7, %v1964_v25  ;;  %v1707_v34 = vmul.f32 %v5598_v44, %v1696_v31  ;;  %v5600_v60 = vpop.eup %5599 }
 0x7ee   : > { %v5602_v13 = vpop.eup %5601 }
 0x7f0   : > { %5088 = vmatmul.msk.bf16.gmra.mxu3 %vm1281_vm6, %v1710_v32  ;;  %v1698_v36 = vpop.f32.mrf.mxu0 }
 0x7f1   : > { %v1708_v2 = vmul.f32 %v5596_v18, %v1698_v36 }
 0x7f3   : > { %v1712_v5 = vpack.c.bf16 %v1708_v2, %v1707_v34  ;;  %v2211_v54 = vpop.xlane.xlu2 %2210 }
 0x7f4   : > { %5603 = vrcp.f32 %v2211_v54 }
 0x7f8   : > { %v1998_v55 = vpop.f32.mrf.mxu0 }
 0x7f9   : > { %v2018_v23 = vmul.f32 %v5602_v13, %v1998_v55 }
 0x7fa   : > { %v5604_v38 = vpop.eup %5603 }
 0x7fb   : > { %v1940_v56 = vpop.xlane.xlu2 %1939 }
 0x800   : > { %5089 = vmatmul.msk.bf16.gmra.mxu3 %vm1281_vm6, %v1711_v1  ;;  %v2000_v12 = vpop.f32.mrf.mxu0 }
 0x801   : > { %v2019_v16 = vmul.f32 %v5600_v60, %v2000_v12 }
 0x803   : > { %v2026_v27 = vpack.c.bf16 %v2019_v16, %v2018_v23 }
 0x810   : > { %5090 = vmatmul.msk.bf16.gmra.mxu3 %vm1281_vm6, %v1712_v5 }
 0x811   : > { %v2214_v3 = vpop.xlane.xlu0 %2213 }
 0x812   : > { %5605 = vrcp.f32 %v2214_v3 }
 0x818   : > { %v5606_v58 = vpop.eup %5605 }
 0x819   : > { %v2217_v9 = vpop.xlane.xlu0 %2216 }
 0x81a   : > { %5607 = vrcp.f32 %v2217_v9 }
 0x820   : > { %5111 = vmatmul.msk.bf16.vlgmr.msra.gmra.mxu3 %vm1281_vm6, %v2026_v27  ;;  %v5608_v25 = vpop.eup %5607 }
 0x821   : > { %v1946_v8 = vpop.xlane.xlu0 %1945 }
 0x825   : > { %v2278_v29 = vpop.f32.mrf.mxu1 }
 0x826   : > { %v2298_v6 = vmul.f32 %v5604_v38, %v2278_v29 }
 0x829   : > { %v1949_v2 = vpop.xlane.xlu0 %1948 }
 0x82d   : > { %v2280_v0 = vpop.f32.mrf.mxu1 }
 0x82e   : > { %v2299_v46 = vmul.f32 %v5606_v58, %v2280_v0 }
 0x830   : > { %v2306_v41 = vpack.c.bf16 %v2299_v46, %v2298_v6 }
 0x832   : > { %5131 = vmatmul.msk.bf16.vlgmr.msrb.gmra.mxu0 %vm1281_vm6, %v2306_v41 }
 0x834   : > { %v1937_v45 = vpop.xlane.xlu1 %1936 }
 0x835   : > { %v2283_v26 = vpop.f32.mrf.mxu1 }
 0x836   : > { %v2300_v32 = vmul.f32 %v5608_v25, %v2283_v26 }
 0x83c   : > { %v2220_v51 = vpop.xlane.xlu1 %2219 }
 0x83d   : > { %5609 = vrcp.f32 %v2220_v51  ;;  %v2285_v24 = vpop.f32.mrf.mxu1 }
 0x83e   : > { %5611 = vrcp.f32 %v1940_v56 }
 0x83f   : > { %v2003_v15 = vpop.f32.mrf.mxu0  ;;  %5613 = vrcp.f32 %v1937_v45 }
 0x843   : > { %v5610_v22 = vpop.eup %5609 }
 0x844   : > { %v2301_v39 = vmul.f32 %v5610_v22, %v2285_v24  ;;  %v5612_v7 = vpop.eup %5611  ;;  %v2223_v1 = vpop.xlane.xlu1 %2222 }
 0x845   : > { %v5614_v11 = vpop.eup %5613  ;;  %5615 = vrcp.f32 %v2223_v1 }
 0x846   : > { %v2307_v37 = vpack.c.bf16 %v2301_v39, %v2300_v32  ;;  %v2020_v52 = vmul.f32 %v5614_v11, %v2003_v15 }
 0x847   : > { %v2005_v20 = vpop.f32.mrf.mxu0  ;;  %v2288_v31 = vpop.f32.mrf.mxu1 }
 0x848   : > { %v2021_v30 = vmul.f32 %v5612_v7, %v2005_v20  ;;  %5132 = vmatmul.msk.bf16.gmra.mxu0 %vm1281_vm6, %v2307_v37 }
 0x84a   : > { %v2027_v61 = vpack.c.bf16 %v2021_v30, %v2020_v52 }
 0x84b   : > { %v5616_v44 = vpop.eup %5615 }
 0x84c   : > { %5112 = vmatmul.msk.bf16.gmra.mxu3 %vm1281_vm6, %v2027_v61  ;;  %v2302_v55 = vmul.f32 %v5616_v44, %v2288_v31  ;;  %v2232_v3 = vpop.xlane.xlu0 %2231  ;;  %v1952_v38 = vpop.xlane.xlu1 %1951 }
 0x84f   : > { %v1943_v33 = vpop.xlane.xlu2 %1942  ;;  %v2290_v36 = vpop.f32.mrf.mxu1 }
 0x857   : > { %v2226_v62 = vpop.xlane.xlu2 %2225  ;;  %v2293_v13 = vpop.f32.mrf.mxu1 }
 0x858   : > { %5617 = vrcp.f32 %v2226_v62 }
 0x859   : > { %5619 = vrcp.f32 %v1946_v8  ;;  %v6873_v8 = vld [vmem:[%s8189_s11] ss:$0 sm:$0xff] }
 0x85a   : > { %v2008_v18 = vpop.f32.mrf.mxu0  ;;  %5621 = vrcp.f32 %v1943_v33 }
 0x85e   : > { %v5618_v34 = vpop.eup %5617 }
 0x85f   : > { %v2303_v5 = vmul.f32 %v5618_v34, %v2290_v36  ;;  %v5620_v10 = vpop.eup %5619  ;;  %v2229_v43 = vpop.xlane.xlu2 %2228 }
 0x860   : > { %v5622_v60 = vpop.eup %5621  ;;  %5623 = vrcp.f32 %v2229_v43  ;;  %v2295_v46 = vpop.f32.mrf.mxu1 }
 0x861   : > { %v2308_v12 = vpack.c.bf16 %v2303_v5, %v2302_v55  ;;  %v2022_v23 = vmul.f32 %v5622_v60, %v2008_v18  ;;  %5625 = vrcp.f32 %v2232_v3 }
 0x862   : > { %v2010_v16 = vpop.f32.mrf.mxu0  ;;  %5627 = vrcp.f32 %v1949_v2 }
 0x863   : > { %v2023_v27 = vmul.f32 %v5620_v10, %v2010_v16  ;;  %v1739_v54 = vpop.f32.mrf.mxu3  ;;  %5133 = vmatmul.msk.bf16.gmra.mxu0 %vm1281_vm6, %v2308_v12  ;;  %5629 = vrcp.f32 %v1952_v38 }
 0x864   : > { %v1784_v30 = vadd.f32 %v6605_v40, %v1739_v54 }
 0x865   : > { %v2028_v29 = vpack.c.bf16 %v2023_v27, %v2022_v23 }
 0x866   : > { %v5624_v58 = vpop.eup %5623 }
 0x867   : > { %5113 = vmatmul.msk.bf16.gmra.mxu3 %vm1281_vm6, %v2028_v29  ;;  %v2304_v41 = vmul.f32 %v5624_v58, %v2293_v13  ;;  %v5626_v45 = vpop.eup %5625 }
 0x868   : > { %v2305_v9 = vmul.f32 %v5626_v45, %v2295_v46  ;;  %v5628_v26 = vpop.eup %5627 }
 0x869   : > { %v5630_v56 = vpop.eup %5629 }
 0x86a   : > { %v2013_v0 = vpop.f32.mrf.mxu0  ;;  %v2309_v51 = vpack.c.bf16 %v2305_v9, %v2304_v41 }
 0x86b   : > { %v1741_v6 = vpop.f32.mrf.mxu3  ;;  %v2024_v25 = vmul.f32 %v5628_v26, %v2013_v0 }
 0x86c   : > { %v1786_v36 = vadd.f32 %v6614_v48, %v1741_v6 }
 0x872   : > { %v2015_v15 = vpop.f32.mrf.mxu0 }
 0x873   : > { %v2025_v22 = vmul.f32 %v5630_v56, %v2015_v15  ;;  %v1744_v24 = vpop.f32.mrf.mxu3  ;;  %5134 = vmatmul.msk.bf16.gmra.mxu0 %vm1281_vm6, %v2309_v51 }
 0x874   : > { %v1789_v48 = vadd.f32 %v6620_v49, %v1744_v24 }
 0x875   : > { %v2029_v32 = vpack.c.bf16 %v2025_v22, %v2024_v25 }
 0x877   : > { %5114 = vmatmul.msk.bf16.gmra.mxu3 %vm1281_vm6, %v2029_v32 }
 0x87b   : > { %v1746_v39 = vpop.f32.mrf.mxu3 }
 0x87c   : > { %v1791_v16 = vadd.f32 %v6625_v50, %v1746_v39 }
 0x883   : > { %v1749_v7 = vpop.f32.mrf.mxu3 }
 0x884   : > { %v1794_v58 = vadd.f32 %v6627_v17, %v1749_v7 }
 0x88b   : > { %v1751_v37 = vpop.f32.mrf.mxu3 }
 0x88c   : > { %v1796_v45 = vadd.f32 %v6629_v19, %v1751_v37 }
 0x893   : > { %v1754_v11 = vpop.f32.mrf.mxu3 }
 0x894   : > { %v1799_v25 = vadd.f32 %v6636_v57, %v1754_v11 }
 0x89b   : > { %v6867_v20 = vpop.f32.mrf.mxu3 }
 0x89c   : > { %v1801_v11 = vadd.f32 %v6645_v4, %v6867_v20 }
 0x8a3   : > { %v2055_v52 = vpop.f32.mrf.mxu3 }
 0x8a4   : > { %v2075_v61 = vadd.f32 %v2055_v52, %v1784_v30 }
 0x8ab   : > { %v2057_v62 = vpop.f32.mrf.mxu3 }
 0x8ac   : > { %v2076_v44 = vadd.f32 %v2057_v62, %v1786_v36 }
 0x8af   : > { %v2335_v31 = vpop.f32.mrf.mxu0 }
 0x8b0   : > { %v2355_v33 = vadd.f32 %v2335_v31, %v2075_v61 }
 0x8b2   : > { %v2363_v1 = vadd.f32 %v2355_v33, %v6189_v47 }
 0x8b4   : > { %v6878_v18 = vadd.f32 %v6873_v8, %v2363_v1 }
 0x8b6   : > { %v2385_v40 = vsel %vm782_vm1, %v6878_v18, 0.0 }
 0x8b7   : > { %2386 = vadd.xlane.f32.xlu1 %v2385_v40  ;;  %v2337_v2 = vpop.f32.mrf.mxu0 }
 0x8b8   : > { %v2356_v34 = vadd.f32 %v2337_v2, %v2076_v44 }
 0x8ba   : > { %v2364_v55 = vadd.f32 %v2356_v34, %v6197_v63 }
 0x8bc   : > { %v6884_v5 = vadd.f32 %v6873_v8, %v2364_v55 }
 0x8be   : > { %v2388_v47 = vsel %vm782_vm1, %v6884_v5, 0.0 }
 0x8bf   : > { %2389 = vadd.xlane.f32.xlu2 %v2388_v47 }
 0x8c5   : > { %v2340_v10 = vpop.f32.mrf.mxu0 }
 0x8cd   : > { %v2342_v3 = vpop.f32.mrf.mxu0 }
 0x8cf   : > { %v2060_v43 = vpop.f32.mrf.mxu3 }
 0x8d0   : > { %v2077_v12 = vadd.f32 %v2060_v43, %v1789_v48 }
 0x8d2   : > { %v2357_v60 = vadd.f32 %v2340_v10, %v2077_v12 }
 0x8d4   : > { %v2365_v13 = vadd.f32 %v2357_v60, %v6205_v14 }
 0x8d6   : > { %v6892_v23 = vadd.f32 %v6873_v8, %v2365_v13 }
 0x8d7   : > { %v2062_v63 = vpop.f32.mrf.mxu3 }
 0x8d8   : > { %v2078_v27 = vadd.f32 %v2062_v63, %v1791_v16  ;;  %v2391_v54 = vsel %vm782_vm1, %v6892_v23, 0.0 }
 0x8d9   : > { %2392 = vadd.xlane.f32.xlu0 %v2391_v54 }
 0x8da   : > { %v2358_v29 = vadd.f32 %v2342_v3, %v2078_v27 }
 0x8dc   : > { %v2366_v49 = vadd.f32 %v2358_v29, %v6213_v28 }
 0x8de   : > { %v6898_v38 = vadd.f32 %v6873_v8, %v2366_v49 }
 0x8e0   : > { %v2394_v14 = vsel %vm782_vm1, %v6898_v38, 0.0  ;;  %v2345_v50 = vpop.f32.mrf.mxu0 }
 0x8e1   : > { %2395 = vadd.xlane.f32.xlu1 %v2394_v14 }
 0x8e8   : > { %v2347_v28 = vpop.f32.mrf.mxu0 }
 0x8ea   : > { %v2065_v0 = vpop.f32.mrf.mxu3 }
 0x8eb   : > { %v2079_v6 = vadd.f32 %v2065_v0, %v1794_v58 }
 0x8ed   : > { %v2359_v46 = vadd.f32 %v2345_v50, %v2079_v6 }
 0x8ef   : > { %v2367_v41 = vadd.f32 %v2359_v46, %v6220_v42 }
 0x8f0   : > { %v2350_v32 = vpop.f32.mrf.mxu0 }
 0x8f1   : > { %v6906_v9 = vadd.f32 %v6873_v8, %v2367_v41 }
 0x8f2   : > { %v2067_v26 = vpop.f32.mrf.mxu3 }
 0x8f3   : > { %v2080_v51 = vadd.f32 %v2067_v26, %v1796_v45  ;;  %v2397_v56 = vsel %vm782_vm1, %v6906_v9, 0.0  ;;  %v5373_v26 = vld [vmem:[%s8192_s14 + $0x8] sm:$0xff] }
 0x8f4   : > { %2398 = vadd.xlane.f32.xlu2 %v2397_v56  ;;  %2625 = vmatpush.bf16.msrb.mxu3 %v5373_v26 }
 0x8f5   : > { %v2360_v15 = vadd.f32 %v2347_v28, %v2080_v51 }
 0x8f7   : > { %v2368_v17 = vadd.f32 %v2360_v15, %v6227_v53 }
 0x8f8   : > { %v2352_v31 = vpop.f32.mrf.mxu0 }
 0x8f9   : > { %v6913_v22 = vadd.f32 %v6873_v8, %v2368_v17  ;;  %v5372_v17 = vld [vmem:[%s8192_s14] sm:$0xff] }
 0x8fa   : > { %v2070_v42 = vpop.f32.mrf.mxu3  ;;  %2626 = vmatpush.bf16.msrb.mxu3 %v5372_v17 }
 0x8fb   : > { %v2081_v19 = vadd.f32 %v2070_v42, %v1799_v25  ;;  %v2400_v24 = vsel %vm782_vm1, %v6913_v22, 0.0 }
 0x8fc   : > { %2401 = vadd.xlane.f32.xlu0 %v2400_v24 }
 0x8fd   : > { %v2361_v39 = vadd.f32 %v2350_v32, %v2081_v19 }
 0x8ff   : > { %v2369_v7 = vadd.f32 %v2361_v39, %v6234_v59 }
 0x901   : > { %v6919_v37 = vadd.f32 %v6873_v8, %v2369_v7 }
 0x902   : > { %v2072_v57 = vpop.f32.mrf.mxu3 }
 0x903   : > { %v2403_v53 = vsel %vm782_vm1, %v6919_v37, 0.0  ;;  %v2082_v52 = vadd.f32 %v2072_v57, %v1801_v11 }
 0x904   : > { %2404 = vadd.xlane.f32.xlu0 %v2403_v53 }
 0x905   : > { %v2362_v33 = vadd.f32 %v2352_v31, %v2082_v52 }
 0x907   : > { %v2370_v62 = vadd.f32 %v2362_v33, %v6255_v21 }
 0x909   : > { %v6938_v40 = vadd.f32 %v6873_v8, %v2370_v62 }
 0x90b   : > { %v2406_v21 = vsel %vm782_vm1, %v6938_v40, 0.0 }
 0x92a   : > { %v2387_v30 = vpop.xlane.xlu1 %2386 }
 0x92b   : > { %v2409_v61 = vmul.f32 %v2387_v30, %v6121_v35 }
 0x92d   : > { %v6927_v1 = vsub.f32 %v6878_v18, %v2409_v61 }
 0x92f   : > { %v2425_v59 = vmul.f32 %v6927_v1, %v6927_v1 }
 0x931   : > { %v2433_v36 = vsel %vm782_vm1, %v2425_v59, 0.0 }
 0x932   : > { %v2390_v44 = vpop.xlane.xlu2 %2389  ;;  %2434 = vadd.xlane.f32.xlu1 %v2433_v36 }
 0x933   : > { %v2410_v4 = vmul.f32 %v2390_v44, %v6121_v35 }
 0x935   : > { %v6935_v20 = vsub.f32 %v6884_v5, %v2410_v4 }
 0x937   : > { %v2426_v2 = vmul.f32 %v6935_v20, %v6935_v20 }
 0x939   : > { %v2436_v34 = vsel %vm782_vm1, %v2426_v2, 0.0  ;;  %v6998_v2 = vld [vmem:[%s8190_s12] ss:$0 sm:$0xff] }
 0x93a   : > { %2437 = vadd.xlane.f32.xlu2 %v2436_v34  ;;  %2407 = vadd.xlane.f32.xlu1 %v2406_v21 }
 0x94c   : > { %v2393_v55 = vpop.xlane.xlu0 %2392 }
 0x94d   : > { %v2411_v47 = vmul.f32 %v2393_v55, %v6121_v35 }
 0x94f   : > { %v6947_v48 = vsub.f32 %v6892_v23, %v2411_v47  ;;  %v7004_v47 = vld [vmem:[%s8191_s13] ss:$0 sm:$0xff] }
 0x951   : > { %v2427_v8 = vmul.f32 %v6947_v48, %v6947_v48 }
 0x953   : > { %v2439_v10 = vsel %vm782_vm1, %v2427_v8, 0.0 }
 0x954   : > { %v2396_v43 = vpop.xlane.xlu1 %2395  ;;  %2440 = vadd.xlane.f32.xlu2 %v2439_v10 }
 0x955   : > { %v2412_v12 = vmul.f32 %v2396_v43, %v6121_v35 }
 0x957   : > { %v6954_v60 = vsub.f32 %v6898_v38, %v2412_v12 }
 0x959   : > { %v2428_v13 = vmul.f32 %v6954_v60, %v6954_v60 }
 0x95b   : > { %v2442_v16 = vsel %vm782_vm1, %v2428_v13, 0.0 }
 0x95c   : > { %2443 = vadd.xlane.f32.xlu0 %v2442_v16 }
 0x967   : > { %v2399_v63 = vpop.xlane.xlu2 %2398 }
 0x968   : > { %v2413_v27 = vmul.f32 %v2399_v63, %v6121_v35 }
 0x96a   : > { %v6961_v54 = vsub.f32 %v6906_v9, %v2413_v27 }
 0x96c   : > { %v2429_v3 = vmul.f32 %v6961_v54, %v6961_v54 }
 0x96e   : > { %v2445_v29 = vsel %vm782_vm1, %v2429_v3, 0.0 }
 0x96f   : > { %2446 = vadd.xlane.f32.xlu1 %v2445_v29  ;;  %v2402_v49 = vpop.xlane.xlu0 %2401 }
 0x970   : > { %v2414_v14 = vmul.f32 %v2402_v49, %v6121_v35 }
 0x972   : > { %v6968_v50 = vsub.f32 %v6913_v22, %v2414_v14 }
 0x974   : > { %v2430_v58 = vmul.f32 %v6968_v50, %v6968_v50 }
 0x976   : > { %v2448_v0 = vsel %vm782_vm1, %v2430_v58, 0.0 }
 0x977   : > { %2449 = vadd.xlane.f32.xlu2 %v2448_v0  ;;  %v2405_v6 = vpop.xlane.xlu0 %2404 }
 0x978   : > { %v2415_v46 = vmul.f32 %v2405_v6, %v6121_v35 }
 0x97a   : > { %v6975_v41 = vsub.f32 %v6919_v37, %v2415_v46 }
 0x97c   : > { %v2431_v45 = vmul.f32 %v6975_v41, %v6975_v41 }
 0x97e   : > { %v2451_v28 = vsel %vm782_vm1, %v2431_v45, 0.0 }
 0x97f   : > { %2452 = vadd.xlane.f32.xlu0 %v2451_v28 }
 0x9a5   : > { %v2435_v51 = vpop.xlane.xlu1 %2434 }
 0x9a6   : > { %v2457_v56 = vmul.f32 %v2435_v51, %v6121_v35 }
 0x9a8   : > { %v2465_v15 = vadd.f32 1e-05, %v2457_v56 }
 0x9aa   : > { %5631 = vrsqrt.f32 %v2465_v15  ;;  %vm2479_vm10 = vweird.f32 %v2465_v15 }
 0x9ad   : > { %v2438_v25 = vpop.xlane.xlu2 %2437  ;;  %v2408_v42 = vpop.xlane.xlu1 %2407 }
 0x9ae   : > { %v2458_v19 = vmul.f32 %v2438_v25, %v6121_v35  ;;  %v2416_v24 = vmul.f32 %v2408_v42, %v6121_v35 }
 0x9b0   : > { %v5632_v32 = vpop.eup %5631  ;;  %v2466_v39 = vadd.f32 1e-05, %v2458_v19  ;;  %v6990_v7 = vsub.f32 %v6938_v40, %v2416_v24 }
 0x9b1   : > { %v2474_v53 = vmul.f32 %v5632_v32, %v2465_v15  ;;  %vm2480_vm9 = vweird.f32 %v5632_v32 }
 0x9b2   : > { %5633 = vrsqrt.f32 %v2466_v39  ;;  %v2432_v57 = vmul.f32 %v6990_v7, %v6990_v7  ;;  %vm2481_vm11 = vmor %vm2479_vm10, %vm2480_vm9  ;;  %vm2489_vm13 = vweird.f32 %v2466_v39 }
 0x9b3   : > { %v2475_v11 = vmul.f32 %v5632_v32, %v2474_v53 }
 0x9b4   : > { %v2454_v52 = vsel %vm782_vm1, %v2432_v57, 0.0 }
 0x9b5   : > { %v2476_v30 = vmul.f32 0.5, %v2475_v11  ;;  %2455 = vadd.xlane.f32.xlu1 %v2454_v52 }
 0x9b7   : > { %v2477_v61 = vsub.f32 1.5, %v2476_v30 }
 0x9b8   : > { %v5634_v31 = vpop.eup %5633 }
 0x9b9   : > { %v2478_v33 = vmul.f32 %v5632_v32, %v2477_v61  ;;  %v2484_v59 = vmul.f32 %v5634_v31, %v2466_v39  ;;  %vm2490_vm12 = vweird.f32 %v5634_v31 }
 0x9ba   : > { %vm2491_vm14 = vmor %vm2489_vm13, %vm2490_vm12 }
 0x9bb   : > { %v2485_v62 = vmul.f32 %v5634_v31, %v2484_v59  ;;  %v2482_v36 = vsel %vm2481_vm11, %v5632_v32, %v2478_v33 }
 0x9bc   : > { %v2553_v34 = vmul.f32 %v2482_v36, %v6927_v1 }
 0x9bd   : > { %v2486_v44 = vmul.f32 0.5, %v2485_v62 }
 0x9be   : > { %v2564_v8 = vmul.f32 %v6998_v2, %v2553_v34 }
 0x9bf   : > { %v2487_v4 = vsub.f32 1.5, %v2486_v44 }
 0x9c0   : > { %v2575_v13 = vadd.f32 %v7004_v47, %v2564_v8 }
 0x9c1   : > { %v2488_v21 = vmul.f32 %v5634_v31, %v2487_v4 }
 0x9c3   : > { %v2492_v55 = vsel %vm2491_vm14, %v5634_v31, %v2488_v21 }
 0x9c4   : > { %v2554_v10 = vmul.f32 %v2492_v55, %v6935_v20 }
 0x9c6   : > { %v2565_v43 = vmul.f32 %v6998_v2, %v2554_v10 }
 0x9c7   : > { %v2441_v12 = vpop.xlane.xlu2 %2440 }
 0x9c8   : > { %v2576_v1 = vadd.f32 %v7004_v47, %v2565_v43  ;;  %v2459_v16 = vmul.f32 %v2441_v12, %v6121_v35 }
 0x9ca   : > { %v2583_v63 = vpack.c.bf16 %v2576_v1, %v2575_v13  ;;  %v2467_v27 = vadd.f32 1e-05, %v2459_v16 }
 0x9cc   : > { %5635 = vrsqrt.f32 %v2467_v27  ;;  %5143 = vmatmul.msk.bf16.vlgmr.msrb.gmra.mxu3 %vm782_vm1, %v2583_v63  ;;  %vm2499_vm0 = vweird.f32 %v2467_v27 }
 0x9cf   : > { %v2444_v3 = vpop.xlane.xlu0 %2443 }
 0x9d0   : > { %v2460_v29 = vmul.f32 %v2444_v3, %v6121_v35 }
 0x9d2   : > { %v5636_v49 = vpop.eup %5635  ;;  %v2468_v14 = vadd.f32 1e-05, %v2460_v29 }
 0x9d3   : > { %v2494_v20 = vmul.f32 %v5636_v49, %v2467_v27  ;;  %vm2500_vm15 = vweird.f32 %v5636_v49 }
 0x9d4   : > { %5637 = vrsqrt.f32 %v2468_v14  ;;  %vm2501_vm2 = vmor %vm2499_vm0, %vm2500_vm15  ;;  %vm2509_vm4 = vweird.f32 %v2468_v14 }
 0x9d5   : > { %v2495_v58 = vmul.f32 %v5636_v49, %v2494_v20 }
 0x9d7   : > { %v2496_v0 = vmul.f32 0.5, %v2495_v58 }
 0x9d9   : > { %v2497_v6 = vsub.f32 1.5, %v2496_v0 }
 0x9da   : > { %v5638_v46 = vpop.eup %5637 }
 0x9db   : > { %v2498_v45 = vmul.f32 %v5636_v49, %v2497_v6  ;;  %v2504_v28 = vmul.f32 %v5638_v46, %v2468_v14  ;;  %vm2510_vm3 = vweird.f32 %v5638_v46 }
 0x9dc   : > { %vm2511_vm5 = vmor %vm2509_vm4, %vm2510_vm3 }
 0x9dd   : > { %v2505_v26 = vmul.f32 %v5638_v46, %v2504_v28  ;;  %v2502_v51 = vsel %vm2501_vm2, %v5636_v49, %v2498_v45 }
 0x9de   : > { %v2555_v17 = vmul.f32 %v2502_v51, %v6947_v48 }
 0x9df   : > { %v2506_v56 = vmul.f32 0.5, %v2505_v26  ;;  %v5381_v26 = vld [vmem:[%s8194_s16 + $0x38] sm:$0xff] }
 0x9e0   : > { %v2566_v53 = vmul.f32 %v6998_v2, %v2555_v17  ;;  %2792 = vmatpush.bf16.msrb.mxu2 %v5381_v26  ;;  %v5380_v17 = vld [vmem:[%s8194_s16 + $0x30] sm:$0xff] }
 0x9e1   : > { %v2507_v15 = vsub.f32 1.5, %v2506_v56 }
 0x9e2   : > { %v2447_v25 = vpop.xlane.xlu1 %2446  ;;  %v2577_v52 = vadd.f32 %v7004_v47, %v2566_v53 }
 0x9e3   : > { %v2508_v42 = vmul.f32 %v5638_v46, %v2507_v15  ;;  %v2461_v19 = vmul.f32 %v2447_v25, %v6121_v35 }
 0x9e4   : > { %2793 = vmatpush.bf16.msrb.mxu2 %v5380_v17 }
 0x9e5   : > { %v2512_v24 = vsel %vm2511_vm5, %v5638_v46, %v2508_v42  ;;  %v2469_v32 = vadd.f32 1e-05, %v2461_v19 }
 0x9e6   : > { %v2556_v39 = vmul.f32 %v2512_v24, %v6954_v60  ;;  %v5379_v24 = vld [vmem:[%s8194_s16 + $0x28] sm:$0xff] }
 0x9e7   : > { %5639 = vrsqrt.f32 %v2469_v32  ;;  %vm2519_vm10 = vweird.f32 %v2469_v32 }
 0x9e8   : > { %v2567_v57 = vmul.f32 %v6998_v2, %v2556_v39  ;;  %2794 = vmatpush.bf16.msrb.mxu2 %v5379_v24 }
 0x9ea   : > { %v2450_v11 = vpop.xlane.xlu2 %2449  ;;  %v2578_v48 = vadd.f32 %v7004_v47, %v2567_v57  ;;  %v5378_v57 = vld [vmem:[%s8194_s16 + $0x20] sm:$0xff] }
 0x9eb   : > { %v2462_v30 = vmul.f32 %v2450_v11, %v6121_v35 }
 0x9ec   : > { %v2584_v61 = vpack.c.bf16 %v2578_v48, %v2577_v52  ;;  %2795 = vmatpush.bf16.msrb.mxu2 %v5378_v57 }
 0x9ed   : > { %v5640_v31 = vpop.eup %5639  ;;  %v2470_v33 = vadd.f32 1e-05, %v2462_v30 }
 0x9ee   : > { %v2514_v59 = vmul.f32 %v5640_v31, %v2469_v32  ;;  %5144 = vmatmul.msk.bf16.gmra.mxu3 %vm782_vm1, %v2584_v61  ;;  %vm2520_vm9 = vweird.f32 %v5640_v31 }
 0x9ef   : > { %5641 = vrsqrt.f32 %v2470_v33  ;;  %vm2521_vm11 = vmor %vm2519_vm10, %vm2520_vm9  ;;  %vm2529_vm13 = vweird.f32 %v2470_v33 }
 0x9f0   : > { %v2515_v60 = vmul.f32 %v5640_v31, %v2514_v59 }
 0x9f2   : > { %v2516_v62 = vmul.f32 0.5, %v2515_v60  ;;  %v2453_v49 = vpop.xlane.xlu0 %2452 }
 0x9f4   : > { %v2517_v36 = vsub.f32 1.5, %v2516_v62 }
 0x9f5   : > { %v5642_v44 = vpop.eup %5641 }
 0x9f6   : > { %v2518_v4 = vmul.f32 %v5640_v31, %v2517_v36  ;;  %v2524_v34 = vmul.f32 %v5642_v44, %v2470_v33  ;;  %vm2530_vm12 = vweird.f32 %v5642_v44  ;;  %v5376_v33 = vld [vmem:[%s8194_s16 + $0x10] sm:$0xff] }
 0x9f7   : > { %vm2531_vm14 = vmor %vm2529_vm13, %vm2530_vm12 }
 0x9f8   : > { %v2525_v21 = vmul.f32 %v5642_v44, %v2524_v34  ;;  %v2522_v55 = vsel %vm2521_vm11, %v5640_v31, %v2518_v4 }
 0x9f9   : > { %v2557_v43 = vmul.f32 %v2522_v55, %v6961_v54  ;;  %v2463_v54 = vmul.f32 %v2453_v49, %v6121_v35 }
 0x9fa   : > { %v2526_v8 = vmul.f32 0.5, %v2525_v21 }
 0x9fb   : > { %v2568_v16 = vmul.f32 %v6998_v2, %v2557_v43  ;;  %v2471_v14 = vadd.f32 1e-05, %v2463_v54 }
 0x9fc   : > { %v2527_v10 = vsub.f32 1.5, %v2526_v8 }
 0x9fd   : > { %v2579_v27 = vadd.f32 %v7004_v47, %v2568_v16  ;;  %5643 = vrsqrt.f32 %v2471_v14  ;;  %vm2539_vm0 = vweird.f32 %v2471_v14 }
 0x9fe   : > { %v2528_v12 = vmul.f32 %v5642_v44, %v2527_v10 }
 0xa00   : > { %v2532_v13 = vsel %vm2531_vm14, %v5642_v44, %v2528_v12 }
 0xa01   : > { %v2558_v1 = vmul.f32 %v2532_v13, %v6968_v50 }
 0xa03   : > { %v2569_v63 = vmul.f32 %v6998_v2, %v2558_v1  ;;  %v5644_v20 = vpop.eup %5643 }
 0xa04   : > { %v2534_v58 = vmul.f32 %v5644_v20, %v2471_v14  ;;  %vm2540_vm15 = vweird.f32 %v5644_v20 }
 0xa05   : > { %v2580_v3 = vadd.f32 %v7004_v47, %v2569_v63  ;;  %vm2541_vm2 = vmor %vm2539_vm0, %vm2540_vm15 }
 0xa06   : > { %v2535_v0 = vmul.f32 %v5644_v20, %v2534_v58 }
 0xa07   : > { %v2585_v29 = vpack.c.bf16 %v2580_v3, %v2579_v27 }
 0xa08   : > { %v2536_v45 = vmul.f32 0.5, %v2535_v0 }
 0xa09   : > { %5145 = vmatmul.msk.bf16.gmra.mxu3 %vm782_vm1, %v2585_v29 }
 0xa0a   : > { %v2537_v28 = vsub.f32 1.5, %v2536_v45 }
 0xa0c   : > { %v2538_v56 = vmul.f32 %v5644_v20, %v2537_v28 }
 0xa0e   : > { %v2542_v42 = vsel %vm2541_vm2, %v5644_v20, %v2538_v56 }
 0xa0f   : > { %v2559_v39 = vmul.f32 %v2542_v42, %v6975_v41  ;;  %v5377_v41 = vld [vmem:[%s8194_s16 + $0x18] sm:$0xff] }
 0xa10   : > { %2796 = vmatpush.bf16.msrb.mxu2 %v5377_v41 }
 0xa11   : > { %v2570_v48 = vmul.f32 %v6998_v2, %v2559_v39 }
 0xa13   : > { %v2581_v61 = vadd.f32 %v7004_v47, %v2570_v48 }
 0xa14   : > { %2797 = vmatpush.bf16.msrb.mxu2 %v5376_v33 }
 0xa28   : > { %v2456_v50 = vpop.xlane.xlu1 %2455 }
 0xa29   : > { %v2464_v6 = vmul.f32 %v2456_v50, %v6121_v35 }
 0xa2b   : > { %v2472_v46 = vadd.f32 1e-05, %v2464_v6 }
 0xa2d   : > { %5645 = vrsqrt.f32 %v2472_v46  ;;  %vm2549_vm4 = vweird.f32 %v2472_v46 }
 0xa33   : > { %v5646_v51 = vpop.eup %5645 }
 0xa34   : > { %v2544_v15 = vmul.f32 %v5646_v51, %v2472_v46  ;;  %vm2550_vm3 = vweird.f32 %v5646_v51 }
 0xa35   : > { %vm2551_vm5 = vmor %vm2549_vm4, %vm2550_vm3 }
 0xa36   : > { %v2545_v25 = vmul.f32 %v5646_v51, %v2544_v15 }
 0xa38   : > { %v2546_v19 = vmul.f32 0.5, %v2545_v25 }
 0xa3a   : > { %v2547_v32 = vsub.f32 1.5, %v2546_v19 }
 0xa3c   : > { %v2548_v53 = vmul.f32 %v5646_v51, %v2547_v32 }
 0xa3e   : > { %v2552_v11 = vsel %vm2551_vm5, %v5646_v51, %v2548_v53 }
 0xa3f   : > { %v2560_v52 = vmul.f32 %v2552_v11, %v6990_v7  ;;  %v5375_v7 = vld [vmem:[%s8194_s16 + $0x8] sm:$0xff] }
 0xa40   : > { %2798 = vmatpush.bf16.msrb.mxu2 %v5375_v7 }
 0xa41   : > { %v2571_v30 = vmul.f32 %v6998_v2, %v2560_v52  ;;  %v5374_v2 = vld [vmem:[%s8194_s16] sm:$0xff] }
 0xa43   : > { %v2582_v31 = vadd.f32 %v7004_v47, %v2571_v30  ;;  %v7066_v47 = vld [vmem:[%s8193_s15] ss:$0 sm:$0xff] }
 0xa44   : > { %2799 = vmatpush.bf16.msrb.mxu2 %v5374_v2 }
 0xa45   : > { %v2586_v59 = vpack.c.bf16 %v2582_v31, %v2581_v61 }
 0xa47   : > { %5146 = vmatmul.msk.bf16.gmra.mxu3 %vm782_vm1, %v2586_v59 }
 0xa4f   : > { %v2628_v60 = vpop.f32.mrf.mxu3 }
 0xa50   : > { %v2629_v62 = vadd.f32 %v7066_v47, %v2628_v60 }
 0xa52   : > { %v2656_v36 = vmul.f32 0.044715, %v2629_v62  ;;  %v2648_v3 = vmul.f32 0.5, %v2629_v62 }
 0xa54   : > { %v2664_v44 = vmul.f32 %v2656_v36, %v2629_v62 }
 0xa56   : > { %v2672_v4 = vmul.f32 %v2664_v44, %v2629_v62 }
 0xa57   : > { %v2630_v34 = vpop.f32.mrf.mxu3 }
 0xa58   : > { %v2680_v21 = vadd.f32 %v2672_v4, %v2629_v62  ;;  %v2631_v55 = vadd.f32 %v7066_v47, %v2630_v34 }
 0xa5a   : > { %v2657_v8 = vmul.f32 0.044715, %v2631_v55  ;;  %v2688_v10 = vmul.f32 0.7978846, %v2680_v21  ;;  %v2649_v29 = vmul.f32 0.5, %v2631_v55 }
 0xa5c   : > { %v2665_v43 = vmul.f32 %v2657_v8, %v2631_v55  ;;  %5647 = vtanh.f32 %v2688_v10 }
 0xa5e   : > { %v2673_v12 = vmul.f32 %v2665_v43, %v2631_v55 }
 0xa60   : > { %v2681_v13 = vadd.f32 %v2673_v12, %v2631_v55 }
 0xa62   : > { %v2689_v1 = vmul.f32 0.7978846, %v2681_v13  ;;  %v5648_v16 = vpop.eup %5647 }
 0xa63   : > { %v2704_v63 = vadd.f32 1.0, %v5648_v16 }
 0xa64   : > { %5649 = vtanh.f32 %v2689_v1 }
 0xa65   : > { %v2712_v54 = vmul.f32 %v2704_v63, %v2648_v3 }
 0xa6a   : > { %v5650_v27 = vpop.eup %5649 }
 0xa6b   : > { %v2705_v49 = vadd.f32 1.0, %v5650_v27 }
 0xa6d   : > { %v2713_v14 = vmul.f32 %v2705_v49, %v2649_v29 }
 0xa6f   : > { %v2720_v20 = vpack.c.bf16 %v2713_v14, %v2712_v54 }
 0xa71   : > { %v2633_v58 = vpop.f32.mrf.mxu3  ;;  %2800 = vmatmul.bf16.vlgmr.msrb.gmra.mxu2 %v2720_v20 }
 0xa72   : > { %v2634_v0 = vadd.f32 %v7066_v47, %v2633_v58 }
 0xa74   : > { %v2658_v50 = vmul.f32 0.044715, %v2634_v0  ;;  %v2650_v57 = vmul.f32 0.5, %v2634_v0 }
 0xa76   : > { %v2666_v6 = vmul.f32 %v2658_v50, %v2634_v0 }
 0xa78   : > { %v2674_v46 = vmul.f32 %v2666_v6, %v2634_v0 }
 0xa79   : > { %v2635_v45 = vpop.f32.mrf.mxu3 }
 0xa7a   : > { %v2636_v28 = vadd.f32 %v7066_v47, %v2635_v45  ;;  %v2682_v26 = vadd.f32 %v2674_v46, %v2634_v0 }
 0xa7c   : > { %v2659_v51 = vmul.f32 0.044715, %v2636_v28  ;;  %v2690_v15 = vmul.f32 0.7978846, %v2682_v26  ;;  %v2651_v11 = vmul.f32 0.5, %v2636_v28 }
 0xa7e   : > { %v2667_v56 = vmul.f32 %v2659_v51, %v2636_v28  ;;  %5651 = vtanh.f32 %v2690_v15 }
 0xa80   : > { %v2675_v17 = vmul.f32 %v2667_v56, %v2636_v28 }
 0xa82   : > { %v2683_v25 = vadd.f32 %v2675_v17, %v2636_v28 }
 0xa84   : > { %v2691_v42 = vmul.f32 0.7978846, %v2683_v25  ;;  %v5652_v19 = vpop.eup %5651 }
 0xa85   : > { %v2706_v24 = vadd.f32 1.0, %v5652_v19 }
 0xa86   : > { %5653 = vtanh.f32 %v2691_v42 }
 0xa87   : > { %v2714_v30 = vmul.f32 %v2706_v24, %v2650_v57 }
 0xa8c   : > { %v5654_v32 = vpop.eup %5653  ;;  %v2638_v39 = vpop.f32.mrf.mxu3 }
 0xa8d   : > { %v2639_v53 = vadd.f32 %v7066_v47, %v2638_v39  ;;  %v2707_v52 = vadd.f32 1.0, %v5654_v32 }
 0xa8f   : > { %v2660_v48 = vmul.f32 0.044715, %v2639_v53  ;;  %v2715_v41 = vmul.f32 %v2707_v52, %v2651_v11  ;;  %v2652_v10 = vmul.f32 0.5, %v2639_v53 }
 0xa91   : > { %v2668_v61 = vmul.f32 %v2660_v48, %v2639_v53  ;;  %v2721_v31 = vpack.c.bf16 %v2715_v41, %v2714_v30 }
 0xa93   : > { %2805 = vmatmul.bf16.gmra.mxu2 %v2721_v31  ;;  %v2676_v33 = vmul.f32 %v2668_v61, %v2639_v53 }
 0xa94   : > { %v2640_v59 = vpop.f32.mrf.mxu3 }
 0xa95   : > { %v2641_v7 = vadd.f32 %v7066_v47, %v2640_v59  ;;  %v2684_v2 = vadd.f32 %v2676_v33, %v2639_v53 }
 0xa97   : > { %v2661_v60 = vmul.f32 0.044715, %v2641_v7  ;;  %v2692_v36 = vmul.f32 0.7978846, %v2684_v2  ;;  %v2653_v43 = vmul.f32 0.5, %v2641_v7 }
 0xa99   : > { %v2669_v62 = vmul.f32 %v2661_v60, %v2641_v7  ;;  %5655 = vtanh.f32 %v2692_v36 }
 0xa9b   : > { %v2677_v44 = vmul.f32 %v2669_v62, %v2641_v7 }
 0xa9d   : > { %v2685_v4 = vadd.f32 %v2677_v44, %v2641_v7 }
 0xa9f   : > { %v2693_v34 = vmul.f32 0.7978846, %v2685_v4  ;;  %v5656_v21 = vpop.eup %5655 }
 0xaa0   : > { %v2708_v55 = vadd.f32 1.0, %v5656_v21 }
 0xaa1   : > { %5657 = vtanh.f32 %v2693_v34 }
 0xaa2   : > { %v2716_v13 = vmul.f32 %v2708_v55, %v2652_v10 }
 0xaa7   : > { %v5658_v8 = vpop.eup %5657 }
 0xaa8   : > { %v2709_v12 = vadd.f32 1.0, %v5658_v8 }
 0xaaa   : > { %v2717_v1 = vmul.f32 %v2709_v12, %v2653_v43 }
 0xaac   : > { %v2722_v16 = vpack.c.bf16 %v2717_v1, %v2716_v13 }
 0xaae   : > { %2810 = vmatmul.bf16.gmra.mxu2 %v2722_v16 }
 0xaca   : > { %v2643_v63 = vpop.f32.mrf.mxu3 }
 0xacb   : > { %v2644_v27 = vadd.f32 %v7066_v47, %v2643_v63 }
 0xacd   : > { %v2662_v3 = vmul.f32 0.044715, %v2644_v27  ;;  %v2654_v56 = vmul.f32 0.5, %v2644_v27 }
 0xacf   : > { %v2670_v29 = vmul.f32 %v2662_v3, %v2644_v27 }
 0xad1   : > { %v2678_v49 = vmul.f32 %v2670_v29, %v2644_v27 }
 0xad2   : > { %v2645_v54 = vpop.f32.mrf.mxu3 }
 0xad3   : > { %v2646_v14 = vadd.f32 %v7066_v47, %v2645_v54  ;;  %v2686_v20 = vadd.f32 %v2678_v49, %v2644_v27  ;;  %v5458_v47 = vld [vmem:[%s8195_s17] ss:$0 sm:$0xff] }
 0xad5   : > { %v2663_v58 = vmul.f32 0.044715, %v2646_v14  ;;  %v2694_v50 = vmul.f32 0.7978846, %v2686_v20  ;;  %v2655_v15 = vmul.f32 0.5, %v2646_v14 }
 0xad7   : > { %v2671_v0 = vmul.f32 %v2663_v58, %v2646_v14  ;;  %5659 = vtanh.f32 %v2694_v50 }
 0xad9   : > { %v2679_v6 = vmul.f32 %v2671_v0, %v2646_v14 }
 0xadb   : > { %v2687_v46 = vadd.f32 %v2679_v6, %v2646_v14 }
 0xadd   : > { %v2695_v45 = vmul.f32 0.7978846, %v2687_v46  ;;  %v5660_v28 = vpop.eup %5659 }
 0xade   : > { %v2710_v26 = vadd.f32 1.0, %v5660_v28 }
 0xadf   : > { %5661 = vtanh.f32 %v2695_v45 }
 0xae0   : > { %v2718_v25 = vmul.f32 %v2710_v26, %v2654_v56 }
 0xae5   : > { %v5662_v51 = vpop.eup %5661 }
 0xae6   : > { %v2711_v17 = vadd.f32 1.0, %v5662_v51 }
 0xae8   : > { %v2719_v42 = vmul.f32 %v2711_v17, %v2655_v15 }
 0xaea   : > { %v2723_v19 = vpack.c.bf16 %v2719_v42, %v2718_v25 }
 0xaec   : > { %2815 = vmatmul.bf16.gmra.mxu2 %v2723_v19 }
 0xaf4   : > { %v2801_v24 = vpop.f32.mrf.mxu2 }
 0xaf5   : > { %v2802_v32 = vadd.f32 %v5458_v47, %v2801_v24 }
 0xaf7   : > { %v7080_v39 = vadd.f32 %v2802_v32, %v6878_v18 }
 0xaf9   : > { %v2833_v53 = vsel %vm782_vm1, %v7080_v39, 0.0 }
 0xafa   : > { %2834 = vadd.xlane.f32.xlu2 %v2833_v53 }
 0xafc   : > { %v2803_v57 = vpop.f32.mrf.mxu2 }
 0xafd   : > { %v2804_v11 = vadd.f32 %v5458_v47, %v2803_v57 }
 0xaff   : > { %v7085_v52 = vadd.f32 %v2804_v11, %v6884_v5 }
 0xb01   : > { %v2836_v48 = vsel %vm782_vm1, %v7085_v52, 0.0 }
 0xb02   : > { %2837 = vadd.xlane.f32.xlu0 %v2836_v48 }
 0xb16   : > { %v2806_v30 = vpop.f32.mrf.mxu2 }
 0xb17   : > { %v2807_v41 = vadd.f32 %v5458_v47, %v2806_v30  ;;  %v5382_v30 = vld [vmem:[%s8254_s7 + $0x10] sm:$0xff] }
 0xb19   : > { %v7090_v61 = vadd.f32 %v2807_v41, %v6892_v23 }
 0xb1b   : > { %v2839_v18 = vsel %vm782_vm1, %v7090_v61, 0.0 }
 0xb1c   : > { %2840 = vadd.xlane.f32.xlu1 %v2839_v18 }
 0xb1e   : > { %v2808_v31 = vpop.f32.mrf.mxu2 }
 0xb1f   : > { %v2809_v33 = vadd.f32 %v5458_v47, %v2808_v31 }
 0xb21   : > { %v7095_v59 = vadd.f32 %v2809_v33, %v6898_v38 }
 0xb23   : > { %v2842_v5 = vsel %vm782_vm1, %v7095_v59, 0.0 }
 0xb24   : > { %2843 = vadd.xlane.f32.xlu2 %v2842_v5 }
 0xb31   : > { %v2811_v7 = vpop.f32.mrf.mxu2 }
 0xb32   : > { %v2812_v2 = vadd.f32 %v5458_v47, %v2811_v7 }
 0xb34   : > { %v7100_v60 = vadd.f32 %v2812_v2, %v6906_v9 }
 0xb36   : > { %v2845_v23 = vsel %vm782_vm1, %v7100_v60, 0.0 }
 0xb37   : > { %2846 = vadd.xlane.f32.xlu0 %v2845_v23 }
 0xb39   : > { %v2813_v62 = vpop.f32.mrf.mxu2 }
 0xb3a   : > { %v2814_v36 = vadd.f32 %v5458_v47, %v2813_v62 }
 0xb3c   : > { %v7105_v44 = vadd.f32 %v2814_v36, %v6913_v22 }
 0xb3e   : > { %v2848_v38 = vsel %vm782_vm1, %v7105_v44, 0.0 }
 0xb3f   : > { %2849 = vadd.xlane.f32.xlu1 %v2848_v38 }
 0xb6d   : > { %v2835_v4 = vpop.xlane.xlu2 %2834 }
 0xb6e   : > { %v2857_v34 = vmul.f32 %v2835_v4, %v6121_v35 }
 0xb6f   : > { %v2816_v21 = vpop.f32.mrf.mxu2 }
 0xb70   : > { %v7111_v9 = vsub.f32 %v7080_v39, %v2857_v34  ;;  %v2817_v55 = vadd.f32 %v5458_v47, %v2816_v21 }
 0xb72   : > { %v7114_v8 = vadd.f32 %v2817_v55, %v6919_v37  ;;  %v2873_v10 = vmul.f32 %v7111_v9, %v7111_v9 }
 0xb74   : > { %v2881_v22 = vsel %vm782_vm1, %v2873_v10, 0.0  ;;  %v2851_v43 = vsel %vm782_vm1, %v7114_v8, 0.0 }
 0xb75   : > { %2882 = vadd.xlane.f32.xlu2 %v2881_v22  ;;  %2852 = vadd.xlane.f32.xlu1 %v2851_v43  ;;  %v2838_v12 = vpop.xlane.xlu0 %2837 }
 0xb76   : > { %v2858_v13 = vmul.f32 %v2838_v12, %v6121_v35 }
 0xb77   : > { %v2818_v1 = vpop.f32.mrf.mxu2 }
 0xb78   : > { %v7123_v16 = vsub.f32 %v7085_v52, %v2858_v13  ;;  %v2819_v63 = vadd.f32 %v5458_v47, %v2818_v1  ;;  %v5383_v47 = vld [vmem:[%s8254_s7 + $0x18] sm:$0xff] }
 0xb79   : > { %3075 = vmatpush.bf16.msra.mxu1 %v5383_v47 }
 0xb7a   : > { %v7126_v37 = vadd.f32 %v2819_v63, %v6938_v40  ;;  %v2874_v27 = vmul.f32 %v7123_v16, %v7123_v16 }
 0xb7c   : > { %v2854_v3 = vsel %vm782_vm1, %v7126_v37, 0.0  ;;  %v2884_v29 = vsel %vm782_vm1, %v2874_v27, 0.0  ;;  %v7186_v27 = vld [vmem:[%s8256_s23 + $0x1] ss:$0 sm:$0xff] }
 0xb7d   : > { %2855 = vadd.xlane.f32.xlu2 %v2854_v3  ;;  %2885 = vadd.xlane.f32.xlu0 %v2884_v29 }
 0xb7e   : > { %3076 = vmatpush.bf16.msra.mxu1 %v5382_v30 }
 0xb8f   : > { %v2841_v49 = vpop.xlane.xlu1 %2840 }
 0xb90   : > { %v2859_v54 = vmul.f32 %v2841_v49, %v6121_v35 }
 0xb92   : > { %v7135_v14 = vsub.f32 %v7090_v61, %v2859_v54  ;;  %v7192_v54 = vld [vmem:[%s8257_s25 + $0x1] ss:$0 sm:$0xff] }
 0xb94   : > { %v2875_v40 = vmul.f32 %v7135_v14, %v7135_v14 }
 0xb96   : > { %v2887_v20 = vsel %vm782_vm1, %v2875_v40, 0.0 }
 0xb97   : > { %v2844_v58 = vpop.xlane.xlu2 %2843  ;;  %2888 = vadd.xlane.f32.xlu0 %v2887_v20 }
 0xb98   : > { %v2860_v0 = vmul.f32 %v2844_v58, %v6121_v35 }
 0xb9a   : > { %v7142_v50 = vsub.f32 %v7095_v59, %v2860_v0 }
 0xb9c   : > { %v2876_v6 = vmul.f32 %v7142_v50, %v7142_v50 }
 0xb9e   : > { %v2890_v46 = vsel %vm782_vm1, %v2876_v6, 0.0 }
 0xb9f   : > { %2891 = vadd.xlane.f32.xlu1 %v2890_v46 }
 0xbaa   : > { %v2847_v45 = vpop.xlane.xlu0 %2846 }
 0xbab   : > { %v2861_v28 = vmul.f32 %v2847_v45, %v6121_v35 }
 0xbad   : > { %v7149_v26 = vsub.f32 %v7100_v60, %v2861_v28 }
 0xbaf   : > { %v2877_v51 = vmul.f32 %v7149_v26, %v7149_v26 }
 0xbb1   : > { %v2893_v56 = vsel %vm782_vm1, %v2877_v51, 0.0 }
 0xbb2   : > { %v2850_v15 = vpop.xlane.xlu1 %2849  ;;  %2894 = vadd.xlane.f32.xlu2 %v2893_v56 }
 0xbb3   : > { %v2862_v17 = vmul.f32 %v2850_v15, %v6121_v35 }
 0xbb5   : > { %v7156_v25 = vsub.f32 %v7105_v44, %v2862_v17 }
 0xbb7   : > { %v2878_v42 = vmul.f32 %v7156_v25, %v7156_v25 }
 0xbb9   : > { %v2896_v19 = vsel %vm782_vm1, %v2878_v42, 0.0 }
 0xbba   : > { %2897 = vadd.xlane.f32.xlu0 %v2896_v19 }
 0xbe8   : > { %v2883_v24 = vpop.xlane.xlu2 %2882  ;;  %v2853_v32 = vpop.xlane.xlu1 %2852 }
 0xbe9   : > { %v2905_v53 = vmul.f32 %v2883_v24, %v6121_v35  ;;  %v2863_v57 = vmul.f32 %v2853_v32, %v6121_v35 }
 0xbeb   : > { %v2913_v11 = vadd.f32 1e-05, %v2905_v53  ;;  %v7167_v48 = vsub.f32 %v7114_v8, %v2863_v57 }
 0xbed   : > { %5663 = vrsqrt.f32 %v2913_v11  ;;  %v2879_v41 = vmul.f32 %v7167_v48, %v7167_v48  ;;  %vm2927_vm10 = vweird.f32 %v2913_v11 }
 0xbef   : > { %v2899_v18 = vsel %vm782_vm1, %v2879_v41, 0.0 }
 0xbf0   : > { %v2856_v31 = vpop.xlane.xlu2 %2855  ;;  %2900 = vadd.xlane.f32.xlu1 %v2899_v18  ;;  %v2886_v33 = vpop.xlane.xlu0 %2885 }
 0xbf1   : > { %v2864_v5 = vmul.f32 %v2856_v31, %v6121_v35  ;;  %v2906_v7 = vmul.f32 %v2886_v33, %v6121_v35 }
 0xbf3   : > { %v5664_v2 = vpop.eup %5663  ;;  %v7178_v23 = vsub.f32 %v7126_v37, %v2864_v5  ;;  %v2914_v62 = vadd.f32 1e-05, %v2906_v7 }
 0xbf4   : > { %v2922_v36 = vmul.f32 %v5664_v2, %v2913_v11  ;;  %vm2928_vm9 = vweird.f32 %v5664_v2 }
 0xbf5   : > { %5665 = vrsqrt.f32 %v2914_v62  ;;  %v2880_v38 = vmul.f32 %v7178_v23, %v7178_v23  ;;  %vm2929_vm11 = vmor %vm2927_vm10, %vm2928_vm9  ;;  %vm2937_vm13 = vweird.f32 %v2914_v62 }
 0xbf6   : > { %v2923_v4 = vmul.f32 %v5664_v2, %v2922_v36 }
 0xbf7   : > { %v2902_v34 = vsel %vm782_vm1, %v2880_v38, 0.0 }
 0xbf8   : > { %v2924_v21 = vmul.f32 0.5, %v2923_v4  ;;  %2903 = vadd.xlane.f32.xlu2 %v2902_v34 }
 0xbfa   : > { %v2925_v55 = vsub.f32 1.5, %v2924_v21 }
 0xbfb   : > { %v5666_v10 = vpop.eup %5665 }
 0xbfc   : > { %v2926_v22 = vmul.f32 %v5664_v2, %v2925_v55  ;;  %v2932_v43 = vmul.f32 %v5666_v10, %v2914_v62  ;;  %vm2938_vm12 = vweird.f32 %v5666_v10 }
 0xbfd   : > { %vm2939_vm14 = vmor %vm2937_vm13, %vm2938_vm12 }
 0xbfe   : > { %v2933_v12 = vmul.f32 %v5666_v10, %v2932_v43  ;;  %v2930_v13 = vsel %vm2929_vm11, %v5664_v2, %v2926_v22 }
 0xbff   : > { %v3001_v3 = vmul.f32 %v2930_v13, %v7111_v9 }
 0xc00   : > { %v2934_v1 = vmul.f32 0.5, %v2933_v12 }
 0xc01   : > { %v3012_v40 = vmul.f32 %v7186_v27, %v3001_v3 }
 0xc02   : > { %v2935_v63 = vsub.f32 1.5, %v2934_v1 }
 0xc03   : > { %v3023_v6 = vadd.f32 %v7192_v54, %v3012_v40 }
 0xc04   : > { %v2936_v29 = vmul.f32 %v5666_v10, %v2935_v63 }
 0xc06   : > { %v2940_v49 = vsel %vm2939_vm14, %v5666_v10, %v2936_v29 }
 0xc07   : > { %v3002_v20 = vmul.f32 %v2940_v49, %v7123_v16 }
 0xc09   : > { %v3013_v58 = vmul.f32 %v7186_v27, %v3002_v20 }
 0xc0a   : > { %v2889_v0 = vpop.xlane.xlu0 %2888 }
 0xc0b   : > { %v3024_v9 = vadd.f32 %v7192_v54, %v3013_v58  ;;  %v2907_v46 = vmul.f32 %v2889_v0, %v6121_v35 }
 0xc0d   : > { %v3031_v45 = vpack.c.bf16 %v3024_v9, %v3023_v6  ;;  %v2915_v28 = vadd.f32 1e-05, %v2907_v46 }
 0xc0f   : > { %5667 = vrsqrt.f32 %v2915_v28  ;;  %5194 = vmatmul.msk.bf16.vlgmr.msra.gmra.mxu1 %vm782_vm1, %v3031_v45  ;;  %vm2947_vm0 = vweird.f32 %v2915_v28 }
 0xc12   : > { %v2892_v51 = vpop.xlane.xlu1 %2891 }
 0xc13   : > { %v2908_v56 = vmul.f32 %v2892_v51, %v6121_v35 }
 0xc15   : > { %v5668_v15 = vpop.eup %5667  ;;  %v2916_v17 = vadd.f32 1e-05, %v2908_v56 }
 0xc16   : > { %v2942_v16 = vmul.f32 %v5668_v15, %v2915_v28  ;;  %vm2948_vm15 = vweird.f32 %v5668_v15 }
 0xc17   : > { %5669 = vrsqrt.f32 %v2916_v17  ;;  %vm2949_vm2 = vmor %vm2947_vm0, %vm2948_vm15  ;;  %vm2957_vm4 = vweird.f32 %v2916_v17 }
 0xc18   : > { %v2943_v42 = vmul.f32 %v5668_v15, %v2942_v16 }
 0xc1a   : > { %v2944_v19 = vmul.f32 0.5, %v2943_v42 }
 0xc1c   : > { %v2945_v47 = vsub.f32 1.5, %v2944_v19 }
 0xc1d   : > { %v5670_v24 = vpop.eup %5669 }
 0xc1e   : > { %v2946_v32 = vmul.f32 %v5668_v15, %v2945_v47  ;;  %v2952_v53 = vmul.f32 %v5670_v24, %v2916_v17  ;;  %vm2958_vm3 = vweird.f32 %v5670_v24 }
 0xc1f   : > { %vm2959_vm5 = vmor %vm2957_vm4, %vm2958_vm3 }
 0xc20   : > { %v2953_v57 = vmul.f32 %v5670_v24, %v2952_v53  ;;  %v2950_v11 = vsel %vm2949_vm2, %v5668_v15, %v2946_v32 }
 0xc21   : > { %v3003_v18 = vmul.f32 %v2950_v11, %v7135_v14 }
 0xc22   : > { %v2954_v30 = vmul.f32 0.5, %v2953_v57 }
 0xc23   : > { %v3014_v36 = vmul.f32 %v7186_v27, %v3003_v18 }
 0xc24   : > { %v2955_v41 = vsub.f32 1.5, %v2954_v30 }
 0xc25   : > { %v2895_v31 = vpop.xlane.xlu2 %2894  ;;  %v3025_v34 = vadd.f32 %v7192_v54, %v3014_v36 }
 0xc26   : > { %v2956_v33 = vmul.f32 %v5670_v24, %v2955_v41  ;;  %v2909_v5 = vmul.f32 %v2895_v31, %v6121_v35 }
 0xc28   : > { %v2960_v7 = vsel %vm2959_vm5, %v5670_v24, %v2956_v33  ;;  %v2917_v2 = vadd.f32 1e-05, %v2909_v5 }
 0xc29   : > { %v3004_v62 = vmul.f32 %v2960_v7, %v7142_v50 }
 0xc2a   : > { %5671 = vrsqrt.f32 %v2917_v2  ;;  %vm2967_vm10 = vweird.f32 %v2917_v2 }
 0xc2b   : > { %v3015_v38 = vmul.f32 %v7186_v27, %v3004_v62 }
 0xc2d   : > { %v2898_v4 = vpop.xlane.xlu0 %2897  ;;  %v3026_v14 = vadd.f32 %v7192_v54, %v3015_v38 }
 0xc2e   : > { %v2910_v21 = vmul.f32 %v2898_v4, %v6121_v35 }
 0xc2f   : > { %v3032_v55 = vpack.c.bf16 %v3026_v14, %v3025_v34 }
 0xc30   : > { %v5672_v10 = vpop.eup %5671  ;;  %v2918_v22 = vadd.f32 1e-05, %v2910_v21 }
 0xc31   : > { %v2962_v43 = vmul.f32 %v5672_v10, %v2917_v2  ;;  %5195 = vmatmul.msk.bf16.gmra.mxu1 %vm782_vm1, %v3032_v55  ;;  %vm2968_vm9 = vweird.f32 %v5672_v10 }
 0xc32   : > { %5673 = vrsqrt.f32 %v2918_v22  ;;  %vm2969_vm11 = vmor %vm2967_vm10, %vm2968_vm9  ;;  %vm2977_vm13 = vweird.f32 %v2918_v22 }
 0xc33   : > { %v2963_v50 = vmul.f32 %v5672_v10, %v2962_v43 }
 0xc35   : > { %v2964_v12 = vmul.f32 0.5, %v2963_v50 }
 0xc37   : > { %v2965_v13 = vsub.f32 1.5, %v2964_v12 }
 0xc38   : > { %v5674_v1 = vpop.eup %5673 }
 0xc39   : > { %v2966_v63 = vmul.f32 %v5672_v10, %v2965_v13  ;;  %v2972_v3 = vmul.f32 %v5674_v1, %v2918_v22  ;;  %vm2978_vm12 = vweird.f32 %v5674_v1 }
 0xc3a   : > { %vm2979_vm14 = vmor %vm2977_vm13, %vm2978_vm12 }
 0xc3b   : > { %v2973_v29 = vmul.f32 %v5674_v1, %v2972_v3  ;;  %v2970_v49 = vsel %vm2969_vm11, %v5672_v10, %v2966_v63  ;;  %v5461_v10 = vld [vmem:[%s8258_s8 + $0x1] ss:$0 sm:$0xff] }
 0xc3c   : > { %v3005_v58 = vmul.f32 %v2970_v49, %v7149_v26 }
 0xc3d   : > { %v2974_v40 = vmul.f32 0.5, %v2973_v29 }
 0xc3e   : > { %v3016_v46 = vmul.f32 %v7186_v27, %v3005_v58 }
 0xc3f   : > { %v2975_v20 = vsub.f32 1.5, %v2974_v40 }
 0xc40   : > { %v3027_v28 = vadd.f32 %v7192_v54, %v3016_v46 }
 0xc41   : > { %v2976_v0 = vmul.f32 %v5674_v1, %v2975_v20 }
 0xc43   : > { %v2980_v6 = vsel %vm2979_vm14, %v5674_v1, %v2976_v0 }
 0xc44   : > { %v3006_v9 = vmul.f32 %v2980_v6, %v7156_v25 }
 0xc46   : > { %v3017_v45 = vmul.f32 %v7186_v27, %v3006_v9 }
 0xc48   : > { %v3028_v51 = vadd.f32 %v7192_v54, %v3017_v45 }
 0xc4a   : > { %v3033_v56 = vpack.c.bf16 %v3028_v51, %v3027_v28 }
 0xc4c   : > { %5196 = vmatmul.msk.bf16.gmra.mxu1 %vm782_vm1, %v3033_v56 }
 0xc63   : > { %v2901_v15 = vpop.xlane.xlu1 %2900 }
 0xc64   : > { %v2911_v26 = vmul.f32 %v2901_v15, %v6121_v35 }
 0xc66   : > { %v2919_v17 = vadd.f32 1e-05, %v2911_v26 }
 0xc68   : > { %5675 = vrsqrt.f32 %v2919_v17  ;;  %vm2987_vm0 = vweird.f32 %v2919_v17 }
 0xc6b   : > { %v2904_v16 = vpop.xlane.xlu2 %2903 }
 0xc6c   : > { %v2912_v42 = vmul.f32 %v2904_v16, %v6121_v35 }
 0xc6e   : > { %v5676_v25 = vpop.eup %5675  ;;  %v2920_v19 = vadd.f32 1e-05, %v2912_v42 }
 0xc6f   : > { %v2982_v47 = vmul.f32 %v5676_v25, %v2919_v17  ;;  %vm2988_vm15 = vweird.f32 %v5676_v25 }
 0xc70   : > { %5677 = vrsqrt.f32 %v2920_v19  ;;  %vm2989_vm2 = vmor %vm2987_vm0, %vm2988_vm15  ;;  %vm2997_vm4 = vweird.f32 %v2920_v19 }
 0xc71   : > { %v2983_v24 = vmul.f32 %v5676_v25, %v2982_v47 }
 0xc73   : > { %v2984_v32 = vmul.f32 0.5, %v2983_v24 }
 0xc75   : > { %v2985_v53 = vsub.f32 1.5, %v2984_v32 }
 0xc76   : > { %v5678_v57 = vpop.eup %5677 }
 0xc77   : > { %v2986_v11 = vmul.f32 %v5676_v25, %v2985_v53  ;;  %v2992_v30 = vmul.f32 %v5678_v57, %v2920_v19  ;;  %vm2998_vm3 = vweird.f32 %v5678_v57 }
 0xc78   : > { %vm2999_vm5 = vmor %vm2997_vm4, %vm2998_vm3 }
 0xc79   : > { %v2993_v41 = vmul.f32 %v5678_v57, %v2992_v30  ;;  %v2990_v18 = vsel %vm2989_vm2, %v5676_v25, %v2986_v11 }
 0xc7a   : > { %v3007_v5 = vmul.f32 %v2990_v18, %v7167_v48 }
 0xc7b   : > { %v2994_v31 = vmul.f32 0.5, %v2993_v41  ;;  %v5202_v41 = vld [vmem:[%s8259_s9 + $0x100] sm:$0xff] }
 0xc7c   : > { %v3018_v36 = vmul.f32 %v7186_v27, %v3007_v5  ;;  %v5203_v5 = vld [vmem:[%s8259_s9 + $0x108] sm:$0xff] }
 0xc7d   : > { %v2995_v33 = vsub.f32 1.5, %v2994_v31 }
 0xc7e   : > { %v3029_v4 = vadd.f32 %v7192_v54, %v3018_v36  ;;  %v5204_v36 = vld [vmem:[%s8259_s9 + $0x110] sm:$0xff] }
 0xc7f   : > { %v2996_v7 = vmul.f32 %v5678_v57, %v2995_v33 }
 0xc81   : > { %v3000_v2 = vsel %vm2999_vm5, %v5678_v57, %v2996_v7 }
 0xc82   : > { %v3008_v62 = vmul.f32 %v3000_v2, %v7178_v23 }
 0xc84   : > { %v3019_v38 = vmul.f32 %v7186_v27, %v3008_v62 }
 0xc86   : > { %v3030_v34 = vadd.f32 %v7192_v54, %v3019_v38 }
 0xc88   : > { %v3034_v14 = vpack.c.bf16 %v3030_v34, %v3029_v4 }
 0xc8a   : > { %5197 = vmatmul.msk.bf16.gmra.mxu1 %vm782_vm1, %v3034_v14  ;;  %v5205_v14 = vld [vmem:[%s8259_s9 + $0x118] sm:$0xff] }
 0xc8c   : > { %v3078_v21 = vpop.f32.mrf.mxu1 }
 0xc8d   : > { %v3079_v3 = vadd.f32 %v5461_v10, %v3078_v21 }
 0xc94   : > { %v3080_v55 = vpop.f32.mrf.mxu1 }
 0xc95   : > { %v3081_v63 = vadd.f32 %v5461_v10, %v3080_v55 }
 0xc97   : > { %v7240_v29 = vpack.c.bf16 %v3081_v63, %v3079_v3  ;;  %v5208_v3 = vld [vmem:[%s8259_s9 + $0x130] sm:$0xff] }
 0xcae   : > { %v3083_v48 = vpop.f32.mrf.mxu1 }
 0xcaf   : > { %v3084_v23 = vadd.f32 %v5461_v10, %v3083_v48 }
 0xcb6   : > { %v3085_v22 = vpop.f32.mrf.mxu1 }
 0xcb7   : > { %v3086_v43 = vadd.f32 %v5461_v10, %v3085_v22 }
 0xcb9   : > { %v7230_v50 = vpack.c.bf16 %v3086_v43, %v3084_v23 }
 0xcbb   : > { %3122 = vrot.lane.b32.xlu2 %v7230_v50, %s5922_s2 }
 0xcc9   : > { %v3088_v27 = vpop.f32.mrf.mxu1 }
 0xcca   : > { %v3089_v12 = vadd.f32 %v5461_v10, %v3088_v27  ;;  %v5207_v27 = vld [vmem:[%s8259_s9 + $0x128] sm:$0xff] }
 0xcd1   : > { %v3090_v54 = vpop.f32.mrf.mxu1 }
 0xcd2   : > { %v3091_v13 = vadd.f32 %v5461_v10, %v3090_v54 }
 0xcd4   : > { %v7234_v1 = vpack.c.bf16 %v3091_v13, %v3089_v12 }
 0xcd6   : > { %3352 = vrot.lane.b32.xlu2 %v7234_v1, %s8261_s29  ;;  %3124 = vrot.lane.b32.xlu1 %v7234_v1, %s5922_s2 }
 0xcde   : > { %3348 = vrot.lane.b32.xlu2 %v7240_v29, %s8261_s29  ;;  %3269 = vrot.lane.b32.xlu1 %v7234_v1, %s8262_s0 }
 0xce6   : > { %3267 = vrot.lane.b32.xlu1 %v7230_v50, %s8262_s0 }
 0xcee   : > { %3265 = vrot.lane.b32.xlu1 %v7240_v29, %s8262_s0 }
 0xcf6   : > { %3350 = vrot.lane.b32.xlu1 %v7230_v50, %s8261_s29 }
 0xd07   : > { %v3093_v49 = vpop.f32.mrf.mxu1 }
 0xd08   : > { %v3094_v20 = vadd.f32 %v5461_v10, %v3093_v49 }
 0xd0f   : > { %v3095_v40 = vpop.f32.mrf.mxu1 }
 0xd10   : > { %v3096_v58 = vadd.f32 %v5461_v10, %v3095_v40  ;;  %v5206_v10 = vld [vmem:[%s8259_s9 + $0x120] sm:$0xff]  ;;  %v5209_v40 = vld [vmem:[%s8259_s9 + $0x138] sm:$0xff] }
 0xd12   : > { %v7252_v0 = vpack.c.bf16 %v3096_v58, %v3094_v20 }
 0xd14   : > { %3126 = vrot.lane.b32.xlu0 %v7252_v0, %s5922_s2  ;;  %3271 = vrot.lane.b32.xlu1 %v7252_v0, %s8262_s0 }
 0xd15   : > { %v3123_v16 = vpop.permute.xlu2 %3122 }
 0xd16   : > { %v3144_v25 = vsel %vm1281_vm6, %v3123_v16, 0 }
 0xd1c   : > { %3120 = vrot.lane.b32.xlu0 %v7240_v29, %s5922_s2 }
 0xd24   : > { %3340 = vrot.lane.b32.xlu0 %v7240_v29, %s8263_s1 }
 0xd2c   : > { %3354 = vrot.lane.b32.xlu0 %v7252_v0, %s8261_s29  ;;  %s8267_s29 = smov 112  }
 0xd30   : > { %v3353_v32 = vpop.permute.xlu2 %3352 }
 0xd31   : > { %v3375_v53 = vsel %vm1281_vm6, %v3353_v32, 0 }
 0xd38   : > { %v3349_v11 = vpop.permute.xlu2 %3348 }
 0xd39   : > { %v3369_v30 = vsel %vm1281_vm6, %v3349_v11, 0 }
 0xd48   : > { %v3125_v6 = vpop.permute.xlu1 %3124 }
 0xd49   : > { %v3147_v17 = vsel %vm1281_vm6, %v3125_v6, 0 }
 0xd50   : > { %v3270_v9 = vpop.permute.xlu1 %3269 }
 0xd58   : > { %v3268_v46 = vpop.permute.xlu1 %3267 }
 0xd60   : > { %v3266_v45 = vpop.permute.xlu1 %3265 }
 0xd68   : > { %v3351_v28 = vpop.permute.xlu1 %3350 }
 0xd69   : > { %v3372_v57 = vsel %vm1281_vm6, %v3351_v28, 0 }
 0xd86   : > { %v3127_v51 = vpop.permute.xlu0 %3126  ;;  %v3272_v56 = vpop.permute.xlu1 %3271 }
 0xd87   : > { %v3150_v15 = vsel %vm1281_vm6, %v3127_v51, 0  ;;  %3293 = vmatpush.bf16.msra.mxu3 %v3272_v56  ;;  %v5198_v51 = vld [vmem:[%s8260_s10 + $0x20] sm:$0xff] }
 0xd88   : > { %3156 = vmatpush.bf16.xpose.msra.mxu0 %v3150_v15  ;;  %v3330_v56 = vpack.c.bf16 %v5198_v51, %v5198_v51 }
 0xd8b   : > { %3294 = vmatpush.bf16.msra.mxu3 %v3270_v9 }
 0xd8e   : > { %v3121_v26 = vpop.permute.xlu0 %3120 }
 0xd8f   : > { %3295 = vmatpush.bf16.msra.mxu3 %v3268_v46  ;;  %v3141_v24 = vsel %vm1281_vm6, %v3121_v26, 0 }
 0xd90   : > { %3157 = vmatpush.bf16.xpose.msra.mxu0 %v3147_v17  ;;  %v3616_v17 = vsel %vm1726_vm8, %v3330_v56, 0 }
 0xd93   : > { %3296 = vmatpush.bf16.msra.mxu3 %v3266_v45 }
 0xd96   : > { %v3341_v42 = vpop.permute.xlu0 %3340 }
 0xd97   : > { %3625 = vmatpush.bf16.msrb.mxu3 %v3616_v17 }
 0xd98   : > { %3158 = vmatpush.bf16.xpose.msra.mxu0 %v3144_v25 }
 0xd9e   : > { %v3355_v19 = vpop.permute.xlu0 %3354 }
 0xd9f   : > { %v3378_v47 = vsel %vm1281_vm6, %v3355_v19, 0 }
 0xda0   : > { %3159 = vmatpush.bf16.xpose.msra.mxu0 %v3141_v24  ;;  %3384 = vmatpush.bf16.xpose.msra.mxu2 %v3378_v47 }
 0xda7   : > { %5210 = vmatmul.msk.bf16.vlgmr.msra.gmra.mxu0 %vm1281_vm6, %v7240_v29 }
 0xda8   : > { %3385 = vmatpush.bf16.xpose.msra.mxu2 %v3375_v53 }
 0xdb0   : > { %3386 = vmatpush.bf16.xpose.msra.mxu2 %v3372_v57 }
 0xdb7   : > { %5211 = vmatmul.msk.bf16.gmra.mxu0 %vm1281_vm6, %v7230_v50 }
 0xdb8   : > { %3387 = vmatpush.bf16.xpose.msra.mxu2 %v3369_v30 }
 0xdbf   : > { %5226 = vmatmul.msk.bf16.vlgmr.msra.gmra.mxu2 %vm1281_vm6, %v3341_v42 }
 0xdc7   : > { %5212 = vmatmul.msk.bf16.gmra.mxu0 %vm1281_vm6, %v7234_v1 }
 0xdd7   : > { %5213 = vmatmul.msk.bf16.gmra.mxu0 %vm1281_vm6, %v7252_v0 }
 0xe24   : > { %v3161_v18 = vpop.f32.mrf.mxu0 }
 0xe25   : > { %v3162_v31 = vadd.f32 %v5202_v41, %v3161_v18 }
 0xe27   : > { %v3181_v33 = vsel %vm1335_vm7, %v3162_v31, -inf }
 0xe28   : > { %3182 = vmax.xlane.f32.xlu2 %v3181_v33 }
 0xe2c   : > { %v3163_v7 = vpop.f32.mrf.mxu0 }
 0xe2d   : > { %v3164_v2 = vadd.f32 %v5203_v5, %v3163_v7 }
 0xe2f   : > { %v3184_v62 = vsel %vm1335_vm7, %v3164_v2, -inf }
 0xe30   : > { %3185 = vmax.xlane.f32.xlu0 %v3184_v62 }
 0xe34   : > { %v3166_v38 = vpop.f32.mrf.mxu0 }
 0xe35   : > { %v3167_v4 = vadd.f32 %v5204_v36, %v3166_v38 }
 0xe37   : > { %v3187_v34 = vsel %vm1335_vm7, %v3167_v4, -inf }
 0xe38   : > { %3188 = vmax.xlane.f32.xlu1 %v3187_v34 }
 0xe3c   : > { %v3168_v21 = vpop.f32.mrf.mxu0 }
 0xe3d   : > { %v3169_v55 = vadd.f32 %v5205_v14, %v3168_v21 }
 0xe3f   : > { %v3190_v48 = vsel %vm1335_vm7, %v3169_v55, -inf }
 0xe40   : > { %3191 = vmax.xlane.f32.xlu2 %v3190_v48 }
 0xe44   : > { %v3171_v22 = vpop.f32.mrf.mxu0 }
 0xe45   : > { %v3172_v23 = vadd.f32 %v5206_v10, %v3171_v22 }
 0xe47   : > { %v3193_v43 = vsel %vm1335_vm7, %v3172_v23, -inf }
 0xe48   : > { %3194 = vmax.xlane.f32.xlu0 %v3193_v43 }
 0xe4c   : > { %v3173_v54 = vpop.f32.mrf.mxu0 }
 0xe4d   : > { %v3174_v12 = vadd.f32 %v5207_v27, %v3173_v54 }
 0xe4f   : > { %v3196_v13 = vsel %vm1335_vm7, %v3174_v12, -inf }
 0xe50   : > { %3197 = vmax.xlane.f32.xlu2 %v3196_v13 }
 0xe51   : > { %3950 = vrot.lane.b32.xlu1 %v7252_v0, %s8264_s5 }
 0xe54   : > { %v3176_v63 = vpop.f32.mrf.mxu0 }
 0xe55   : > { %v7318_v49 = vadd.f32 %v5208_v3, %v3176_v63 }
 0xe57   : > { %v3199_v6 = vsel %vm1335_vm7, %v7318_v49, -inf }
 0xe59   : > { %3946 = vrot.lane.b32.xlu1 %v7230_v50, %s8264_s5 }
 0xe5c   : > { %3344 = vrot.lane.b32.xlu0 %v7234_v1, %s8263_s1  ;;  %v3178_v20 = vpop.f32.mrf.mxu0 }
 0xe5d   : > { %v7323_v58 = vadd.f32 %v5209_v40, %v3178_v20 }
 0xe5f   : > { %v3202_v9 = vsel %vm1335_vm7, %v7323_v58, -inf }
 0xe64   : > { %3670 = vrot.lane.b32.xlu0 %v7252_v0, %s8265_s3 }
 0xe68   : > { %3342 = vrot.lane.b32.xlu2 %v7230_v50, %s8263_s1 }
 0xe8e   : > { %3200 = vmax.xlane.f32.xlu0 %v3199_v6 }
 0xe91   : > { %3203 = vmax.xlane.f32.xlu2 %v3202_v9 }
 0xe9b   : > { %v3183_v46 = vpop.xlane.xlu2 %3182 }
 0xe9c   : > { %v3205_v45 = vsub.f32 %v3162_v31, %v3183_v46 }
 0xe9e   : > { %v3213_v28 = vmul.f32 1.442695, %v3205_v45 }
 0xea0   : > { %5679 = vpow2.f32 %v3213_v28 }
 0xea2   : > { %3668 = vrot.lane.b32.xlu0 %v7234_v1, %s8265_s3 }
 0xea3   : > { %v3186_v15 = vpop.xlane.xlu0 %3185 }
 0xea4   : > { %v3206_v26 = vsub.f32 %v3164_v2, %v3186_v15 }
 0xea6   : > { %v5680_v16 = vpop.eup %5679  ;;  %v3215_v42 = vmul.f32 1.442695, %v3206_v26 }
 0xea7   : > { %v3229_v25 = vsel %vm1335_vm7, %v5680_v16, 0.0 }
 0xea8   : > { %5681 = vpow2.f32 %v3215_v42  ;;  %3230 = vadd.xlane.f32.xlu1 %v3229_v25  ;;  %v3389_v25 = vpop.f32.mrf.mxu2 }
 0xea9   : > { %3948 = vrot.lane.b32.xlu2 %v7234_v1, %s8264_s5 }
 0xeaa   : > { %3346 = vrot.lane.b32.xlu0 %v7252_v0, %s8263_s1  ;;  %s8266_s1 = smov 104  }
 0xeab   : > { %v3189_v19 = vpop.xlane.xlu1 %3188 }
 0xeac   : > { %v3207_v32 = vsub.f32 %v3167_v4, %v3189_v19 }
 0xeae   : > { %v5682_v47 = vpop.eup %5681  ;;  %v3217_v53 = vmul.f32 1.442695, %v3207_v32 }
 0xeaf   : > { %v3261_v24 = vpack.c.bf16 %v5682_v47, %v5680_v16 }
 0xeb0   : > { %5683 = vpow2.f32 %v3217_v53  ;;  %v3391_v32 = vpop.f32.mrf.mxu2 }
 0xeb1   : > { %5214 = vmatmul.msk.bf16.vlgmr.msra.gmra.mxu3 %vm1335_vm7, %v3261_v24 }
 0xeb3   : > { %v3192_v57 = vpop.xlane.xlu2 %3191 }
 0xeb4   : > { %v3208_v11 = vsub.f32 %v3169_v55, %v3192_v57  ;;  %v5218_v57 = vld [vmem:[%s8259_s9 + $0x140] sm:$0xff] }
 0xeb6   : > { %v3219_v30 = vmul.f32 1.442695, %v3208_v11  ;;  %v5684_v18 = vpop.eup %5683 }
 0xeb7   : > { %v3235_v22 = vsel %vm1335_vm7, %v5684_v18, 0.0 }
 0xeb8   : > { %5685 = vpow2.f32 %v3219_v30 }
 0xebb   : > { %v3195_v41 = vpop.xlane.xlu0 %3194 }
 0xebc   : > { %v3209_v33 = vsub.f32 %v3172_v23, %v3195_v41  ;;  %v3232_v23 = vsel %vm1335_vm7, %v5682_v47, 0.0 }
 0xebe   : > { %v5686_v31 = vpop.eup %5685  ;;  %v3221_v2 = vmul.f32 1.442695, %v3209_v33 }
 0xebf   : > { %v3238_v5 = vsel %vm1335_vm7, %v5686_v31, 0.0  ;;  %v3262_v7 = vpack.c.bf16 %v5686_v31, %v5684_v18  ;;  %v7393_v31 = vadd.f32 %v5218_v57, %v3389_v25 }
 0xec0   : > { %3239 = vadd.xlane.f32.xlu1 %v3238_v5  ;;  %5687 = vpow2.f32 %v3221_v2 }
 0xec1   : > { %5215 = vmatmul.msk.bf16.gmra.mxu3 %vm1335_vm7, %v3262_v7 }
 0xec3   : > { %v3198_v62 = vpop.xlane.xlu2 %3197  ;;  %v3951_v36 = vpop.permute.xlu1 %3950 }
 0xec4   : > { %v3210_v38 = vsub.f32 %v3174_v12, %v3198_v62  ;;  %v3974_v4 = vsel %vm1281_vm6, %v3951_v36, 0 }
 0xec5   : > { %3980 = vmatpush.bf16.xpose.msra.mxu3 %v3974_v4  ;;  %v5221_v4 = vld [vmem:[%s8259_s9 + $0x158] sm:$0xff] }
 0xec6   : > { %v3223_v34 = vmul.f32 1.442695, %v3210_v38  ;;  %v5688_v21 = vpop.eup %5687  ;;  %v3409_v38 = vsel %vm1335_vm7, %v7393_v31, -inf }
 0xec8   : > { %5689 = vpow2.f32 %v3223_v34 }
 0xecb   : > { %v3343_v14 = vpop.permute.xlu2 %3342 }
 0xecc   : > { %5227 = vmatmul.msk.bf16.gmra.mxu2 %vm1281_vm6, %v3343_v14 }
 0xece   : > { %v5690_v55 = vpop.eup %5689  ;;  %v3345_v48 = vpop.permute.xlu0 %3344 }
 0xecf   : > { %v3263_v10 = vpack.c.bf16 %v5690_v55, %v5688_v21  ;;  %v3244_v51 = vsel %vm1335_vm7, %v5690_v55, 0.0 }
 0xed1   : > { %5216 = vmatmul.msk.bf16.gmra.mxu3 %vm1335_vm7, %v3263_v10 }
 0xed2   : > { %3236 = vadd.xlane.f32.xlu2 %v3235_v22 }
 0xed4   : > { %3233 = vadd.xlane.f32.xlu0 %v3232_v23 }
 0xed6   : > { %v3671_v43 = vpop.permute.xlu0 %3670 }
 0xed7   : > { %v3694_v27 = vsel %vm1281_vm6, %v3671_v43, 0 }
 0xed8   : > { %3700 = vmatpush.bf16.xpose.msrb.mxu2 %v3694_v27 }
 0xed9   : > { %3936 = vrot.lane.b32.xlu1 %v7240_v29, %s8266_s1 }
 0xedc   : > { %5228 = vmatmul.msk.bf16.gmra.mxu2 %vm1281_vm6, %v3345_v48 }
 0xee1   : > { %3658 = vrot.lane.b32.xlu1 %v7230_v50, %s8267_s29 }
 0xee8   : > { %3666 = vrot.lane.b32.xlu0 %v7230_v50, %s8265_s3 }
 0xeea   : > { %3944 = vrot.lane.b32.xlu2 %v7240_v29, %s8264_s5  ;;  %s8268_s5 = smov 56  }
 0xf01   : > { %v3201_v54 = vpop.xlane.xlu0 %3200 }
 0xf02   : > { %v3211_v12 = vsub.f32 %v7318_v49, %v3201_v54  ;;  %v3947_v49 = vpop.permute.xlu1 %3946 }
 0xf03   : > { %v3968_v15 = vsel %vm1281_vm6, %v3947_v49, 0 }
 0xf04   : > { %v3225_v13 = vmul.f32 1.442695, %v3211_v12  ;;  %v3204_v63 = vpop.xlane.xlu2 %3203 }
 0xf05   : > { %v3212_v3 = vsub.f32 %v7323_v58, %v3204_v63  ;;  %v3241_v58 = vsel %vm1335_vm7, %v5688_v21, 0.0  ;;  %v5223_v63 = vld [vmem:[%s8259_s9 + $0x168] sm:$0xff] }
 0xf06   : > { %5691 = vpow2.f32 %v3225_v13  ;;  %v5219_v13 = vld [vmem:[%s8259_s9 + $0x148] sm:$0xff] }
 0xf07   : > { %v3227_v40 = vmul.f32 1.442695, %v3212_v3  ;;  %v7415_v3 = vadd.f32 %v5219_v13, %v3391_v32 }
 0xf09   : > { %5693 = vpow2.f32 %v3227_v40 }
 0xf0c   : > { %v3949_v20 = vpop.permute.xlu2 %3948  ;;  %v5692_v9 = vpop.eup %5691 }
 0xf0d   : > { %v3971_v6 = vsel %vm1281_vm6, %v3949_v20, 0  ;;  %v3247_v17 = vsel %vm1335_vm7, %v5692_v9, 0.0 }
 0xf0e   : > { %3981 = vmatpush.bf16.xpose.msra.mxu3 %v3971_v6 }
 0xf0f   : > { %v5694_v46 = vpop.eup %5693 }
 0xf10   : > { %v3250_v45 = vsel %vm1335_vm7, %v5694_v46, 0.0  ;;  %v3264_v28 = vpack.c.bf16 %v5694_v46, %v5692_v9  ;;  %v3412_v9 = vsel %vm1335_vm7, %v7415_v3, -inf  ;;  %v5222_v46 = vld [vmem:[%s8259_s9 + $0x160] sm:$0xff] }
 0xf11   : > { %3251 = vadd.xlane.f32.xlu1 %v3250_v45 }
 0xf12   : > { %3245 = vadd.xlane.f32.xlu0 %v3244_v51  ;;  %5217 = vmatmul.msk.bf16.gmra.mxu3 %vm1335_vm7, %v3264_v28  ;;  %v5220_v51 = vld [vmem:[%s8259_s9 + $0x150] sm:$0xff] }
 0xf13   : > { %3242 = vadd.xlane.f32.xlu2 %v3241_v58 }
 0xf14   : > { %v3669_v56 = vpop.permute.xlu0 %3668 }
 0xf15   : > { %v3691_v26 = vsel %vm1281_vm6, %v3669_v56, 0 }
 0xf16   : > { %3701 = vmatpush.bf16.xpose.msrb.mxu2 %v3691_v26  ;;  %3982 = vmatpush.bf16.xpose.msra.mxu3 %v3968_v15 }
 0xf1b   : > { %3248 = vadd.xlane.f32.xlu2 %v3247_v17  ;;  %v3231_v19 = vpop.xlane.xlu1 %3230 }
 0xf1c   : > { %v3347_v16 = vpop.permute.xlu0 %3346  ;;  %5695 = vrcp.f32 %v3231_v19 }
 0xf1d   : > { %5229 = vmatmul.msk.bf16.gmra.mxu2 %vm1281_vm6, %v3347_v16 }
 0xf22   : > { %v5696_v11 = vpop.eup %5695 }
 0xf26   : > { %3664 = vrot.lane.b32.xlu0 %v7240_v29, %s8265_s3  ;;  %s5877_s3 = scalar_lea.hbm %s8200_s22, 2 }
 0xf2a   : > { %3942 = vrot.lane.b32.xlu1 %v7252_v0, %s8266_s1 }
 0xf2e   : > { %3938 = vrot.lane.b32.xlu0 %v7230_v50, %s8266_s1 }
 0xf33   : > { %3656 = vrot.lane.b32.xlu2 %v7240_v29, %s8267_s29  ;;  %v3240_v36 = vpop.xlane.xlu1 %3239 }
 0xf34   : > { %v3298_v42 = vpop.f32.mrf.mxu3 }
 0xf35   : > { %v3318_v33 = vmul.f32 %v5696_v11, %v3298_v42 }
 0xf36   : > { %3660 = vrot.lane.b32.xlu0 %v7234_v1, %s8267_s29 }
 0xf3b   : > { %3940 = vrot.lane.b32.xlu2 %v7234_v1, %s8266_s1  ;;  %s674_s1 = sand.u32 1, %s5911_s28  }
 0xf3c   : > { %v3300_v24 = vpop.f32.mrf.mxu3  ;;  %s4946_s7 = scalar_lea.sflag [#allocation3], %s674_s1 }
 0xf3e   : > { %3499 = vrot.lane.b32.xlu0 %v7252_v0, %s8268_s5 }
 0xf43   : > { %3662 = vrot.lane.b32.xlu2 %v7252_v0, %s8267_s29 }
 0xf44   : > { %v3303_v2 = vpop.f32.mrf.mxu3 }
 0xf45   : > { %v3237_v47 = vpop.xlane.xlu2 %3236 }
 0xf46   : > { %3497 = vrot.lane.b32.xlu0 %v7234_v1, %s8268_s5 }
 0xf47   : > { %v3234_v53 = vpop.xlane.xlu0 %3233 }
 0xf48   : > { %5697 = vrcp.f32 %v3234_v53 }
 0xf49   : > { %5699 = vrcp.f32 %v3237_v47 }
 0xf4a   : > { %5701 = vrcp.f32 %v3240_v36 }
 0xf4b   : > { %v3937_v56 = vpop.permute.xlu1 %3936 }
 0xf4c   : > { %v3305_v55 = vpop.f32.mrf.mxu3 }
 0xf4d   : > { %v3945_v30 = vpop.permute.xlu2 %3944 }
 0xf4e   : > { %v5698_v41 = vpop.eup %5697  ;;  %v3965_v18 = vsel %vm1281_vm6, %v3945_v30, 0  ;;  %3495 = vrot.lane.b32.xlu0 %v7230_v50, %s8268_s5 }
 0xf4f   : > { %v3319_v5 = vmul.f32 %v5698_v41, %v3300_v24  ;;  %v3394_v7 = vpop.f32.mrf.mxu2  ;;  %3983 = vmatpush.bf16.xpose.msra.mxu3 %v3965_v18  ;;  %v5700_v21 = vpop.eup %5699 }
 0xf50   : > { %v5702_v23 = vpop.eup %5701  ;;  %v3320_v43 = vmul.f32 %v5700_v21, %v3303_v2  ;;  %v7433_v49 = vadd.f32 %v5220_v51, %v3394_v7 }
 0xf51   : > { %v3326_v62 = vpack.c.bf16 %v3319_v5, %v3318_v33  ;;  %v3321_v27 = vmul.f32 %v5702_v23, %v3305_v55 }
 0xf52   : > { %v3415_v58 = vsel %vm1335_vm7, %v7433_v49, -inf }
 0xf53   : > { %5238 = vmatmul.msk.bf16.vlgmr.msrb.gmra.mxu3 %vm1281_vm6, %v3326_v62  ;;  %v3327_v12 = vpack.c.bf16 %v3321_v27, %v3320_v43  ;;  %v3659_v42 = vpop.permute.xlu1 %3658  ;;  %v5224_v62 = vld [vmem:[%s8259_s9 + $0x170] sm:$0xff] }
 0xf54   : > { %3410 = vmax.xlane.f32.xlu1 %v3409_v38  ;;  %v3308_v15 = vpop.f32.mrf.mxu3 }
 0xf56   : > { %3493 = vrot.lane.b32.xlu0 %v7240_v29, %s8268_s5  ;;  %s8270_s5 = smov 48  }
 0xf57   : > { %v3396_v34 = vpop.f32.mrf.mxu2 }
 0xf58   : > { %v7403_v14 = vadd.f32 %v5221_v4, %v3396_v34 }
 0xf5a   : > { %v3667_v48 = vpop.permute.xlu0 %3666  ;;  %v3418_v10 = vsel %vm1335_vm7, %v7403_v14, -inf }
 0xf5b   : > { %v3688_v22 = vsel %vm1281_vm6, %v3667_v48, 0  ;;  %v5225_v48 = vld [vmem:[%s8259_s9 + $0x178] sm:$0xff] }
 0xf5c   : > { %3702 = vmatpush.bf16.xpose.msrb.mxu2 %v3688_v22  ;;  %3419 = vmax.xlane.f32.xlu1 %v3418_v10  ;;  %v3310_v25 = vpop.f32.mrf.mxu3 }
 0xf5f   : > { %v3399_v54 = vpop.f32.mrf.mxu2 }
 0xf60   : > { %v7426_v45 = vadd.f32 %v5222_v46, %v3399_v54 }
 0xf62   : > { %v3421_v28 = vsel %vm1335_vm7, %v7426_v45, -inf }
 0xf63   : > { %5239 = vmatmul.msk.bf16.gmra.mxu3 %vm1281_vm6, %v3327_v12 }
 0xf67   : > { %v3401_v40 = vpop.f32.mrf.mxu2 }
 0xf68   : > { %v7417_v20 = vadd.f32 %v5223_v63, %v3401_v40 }
 0xf6a   : > { %v3424_v6 = vsel %vm1335_vm7, %v7417_v20, -inf }
 0xf6b   : > { %3425 = vmax.xlane.f32.xlu1 %v3424_v6 }
 0xf6c   : > { %3413 = vmax.xlane.f32.xlu2 %v3412_v9 }
 0xf74   : > { %3422 = vmax.xlane.f32.xlu2 %v3421_v28 }
 0xf80   : > { %3416 = vmax.xlane.f32.xlu0 %v3415_v58 }
 0xf84   : > { %v3252_v57 = vpop.xlane.xlu1 %3251 }
 0xf85   : > { %v3246_v26 = vpop.xlane.xlu0 %3245 }
 0xf86   : > { %5703 = vrcp.f32 %v3246_v26  ;;  %v3243_v17 = vpop.xlane.xlu2 %3242 }
 0xf87   : > { %5705 = vrcp.f32 %v3243_v17 }
 0xf8c   : > { %v5704_v16 = vpop.eup %5703 }
 0xf8d   : > { %v5706_v19 = vpop.eup %5705  ;;  %v3323_v47 = vmul.f32 %v5704_v16, %v3310_v25 }
 0xf8e   : > { %v3322_v24 = vmul.f32 %v5706_v19, %v3308_v15  ;;  %v3249_v53 = vpop.xlane.xlu2 %3248 }
 0xf8f   : > { %5707 = vrcp.f32 %v3249_v53 }
 0xf90   : > { %v3328_v32 = vpack.c.bf16 %v3323_v47, %v3322_v24  ;;  %5709 = vrcp.f32 %v3252_v57 }
 0xf92   : > { %5240 = vmatmul.msk.bf16.gmra.mxu3 %vm1281_vm6, %v3328_v32 }
 0xf94   : > { %4093 = vrot.lane.b32.xlu0 %v7234_v1, %s8269_s26 }
 0xf95   : > { %v3313_v11 = vpop.f32.mrf.mxu3  ;;  %v5708_v18 = vpop.eup %5707 }
 0xf96   : > { %v5710_v33 = vpop.eup %5709  ;;  %v3324_v7 = vmul.f32 %v5708_v18, %v3313_v11  ;;  %v3657_v36 = vpop.permute.xlu2 %3656 }
 0xf98   : > { %v3665_v30 = vpop.permute.xlu0 %3664 }
 0xf99   : > { %v3685_v41 = vsel %vm1281_vm6, %v3665_v30, 0 }
 0xf9a   : > { %3703 = vmatpush.bf16.xpose.msrb.mxu2 %v3685_v41 }
 0xf9c   : > { %v3943_v40 = vpop.permute.xlu1 %3942 }
 0xf9d   : > { %v3315_v5 = vpop.f32.mrf.mxu3 }
 0xf9e   : > { %v3325_v2 = vmul.f32 %v5710_v33, %v3315_v5  ;;  %v3941_v13 = vpop.permute.xlu2 %3940 }
 0xfa0   : > { %v3329_v38 = vpack.c.bf16 %v3325_v2, %v3324_v7  ;;  %v3939_v4 = vpop.permute.xlu0 %3938  ;;  %v3404_v34 = vpop.f32.mrf.mxu2 }
 0xfa1   : > { %v7444_v21 = vadd.f32 %v5224_v62, %v3404_v34  ;;  %5250 = vmatmul.msk.bf16.vlgmr.msrb.gmra.mxu2 %vm1281_vm6, %v3657_v36 }
 0xfa2   : > { %5241 = vmatmul.msk.bf16.gmra.mxu3 %vm1281_vm6, %v3329_v38 }
 0xfa3   : > { %v3427_v55 = vsel %vm1335_vm7, %v7444_v21, -inf }
 0xfa4   : > { %3428 = vmax.xlane.f32.xlu2 %v3427_v55  ;;  %v5242_v55 = vld [vmem:[%s8259_s9 + $0x180] sm:$0xff] }
 0xfa6   : > { %v3663_v6 = vpop.permute.xlu2 %3662 }
 0xfa8   : > { %v3661_v10 = vpop.permute.xlu0 %3660  ;;  %v3406_v22 = vpop.f32.mrf.mxu2 }
 0xfa9   : > { %v7453_v23 = vadd.f32 %v5225_v48, %v3406_v22 }
 0xfab   : > { %v3430_v43 = vsel %vm1335_vm7, %v7453_v23, -inf }
 0xfac   : > { %3431 = vmax.xlane.f32.xlu1 %v3430_v43 }
 0xfb0   : > { %v3500_v27 = vpop.permute.xlu0 %3499 }
 0xfb1   : > { %3521 = vmatpush.bf16.msrb.mxu1 %v3500_v27  ;;  %5251 = vmatmul.msk.bf16.gmra.mxu2 %vm1281_vm6, %v3659_v42 }
 0xfb2   : > { %5270 = vmatmul.msk.bf16.vlgmr.msra.gmra.mxu3 %vm1281_vm6, %v3937_v56 }
 0xfb8   : > { %v3498_v54 = vpop.permute.xlu0 %3497 }
 0xfb9   : > { %3522 = vmatpush.bf16.msrb.mxu1 %v3498_v54  ;;  %v5243_v54 = vld [vmem:[%s8259_s9 + $0x188] sm:$0xff] }
 0xfbc   : > { %4095 = vrot.lane.b32.xlu2 %v7252_v0, %s8269_s26 }
 0xfc0   : > { %v3496_v12 = vpop.permute.xlu0 %3495 }
 0xfc1   : > { %3523 = vmatpush.bf16.msrb.mxu1 %v3496_v12  ;;  %5252 = vmatmul.msk.bf16.gmra.mxu2 %vm1281_vm6, %v3661_v10 }
 0xfc2   : > { %5271 = vmatmul.msk.bf16.gmra.mxu3 %vm1281_vm6, %v3939_v4 }
 0xfc5   : > { %3815 = vrot.lane.b32.xlu1 %v7252_v0, %s8270_s5 }
 0xfc7   : > { %v3411_v9 = vpop.xlane.xlu1 %3410 }
 0xfc8   : > { %v3494_v63 = vpop.permute.xlu0 %3493  ;;  %v3433_v46 = vsub.f32 %v7393_v31, %v3411_v9  ;;  %v5262_v9 = vld [vmem:[%s8259_s9 + $0x1c0] sm:$0xff] }
 0xfc9   : > { %3524 = vmatpush.bf16.msrb.mxu1 %v3494_v63 }
 0xfca   : > { %v3441_v0 = vmul.f32 1.442695, %v3433_v46 }
 0xfcc   : > { %5711 = vpow2.f32 %v3441_v0 }
 0xfcd   : > { %3813 = vrot.lane.b32.xlu1 %v7234_v1, %s8270_s5 }
 0xfcf   : > { %v3420_v31 = vpop.xlane.xlu1 %3419 }
 0xfd1   : > { %5253 = vmatmul.msk.bf16.gmra.mxu2 %vm1281_vm6, %v3663_v6 }
 0xfd2   : > { %5272 = vmatmul.msk.bf16.gmra.mxu3 %vm1281_vm6, %v3941_v13  ;;  %v7476_v58 = vpop.eup %5711 }
 0xfd5   : > { %4091 = vrot.lane.b32.xlu1 %v7230_v50, %s8269_s26 }
 0xfd6   : > { %v7484_v26 = vpop.f32.mrf.mxu3 }
 0xfdd   : > { %3811 = vrot.lane.b32.xlu1 %v7230_v50, %s8270_s5  ;;  %v3436_v50 = vsub.f32 %v7403_v14, %v3420_v31 }
 0xfde   : > { %v7487_v25 = vpop.f32.mrf.mxu3  ;;  %v3426_v24 = vpop.xlane.xlu1 %3425 }
 0xfdf   : > { %v3414_v28 = vpop.xlane.xlu2 %3413  ;;  %v3438_v57 = vsub.f32 %v7417_v20, %v3426_v24 }
 0xfe0   : > { %v3434_v51 = vsub.f32 %v7415_v3, %v3414_v28  ;;  %v3447_v3 = vmul.f32 1.442695, %v3436_v50 }
 0xfe1   : > { %v3451_v30 = vmul.f32 1.442695, %v3438_v57 }
 0xfe2   : > { %v3443_v1 = vmul.f32 1.442695, %v3434_v51  ;;  %5273 = vmatmul.msk.bf16.gmra.mxu3 %vm1281_vm6, %v3943_v40 }
 0xfe4   : > { %5713 = vpow2.f32 %v3443_v1  ;;  %v5263_v1 = vld [vmem:[%s8259_s9 + $0x1c8] sm:$0xff] }
 0xfe5   : > { %5715 = vpow2.f32 %v3447_v3 }
 0xfe6   : > { %v7498_v11 = vpop.f32.mrf.mxu3 }
 0xfe7   : > { %v3423_v19 = vpop.xlane.xlu2 %3422 }
 0xfe8   : > { %v3437_v53 = vsub.f32 %v7426_v45, %v3423_v19 }
 0xfea   : > { %v7478_v56 = vpop.eup %5713 }
 0xfeb   : > { %v3489_v15 = vpack.c.bf16 %v7478_v56, %v7476_v58  ;;  %v7489_v47 = vpop.eup %5715 }
 0xfed   : > { %5230 = vmatmul.msk.bf16.vlgmr.msrb.gmra.mxu1 %vm1335_vm7, %v3489_v15 }
 0xfee   : > { %v7502_v18 = vpop.f32.mrf.mxu3 }
 0xff3   : > { %v3417_v17 = vpop.xlane.xlu0 %3416 }
 0xff4   : > { %v3435_v16 = vsub.f32 %v7433_v49, %v3417_v17  ;;  %v3449_v49 = vmul.f32 1.442695, %v3437_v53  ;;  %v5244_v17 = vld [vmem:[%s8259_s9 + $0x190] sm:$0xff] }
 0xff6   : > { %v3445_v42 = vmul.f32 1.442695, %v3435_v16 }
 0xff8   : > { %5717 = vpow2.f32 %v3445_v42 }
 0xff9   : > { %5719 = vpow2.f32 %v3449_v49 }
 0xffa   : > { %5721 = vpow2.f32 %v3451_v30 }
 0xffe   : > { %v7491_v32 = vpop.eup %5717 }
 0xfff   : > { %v3490_v14 = vpack.c.bf16 %v7489_v47, %v7491_v32  ;;  %v7500_v41 = vpop.eup %5719 }
0x1000   : > { %v7504_v33 = vpop.eup %5721 }
0x1001   : > { %5231 = vmatmul.msk.bf16.gmra.mxu1 %vm1335_vm7, %v3490_v14  ;;  %v3491_v45 = vpack.c.bf16 %v7504_v33, %v7500_v41  ;;  %v5265_v14 = vld [vmem:[%s8259_s9 + $0x1d8] sm:$0xff] }
0x1006   : > { %v4094_v48 = vpop.permute.xlu0 %4093 }
0x1011   : > { %5232 = vmatmul.msk.bf16.gmra.mxu1 %vm1335_vm7, %v3491_v45 }
0x1015   : > { %v7509_v20 = vpop.f32.mrf.mxu3 }
0x1017   : > { %v3429_v5 = vpop.xlane.xlu2 %3428 }
0x1018   : > { %v3439_v7 = vsub.f32 %v7444_v21, %v3429_v5 }
0x101a   : > { %v3453_v62 = vmul.f32 1.442695, %v3439_v7  ;;  %v5266_v7 = vld [vmem:[%s8259_s9 + $0x1e0] sm:$0xff] }
0x101c   : > { %5723 = vpow2.f32 %v3453_v62 }
0x101d   : > { %v7512_v2 = vpop.f32.mrf.mxu3 }
0x101f   : > { %v4096_v36 = vpop.permute.xlu2 %4095  ;;  %v3432_v38 = vpop.xlane.xlu1 %3431 }
0x1020   : > { %v3440_v4 = vsub.f32 %v7453_v23, %v3432_v38  ;;  %4117 = vmatpush.bf16.msra.mxu2 %v4096_v36 }
0x1022   : > { %v3455_v34 = vmul.f32 1.442695, %v3440_v4  ;;  %v7524_v23 = vpop.eup %5723  ;;  %v5267_v4 = vld [vmem:[%s8259_s9 + $0x1e8] sm:$0xff] }
0x1024   : > { %5725 = vpow2.f32 %v3455_v34  ;;  %v3705_v10 = vpop.f32.mrf.mxu2  ;;  %4118 = vmatpush.bf16.msra.mxu2 %v4094_v48 }
0x1025   : > { %v7518_v22 = vadd.f32 %v5242_v55, %v3705_v10  ;;  %v7520_v21 = vpop.f32.mrf.mxu3  ;;  %v5245_v10 = vld [vmem:[%s8259_s9 + $0x198] sm:$0xff] }
0x1027   : > { %v3725_v43 = vsel %vm1335_vm7, %v7518_v22, -inf }
0x1028   : > { %3726 = vmax.xlane.f32.xlu2 %v3725_v43  ;;  %v5246_v43 = vld [vmem:[%s8259_s9 + $0x1a0] sm:$0xff] }
0x102a   : > { %v7526_v27 = vpop.eup %5725 }
0x102b   : > { %v3492_v12 = vpack.c.bf16 %v7526_v27, %v7524_v23 }
0x102c   : > { %v3707_v13 = vpop.f32.mrf.mxu2 }
0x102d   : > { %v7533_v63 = vadd.f32 %v5243_v54, %v3707_v13  ;;  %5233 = vmatmul.msk.bf16.gmra.mxu1 %vm1335_vm7, %v3492_v12  ;;  %v7536_v40 = vpop.f32.mrf.mxu3 }
0x102f   : > { %v3728_v6 = vsel %vm1335_vm7, %v7533_v63, -inf }
0x1030   : > { %3729 = vmax.xlane.f32.xlu0 %v3728_v6 }
0x1034   : > { %v3710_v16 = vpop.f32.mrf.mxu2 }
0x1035   : > { %v3985_v46 = vpop.f32.mrf.mxu3  ;;  %v7559_v42 = vadd.f32 %v5244_v17, %v3710_v16  ;;  %v5264_v17 = vld [vmem:[%s8259_s9 + $0x1d0] sm:$0xff] }
0x1036   : > { %v7543_v0 = vadd.f32 %v5262_v9, %v3985_v46  ;;  %v5268_v46 = vld [vmem:[%s8259_s9 + $0x1f0] sm:$0xff] }
0x1037   : > { %v3816_v28 = vpop.permute.xlu1 %3815  ;;  %v3731_v53 = vsel %vm1335_vm7, %v7559_v42, -inf }
0x1038   : > { %3837 = vmatpush.bf16.msra.mxu1 %v3816_v28  ;;  %v4005_v51 = vsel %vm1335_vm7, %v7543_v0, -inf }
0x1039   : > { %4006 = vmax.xlane.f32.xlu1 %v4005_v51 }
0x103c   : > { %v3712_v5 = vpop.f32.mrf.mxu2 }
0x103d   : > { %v3987_v15 = vpop.f32.mrf.mxu3  ;;  %v7592_v54 = vadd.f32 %v5245_v10, %v3712_v5  ;;  %v5269_v5 = vld [vmem:[%s8259_s9 + $0x1f8] sm:$0xff]  ;;  %v3463_v10 = vsel %vm1335_vm7, %v7491_v32, 0.0 }
0x103e   : > { %v7550_v31 = vadd.f32 %v5263_v1, %v3987_v15  ;;  %v3457_v15 = vsel %vm1335_vm7, %v7476_v58, 0.0  ;;  %v3466_v58 = vsel %vm1335_vm7, %v7489_v47, 0.0 }
0x103f   : > { %v3814_v50 = vpop.permute.xlu1 %3813  ;;  %v3734_v6 = vsel %vm1335_vm7, %v7592_v54, -inf }
0x1040   : > { %3809 = vrot.lane.b32.xlu2 %v7240_v29, %s8270_s5  ;;  %3838 = vmatpush.bf16.msra.mxu1 %v3814_v50  ;;  %v4008_v3 = vsel %vm1335_vm7, %v7550_v31, -inf  ;;  %v5248_v50 = vld [vmem:[%s8259_s9 + $0x1b0] sm:$0xff]  ;;  %s675_s5 = scalar_lea.vmem [#allocation2], %s674_s1 }
0x1041   : > { %4009 = vmax.xlane.f32.xlu0 %v4008_v3  ;;  %s4956_s30 = sshll.u32 %s675_s5, 4  ;;  %s4957_s30 = int_to_ptr.vmem [resolvable:$true] %s4956_s30 }
0x1044   : > { %v3715_v34 = vpop.f32.mrf.mxu2 }
0x1045   : > { %v3990_v19 = vpop.f32.mrf.mxu3  ;;  %v7594_v12 = vadd.f32 %v5246_v43, %v3715_v34 }
0x1047   : > { %v4092_v24 = vpop.permute.xlu1 %4091  ;;  %v3737_v9 = vsel %vm1335_vm7, %v7594_v12, -inf }
0x1048   : > { %4119 = vmatpush.bf16.msra.mxu2 %v4092_v24  ;;  %v7617_v24 = vadd.f32 %v5264_v17, %v3990_v19  ;;  %v3460_v19 = vsel %vm1335_vm7, %v7478_v56, 0.0 }
0x1049   : > { %3732 = vmax.xlane.f32.xlu0 %v3731_v53 }
0x104c   : > { %v3717_v13 = vpop.f32.mrf.mxu2 }
0x104d   : > { %v3992_v57 = vpop.f32.mrf.mxu3 }
0x104e   : > { %v7566_v49 = vadd.f32 %v5265_v14, %v3992_v57  ;;  %v4011_v14 = vsel %vm1335_vm7, %v7617_v24, -inf  ;;  %v5247_v57 = vld [vmem:[%s8259_s9 + $0x1a8] sm:$0xff] }
0x104f   : > { %v3812_v30 = vpop.permute.xlu1 %3811 }
0x1050   : > { %3839 = vmatpush.bf16.msra.mxu1 %v3812_v30  ;;  %v4014_v45 = vsel %vm1335_vm7, %v7566_v49, -inf  ;;  %v7628_v30 = vadd.f32 %v5247_v57, %v3717_v13 }
0x1051   : > { %4015 = vmax.xlane.f32.xlu0 %v4014_v45  ;;  %v3475_v45 = vsel %vm1335_vm7, %v7524_v23, 0.0  ;;  %v5249_v23 = vld [vmem:[%s8259_s9 + $0x1b8] sm:$0xff] }
0x1052   : > { %4089 = vrot.lane.b32.xlu1 %v7240_v29, %s8269_s26  ;;  %v3740_v47 = vsel %vm1335_vm7, %v7628_v30, -inf  ;;  %s4954_s26 = scalar_lea.hbm %s8200_s22, %s6070_s4 }
0x1053   : > { %s4958_s24 = sshll.u32 %s4954_s26, 4  ;;  %s4959_s24 = int_to_ptr.hbm [resolvable:$true] %s4958_s24 }
0x1054   : > { %v3720_v3 = vpop.f32.mrf.mxu2  ;;  %s5871_s8 = sshra.s32 %s4959_s24, 4  ;;  %s5872_s8 = int_to_ptr.hbm [resolvable:$true] %s5871_s8 }
0x1055   : > { %v3995_v62 = vpop.f32.mrf.mxu3  ;;  %v7615_v16 = vadd.f32 %v5248_v50, %v3720_v3  ;;  %s5873_s9 = scalar_lea.hbm %s5872_s8, 1  ;;  %p5878_p0 = scmp.lt.s32.totalorder %s5872_s8, %s8200_s22 }
0x1056   : > { %v7575_v36 = vadd.f32 %v5266_v7, %v3995_v62  ;;  %p5874_p11 = scmp.ne.s32.totalorder %s5872_s8, %s5873_s9  ;;  %p5879_p1 = scmp.lt.s32.totalorder %s5877_s3, %s5873_s9 }
0x1057   : > { %v3743_v53 = vsel %vm1335_vm7, %v7615_v16, -inf }
0x1058   : > { %v4017_v38 = vsel %vm1335_vm7, %v7575_v36, -inf  ;;  %p5875_p12 = pnand %p5874_p11, %p6087_p5  ;;  %p5880_p2 = por %p5879_p1, %p5878_p0 }
0x1059   : > { %4018 = vmax.xlane.f32.xlu0 %v4017_v38  ;;  %v3469_v38 = vsel %vm1335_vm7, %v7500_v41, 0.0 }
0x105a   : > { %p5876_p13 = pneg %p5875_p12 }
0x105c   : > { %p5881_p3 = pnand %p5880_p2, %p5876_p13 }
0x105d   : > { %v3997_v55 = vpop.f32.mrf.mxu3 }
0x105e   : > { %v7582_v48 = vadd.f32 %v5267_v4, %v3997_v55  ;;  %v3722_v4 = vpop.f32.mrf.mxu2  ;;  %v3478_v55 = vsel %vm1335_vm7, %v7526_v27, 0.0 }
0x105f   : > { %v7648_v34 = vadd.f32 %v5249_v23, %v3722_v4 }
0x1060   : > { %v4020_v29 = vsel %vm1335_vm7, %v7582_v48, -inf }
0x1061   : > { %4021 = vmax.xlane.f32.xlu0 %v4020_v29  ;;  %v3746_v29 = vsel %vm1335_vm7, %v7648_v34, -inf }
0x1065   : > { %v4000_v28 = vpop.f32.mrf.mxu3 }
0x1066   : > { %v7603_v51 = vadd.f32 %v5268_v46, %v4000_v28  ;;  %v3472_v46 = vsel %vm1335_vm7, %v7504_v33, 0.0 }
0x1068   : > { %v4023_v1 = vsel %vm1335_vm7, %v7603_v51, -inf }
0x1069   : > { %3735 = vmax.xlane.f32.xlu2 %v3734_v6  ;;  %3738 = vmax.xlane.f32.xlu0 %v3737_v9 }
0x106d   : > { %v4002_v7 = vpop.f32.mrf.mxu3 }
0x106e   : > { %v7639_v62 = vadd.f32 %v5269_v5, %v4002_v7 }
0x1070   : > { %v4026_v56 = vsel %vm1335_vm7, %v7639_v62, -inf }
0x1071   : > { %4024 = vmax.xlane.f32.xlu0 %v4023_v1  ;;  %3458 = vadd.xlane.f32.xlu2 %v3457_v15 }
0x1079   : > { %3744 = vmax.xlane.f32.xlu0 %v3743_v53  ;;  %3467 = vadd.xlane.f32.xlu2 %v3466_v58 }
0x107c   : > { %4012 = vmax.xlane.f32.xlu1 %v4011_v14 }
0x1081   : > { %3461 = vadd.xlane.f32.xlu0 %v3460_v19  ;;  %3476 = vadd.xlane.f32.xlu2 %v3475_v45 }
0x1084   : > { %3741 = vmax.xlane.f32.xlu1 %v3740_v47 }
0x1089   : > { %3470 = vadd.xlane.f32.xlu0 %v3469_v38 }
0x108c   : > { %4027 = vmax.xlane.f32.xlu1 %v4026_v56 }
0x1091   : > { %3479 = vadd.xlane.f32.xlu0 %v3478_v55 }
0x1094   : > { %3747 = vmax.xlane.f32.xlu1 %v3746_v29 }
0x109b   : > { %v3727_v41 = vpop.xlane.xlu2 %3726 }
0x109c   : > { %v3749_v43 = vsub.f32 %v7518_v22, %v3727_v41  ;;  %3464 = vadd.xlane.f32.xlu1 %v3463_v10 }
0x109e   : > { %v3757_v13 = vmul.f32 1.442695, %v3749_v43 }
0x10a0   : > { %5727 = vpow2.f32 %v3757_v13 }
0x10a3   : > { %v3730_v6 = vpop.xlane.xlu0 %3729  ;;  %v3810_v9 = vpop.permute.xlu2 %3809 }
0x10a4   : > { %v3750_v27 = vsub.f32 %v7533_v63, %v3730_v6  ;;  %3473 = vadd.xlane.f32.xlu1 %v3472_v46  ;;  %3840 = vmatpush.bf16.msra.mxu1 %v3810_v9  ;;  %v5199_v9 = vld [vmem:[%s8260_s10 + $0x28] sm:$0xff] }
0x10a6   : > { %v3759_v28 = vmul.f32 1.442695, %v3750_v27  ;;  %v5728_v1 = vpop.eup %5727 }
0x10a7   : > { %v3773_v15 = vsel %vm1335_vm7, %v5728_v1, 0.0 }
0x10a8   : > { %5729 = vpow2.f32 %v3759_v28 }
0x10ac   : > { %3774 = vadd.xlane.f32.xlu1 %v3773_v15  ;;  %v4007_v32 = vpop.xlane.xlu1 %4006 }
0x10ad   : > { %v4029_v22 = vsub.f32 %v7543_v0, %v4007_v32 }
0x10ae   : > { %v5730_v50 = vpop.eup %5729 }
0x10af   : > { %v3805_v3 = vpack.c.bf16 %v5730_v50, %v5728_v1  ;;  %v4037_v17 = vmul.f32 1.442695, %v4029_v22  ;;  %v3776_v53 = vsel %vm1335_vm7, %v5730_v50, 0.0 }
0x10b0   : > { %3777 = vadd.xlane.f32.xlu2 %v3776_v53 }
0x10b1   : > { %5731 = vpow2.f32 %v4037_v17  ;;  %5254 = vmatmul.msk.bf16.vlgmr.msra.gmra.mxu1 %vm1335_vm7, %v3805_v3 }
0x10b4   : > { %v4010_v33 = vpop.xlane.xlu0 %4009 }
0x10b5   : > { %v4030_v63 = vsub.f32 %v7550_v31, %v4010_v33 }
0x10b7   : > { %v5732_v58 = vpop.eup %5731  ;;  %v4039_v14 = vmul.f32 1.442695, %v4030_v63 }
0x10b8   : > { %v4053_v57 = vsel %vm1335_vm7, %v5732_v58, 0.0 }
0x10b9   : > { %5733 = vpow2.f32 %v4039_v14  ;;  %4054 = vadd.xlane.f32.xlu0 %v4053_v57  ;;  %v3526_v14 = vpop.f32.mrf.mxu1 }
0x10bc   : > { %v3733_v19 = vpop.xlane.xlu0 %3732 }
0x10bd   : > { %v3751_v0 = vsub.f32 %v7559_v42, %v3733_v19 }
0x10bf   : > { %v5734_v45 = vpop.eup %5733  ;;  %v3761_v47 = vmul.f32 1.442695, %v3751_v0 }
0x10c0   : > { %v4056_v5 = vsel %vm1335_vm7, %v5734_v45, 0.0  ;;  %v4085_v31 = vpack.c.bf16 %v5734_v45, %v5732_v58 }
0x10c1   : > { %5735 = vpow2.f32 %v3761_v47  ;;  %4057 = vadd.xlane.f32.xlu1 %v4056_v5 }
0x10c4   : > { %v4016_v7 = vpop.xlane.xlu0 %4015  ;;  %v4090_v38 = vpop.permute.xlu1 %4089 }
0x10c5   : > { %v4032_v56 = vsub.f32 %v7566_v49, %v4016_v7  ;;  %4120 = vmatpush.bf16.msra.mxu2 %v4090_v38 }
0x10c7   : > { %v5736_v23 = vpop.eup %5735  ;;  %v4043_v4 = vmul.f32 1.442695, %v4032_v56  ;;  %v3528_v56 = vpop.f32.mrf.mxu1 }
0x10c8   : > { %5274 = vmatmul.msk.bf16.vlgmr.msra.gmra.mxu2 %vm1335_vm7, %v4085_v31  ;;  %v3779_v55 = vsel %vm1335_vm7, %v5736_v23, 0.0 }
0x10c9   : > { %5737 = vpow2.f32 %v4043_v4  ;;  %3780 = vadd.xlane.f32.xlu2 %v3779_v55 }
0x10cc   : > { %v4019_v42 = vpop.xlane.xlu0 %4018 }
0x10cd   : > { %v4033_v29 = vsub.f32 %v7575_v36, %v4019_v42  ;;  %v3558_v36 = vpack.c.bf16 %v5199_v9, %v5199_v9 }
0x10cf   : > { %v7672_v41 = vpop.eup %5737  ;;  %v4045_v10 = vmul.f32 1.442695, %v4033_v29  ;;  %v3572_v1 = vsel %vm1726_vm8, %v3558_v36, 0 }
0x10d0   : > { %v4062_v43 = vsel %vm1335_vm7, %v7672_v41, 0.0  ;;  %3581 = vmatpush.bf16.msrb.mxu0 %v3572_v1 }
0x10d1   : > { %5739 = vpow2.f32 %v4045_v10  ;;  %4063 = vadd.xlane.f32.xlu2 %v4062_v43 }
0x10d4   : > { %v4022_v49 = vpop.xlane.xlu0 %4021 }
0x10d5   : > { %v4034_v17 = vsub.f32 %v7582_v48, %v4022_v49 }
0x10d7   : > { %v7676_v13 = vpop.eup %5739 }
0x10d8   : > { %v4065_v6 = vsel %vm1335_vm7, %v7676_v13, 0.0 }
0x10d9   : > { %4066 = vadd.xlane.f32.xlu2 %v4065_v6 }
0x10dc   : > { %v3736_v46 = vpop.xlane.xlu2 %3735  ;;  %v3739_v27 = vpop.xlane.xlu0 %3738 }
0x10dd   : > { %v3752_v28 = vsub.f32 %v7592_v54, %v3736_v46  ;;  %v3753_v32 = vsub.f32 %v7594_v12, %v3739_v27  ;;  %v4047_v54 = vmul.f32 1.442695, %v4034_v17  ;;  %v3531_v46 = vpop.f32.mrf.mxu1 }
0x10df   : > { %v3763_v15 = vmul.f32 1.442695, %v3752_v28  ;;  %v3765_v22 = vmul.f32 1.442695, %v3753_v32 }
0x10e1   : > { %5741 = vpow2.f32 %v3763_v15 }
0x10e2   : > { %5743 = vpow2.f32 %v3765_v22 }
0x10e3   : > { %5745 = vpow2.f32 %v4047_v54 }
0x10e4   : > { %v4025_v50 = vpop.xlane.xlu0 %4024  ;;  %v3459_v19 = vpop.xlane.xlu2 %3458 }
0x10e5   : > { %v4035_v12 = vsub.f32 %v7603_v51, %v4025_v50  ;;  %5747 = vrcp.f32 %v3459_v19 }
0x10e7   : > { %v5742_v3 = vpop.eup %5741  ;;  %v4049_v47 = vmul.f32 1.442695, %v4035_v12 }
0x10e8   : > { %v3782_v53 = vsel %vm1335_vm7, %v5742_v3, 0.0  ;;  %v3806_v33 = vpack.c.bf16 %v5742_v3, %v5736_v23  ;;  %v5744_v58 = vpop.eup %5743  ;;  %v3533_v3 = vpop.f32.mrf.mxu1 }
0x10e9   : > { %3783 = vadd.xlane.f32.xlu0 %v3782_v53  ;;  %v3785_v48 = vsel %vm1335_vm7, %v5744_v58, 0.0  ;;  %v5746_v7 = vpop.eup %5745 }
0x10ea   : > { %5255 = vmatmul.msk.bf16.gmra.mxu1 %vm1335_vm7, %v3806_v33  ;;  %v4068_v51 = vsel %vm1335_vm7, %v5746_v7, 0.0  ;;  %v4087_v54 = vpack.c.bf16 %v5746_v7, %v7676_v13  ;;  %v5201_v7 = vld [vmem:[%s8260_s10 + $0x38] sm:$0xff] }
0x10eb   : > { %v5748_v23 = vpop.eup %5747 }
0x10ec   : > { %v3745_v63 = vpop.xlane.xlu0 %3744  ;;  %v3546_v43 = vmul.f32 %v5748_v23, %v3526_v14  ;;  %v3468_v53 = vpop.xlane.xlu2 %3467 }
0x10ed   : > { %v3755_v4 = vsub.f32 %v7615_v16, %v3745_v63 }
0x10ef   : > { %v4013_v57 = vpop.xlane.xlu1 %4012 }
0x10f0   : > { %v4031_v0 = vsub.f32 %v7617_v24, %v4013_v57  ;;  %v3536_v19 = vpop.f32.mrf.mxu1 }
0x10f1   : > { %3786 = vadd.xlane.f32.xlu0 %v3785_v48 }
0x10f2   : > { %v4041_v45 = vmul.f32 1.442695, %v4031_v0 }
0x10f4   : > { %5749 = vpow2.f32 %v4041_v45  ;;  %v3462_v5 = vpop.xlane.xlu0 %3461 }
0x10f5   : > { %5751 = vrcp.f32 %v3462_v5  ;;  %v5200_v5 = vld [vmem:[%s8260_s10 + $0x30] sm:$0xff] }
0x10f6   : > { %5753 = vpow2.f32 %v4049_v47 }
0x10f7   : > { %v3742_v38 = vpop.xlane.xlu1 %3741 }
0x10f8   : > { %v3754_v31 = vsub.f32 %v7628_v30, %v3742_v38  ;;  %v3769_v30 = vmul.f32 1.442695, %v3755_v4  ;;  %v3874_v38 = vpack.c.bf16 %v5200_v5, %v5200_v5  ;;  %v3538_v4 = vpop.f32.mrf.mxu1 }
0x10f9   : > { %4069 = vadd.xlane.f32.xlu0 %v4068_v51 }
0x10fa   : > { %v5750_v24 = vpop.eup %5749  ;;  %v3767_v55 = vmul.f32 1.442695, %v3754_v31  ;;  %v3888_v23 = vsel %vm1726_vm8, %v3874_v38, 0 }
0x10fb   : > { %v5752_v42 = vpop.eup %5751  ;;  %v4059_v29 = vsel %vm1335_vm7, %v5750_v24, 0.0  ;;  %v4086_v10 = vpack.c.bf16 %v7672_v41, %v5750_v24  ;;  %3897 = vmatpush.bf16.msra.mxu0 %v3888_v23 }
0x10fc   : > { %v3547_v49 = vmul.f32 %v5752_v42, %v3528_v56  ;;  %5755 = vpow2.f32 %v3767_v55  ;;  %4060 = vadd.xlane.f32.xlu1 %v4059_v29  ;;  %v5754_v6 = vpop.eup %5753  ;;  %v4154_v56 = vpack.c.bf16 %v5201_v7, %v5201_v7  ;;  %v3471_v31 = vpop.xlane.xlu0 %3470 }
0x10fd   : > { %5275 = vmatmul.msk.bf16.gmra.mxu2 %vm1335_vm7, %v4086_v10  ;;  %v4071_v16 = vsel %vm1335_vm7, %v5754_v6, 0.0  ;;  %5757 = vpow2.f32 %v3769_v30 }
0x10fe   : > { %v3554_v9 = vpack.c.bf16 %v3547_v49, %v3546_v43  ;;  %v4168_v24 = vsel %vm1726_vm8, %v4154_v56, 0 }
0x10ff   : > { %v4028_v36 = vpop.xlane.xlu1 %4027  ;;  %4177 = vmatpush.bf16.msrb.mxu1 %v4168_v24 }
0x1100   : > { %5234 = vmatmul.msk.bf16.vlgmr.msrb.gmra.mxu0 %vm1281_vm6, %v3554_v9  ;;  %v4036_v41 = vsub.f32 %v7639_v62, %v4028_v36  ;;  %v3541_v10 = vpop.f32.mrf.mxu1  ;;  %v3477_v9 = vpop.xlane.xlu2 %3476 }
0x1101   : > { %4072 = vadd.xlane.f32.xlu0 %v4071_v16 }
0x1102   : > { %v5756_v27 = vpop.eup %5755  ;;  %v4051_v15 = vmul.f32 1.442695, %v4036_v41 }
0x1103   : > { %v3788_v28 = vsel %vm1335_vm7, %v5756_v27, 0.0  ;;  %v3807_v1 = vpack.c.bf16 %v5756_v27, %v5744_v58  ;;  %v5758_v22 = vpop.eup %5757 }
0x1104   : > { %3789 = vadd.xlane.f32.xlu1 %v3788_v28  ;;  %5759 = vpow2.f32 %v4051_v15  ;;  %v3791_v33 = vsel %vm1335_vm7, %v5758_v22, 0.0  ;;  %v3480_v49 = vpop.xlane.xlu0 %3479 }
0x1105   : > { %5256 = vmatmul.msk.bf16.gmra.mxu1 %vm1335_vm7, %v3807_v1 }
0x1107   : > { %v3748_v32 = vpop.xlane.xlu1 %3747 }
0x1108   : > { %v3756_v50 = vsub.f32 %v7648_v34, %v3748_v32 }
0x110a   : > { %v3771_v17 = vmul.f32 1.442695, %v3756_v50  ;;  %v5760_v63 = vpop.eup %5759 }
0x110b   : > { %v4074_v14 = vsel %vm1335_vm7, %v5760_v63, 0.0  ;;  %v4088_v51 = vpack.c.bf16 %v5760_v63, %v5754_v6  ;;  %v3543_v6 = vpop.f32.mrf.mxu1 }
0x110c   : > { %5761 = vpow2.f32 %v3771_v17  ;;  %3792 = vadd.xlane.f32.xlu1 %v3791_v33 }
0x110d   : > { %5276 = vmatmul.msk.bf16.gmra.mxu2 %vm1335_vm7, %v4087_v54  ;;  %5763 = vrcp.f32 %v3468_v53 }
0x110f   : > { %v3465_v62 = vpop.xlane.xlu1 %3464 }
0x1110   : > { %5765 = vrcp.f32 %v3465_v62 }
0x1112   : > { %v5762_v58 = vpop.eup %5761 }
0x1113   : > { %v3794_v34 = vsel %vm1335_vm7, %v5762_v58, 0.0  ;;  %v3808_v12 = vpack.c.bf16 %v5762_v58, %v5758_v22  ;;  %v5764_v57 = vpop.eup %5763 }
0x1114   : > { %4075 = vadd.xlane.f32.xlu1 %v4074_v14  ;;  %3795 = vadd.xlane.f32.xlu2 %v3794_v34  ;;  %v3549_v0 = vmul.f32 %v5764_v57, %v3533_v3 }
0x1115   : > { %5257 = vmatmul.msk.bf16.gmra.mxu1 %vm1335_vm7, %v3808_v12 }
0x1116   : > { %v5766_v13 = vpop.eup %5765 }
0x1117   : > { %v3548_v48 = vmul.f32 %v5766_v13, %v3531_v46  ;;  %v3474_v45 = vpop.xlane.xlu1 %3473 }
0x1118   : > { %5767 = vrcp.f32 %v3474_v45 }
0x1119   : > { %v3555_v47 = vpack.c.bf16 %v3549_v0, %v3548_v48  ;;  %5769 = vrcp.f32 %v3471_v31 }
0x111a   : > { %5771 = vrcp.f32 %v3480_v49 }
0x111b   : > { %5235 = vmatmul.msk.bf16.gmra.mxu0 %vm1281_vm6, %v3555_v47  ;;  %5773 = vrcp.f32 %v3477_v9 }
0x111d   : > { %5277 = vmatmul.msk.bf16.gmra.mxu2 %vm1335_vm7, %v4088_v51 }
0x111e   : > { %v5768_v55 = vpop.eup %5767 }
0x111f   : > { %v5770_v42 = vpop.eup %5769  ;;  %v3551_v29 = vmul.f32 %v5768_v55, %v3538_v4  ;;  %v3775_v15 = vpop.xlane.xlu1 %3774 }
0x1120   : > { %v3550_v43 = vmul.f32 %v5770_v42, %v3536_v19  ;;  %v5772_v36 = vpop.eup %5771 }
0x1121   : > { %v5774_v46 = vpop.eup %5773  ;;  %v3553_v16 = vmul.f32 %v5772_v36, %v3543_v6 }
0x1122   : > { %v3556_v30 = vpack.c.bf16 %v3551_v29, %v3550_v43  ;;  %v3552_v27 = vmul.f32 %v5774_v46, %v3541_v10 }
0x1123   : > { %v3778_v1 = vpop.xlane.xlu2 %3777 }
0x1124   : > { %v3557_v28 = vpack.c.bf16 %v3553_v16, %v3552_v27  ;;  %5775 = vrcp.f32 %v3778_v1 }
0x1125   : > { %5777 = vrcp.f32 %v3775_v15 }
0x112a   : > { %v5776_v22 = vpop.eup %5775 }
0x112b   : > { %5236 = vmatmul.msk.bf16.gmra.mxu0 %vm1281_vm6, %v3556_v30  ;;  %v5778_v3 = vpop.eup %5777 }
0x112c   : > { %v4055_v53 = vpop.xlane.xlu0 %4054 }
0x112d   : > { %5779 = vrcp.f32 %v4055_v53 }
0x112e   : > { %v3842_v41 = vpop.f32.mrf.mxu1 }
0x112f   : > { %v3862_v17 = vmul.f32 %v5778_v3, %v3842_v41 }
0x1133   : > { %v5780_v63 = vpop.eup %5779 }
0x1134   : > { %v4058_v54 = vpop.xlane.xlu1 %4057 }
0x1135   : > { %5781 = vrcp.f32 %v4058_v54 }
0x1136   : > { %v3844_v32 = vpop.f32.mrf.mxu1 }
0x1137   : > { %v3863_v50 = vmul.f32 %v5776_v22, %v3844_v32 }
0x1139   : > { %v3870_v33 = vpack.c.bf16 %v3863_v50, %v3862_v17 }
0x113b   : > { %5237 = vmatmul.msk.bf16.gmra.mxu0 %vm1281_vm6, %v3557_v28  ;;  %v5782_v58 = vpop.eup %5781 }
0x113c   : > { %v3781_v19 = vpop.xlane.xlu2 %3780 }
0x113d   : > { %5783 = vrcp.f32 %v3781_v19 }
0x1143   : > { %v5784_v48 = vpop.eup %5783 }
0x1144   : > { %v4064_v31 = vpop.xlane.xlu2 %4063 }
0x114b   : > { %5258 = vmatmul.msk.bf16.vlgmr.msra.gmra.mxu0 %vm1281_vm6, %v3870_v33  ;;  %v4122_v62 = vpop.f32.mrf.mxu2 }
0x114c   : > { %v4142_v34 = vmul.f32 %v5780_v63, %v4122_v62  ;;  %v4067_v49 = vpop.xlane.xlu2 %4066 }
0x1153   : > { %v4124_v14 = vpop.f32.mrf.mxu2 }
0x1154   : > { %v4143_v12 = vmul.f32 %v5782_v58, %v4124_v14 }
0x1156   : > { %v4150_v57 = vpack.c.bf16 %v4143_v12, %v4142_v34 }
0x1158   : > { %5278 = vmatmul.msk.bf16.vlgmr.msrb.gmra.mxu1 %vm1281_vm6, %v4150_v57 }
0x115c   : > { %v3784_v13 = vpop.xlane.xlu0 %3783 }
0x115d   : > { %5785 = vrcp.f32 %v3784_v13 }
0x115e   : > { %5787 = vrcp.f32 %v4064_v31 }
0x1163   : > { %v5786_v45 = vpop.eup %5785 }
0x1164   : > { %v3787_v51 = vpop.xlane.xlu0 %3786  ;;  %v5788_v42 = vpop.eup %5787 }
0x1167   : > { %v3847_v0 = vpop.f32.mrf.mxu1 }
0x1168   : > { %v3864_v5 = vmul.f32 %v5784_v48, %v3847_v0 }
0x116c   : > { %v4070_v28 = vpop.xlane.xlu0 %4069 }
0x116f   : > { %v3849_v47 = vpop.f32.mrf.mxu1  ;;  %v4061_v56 = vpop.xlane.xlu1 %4060 }
0x1170   : > { %v3865_v7 = vmul.f32 %v5786_v45, %v3849_v47  ;;  %5789 = vrcp.f32 %v4061_v56 }
0x1171   : > { %5791 = vrcp.f32 %v3787_v51 }
0x1172   : > { %v3871_v38 = vpack.c.bf16 %v3865_v7, %v3864_v5 }
0x1174   : > { %5259 = vmatmul.msk.bf16.gmra.mxu0 %vm1281_vm6, %v3871_v38  ;;  %v4073_v13 = vpop.xlane.xlu0 %4072 }
0x1176   : > { %v5790_v29 = vpop.eup %5789 }
0x1177   : > { %v3790_v24 = vpop.xlane.xlu1 %3789  ;;  %v5792_v43 = vpop.eup %5791 }
0x1178   : > { %5793 = vrcp.f32 %v3790_v24 }
0x1179   : > { %5795 = vrcp.f32 %v4067_v49 }
0x117a   : > { %5797 = vrcp.f32 %v4070_v28 }
0x117d   : > { %v3583_v55 = vpop.f32.mrf.mxu0 }
0x117e   : > { %v5794_v6 = vpop.eup %5793 }
0x117f   : > { %v3793_v1 = vpop.xlane.xlu1 %3792  ;;  %v5796_v3 = vpop.eup %5795 }
0x1180   : > { %v4127_v23 = vpop.f32.mrf.mxu2  ;;  %5799 = vrcp.f32 %v3793_v1  ;;  %v5798_v17 = vpop.eup %5797 }
0x1181   : > { %v4144_v30 = vmul.f32 %v5790_v29, %v4127_v23  ;;  %v3628_v29 = vadd.f32 %v7484_v26, %v3583_v55 }
0x1182   : > { %v3852_v4 = vpop.f32.mrf.mxu1 }
0x1183   : > { %v3866_v46 = vmul.f32 %v5792_v43, %v3852_v4 }
0x1185   : > { %v3585_v15 = vpop.f32.mrf.mxu0 }
0x1186   : > { %v5800_v54 = vpop.eup %5799 }
0x1187   : > { %v3796_v22 = vpop.xlane.xlu2 %3795  ;;  %v4076_v0 = vpop.xlane.xlu1 %4075 }
0x1188   : > { %v4129_v10 = vpop.f32.mrf.mxu2  ;;  %5801 = vrcp.f32 %v3796_v22 }
0x1189   : > { %v4145_v9 = vmul.f32 %v5788_v42, %v4129_v10  ;;  %5803 = vrcp.f32 %v4073_v13 }
0x118a   : > { %v3854_v36 = vpop.f32.mrf.mxu1  ;;  %5805 = vrcp.f32 %v4076_v0 }
0x118b   : > { %v4151_v16 = vpack.c.bf16 %v4145_v9, %v4144_v30  ;;  %v3867_v27 = vmul.f32 %v5794_v6, %v3854_v36  ;;  %v7736_v30 = vld [vmem:[%s8189_s11 + $0x1] ss:$0 sm:$0xff]  ;;  %v3630_v36 = vadd.f32 %v7487_v25, %v3585_v15 }
0x118d   : > { %v3872_v41 = vpack.c.bf16 %v3867_v27, %v3866_v46  ;;  %5279 = vmatmul.msk.bf16.gmra.mxu1 %vm1281_vm6, %v4151_v16 }
0x118e   : > { %v5802_v58 = vpop.eup %5801 }
0x118f   : > { %5260 = vmatmul.msk.bf16.gmra.mxu0 %vm1281_vm6, %v3872_v41  ;;  %v5804_v47 = vpop.eup %5803 }
0x1190   : > { %v4132_v32 = vpop.f32.mrf.mxu2  ;;  %v5806_v5 = vpop.eup %5805 }
0x1191   : > { %v4146_v62 = vmul.f32 %v5796_v3, %v4132_v32 }
0x1192   : > { %v3857_v50 = vpop.f32.mrf.mxu1 }
0x1193   : > { %v3868_v34 = vmul.f32 %v5800_v54, %v3857_v50 }
0x1198   : > { %v3588_v53 = vpop.f32.mrf.mxu0  ;;  %v4134_v33 = vpop.f32.mrf.mxu2 }
0x1199   : > { %v4147_v63 = vmul.f32 %v5798_v17, %v4134_v33  ;;  %v3633_v1 = vadd.f32 %v7498_v11, %v3588_v53 }
0x119a   : > { %v3859_v14 = vpop.f32.mrf.mxu1 }
0x119b   : > { %v4152_v12 = vpack.c.bf16 %v4147_v63, %v4146_v62  ;;  %v3869_v57 = vmul.f32 %v5802_v58, %v3859_v14 }
0x119d   : > { %v3873_v19 = vpack.c.bf16 %v3869_v57, %v3868_v34  ;;  %5280 = vmatmul.msk.bf16.gmra.mxu1 %vm1281_vm6, %v4152_v12 }
0x119f   : > { %5261 = vmatmul.msk.bf16.gmra.mxu0 %vm1281_vm6, %v3873_v19 }
0x11a0   : > { %v3590_v48 = vpop.f32.mrf.mxu0  ;;  %v4137_v45 = vpop.f32.mrf.mxu2 }
0x11a1   : > { %v4148_v56 = vmul.f32 %v5804_v47, %v4137_v45  ;;  %v3635_v17 = vadd.f32 %v7502_v18, %v3590_v48 }
0x11a8   : > { %v3593_v7 = vpop.f32.mrf.mxu0  ;;  %v4139_v38 = vpop.f32.mrf.mxu2 }
0x11a9   : > { %v4149_v31 = vmul.f32 %v5806_v5, %v4139_v38  ;;  %v3638_v53 = vadd.f32 %v7509_v20, %v3593_v7 }
0x11ab   : > { %v4153_v51 = vpack.c.bf16 %v4149_v31, %v4148_v56 }
0x11ad   : > { %5281 = vmatmul.msk.bf16.gmra.mxu1 %vm1281_vm6, %v4153_v51 }
0x11b0   : > { %v3595_v23 = vpop.f32.mrf.mxu0 }
0x11b1   : > { %v3640_v13 = vadd.f32 %v7512_v2, %v3595_v23 }
0x11b8   : > { %v3598_v24 = vpop.f32.mrf.mxu0 }
0x11b9   : > { %v3643_v7 = vadd.f32 %v7520_v21, %v3598_v24 }
0x11c0   : > { %v7730_v4 = vpop.f32.mrf.mxu0 }
0x11c1   : > { %v3645_v24 = vadd.f32 %v7536_v40, %v7730_v4 }
0x11c8   : > { %v3899_v42 = vpop.f32.mrf.mxu0 }
0x11c9   : > { %v3919_v10 = vadd.f32 %v3899_v42, %v3628_v29 }
0x11d0   : > { %v3901_v6 = vpop.f32.mrf.mxu0 }
0x11d1   : > { %v3920_v16 = vadd.f32 %v3901_v6, %v3630_v36 }
0x11d5   : > { %v4179_v43 = vpop.f32.mrf.mxu1 }
0x11d6   : > { %v4199_v49 = vadd.f32 %v4179_v43, %v3919_v10 }
0x11d8   : > { %v4207_v9 = vadd.f32 %v4199_v49, %v7080_v39 }
0x11da   : > { %v7741_v46 = vadd.f32 %v7736_v30, %v4207_v9 }
0x11dc   : > { %v4232_v26 = vsel %vm782_vm1, %v7741_v46, 0.0 }
0x11dd   : > { %4233 = vadd.xlane.f32.xlu2 %v4232_v26  ;;  %v4181_v55 = vpop.f32.mrf.mxu1 }
0x11de   : > { %v4200_v27 = vadd.f32 %v4181_v55, %v3920_v16 }
0x11e0   : > { %v4208_v41 = vadd.f32 %v4200_v27, %v7085_v52 }
0x11e2   : > { %v7747_v28 = vadd.f32 %v7736_v30, %v4208_v41 }
0x11e4   : > { %v4235_v39 = vsel %vm782_vm1, %v7747_v28, 0.0 }
0x11e5   : > { %4236 = vadd.xlane.f32.xlu0 %v4235_v39 }
0x11f1   : > { %v3904_v25 = vpop.f32.mrf.mxu0 }
0x11f2   : > { %v3921_v15 = vadd.f32 %v3904_v25, %v3633_v1 }
0x11f9   : > { %v3906_v32 = vpop.f32.mrf.mxu0 }
0x11fa   : > { %v3922_v33 = vadd.f32 %v3906_v32, %v3635_v17 }
0x120a   : > { %v4184_v22 = vpop.f32.mrf.mxu1 }
0x120b   : > { %v4201_v50 = vadd.f32 %v4184_v22, %v3921_v15 }
0x120c   : > { %v3909_v62 = vpop.f32.mrf.mxu0 }
0x120d   : > { %v4209_v3 = vadd.f32 %v4201_v50, %v7090_v61  ;;  %v3923_v61 = vadd.f32 %v3909_v62, %v3638_v53 }
0x120f   : > { %v7755_v52 = vadd.f32 %v7736_v30, %v4209_v3 }
0x1211   : > { %v4238_v54 = vsel %vm782_vm1, %v7755_v52, 0.0 }
0x1212   : > { %4239 = vadd.xlane.f32.xlu1 %v4238_v54  ;;  %v4186_v63 = vpop.f32.mrf.mxu1 }
0x1213   : > { %v4202_v58 = vadd.f32 %v4186_v63, %v3922_v33 }
0x1214   : > { %v3911_v57 = vpop.f32.mrf.mxu0 }
0x1215   : > { %v4210_v11 = vadd.f32 %v4202_v58, %v7095_v59  ;;  %v3924_v59 = vadd.f32 %v3911_v57, %v3640_v13 }
0x1217   : > { %v7762_v14 = vadd.f32 %v7736_v30, %v4210_v11 }
0x1219   : > { %v4241_v18 = vsel %vm782_vm1, %v7762_v14, 0.0 }
0x121a   : > { %4242 = vadd.xlane.f32.xlu2 %v4241_v18  ;;  %v4189_v34 = vpop.f32.mrf.mxu1 }
0x121b   : > { %v4203_v12 = vadd.f32 %v4189_v34, %v3923_v61 }
0x121c   : > { %v3914_v5 = vpop.f32.mrf.mxu0 }
0x121d   : > { %v4211_v19 = vadd.f32 %v4203_v12, %v7100_v60  ;;  %v3925_v60 = vadd.f32 %v3914_v5, %v3643_v7 }
0x121f   : > { %v7769_v0 = vadd.f32 %v7736_v30, %v4211_v19 }
0x1221   : > { %v4244_v20 = vsel %vm782_vm1, %v7769_v0, 0.0 }
0x1222   : > { %v4191_v48 = vpop.f32.mrf.mxu1  ;;  %4245 = vadd.xlane.f32.xlu0 %v4244_v20 }
0x1223   : > { %v4204_v45 = vadd.f32 %v4191_v48, %v3924_v59  ;;  %v5385_v59 = vld [vmem:[%s8192_s14 + $0x18] sm:$0xff] }
0x1224   : > { %v3916_v21 = vpop.f32.mrf.mxu0  ;;  %4474 = vmatpush.bf16.msrb.mxu0 %v5385_v59 }
0x1225   : > { %v4212_v47 = vadd.f32 %v4204_v45, %v7105_v44  ;;  %v3926_v10 = vadd.f32 %v3916_v21, %v3645_v24 }
0x1227   : > { %v7776_v38 = vadd.f32 %v7736_v30, %v4212_v47  ;;  %v5384_v47 = vld [vmem:[%s8192_s14 + $0x10] sm:$0xff] }
0x1228   : > { %4475 = vmatpush.bf16.msrb.mxu0 %v5384_v47 }
0x1229   : > { %v4247_v2 = vsel %vm782_vm1, %v7776_v38, 0.0 }
0x122a   : > { %4248 = vadd.xlane.f32.xlu1 %v4247_v2  ;;  %v4194_v56 = vpop.f32.mrf.mxu1 }
0x122b   : > { %v4205_v31 = vadd.f32 %v4194_v56, %v3925_v60 }
0x122d   : > { %v4213_v51 = vadd.f32 %v4205_v31, %v7114_v8 }
0x122f   : > { %v7782_v23 = vadd.f32 %v7736_v30, %v4213_v51 }
0x1231   : > { %v4250_v44 = vsel %vm782_vm1, %v7782_v23, 0.0 }
0x1232   : > { %4251 = vadd.xlane.f32.xlu1 %v4250_v44  ;;  %v4196_v42 = vpop.f32.mrf.mxu1 }
0x1233   : > { %v4206_v49 = vadd.f32 %v4196_v42, %v3926_v10 }
0x1235   : > { %v4214_v6 = vadd.f32 %v4206_v49, %v7126_v37 }
0x1237   : > { %v7798_v4 = vadd.f32 %v7736_v30, %v4214_v6 }
0x1239   : > { %v4253_v37 = vsel %vm782_vm1, %v7798_v4, 0.0 }
0x1250   : > { %v4234_v29 = vpop.xlane.xlu2 %4233 }
0x1251   : > { %v4256_v43 = vmul.f32 %v4234_v29, %v6121_v35 }
0x1253   : > { %v7790_v9 = vsub.f32 %v7741_v46, %v4256_v43 }
0x1255   : > { %v4272_v8 = vmul.f32 %v7790_v9, %v7790_v9 }
0x1257   : > { %v4280_v36 = vsel %vm782_vm1, %v4272_v8, 0.0 }
0x1258   : > { %v4237_v16 = vpop.xlane.xlu0 %4236  ;;  %4281 = vadd.xlane.f32.xlu2 %v4280_v36 }
0x1259   : > { %v4257_v40 = vmul.f32 %v4237_v16, %v6121_v35 }
0x125b   : > { %v7801_v26 = vsub.f32 %v7747_v28, %v4257_v40 }
0x125d   : > { %v4273_v55 = vmul.f32 %v7801_v26, %v7801_v26 }
0x125f   : > { %v4283_v27 = vsel %vm782_vm1, %v4273_v55, 0.0  ;;  %v7861_v55 = vld [vmem:[%s8190_s12 + $0x1] ss:$0 sm:$0xff] }
0x1260   : > { %4284 = vadd.xlane.f32.xlu0 %v4283_v27  ;;  %4254 = vadd.xlane.f32.xlu2 %v4253_v37 }
0x1285   : > { %v4240_v41 = vpop.xlane.xlu1 %4239 }
0x1286   : > { %v4258_v39 = vmul.f32 %v4240_v41, %v6121_v35 }
0x1288   : > { %v7810_v25 = vsub.f32 %v7755_v52, %v4258_v39  ;;  %v7867_v39 = vld [vmem:[%s8191_s13 + $0x1] ss:$0 sm:$0xff] }
0x128a   : > { %v4274_v30 = vmul.f32 %v7810_v25, %v7810_v25 }
0x128c   : > { %v4286_v1 = vsel %vm782_vm1, %v4274_v30, 0.0 }
0x128d   : > { %v4243_v15 = vpop.xlane.xlu2 %4242  ;;  %4287 = vadd.xlane.f32.xlu0 %v4286_v1 }
0x128e   : > { %v4259_v32 = vmul.f32 %v4243_v15, %v6121_v35 }
0x1290   : > { %v7817_v22 = vsub.f32 %v7762_v14, %v4259_v32 }
0x1292   : > { %v4275_v50 = vmul.f32 %v7817_v22, %v7817_v22 }
0x1294   : > { %v4289_v3 = vsel %vm782_vm1, %v4275_v50, 0.0 }
0x1295   : > { %v4246_v17 = vpop.xlane.xlu0 %4245  ;;  %4290 = vadd.xlane.f32.xlu1 %v4289_v3 }
0x1296   : > { %v4260_v33 = vmul.f32 %v4246_v17, %v6121_v35 }
0x1298   : > { %v7824_v54 = vsub.f32 %v7769_v0, %v4260_v33 }
0x129a   : > { %v4276_v62 = vmul.f32 %v7824_v54, %v7824_v54 }
0x129c   : > { %v4292_v63 = vsel %vm782_vm1, %v4276_v62, 0.0 }
0x129d   : > { %4293 = vadd.xlane.f32.xlu2 %v4292_v63  ;;  %v4249_v58 = vpop.xlane.xlu1 %4248 }
0x129e   : > { %v4261_v11 = vmul.f32 %v4249_v58, %v6121_v35 }
0x12a0   : > { %v7831_v53 = vsub.f32 %v7776_v38, %v4261_v11 }
0x12a2   : > { %v4277_v61 = vmul.f32 %v7831_v53, %v7831_v53 }
0x12a4   : > { %v4295_v18 = vsel %vm782_vm1, %v4277_v61, 0.0 }
0x12a5   : > { %4296 = vadd.xlane.f32.xlu0 %v4295_v18  ;;  %v4252_v34 = vpop.xlane.xlu1 %4251 }
0x12a6   : > { %v4262_v12 = vmul.f32 %v4252_v34, %v6121_v35 }
0x12a8   : > { %v7838_v57 = vsub.f32 %v7782_v23, %v4262_v12 }
0x12aa   : > { %v4278_v19 = vmul.f32 %v7838_v57, %v7838_v57 }
0x12ac   : > { %v4298_v13 = vsel %vm782_vm1, %v4278_v19, 0.0 }
0x12ad   : > { %4299 = vadd.xlane.f32.xlu1 %v4298_v13 }
0x12cb   : > { %v4282_v20 = vpop.xlane.xlu2 %4281 }
0x12cc   : > { %v4304_v48 = vmul.f32 %v4282_v20, %v6121_v35 }
0x12ce   : > { %v4312_v45 = vadd.f32 1e-05, %v4304_v48 }
0x12d0   : > { %5807 = vrsqrt.f32 %v4312_v45  ;;  %vm4326_vm7 = vweird.f32 %v4312_v45 }
0x12d3   : > { %v4285_v5 = vpop.xlane.xlu0 %4284  ;;  %v4255_v7 = vpop.xlane.xlu2 %4254 }
0x12d4   : > { %v4305_v60 = vmul.f32 %v4285_v5, %v6121_v35  ;;  %v4263_v2 = vmul.f32 %v4255_v7, %v6121_v35 }
0x12d6   : > { %v5808_v56 = vpop.eup %5807  ;;  %v4313_v31 = vadd.f32 1e-05, %v4305_v60  ;;  %v7853_v51 = vsub.f32 %v7798_v4, %v4263_v2 }
0x12d7   : > { %v4321_v44 = vmul.f32 %v5808_v56, %v4312_v45  ;;  %vm4327_vm6 = vweird.f32 %v5808_v56 }
0x12d8   : > { %5809 = vrsqrt.f32 %v4313_v31  ;;  %v4279_v21 = vmul.f32 %v7853_v51, %v7853_v51  ;;  %vm4328_vm8 = vmor %vm4326_vm7, %vm4327_vm6  ;;  %vm4336_vm10 = vweird.f32 %v4313_v31 }
0x12d9   : > { %v4322_v24 = vmul.f32 %v5808_v56, %v4321_v44 }
0x12da   : > { %v4301_v42 = vsel %vm782_vm1, %v4279_v21, 0.0 }
0x12db   : > { %v4323_v29 = vmul.f32 0.5, %v4322_v24  ;;  %4302 = vadd.xlane.f32.xlu2 %v4301_v42 }
0x12dd   : > { %v4324_v10 = vsub.f32 1.5, %v4323_v29 }
0x12de   : > { %v5810_v43 = vpop.eup %5809 }
0x12df   : > { %v4325_v49 = vmul.f32 %v5808_v56, %v4324_v10  ;;  %v4331_v8 = vmul.f32 %v5810_v43, %v4313_v31  ;;  %vm4337_vm9 = vweird.f32 %v5810_v43 }
0x12e0   : > { %vm4338_vm11 = vmor %vm4336_vm10, %vm4337_vm9 }
0x12e1   : > { %v4332_v6 = vmul.f32 %v5810_v43, %v4331_v8  ;;  %v4329_v36 = vsel %vm4328_vm8, %v5808_v56, %v4325_v49 }
0x12e2   : > { %v4400_v27 = vmul.f32 %v4329_v36, %v7790_v9 }
0x12e3   : > { %v4333_v16 = vmul.f32 0.5, %v4332_v6 }
0x12e4   : > { %v4411_v30 = vmul.f32 %v7861_v55, %v4400_v27 }
0x12e5   : > { %v4334_v40 = vsub.f32 1.5, %v4333_v16 }
0x12e6   : > { %v4422_v32 = vadd.f32 %v7867_v39, %v4411_v30 }
0x12e7   : > { %v4335_v37 = vmul.f32 %v5810_v43, %v4334_v40 }
0x12e9   : > { %v4339_v41 = vsel %vm4338_vm11, %v5810_v43, %v4335_v37 }
0x12ea   : > { %v4401_v1 = vmul.f32 %v4339_v41, %v7801_v26 }
0x12ec   : > { %v4412_v15 = vmul.f32 %v7861_v55, %v4401_v1 }
0x12ee   : > { %v4423_v50 = vadd.f32 %v7867_v39, %v4412_v15 }
0x12f0   : > { %v4430_v9 = vpack.c.bf16 %v4423_v50, %v4422_v32 }
0x12f2   : > { %5298 = vmatmul.msk.bf16.vlgmr.msrb.gmra.mxu0 %vm782_vm1, %v4430_v9 }
0x1300   : > { %v4288_v3 = vpop.xlane.xlu0 %4287 }
0x1301   : > { %v4306_v17 = vmul.f32 %v4288_v3, %v6121_v35 }
0x1303   : > { %v4314_v33 = vadd.f32 1e-05, %v4306_v17 }
0x1305   : > { %5811 = vrsqrt.f32 %v4314_v33  ;;  %vm4346_vm13 = vweird.f32 %v4314_v33 }
0x1308   : > { %v4291_v62 = vpop.xlane.xlu1 %4290 }
0x1309   : > { %v4307_v63 = vmul.f32 %v4291_v62, %v6121_v35 }
0x130b   : > { %v5812_v58 = vpop.eup %5811  ;;  %v4315_v11 = vadd.f32 1e-05, %v4307_v63 }
0x130c   : > { %v4341_v26 = vmul.f32 %v5812_v58, %v4314_v33  ;;  %vm4347_vm12 = vweird.f32 %v5812_v58 }
0x130d   : > { %5813 = vrsqrt.f32 %v4315_v11  ;;  %vm4348_vm14 = vmor %vm4346_vm13, %vm4347_vm12  ;;  %vm4356_vm0 = vweird.f32 %v4315_v11 }
0x130e   : > { %v4342_v61 = vmul.f32 %v5812_v58, %v4341_v26 }
0x1310   : > { %v4343_v18 = vmul.f32 0.5, %v4342_v61  ;;  %v4294_v34 = vpop.xlane.xlu2 %4293 }
0x1311   : > { %v4308_v12 = vmul.f32 %v4294_v34, %v6121_v35 }
0x1312   : > { %v4344_v19 = vsub.f32 1.5, %v4343_v18 }
0x1313   : > { %v5814_v13 = vpop.eup %5813  ;;  %v4316_v59 = vadd.f32 1e-05, %v4308_v12 }
0x1314   : > { %v4345_v20 = vmul.f32 %v5812_v58, %v4344_v19  ;;  %v4351_v48 = vmul.f32 %v5814_v13, %v4315_v11  ;;  %vm4357_vm15 = vweird.f32 %v5814_v13  ;;  %v5393_v19 = vld [vmem:[%s8194_s16 + $0x78] sm:$0xff] }
0x1315   : > { %5815 = vrsqrt.f32 %v4316_v59  ;;  %vm4358_vm2 = vmor %vm4356_vm0, %vm4357_vm15  ;;  %vm4366_vm4 = vweird.f32 %v4316_v59  ;;  %4643 = vmatpush.bf16.msrb.mxu3 %v5393_v19 }
0x1316   : > { %v4352_v45 = vmul.f32 %v5814_v13, %v4351_v48  ;;  %v4349_v47 = vsel %vm4348_vm14, %v5812_v58, %v4345_v20 }
0x1317   : > { %v4402_v31 = vmul.f32 %v4349_v47, %v7810_v25 }
0x1318   : > { %v4353_v5 = vmul.f32 0.5, %v4352_v45  ;;  %v4297_v7 = vpop.xlane.xlu0 %4296  ;;  %v5391_v45 = vld [vmem:[%s8194_s16 + $0x68] sm:$0xff] }
0x1319   : > { %v4309_v60 = vmul.f32 %v4297_v7, %v6121_v35  ;;  %v4413_v43 = vmul.f32 %v7861_v55, %v4402_v31 }
0x131a   : > { %v4354_v2 = vsub.f32 1.5, %v4353_v5 }
0x131b   : > { %v5816_v56 = vpop.eup %5815  ;;  %v4317_v44 = vadd.f32 1e-05, %v4309_v60  ;;  %v4424_v16 = vadd.f32 %v7867_v39, %v4413_v43  ;;  %v5390_v60 = vld [vmem:[%s8194_s16 + $0x60] sm:$0xff]  ;;  %v5388_v43 = vld [vmem:[%s8194_s16 + $0x50] sm:$0xff] }
0x131c   : > { %v4355_v21 = vmul.f32 %v5814_v13, %v4354_v2  ;;  %v4361_v24 = vmul.f32 %v5816_v56, %v4316_v59  ;;  %vm4367_vm3 = vweird.f32 %v5816_v56  ;;  %v5392_v59 = vld [vmem:[%s8194_s16 + $0x70] sm:$0xff] }
0x131d   : > { %5817 = vrsqrt.f32 %v4317_v44  ;;  %vm4368_vm5 = vmor %vm4366_vm4, %vm4367_vm3  ;;  %vm4376_vm7 = vweird.f32 %v4317_v44  ;;  %4644 = vmatpush.bf16.msrb.mxu3 %v5392_v59 }
0x131e   : > { %v4359_v42 = vsel %vm4358_vm2, %v5814_v13, %v4355_v21  ;;  %v4362_v29 = vmul.f32 %v5816_v56, %v4361_v24  ;;  %v5389_v21 = vld [vmem:[%s8194_s16 + $0x58] sm:$0xff] }
0x131f   : > { %v4403_v10 = vmul.f32 %v4359_v42, %v7817_v22 }
0x1320   : > { %v4363_v49 = vmul.f32 0.5, %v4362_v29  ;;  %v4300_v58 = vpop.xlane.xlu1 %4299 }
0x1321   : > { %v4414_v8 = vmul.f32 %v7861_v55, %v4403_v10  ;;  %4645 = vmatpush.bf16.msrb.mxu3 %v5391_v45 }
0x1322   : > { %v4364_v6 = vsub.f32 1.5, %v4363_v49 }
0x1323   : > { %v5818_v36 = vpop.eup %5817  ;;  %v4425_v25 = vadd.f32 %v7867_v39, %v4414_v8 }
0x1324   : > { %v4365_v40 = vmul.f32 %v5816_v56, %v4364_v6  ;;  %v4371_v27 = vmul.f32 %v5818_v36, %v4317_v44  ;;  %vm4377_vm6 = vweird.f32 %v5818_v36  ;;  %v5387_v6 = vld [vmem:[%s8194_s16 + $0x48] sm:$0xff] }
0x1325   : > { %v4431_v37 = vpack.c.bf16 %v4425_v25, %v4424_v16  ;;  %vm4378_vm8 = vmor %vm4376_vm7, %vm4377_vm6  ;;  %4646 = vmatpush.bf16.msrb.mxu3 %v5390_v60  ;;  %v7928_v16 = vld [vmem:[%s8193_s15 + $0x1] ss:$0 sm:$0xff] }
0x1326   : > { %v4372_v41 = vmul.f32 %v5818_v36, %v4371_v27  ;;  %v4369_v22 = vsel %vm4368_vm5, %v5816_v56, %v4365_v40 }
0x1327   : > { %5299 = vmatmul.msk.bf16.gmra.mxu0 %vm782_vm1, %v4431_v37  ;;  %v4404_v15 = vmul.f32 %v4369_v22, %v7824_v54  ;;  %v4310_v54 = vmul.f32 %v4300_v58, %v6121_v35 }
0x1328   : > { %v4373_v30 = vmul.f32 0.5, %v4372_v41 }
0x1329   : > { %v4415_v3 = vmul.f32 %v7861_v55, %v4404_v15  ;;  %v4318_v11 = vadd.f32 1e-05, %v4310_v54  ;;  %4647 = vmatpush.bf16.msrb.mxu3 %v5389_v21 }
0x132a   : > { %v4374_v1 = vsub.f32 1.5, %v4373_v30 }
0x132b   : > { %v4426_v33 = vadd.f32 %v7867_v39, %v4415_v3  ;;  %5819 = vrsqrt.f32 %v4318_v11  ;;  %vm4386_vm10 = vweird.f32 %v4318_v11 }
0x132c   : > { %v4375_v32 = vmul.f32 %v5818_v36, %v4374_v1 }
0x132d   : > { %4648 = vmatpush.bf16.msrb.mxu3 %v5388_v43 }
0x132e   : > { %v4379_v50 = vsel %vm4378_vm8, %v5818_v36, %v4375_v32 }
0x132f   : > { %v4405_v9 = vmul.f32 %v4379_v50, %v7831_v53 }
0x1331   : > { %v4416_v17 = vmul.f32 %v7861_v55, %v4405_v9  ;;  %v5820_v26 = vpop.eup %5819  ;;  %4649 = vmatpush.bf16.msrb.mxu3 %v5387_v6 }
0x1332   : > { %v4381_v61 = vmul.f32 %v5820_v26, %v4318_v11  ;;  %vm4387_vm9 = vweird.f32 %v5820_v26 }
0x1333   : > { %v4427_v62 = vadd.f32 %v7867_v39, %v4416_v17  ;;  %vm4388_vm11 = vmor %vm4386_vm10, %vm4387_vm9 }
0x1334   : > { %v4382_v18 = vmul.f32 %v5820_v26, %v4381_v61 }
0x1335   : > { %v4432_v63 = vpack.c.bf16 %v4427_v62, %v4426_v33 }
0x1336   : > { %v4383_v13 = vmul.f32 0.5, %v4382_v18 }
0x1337   : > { %5300 = vmatmul.msk.bf16.gmra.mxu0 %vm782_vm1, %v4432_v63 }
0x1338   : > { %v4384_v20 = vsub.f32 1.5, %v4383_v13 }
0x133a   : > { %v4385_v47 = vmul.f32 %v5820_v26, %v4384_v20 }
0x133c   : > { %v4389_v2 = vsel %vm4388_vm11, %v5820_v26, %v4385_v47 }
0x133d   : > { %v4406_v44 = vmul.f32 %v4389_v2, %v7838_v57 }
0x133f   : > { %v4417_v10 = vmul.f32 %v7861_v55, %v4406_v44 }
0x1341   : > { %v4428_v57 = vadd.f32 %v7867_v39, %v4417_v10 }
0x134e   : > { %v4303_v53 = vpop.xlane.xlu2 %4302 }
0x134f   : > { %v4311_v34 = vmul.f32 %v4303_v53, %v6121_v35 }
0x1351   : > { %v4319_v12 = vadd.f32 1e-05, %v4311_v34 }
0x1353   : > { %5821 = vrsqrt.f32 %v4319_v12  ;;  %vm4396_vm13 = vweird.f32 %v4319_v12 }
0x1359   : > { %v5822_v48 = vpop.eup %5821 }
0x135a   : > { %v4391_v5 = vmul.f32 %v5822_v48, %v4319_v12  ;;  %vm4397_vm12 = vweird.f32 %v5822_v48 }
0x135b   : > { %vm4398_vm14 = vmor %vm4396_vm13, %vm4397_vm12 }
0x135c   : > { %v4392_v7 = vmul.f32 %v5822_v48, %v4391_v5 }
0x135e   : > { %v4393_v56 = vmul.f32 0.5, %v4392_v7 }
0x1360   : > { %v4394_v31 = vsub.f32 1.5, %v4393_v56 }
0x1362   : > { %v4395_v24 = vmul.f32 %v5822_v48, %v4394_v31 }
0x1364   : > { %v4399_v42 = vsel %vm4398_vm14, %v5822_v48, %v4395_v24 }
0x1365   : > { %v4407_v29 = vmul.f32 %v4399_v42, %v7853_v51  ;;  %v5386_v51 = vld [vmem:[%s8194_s16 + $0x40] sm:$0xff] }
0x1366   : > { %4650 = vmatpush.bf16.msrb.mxu3 %v5386_v51 }
0x1367   : > { %v4418_v49 = vmul.f32 %v7861_v55, %v4407_v29 }
0x1369   : > { %v4429_v8 = vadd.f32 %v7867_v39, %v4418_v49 }
0x136b   : > { %v4433_v36 = vpack.c.bf16 %v4429_v8, %v4428_v57 }
0x136d   : > { %5301 = vmatmul.msk.bf16.gmra.mxu0 %vm782_vm1, %v4433_v36 }
0x136f   : > { %v4477_v55 = vpop.f32.mrf.mxu0 }
0x1370   : > { %v4478_v39 = vadd.f32 %v7928_v16, %v4477_v55 }
0x1372   : > { %v4505_v25 = vmul.f32 0.044715, %v4478_v39  ;;  %v4497_v62 = vmul.f32 0.5, %v4478_v39 }
0x1374   : > { %v4513_v40 = vmul.f32 %v4505_v25, %v4478_v39 }
0x1376   : > { %v4521_v27 = vmul.f32 %v4513_v40, %v4478_v39 }
0x1377   : > { %v4479_v37 = vpop.f32.mrf.mxu0 }
0x1378   : > { %v4529_v41 = vadd.f32 %v4521_v27, %v4478_v39  ;;  %v4480_v22 = vadd.f32 %v7928_v16, %v4479_v37 }
0x137a   : > { %v4506_v30 = vmul.f32 0.044715, %v4480_v22  ;;  %v4537_v1 = vmul.f32 0.7978846, %v4529_v41  ;;  %v4498_v63 = vmul.f32 0.5, %v4480_v22 }
0x137c   : > { %v4514_v15 = vmul.f32 %v4506_v30, %v4480_v22  ;;  %5823 = vtanh.f32 %v4537_v1 }
0x137e   : > { %v4522_v32 = vmul.f32 %v4514_v15, %v4480_v22 }
0x1380   : > { %v4530_v50 = vadd.f32 %v4522_v32, %v4480_v22 }
0x1382   : > { %v4538_v9 = vmul.f32 0.7978846, %v4530_v50  ;;  %v5824_v3 = vpop.eup %5823 }
0x1383   : > { %v4553_v17 = vadd.f32 1.0, %v5824_v3 }
0x1384   : > { %5825 = vtanh.f32 %v4538_v9 }
0x1385   : > { %v4561_v54 = vmul.f32 %v4553_v17, %v4497_v62 }
0x138a   : > { %v5826_v33 = vpop.eup %5825 }
0x138b   : > { %v4554_v58 = vadd.f32 1.0, %v5826_v33 }
0x138d   : > { %v4562_v11 = vmul.f32 %v4554_v58, %v4498_v63 }
0x138f   : > { %v4569_v26 = vpack.c.bf16 %v4562_v11, %v4561_v54 }
0x1391   : > { %4651 = vmatmul.bf16.vlgmr.msrb.gmra.mxu3 %v4569_v26 }
0x13a4   : > { %v4482_v61 = vpop.f32.mrf.mxu0 }
0x13a5   : > { %v4483_v18 = vadd.f32 %v7928_v16, %v4482_v61 }
0x13a7   : > { %v4507_v53 = vmul.f32 0.044715, %v4483_v18  ;;  %v4499_v57 = vmul.f32 0.5, %v4483_v18 }
0x13a9   : > { %v4515_v34 = vmul.f32 %v4507_v53, %v4483_v18 }
0x13ab   : > { %v4523_v12 = vmul.f32 %v4515_v34, %v4483_v18 }
0x13ac   : > { %v4484_v19 = vpop.f32.mrf.mxu0 }
0x13ad   : > { %v4485_v13 = vadd.f32 %v7928_v16, %v4484_v19  ;;  %v4531_v59 = vadd.f32 %v4523_v12, %v4483_v18 }
0x13af   : > { %v4508_v20 = vmul.f32 0.044715, %v4485_v13  ;;  %v4539_v45 = vmul.f32 0.7978846, %v4531_v59  ;;  %v4500_v8 = vmul.f32 0.5, %v4485_v13 }
0x13b1   : > { %v4516_v48 = vmul.f32 %v4508_v20, %v4485_v13  ;;  %5827 = vtanh.f32 %v4539_v45 }
0x13b3   : > { %v4524_v47 = vmul.f32 %v4516_v48, %v4485_v13 }
0x13b4   : > { %v4487_v5 = vpop.f32.mrf.mxu0 }
0x13b5   : > { %v4488_v7 = vadd.f32 %v7928_v16, %v4487_v5  ;;  %v4532_v60 = vadd.f32 %v4524_v47, %v4485_v13 }
0x13b7   : > { %v4509_v2 = vmul.f32 0.044715, %v4488_v7  ;;  %v4540_v56 = vmul.f32 0.7978846, %v4532_v60  ;;  %v5828_v44 = vpop.eup %5827  ;;  %v4501_v1 = vmul.f32 0.5, %v4488_v7 }
0x13b8   : > { %v4555_v10 = vadd.f32 1.0, %v5828_v44 }
0x13b9   : > { %v4517_v31 = vmul.f32 %v4509_v2, %v4488_v7  ;;  %5829 = vtanh.f32 %v4540_v56 }
0x13ba   : > { %v4563_v55 = vmul.f32 %v4555_v10, %v4499_v57 }
0x13bb   : > { %v4525_v21 = vmul.f32 %v4517_v31, %v4488_v7 }
0x13bc   : > { %v4489_v24 = vpop.f32.mrf.mxu0 }
0x13bd   : > { %v4490_v42 = vadd.f32 %v7928_v16, %v4489_v24  ;;  %v4533_v29 = vadd.f32 %v4525_v21, %v4488_v7 }
0x13bf   : > { %v5830_v43 = vpop.eup %5829  ;;  %v4510_v49 = vmul.f32 0.044715, %v4490_v42  ;;  %v4541_v51 = vmul.f32 0.7978846, %v4533_v29  ;;  %v4502_v15 = vmul.f32 0.5, %v4490_v42 }
0x13c0   : > { %v4556_v6 = vadd.f32 1.0, %v5830_v43 }
0x13c1   : > { %v4518_v36 = vmul.f32 %v4510_v49, %v4490_v42  ;;  %5831 = vtanh.f32 %v4541_v51 }
0x13c2   : > { %v4564_v39 = vmul.f32 %v4556_v6, %v4500_v8 }
0x13c3   : > { %v4526_v25 = vmul.f32 %v4518_v36, %v4490_v42 }
0x13c4   : > { %v4570_v40 = vpack.c.bf16 %v4564_v39, %v4563_v55 }
0x13c5   : > { %v4534_v27 = vadd.f32 %v4526_v25, %v4490_v42 }
0x13c6   : > { %4656 = vmatmul.bf16.gmra.mxu3 %v4570_v40 }
0x13c7   : > { %v4542_v37 = vmul.f32 0.7978846, %v4534_v27  ;;  %v5832_v41 = vpop.eup %5831 }
0x13c8   : > { %v4557_v22 = vadd.f32 1.0, %v5832_v41 }
0x13c9   : > { %5833 = vtanh.f32 %v4542_v37 }
0x13ca   : > { %v4565_v50 = vmul.f32 %v4557_v22, %v4501_v1 }
0x13cf   : > { %v5834_v30 = vpop.eup %5833 }
0x13d0   : > { %v4558_v32 = vadd.f32 1.0, %v5834_v30 }
0x13d2   : > { %v4566_v9 = vmul.f32 %v4558_v32, %v4502_v15 }
0x13d4   : > { %v4571_v3 = vpack.c.bf16 %v4566_v9, %v4565_v50 }
0x13d6   : > { %4661 = vmatmul.bf16.gmra.mxu3 %v4571_v3 }
0x13ea   : > { %v4492_v17 = vpop.f32.mrf.mxu0 }
0x13eb   : > { %v4493_v33 = vadd.f32 %v7928_v16, %v4492_v17 }
0x13ed   : > { %v4511_v62 = vmul.f32 0.044715, %v4493_v33  ;;  %v4503_v48 = vmul.f32 0.5, %v4493_v33 }
0x13ef   : > { %v4519_v63 = vmul.f32 %v4511_v62, %v4493_v33 }
0x13f1   : > { %v4527_v58 = vmul.f32 %v4519_v63, %v4493_v33 }
0x13f2   : > { %v4494_v54 = vpop.f32.mrf.mxu0 }
0x13f3   : > { %v4495_v11 = vadd.f32 %v7928_v16, %v4494_v54  ;;  %v4535_v26 = vadd.f32 %v4527_v58, %v4493_v33  ;;  %v5466_v16 = vld [vmem:[%s8195_s17 + $0x1] ss:$0 sm:$0xff] }
0x13f5   : > { %v4512_v61 = vmul.f32 0.044715, %v4495_v11  ;;  %v4543_v53 = vmul.f32 0.7978846, %v4535_v26  ;;  %v4504_v45 = vmul.f32 0.5, %v4495_v11 }
0x13f7   : > { %v4520_v18 = vmul.f32 %v4512_v61, %v4495_v11  ;;  %5835 = vtanh.f32 %v4543_v53 }
0x13f9   : > { %v4528_v34 = vmul.f32 %v4520_v18, %v4495_v11 }
0x13fb   : > { %v4536_v12 = vadd.f32 %v4528_v34, %v4495_v11 }
0x13fd   : > { %v4544_v19 = vmul.f32 0.7978846, %v4536_v12  ;;  %v5836_v13 = vpop.eup %5835 }
0x13fe   : > { %v4559_v59 = vadd.f32 1.0, %v5836_v13 }
0x13ff   : > { %5837 = vtanh.f32 %v4544_v19 }
0x1400   : > { %v4567_v5 = vmul.f32 %v4559_v59, %v4503_v48 }
0x1405   : > { %v5838_v20 = vpop.eup %5837 }
0x1406   : > { %v4560_v47 = vadd.f32 1.0, %v5838_v20 }
0x1408   : > { %v4568_v7 = vmul.f32 %v4560_v47, %v4504_v45 }
0x140a   : > { %v4572_v60 = vpack.c.bf16 %v4568_v7, %v4567_v5 }
0x140c   : > { %4666 = vmatmul.bf16.gmra.mxu3 %v4572_v60 }
0x1414   : > { %v4652_v2 = vpop.f32.mrf.mxu3 }
0x1415   : > { %v4653_v56 = vadd.f32 %v5466_v16, %v4652_v2 }
0x1417   : > { %v4672_v31 = vadd.f32 %v4653_v56, %v7741_v46 }
0x1419   : > { %v4682_v44 = vsel %vm782_vm1, %v4672_v31, 0.0 }
0x141a   : > { %4683 = vadd.xlane.f32.xlu0 %v4682_v44 }
0x141c   : > { %v4654_v21 = vpop.f32.mrf.mxu3 }
0x141d   : > { %v4655_v24 = vadd.f32 %v5466_v16, %v4654_v21 }
0x141f   : > { %v4673_v42 = vadd.f32 %v4655_v24, %v7747_v28 }
0x1421   : > { %v4685_v29 = vsel %vm782_vm1, %v4673_v42, 0.0 }
0x1422   : > { %4686 = vadd.xlane.f32.xlu1 %v4685_v29 }
0x1449   : > { %v4657_v10 = vpop.f32.mrf.mxu3 }
0x144a   : > { %v4658_v43 = vadd.f32 %v5466_v16, %v4657_v10 }
0x144c   : > { %v4674_v49 = vadd.f32 %v4658_v43, %v7755_v52 }
0x144e   : > { %v4688_v57 = vsel %vm782_vm1, %v4674_v49, 0.0 }
0x144f   : > { %4689 = vadd.xlane.f32.xlu2 %v4688_v57 }
0x1451   : > { %v4659_v8 = vpop.f32.mrf.mxu3 }
0x1452   : > { %v4660_v6 = vadd.f32 %v5466_v16, %v4659_v8 }
0x1454   : > { %v4675_v46 = vadd.f32 %v4660_v6, %v7762_v14 }
0x1456   : > { %v4691_v36 = vsel %vm782_vm1, %v4675_v46, 0.0 }
0x1457   : > { %4692 = vadd.xlane.f32.xlu0 %v4691_v36 }
0x1459   : > { %v4662_v51 = vpop.f32.mrf.mxu3 }
0x145a   : > { %v4663_v55 = vadd.f32 %v5466_v16, %v4662_v51 }
0x145c   : > { %v4676_v28 = vadd.f32 %v4663_v55, %v7769_v0 }
0x145e   : > { %v4694_v39 = vsel %vm782_vm1, %v4676_v28, 0.0 }
0x145f   : > { %4695 = vadd.xlane.f32.xlu1 %v4694_v39 }
0x1461   : > { %v4664_v25 = vpop.f32.mrf.mxu3 }
0x1462   : > { %v4665_v40 = vadd.f32 %v5466_v16, %v4664_v25 }
0x1464   : > { %v4677_v52 = vadd.f32 %v4665_v40, %v7776_v38 }
0x1466   : > { %v4697_v27 = vsel %vm782_vm1, %v4677_v52, 0.0 }
0x1467   : > { %4698 = vadd.xlane.f32.xlu2 %v4697_v27 }
0x148d   : > { %v4684_v37 = vpop.xlane.xlu0 %4683 }
0x148e   : > { %v4706_v14 = vmul.f32 %v4684_v37, %v6121_v35 }
0x148f   : > { %v4667_v41 = vpop.f32.mrf.mxu3 }
0x1490   : > { %v7955_v22 = vsub.f32 %v4672_v31, %v4706_v14  ;;  %v4668_v30 = vadd.f32 %v5466_v16, %v4667_v41 }
0x1492   : > { %v4678_v1 = vadd.f32 %v4668_v30, %v7782_v23  ;;  %v4722_v0 = vmul.f32 %v7955_v22, %v7955_v22 }
0x1494   : > { %v4730_v15 = vsel %vm782_vm1, %v4722_v0, 0.0  ;;  %v4700_v32 = vsel %vm782_vm1, %v4678_v1, 0.0 }
0x1495   : > { %4731 = vadd.xlane.f32.xlu2 %v4730_v15  ;;  %4701 = vadd.xlane.f32.xlu0 %v4700_v32  ;;  %v4687_v38 = vpop.xlane.xlu1 %4686 }
0x1496   : > { %v4707_v50 = vmul.f32 %v4687_v38, %v6121_v35 }
0x1497   : > { %v4669_v9 = vpop.f32.mrf.mxu3 }
0x1498   : > { %v7963_v3 = vsub.f32 %v4673_v42, %v4707_v50  ;;  %v4670_v17 = vadd.f32 %v5466_v16, %v4669_v9 }
0x149a   : > { %v4679_v33 = vadd.f32 %v4670_v17, %v7798_v4  ;;  %v4723_v23 = vmul.f32 %v7963_v3, %v7963_v3 }
0x149c   : > { %v4703_v62 = vsel %vm782_vm1, %v4679_v33, 0.0  ;;  %v4733_v63 = vsel %vm782_vm1, %v4723_v23, 0.0 }
0x149d   : > { %4704 = vadd.xlane.f32.xlu1 %v4703_v62  ;;  %4734 = vadd.xlane.f32.xlu0 %v4733_v63 }
0x14c2   : > { %v4690_v58 = vpop.xlane.xlu2 %4689 }
0x14c3   : > { %v4708_v54 = vmul.f32 %v4690_v58, %v6121_v35 }
0x14c5   : > { %v7971_v11 = vsub.f32 %v4674_v49, %v4708_v54 }
0x14c7   : > { %v4724_v26 = vmul.f32 %v7971_v11, %v7971_v11 }
0x14c9   : > { %v4736_v61 = vsel %vm782_vm1, %v4724_v26, 0.0 }
0x14ca   : > { %v4693_v4 = vpop.xlane.xlu0 %4692  ;;  %4737 = vadd.xlane.f32.xlu1 %v4736_v61 }
0x14cb   : > { %v4709_v18 = vmul.f32 %v4693_v4, %v6121_v35 }
0x14cd   : > { %v7977_v53 = vsub.f32 %v4675_v46, %v4709_v18 }
0x14cf   : > { %v4725_v34 = vmul.f32 %v7977_v53, %v7977_v53 }
0x14d1   : > { %v4739_v12 = vsel %vm782_vm1, %v4725_v34, 0.0 }
0x14d2   : > { %4740 = vadd.xlane.f32.xlu2 %v4739_v12  ;;  %v4696_v19 = vpop.xlane.xlu1 %4695 }
0x14d3   : > { %v4710_v13 = vmul.f32 %v4696_v19, %v6121_v35 }
0x14d5   : > { %v7983_v59 = vsub.f32 %v4676_v28, %v4710_v13 }
0x14d7   : > { %v4726_v20 = vmul.f32 %v7983_v59, %v7983_v59 }
0x14d9   : > { %v4742_v48 = vsel %vm782_vm1, %v4726_v20, 0.0 }
0x14da   : > { %v4699_v45 = vpop.xlane.xlu2 %4698  ;;  %4743 = vadd.xlane.f32.xlu0 %v4742_v48 }
0x14db   : > { %v4711_v47 = vmul.f32 %v4699_v45, %v6121_v35 }
0x14dd   : > { %v7989_v5 = vsub.f32 %v4677_v52, %v4711_v47 }
0x14df   : > { %v4727_v7 = vmul.f32 %v7989_v5, %v7989_v5 }
0x14e1   : > { %v4745_v60 = vsel %vm782_vm1, %v4727_v7, 0.0 }
0x14e2   : > { %4746 = vadd.xlane.f32.xlu1 %v4745_v60 }
0x1508   : > { %v4702_v16 = vpop.xlane.xlu0 %4701  ;;  %v4732_v43 = vpop.xlane.xlu2 %4731 }
0x1509   : > { %v4712_v2 = vmul.f32 %v4702_v16, %v6121_v35  ;;  %v4754_v6 = vmul.f32 %v4732_v43, %v6121_v35 }
0x150b   : > { %v7995_v56 = vsub.f32 %v4678_v1, %v4712_v2  ;;  %v4762_v39 = vadd.f32 1e-05, %v4754_v6 }
0x150d   : > { %v4728_v31 = vmul.f32 %v7995_v56, %v7995_v56  ;;  %vm4776_vm5 = vweird.f32 %v4762_v39 }
0x150f   : > { %v4748_v44 = vsel %vm782_vm1, %v4728_v31, 0.0 }
0x1510   : > { %4749 = vadd.xlane.f32.xlu2 %v4748_v44  ;;  %v4705_v21 = vpop.xlane.xlu1 %4704  ;;  %v4735_v49 = vpop.xlane.xlu0 %4734 }
0x1511   : > { %v4713_v24 = vmul.f32 %v4705_v21, %v6121_v35  ;;  %v4755_v8 = vmul.f32 %v4735_v49, %v6121_v35 }
0x1513   : > { %v8001_v42 = vsub.f32 %v4679_v33, %v4713_v24  ;;  %v4763_v51 = vadd.f32 1e-05, %v4755_v8 }
0x1515   : > { %v4729_v29 = vmul.f32 %v8001_v42, %v8001_v42  ;;  %5839 = vrsqrt.f32 %v4763_v51  ;;  %vm4786_vm2 = vweird.f32 %v4763_v51 }
0x1516   : > { %5841 = vrsqrt.f32 %v4762_v39 }
0x1517   : > { %v4751_v10 = vsel %vm782_vm1, %v4729_v29, 0.0 }
0x1518   : > { %4752 = vadd.xlane.f32.xlu0 %v4751_v10 }
0x151b   : > { %v5840_v30 = vpop.eup %5839 }
0x151c   : > { %v8023_v1 = vpop.eup %5841  ;;  %v4781_v15 = vmul.f32 %v5840_v30, %v4763_v51  ;;  %vm4787_vm15 = vweird.f32 %v5840_v30 }
0x151d   : > { %v4771_v38 = vmul.f32 %v8023_v1, %v4762_v39  ;;  %vm4777_vm0 = vweird.f32 %v8023_v1  ;;  %vm8054_vm3 = vmor %vm4786_vm2, %vm4787_vm15 }
0x151e   : > { %v4782_v17 = vmul.f32 %v5840_v30, %v4781_v15  ;;  %vm8062_vm6 = vmor %vm4776_vm5, %vm4777_vm0  ;;  %v5395_v15 = vld [vmem:[%s8198_s20 + $0x8] sm:$0xff] }
0x151f   : > { %v4772_v62 = vmul.f32 %v8023_v1, %v4771_v38  ;;  %4936 = vmatpush.bf16.msrb.mxu2 %v5395_v15 }
0x1520   : > { %v4783_v54 = vmul.f32 0.5, %v4782_v17 }
0x1521   : > { %v4773_v4 = vmul.f32 0.5, %v4772_v62 }
0x1522   : > { %v4784_v12 = vsub.f32 1.5, %v4783_v54 }
0x1523   : > { %v4774_v48 = vsub.f32 1.5, %v4773_v4 }
0x1524   : > { %v4785_v60 = vmul.f32 %v5840_v30, %v4784_v12 }
0x1525   : > { %v4775_v44 = vmul.f32 %v8023_v1, %v4774_v48  ;;  %v5933_v48 = vmov 64.0  }
0x1526   : > { %v4789_v10 = vsel %vm8054_vm3, %v5840_v30, %v4785_v60 }
0x1527   : > { %v4779_v6 = vsel %vm8062_vm6, %v8023_v1, %v4775_v44  ;;  %v4851_v39 = vmul.f32 %v4789_v10, %v7963_v3  ;;  %v8098_v3 = vld [vmem:[%s8196_s18] ss:$0 sm:$0xff] }
0x153d   : > { %v4738_v57 = vpop.xlane.xlu1 %4737 }
0x153e   : > { %v4756_v36 = vmul.f32 %v4738_v57, %v6121_v35 }
0x1540   : > { %v8010_v40 = vadd.f32 1e-05, %v4756_v36 }
0x1542   : > { %5843 = vrsqrt.f32 %v8010_v40  ;;  %vm4796_vm7 = vweird.f32 %v8010_v40 }
0x1545   : > { %v4741_v46 = vpop.xlane.xlu2 %4740 }
0x1546   : > { %v4757_v28 = vmul.f32 %v4741_v46, %v6121_v35 }
0x1548   : > { %v8013_v27 = vadd.f32 1e-05, %v4757_v28  ;;  %v8025_v0 = vpop.eup %5843 }
0x1549   : > { %v4791_v50 = vmul.f32 %v8025_v0, %v8010_v40  ;;  %vm4797_vm4 = vweird.f32 %v8025_v0 }
0x154a   : > { %5845 = vrsqrt.f32 %v8013_v27  ;;  %vm8072_vm9 = vmor %vm4796_vm7, %vm4797_vm4  ;;  %vm4806_vm10 = vweird.f32 %v8013_v27 }
0x154b   : > { %v4792_v63 = vmul.f32 %v8025_v0, %v4791_v50  ;;  %v5394_v50 = vld [vmem:[%s8198_s20] sm:$0xff] }
0x154c   : > { %4937 = vmatpush.bf16.msrb.mxu2 %v5394_v50 }
0x154d   : > { %v4744_v55 = vpop.xlane.xlu0 %4743  ;;  %v4793_v18 = vmul.f32 0.5, %v4792_v63 }
0x154e   : > { %v4758_v52 = vmul.f32 %v4744_v55, %v6121_v35 }
0x154f   : > { %v4794_v47 = vsub.f32 1.5, %v4793_v18 }
0x1550   : > { %v8017_v14 = vadd.f32 1e-05, %v4758_v52  ;;  %v8028_v32 = vpop.eup %5845 }
0x1551   : > { %v4801_v33 = vmul.f32 %v8028_v32, %v8013_v27  ;;  %v4795_v24 = vmul.f32 %v8025_v0, %v4794_v47  ;;  %vm4807_vm8 = vweird.f32 %v8028_v32 }
0x1552   : > { %5847 = vrsqrt.f32 %v8017_v14  ;;  %vm8084_vm12 = vmor %vm4806_vm10, %vm4807_vm8  ;;  %vm4816_vm13 = vweird.f32 %v8017_v14  ;;  %vm4943_vm10 = vcmask 73728  }
0x1553   : > { %v4802_v26 = vmul.f32 %v8028_v32, %v4801_v33  ;;  %v4799_v51 = vsel %vm8072_vm9, %v8025_v0, %v4795_v24 }
0x1555   : > { %v4747_v25 = vpop.xlane.xlu1 %4746  ;;  %v4803_v19 = vmul.f32 0.5, %v4802_v26 }
0x1556   : > { %v4759_v37 = vmul.f32 %v4747_v25, %v6121_v35 }
0x1557   : > { %v4804_v2 = vsub.f32 1.5, %v4803_v19 }
0x1558   : > { %v8020_v41 = vadd.f32 1e-05, %v4759_v37  ;;  %v8033_v9 = vpop.eup %5847  ;;  %v4850_v37 = vmul.f32 %v4779_v6, %v7955_v22  ;;  %v4862_v22 = vmul.f32 %v8098_v3, %v4851_v39 }
0x1559   : > { %v4811_v58 = vmul.f32 %v8033_v9, %v8017_v14  ;;  %v4805_v49 = vmul.f32 %v8028_v32, %v4804_v2  ;;  %vm4817_vm11 = vweird.f32 %v8033_v9  ;;  %v4852_v14 = vmul.f32 %v4799_v51, %v7971_v11 }
0x155a   : > { %5849 = vrsqrt.f32 %v8020_v41  ;;  %vm8102_vm15 = vmor %vm4816_vm13, %vm4817_vm11  ;;  %vm4826_vm0 = vweird.f32 %v8020_v41 }
0x155b   : > { %v4812_v34 = vmul.f32 %v8033_v9, %v4811_v58  ;;  %v4809_v40 = vsel %vm8084_vm12, %v8028_v32, %v4805_v49  ;;  %v4863_v17 = vmul.f32 %v8098_v3, %v4852_v14 }
0x155c   : > { %v4853_v11 = vmul.f32 %v4809_v40, %v7977_v53 }
0x155d   : > { %v4813_v7 = vmul.f32 0.5, %v4812_v34 }
0x155e   : > { %v4864_v63 = vmul.f32 %v8098_v3, %v4853_v11  ;;  %v4914_v11 = vld [vmem:[%s8199_s21] sm:$0x1] }
0x155f   : > { %v4814_v29 = vsub.f32 1.5, %v4813_v7 }
0x1560   : > { %v8037_v23 = vpop.eup %5849 }
0x1561   : > { %v4821_v61 = vmul.f32 %v8037_v23, %v8020_v41  ;;  %v4815_v55 = vmul.f32 %v8033_v9, %v4814_v29  ;;  %vm4827_vm14 = vweird.f32 %v8037_v23  ;;  %v5468_v41 = vld [vmem:[%s8197_s19] ss:$0 sm:$0xff] }
0x1562   : > { %vm4828_vm2 = vmor %vm4826_vm0, %vm4827_vm14  ;;  %v4874_v4 = vadd.f32 %v5468_v41, %v4863_v17  ;;  %v4875_v19 = vadd.f32 %v5468_v41, %v4864_v63 }
0x1563   : > { %v4822_v13 = vmul.f32 %v8037_v23, %v4821_v61  ;;  %v4819_v1 = vsel %vm8102_vm15, %v8033_v9, %v4815_v55  ;;  %v4861_v9 = vmul.f32 %v8098_v3, %v4850_v37 }
0x1564   : > { %v4854_v33 = vmul.f32 %v4819_v1, %v7983_v59  ;;  %v4883_v47 = vsel %vm782_vm1, %v4874_v4, 0.0 }
0x1565   : > { %v4823_v31 = vmul.f32 0.5, %v4822_v13  ;;  %v4872_v61 = vadd.f32 %v5468_v41, %v4861_v9 }
0x1566   : > { %v4865_v18 = vmul.f32 %v8098_v3, %v4854_v33 }
0x1567   : > { %v4824_v57 = vsub.f32 1.5, %v4823_v31  ;;  %v4885_v31 = vsel %vm782_vm1, %v4875_v19, 0.0 }
0x1568   : > { %v4876_v7 = vadd.f32 %v5468_v41, %v4865_v18 }
0x1569   : > { %v4825_v52 = vmul.f32 %v8037_v23, %v4824_v57 }
0x156b   : > { %v4829_v32 = vsel %vm4828_vm2, %v8037_v23, %v4825_v52  ;;  %v4873_v23 = vadd.f32 %v5468_v41, %v4862_v22 }
0x156c   : > { %v4855_v58 = vmul.f32 %v4829_v32, %v7989_v5 }
0x156d   : > { %v4881_v12 = vsel %vm782_vm1, %v4873_v23, 0.0 }
0x156e   : > { %v4866_v13 = vmul.f32 %v8098_v3, %v4855_v58 }
0x1570   : > { %v4877_v44 = vadd.f32 %v5468_v41, %v4866_v13 }
0x1572   : > { %v4889_v57 = vsel %vm782_vm1, %v4877_v44, 0.0 }
0x1583   : > { %v4750_v20 = vpop.xlane.xlu2 %4749 }
0x1584   : > { %v4760_v45 = vmul.f32 %v4750_v20, %v6121_v35 }
0x1586   : > { %v8049_v16 = vadd.f32 1e-05, %v4760_v45  ;;  %v4880_v45 = vsel %vm782_vm1, %v4872_v61, 0.0 }
0x1588   : > { %5851 = vrsqrt.f32 %v8049_v16  ;;  %vm4836_vm4 = vweird.f32 %v8049_v16 }
0x158b   : > { %v4753_v8 = vpop.xlane.xlu0 %4752 }
0x158c   : > { %v4761_v36 = vmul.f32 %v4753_v8, %v6121_v35 }
0x158e   : > { %v5852_v28 = vpop.eup %5851  ;;  %v4769_v35 = vadd.f32 1e-05, %v4761_v36 }
0x158f   : > { %v4831_v27 = vmul.f32 %v5852_v28, %v8049_v16  ;;  %vm4837_vm3 = vweird.f32 %v5852_v28  ;;  %v4882_v16 = vadd.f32 %v4881_v12, %v4880_v45 }
0x1590   : > { %5853 = vrsqrt.f32 %v4769_v35  ;;  %vm4838_vm5 = vmor %vm4836_vm4, %vm4837_vm3  ;;  %vm4846_vm7 = vweird.f32 %v4769_v35 }
0x1591   : > { %v4832_v0 = vmul.f32 %v5852_v28, %v4831_v27  ;;  %5855 = vrcp.f32 %v5933_v48  ;;  %v4884_v21 = vadd.f32 %v4883_v47, %v4882_v16 }
0x1593   : > { %v4833_v38 = vmul.f32 0.5, %v4832_v0  ;;  %v4886_v43 = vadd.f32 %v4885_v31, %v4884_v21 }
0x1595   : > { %v4834_v53 = vsub.f32 1.5, %v4833_v38 }
0x1596   : > { %v5854_v62 = vpop.eup %5853 }
0x1597   : > { %v4835_v54 = vmul.f32 %v5852_v28, %v4834_v53  ;;  %v4841_v26 = vmul.f32 %v5854_v62, %v4769_v35  ;;  %vm4847_vm6 = vweird.f32 %v5854_v62  ;;  %v5856_v10 = vpop.eup %5855 }
0x1598   : > { %vm4848_vm8 = vmor %vm4846_vm7, %vm4847_vm6  ;;  %v4902_v51 = vmul.f32 64.0, %v5856_v10  ;;  %vm4906_vm9 = vweird.f32 %v5856_v10 }
0x1599   : > { %v4839_v34 = vsel %vm4838_vm5, %v5852_v28, %v4835_v54  ;;  %v4842_v59 = vmul.f32 %v5854_v62, %v4841_v26 }
0x159a   : > { %v4856_v20 = vmul.f32 %v4839_v34, %v7995_v56  ;;  %v4887_v56 = vsel %vm782_vm1, %v4876_v7, 0.0  ;;  %v4903_v35 = vsub.f32 1.0, %v4902_v51 }
0x159b   : > { %v4843_v5 = vmul.f32 0.5, %v4842_v59  ;;  %v4888_v6 = vadd.f32 %v4887_v56, %v4886_v43 }
0x159c   : > { %v4867_v60 = vmul.f32 %v8098_v3, %v4856_v20  ;;  %v4904_v27 = vmul.f32 %v5856_v10, %v4903_v35 }
0x159d   : > { %v4844_v2 = vsub.f32 1.5, %v4843_v5  ;;  %v4890_v55 = vadd.f32 %v4889_v57, %v4888_v6 }
0x159e   : > { %v4878_v29 = vadd.f32 %v5468_v41, %v4867_v60 }
0x159f   : > { %v4845_v24 = vmul.f32 %v5854_v62, %v4844_v2 }
0x15a0   : > { %v4891_v46 = vsel %vm782_vm1, %v4878_v29, 0.0 }
0x15a1   : > { %v4849_v49 = vsel %vm4848_vm8, %v5854_v62, %v4845_v24  ;;  %v4892_v39 = vadd.f32 %v4891_v46, %v4890_v55 }
0x15a2   : > { %v4857_v8 = vmul.f32 %v4849_v49, %v8001_v42  ;;  %v4905_v42 = vadd.f32 %v5856_v10, %v4904_v27 }
0x15a4   : > { %v4868_v36 = vmul.f32 %v8098_v3, %v4857_v8  ;;  %v4907_v0 = vsel %vm4906_vm9, %v5856_v10, %v4905_v42 }
0x15a6   : > { %v4879_v28 = vadd.f32 %v5468_v41, %v4868_v36 }
0x15a8   : > { %v4893_v25 = vsel %vm782_vm1, %v4879_v28, 0.0 }
0x15a9   : > { %v4894_v40 = vadd.f32 %v4893_v25, %v4892_v39 }
0x15ab   : > { %v4895_v52 = vrot.slane %v4894_v40, 4 }
0x15ad   : > { %v4896_v37 = vadd.f32 %v4895_v52, %v4894_v40 }
0x15af   : > { %v4897_v14 = vrot.slane %v4896_v37, 2 }
0x15b1   : > { %v4898_v30 = vadd.f32 %v4897_v14, %v4896_v37 }
0x15b3   : > { %v4899_v1 = vrot.slane %v4898_v30, 1 }
0x15b5   : > { %v4900_v3 = vadd.f32 %v4899_v1, %v4898_v30 }
0x15b7   : > { %v4908_v15 = vmul.f32 %v4907_v0, %v4900_v3 }
0x15b9   : > { %v4909_v22 = vpack.c.bf16 %v4908_v15, %v4908_v15 }
0x15bb   : > { %5359 = vmatmul.msk.bf16.vlgmr.msrb.gmra.mxu2 %vm782_vm1, %v4909_v22 }
0x163e   : > { %v4939_v32 = vpop.f32.mrf.mxu2 }
0x163f   : > { %v4940_v38 = vadd.f32 %v4939_v32, %v4914_v11 }
0x1641   : > { %4944 = vst.msk [vmem:[%s675_s5] sm:$0x1] %vm4943_vm10, %v4940_v38 }
0x1642   : > { %5884 = shalt.err (!%p5881_p3)
}
0x1643   : > { %5396 = dma.vmem_to_hbm [thread:$0]  (%p6087_p5), %s4957_s30, 16, %s4959_s24, %s4946_s7  }
0x1646   : > { %v4941_v50 = vpop.f32.mrf.mxu2 }
0x1647 PF: > { %s8281_s1 = sld [smem:[#allocation7_spill]] }
0x1648   : > { %s8282_s2 = sld [smem:[#allocation5_spill]] }
0x164d   : > { %p5402_p4 = scmp.ge.s32.totalorder %s8281_s1, 2 }
0x164e   : > { %s4970_s10 = sand.u32 1, %s8282_s2  }
0x164f   : > { %p5399_p7 = pnand %p5402_p4, %p6091_p6  ;;  %s4971_s4 = scalar_lea.sflag [#allocation3], %s4970_s10 }
0x1651   : > { %p5400_p8 = pneg %p5399_p7 }
0x1653   : > { %5902 = dma.done.wait (%p5400_p8), %s4971_s4, 16  }
0x1654   : > { %5904 = vsyncadd (%p5400_p8), %s4971_s4, 4294967280  ;;  %s8284_s30 = sld [smem:[#allocation8_spill]]  ;;  %s8287_s3 = smov %s5911_s28 }
0x1655   : > { %s8285_s8 = sld [smem:[#allocation6_spill]] }
0x1656   : > { %s8286_s29 = sld [smem:[#allocation9_spill]] }
0x165a   : > { %p32_p9 = scmp.ge.s32.totalorder %s8284_s30, 4  }
0x165b   : > { %s8288_s28 = smov %s8285_s8 }
0x165c   :  { %34 = sbr.rel (!%p32_p9) target bundleno = 15 (0xf), region = 162 }
0x1661   :  { %4976 = vsyncpa [#allocation3], 1 }
0x1662   :  { %4978 = vsyncpa [#allocation3 + $0x1], 1 }

</bundles_post_ra>
